<compile_context>
chip_gen: v7x
topology: tpu7x:2x2x1
jax: 0.10.0
libtpu: 0.0.40
codegen_flags: <defaults>
</compile_context>

<pallas_src>
import functools

import jax
import jax.numpy as jnp
import numpy as np
from jax.experimental import pallas as pl
from jax.experimental.pallas import tpu as pltpu


# -----------------------------------------------------------------------------
# helpers
# -----------------------------------------------------------------------------
def _round_up(v, m):
    return ((v + m - 1) // m) * m


def _bias_layout(hid, out_c):
    """8-row-aligned offsets of the packed bias slab (shared host <-> kernel)."""
    o_b1c = 0
    o_b2c = o_b1c + _round_up(2 * hid, 8)
    o_b13 = o_b2c + _round_up(2 * out_c, 8)
    o_b23 = o_b13 + _round_up(hid, 8)
    total = o_b23 + _round_up(out_c, 8)
    return o_b1c, o_b2c, o_b13, o_b23, total


def _device_tile_caps():
    """(max voxel-tile width, vmem_limit_bytes) per TPU generation."""
    try:
        kind = jax.devices()[0].device_kind.lower()
    except Exception:  # pragma: no cover - defensive
        kind = ""
    if "v7" in kind:
        return 16384, 48 * 1024 * 1024     # 64 MiB physical VMEM per TC
    return 32768, 96 * 1024 * 1024         # v5e / v6e: 128 MiB physical VMEM


def _pick_tile(n_vox, cap):
    """Largest lane-dense tile <= cap that avoids padding when possible."""
    if n_vox <= cap:
        return n_vox, n_vox                # one full-width tile, no padding
    t = (cap // 128) * 128
    while t >= 128:
        if n_vox % t == 0:
            return t, n_vox
        t -= 128
    t = (cap // 128) * 128                 # no divisor found: pad (rare)
    return t, _round_up(n_vox, t)


def _sinusoidal_emb(t, dim):
    half = dim // 2
    freqs = jnp.exp(-jnp.log(10000.0) * jnp.arange(half, dtype=jnp.float32) / half)
    ang = jnp.float32(t) * freqs
    return jnp.concatenate([jnp.sin(ang), jnp.cos(ang)]).astype(jnp.float32)


# -----------------------------------------------------------------------------
# Fused Pallas kernel: both 2D denoisers + model_3D ensemble net + combine
# -----------------------------------------------------------------------------
def _fused_ensemble_kernel(x_ref, w1_ref, w2bd_ref, w1o23_ref, w23_ref, b_ref,
                           out_ref, *, hid, out_c):
    """Layout: channels on sublanes, voxels on lanes. Per voxel column:
       out2  = tanh(W2_2 relu(W1_2 x + b1_2 + temb2) + b2_2)
       out3  = tanh(W2_3 relu(W1_3 x + b1_3 + temb2) + b2_3)
       ew    = sigmoid(W2_3d relu(W1_3d [x;out2;out3] + b1_3d + temb3d) + b2_3d)
       out   = ew * out2 + (1 - ew) * out3
    """
    hid2 = 2 * hid
    o_b1c, o_b2c, o_b13, o_b23, _ = _bias_layout(hid, out_c)

    x = x_ref[...].astype(jnp.bfloat16)                                # (c, T)

    # One MXU pass for all three first layers: [W1_2^T;W1_3^T;W1_3d_x^T] @ x
    z = jnp.dot(w1_ref[...], x, preferred_element_type=jnp.float32)    # (3*hid, T)

    b1c = b_ref[o_b1c:o_b1c + hid2, :]                                 # (2*hid, 1)
    h = jnp.maximum(z[:hid2, :] + b1c, 0.0).astype(jnp.bfloat16)       # (2*hid, T)
    gx = z[hid2:, :]                                                   # (hid, T) f32

    # Both 2D denoiser heads in a single block-diagonal matmul -> tanh
    b2c = b_ref[o_b2c:o_b2c + 2 * out_c, :]
    o23 = jnp.tanh(
        jnp.dot(w2bd_ref[...], h, preferred_element_type=jnp.float32) + b2c
    )                                                                   # (2*out_c, T)
    out2 = o23[:out_c, :]
    out3 = o23[out_c:, :]

    # model_3D ensemble weight; channel-concat folded into the weights.
    b13 = b_ref[o_b13:o_b13 + hid, :]
    g = gx + jnp.dot(w1o23_ref[...], o23.astype(jnp.bfloat16),
                     preferred_element_type=jnp.float32)                # (hid, T)
    g = jnp.maximum(g + b13, 0.0).astype(jnp.bfloat16)

    b23 = b_ref[o_b23:o_b23 + out_c, :]
    logit = jnp.dot(w23_ref[...], g, preferred_element_type=jnp.float32) + b23
    ew = pl.reciprocal(1.0 + jnp.exp(-logit), approx=True)              # sigmoid (EUP)

    out_ref[...] = out3 + ew * (out2 - out3)                            # lane-dense store


# -----------------------------------------------------------------------------
# pallas_call wrapper
# -----------------------------------------------------------------------------
def fused_ensemble(x3, w1all, w2bd, w1o23, w23, bias, *, hid, out_c):
    """x3: (b, c, n_vox) f32 (channels on sublanes, voxels on lanes)."""
    b, c, n_vox = x3.shape
    tile_cap, vmem_limit = _device_tile_caps()
    tile_m, n_pad = _pick_tile(n_vox, tile_cap)
    if n_pad != n_vox:
        x3 = jnp.pad(x3, ((0, 0), (0, 0), (0, n_pad - n_vox)))
    grid = (b, n_pad // tile_m)

    def _rep(shape):  # small weight/bias arrays, resident across all grid steps
        return pl.BlockSpec(shape, lambda bi, vi: tuple(0 for _ in shape))

    kernel = functools.partial(_fused_ensemble_kernel, hid=hid, out_c=out_c)
    return pl.pallas_call(
        kernel,
        out_shape=jax.ShapeDtypeStruct((b, out_c, n_pad), jnp.float32),
        grid_spec=pltpu.PrefetchScalarGridSpec(
            num_scalar_prefetch=0,
            grid=grid,
            in_specs=[
                pl.BlockSpec((pl.Squeezed(), c, tile_m),
                             lambda bi, vi: (bi, 0, vi)),      # x (f32, cast in-kernel)
                _rep(w1all.shape),        # [W1_2^T ; W1_3^T ; W1_3d_x^T]   bf16
                _rep(w2bd.shape),         # block-diag [W2_2^T, W2_3^T]     bf16
                _rep(w1o23.shape),        # W1_3d^T cols for [out2;out3]    bf16
                _rep(w23.shape),          # W2_3d^T                         bf16
                _rep(bias.shape),         # packed biases (+ time embeddings) f32
            ],
            out_specs=pl.BlockSpec((pl.Squeezed(), out_c, tile_m),
                                   lambda bi, vi: (bi, 0, vi)),
        ),
        compiler_params=pltpu.CompilerParams(
            dimension_semantics=("parallel", "parallel"),
            vmem_limit_bytes=vmem_limit,
        ),
    )(x3, w1all, w2bd, w1o23, w23, bias)


# -----------------------------------------------------------------------------
# model_ensemble forward (baseline='3D')
# -----------------------------------------------------------------------------
@functools.partial(
    jax.jit,
    static_argnames=("timesteps", "out_c", "time_step", "ntime_steps_2D",
                     "batch_size_2D_inference"),
)
def model_ensemble_forward(x, timesteps, params, *, out_c=1, time_step=1000,
                           ntime_steps_2D=1000, batch_size_2D_inference=8):
    """x: (b, c, d, h, w) NCDHW f32; timesteps: python int (== .item())."""
    b, c, d, hh, ww = x.shape
    hid = params["m2"]["w1"].shape[1]
    n_vox = d * hh * ww

    # t_2D = int(t / time_step * ntime_steps_2D) -- scalar, shared by both 2D nets
    t2d = int(timesteps / time_step * ntime_steps_2D)
    temb2 = _sinusoidal_emb(t2d, hid)                      # (hid,)
    temb3d = _sinusoidal_emb(timesteps, hid)               # (hid,)

    p2, p3, p3d = params["m2"], params["m3"], params["m3d"]

    # ---- host-side weight packing (transposed; temb folded into biases) ----
    w1all = jnp.concatenate([p2["w1"].T, p3["w1"].T, p3d["w1"][:c].T],
                            axis=0).astype(jnp.bfloat16)             # (3*hid, c)
    w2bd = (jnp.zeros((2 * out_c, 2 * hid), jnp.float32)
            .at[:out_c, :hid].set(p2["w2"].T)
            .at[out_c:, hid:].set(p3["w2"].T)).astype(jnp.bfloat16)  # (2*out_c, 2*hid)
    w1o23 = jnp.concatenate([p3d["w1"][c:c + out_c].T,
                             p3d["w1"][c + out_c:].T],
                            axis=1).astype(jnp.bfloat16)             # (hid, 2*out_c)
    w23 = p3d["w2"].T.astype(jnp.bfloat16)                           # (out_c, hid)

    o_b1c, o_b2c, o_b13, o_b23, rows = _bias_layout(hid, out_c)
    bias = jnp.zeros((rows, 1), jnp.float32)
    bias = bias.at[o_b1c:o_b1c + hid, 0].set(p2["b1"][0] + temb2)
    bias = bias.at[o_b1c + hid:o_b1c + 2 * hid, 0].set(p3["b1"][0] + temb2)
    bias = bias.at[o_b2c:o_b2c + out_c, 0].set(p2["b2"][0])
    bias = bias.at[o_b2c + out_c:o_b2c + 2 * out_c, 0].set(p3["b2"][0])
    bias = bias.at[o_b13:o_b13 + hid, 0].set(p3d["b1"][0] + temb3d)
    bias = bias.at[o_b23:o_b23 + out_c, 0].set(p3d["b2"][0])

    # NOTE: the per-chunk (batch_size_2D_inference) loops and the separate H-/W-
    # slice orderings of the original are subsumed by grid tiling over voxels --
    # semantically identical only because the synthetic denoisers are point-wise.
    x3 = x.reshape(b, c, n_vox)                            # free reshape, no HBM copy

    out3d = fused_ensemble(x3, w1all, w2bd, w1o23, w23, bias, hid=hid, out_c=out_c)

    return out3d[:, :, :n_vox].reshape(b, out_c, d, hh, ww)


# -----------------------------------------------------------------------------
# pure-JAX reference (f32 end-to-end) for the self-test
# -----------------------------------------------------------------------------
def _reference_forward(x, timesteps, params, *, out_c, time_step, ntime_steps_2D):
    b, c, d, hh, ww = x.shape
    hid = params["m2"]["w1"].shape[1]
    t2d = int(timesteps / time_step * ntime_steps_2D)
    temb2 = _sinusoidal_emb(t2d, hid)
    temb3d = _sinusoidal_emb(timesteps, hid)
    xv = x.transpose(0, 2, 3, 4, 1).reshape(-1, c)         # (N, c)

    def mlp(p, inp, temb, act):
        h1 = jnp.maximum(inp @ p["w1"] + p["b1"] + temb, 0.0)
        return act(h1 @ p["w2"] + p["b2"])

    out2 = mlp(params["m2"], xv, temb2, jnp.tanh)
    out3 = mlp(params["m3"], xv, temb2, jnp.tanh)
    ew = mlp(params["m3d"], jnp.concatenate([xv, out2, out3], axis=1),
             temb3d, jax.nn.sigmoid)
    out = ew * out2 + (1.0 - ew) * out3                    # (N, out_c)
    return out.reshape(b, d, hh, ww, out_c).transpose(0, 4, 1, 2, 3)


# -----------------------------------------------------------------------------
# deterministic parameter init (synthetic stand-ins for the diffusion UNets)
# -----------------------------------------------------------------------------
def _init_mlp(key, cin, hid, cout):
    k1, k2 = jax.random.split(key)
    return {
        "w1": (0.2 * jax.random.normal(k1, (cin, hid))).astype(jnp.float32),
        "b1": jnp.zeros((1, hid), jnp.float32),
        "w2": (0.2 * jax.random.normal(k2, (hid, cout))).astype(jnp.float32),
        "b2": jnp.zeros((1, cout), jnp.float32),
    }


def init_all_params(key, c, hidden, out_c):
    k2, k3, k3d = jax.random.split(key, 3)
    return {
        "m2": _init_mlp(k2, c, hidden, out_c),                 # model2D_2.netG denoiser
        "m3": _init_mlp(k3, c, hidden, out_c),                 # model2D_3.netG denoiser
        "m3d": _init_mlp(k3d, c + 2 * out_c, hidden, out_c),   # model_3D ensemble net
    }


# TODO(synk): the real model2D_* / model_3D are full diffusion UNets (spatial
# convs, per-slice chunked inference, internal time MLPs) passed in at
# construction time; they are replaced here by synthetic point-wise denoisers,
# which is what makes the single-pass fused kernel exactly equivalent. Only the
# baseline='3D' branch is implemented.

if __name__ == "__main__":
    key = jax.random.PRNGKey(0)
    kx, kp = jax.random.split(key)

    b, c, d, hh, ww = 2, 4, 16, 16, 16
    out_c = 1
    hidden = 64                      # matches self.featue_c = 64

    x = jax.random.normal(kx, (b, c, d, hh, ww), dtype=jnp.float32)
    timesteps = 500                  # corresponds to timesteps.item()
    params = init_all_params(kp, c, hidden, out_c)

    out = model_ensemble_forward(
        x, timesteps, params,
        out_c=out_c, time_step=1000, ntime_steps_2D=1000,
        batch_size_2D_inference=8,
    )
    out = jax.block_until_ready(out)
    assert out.shape == (b, out_c, d, hh, ww), out.shape
    assert out.dtype == jnp.float32

    ref = _reference_forward(x, timesteps, params, out_c=out_c,
                             time_step=1000, ntime_steps_2D=1000)
    np.testing.assert_allclose(np.asarray(out), np.asarray(ref), atol=5e-2, rtol=0)
    print("KERNEL_OK")
</pallas_src>

<mosaic_0001>
module attributes {stable_mosaic.version = 11 : i64} {
  func.func @_fused_ensemble_kernel(%arg0: i32, %arg1: i32, %arg2: memref<1x4x4096xf32, #tpu.memory_space<vmem>>, %arg3: memref<192x4xbf16, #tpu.memory_space<vmem>>, %arg4: memref<2x128xbf16, #tpu.memory_space<vmem>>, %arg5: memref<64x2xbf16, #tpu.memory_space<vmem>>, %arg6: memref<1x64xbf16, #tpu.memory_space<vmem>>, %arg7: memref<208x1xf32, #tpu.memory_space<vmem>>, %arg8: memref<1x1x4096xf32, #tpu.memory_space<vmem>>) attributes {dimension_semantics = [#tpu.dimension_semantics<parallel>, #tpu.dimension_semantics<parallel>], iteration_bounds = array<i64: 2, 1>, scalar_prefetch = 0 : i64, scratch_operands = 0 : i64, tpu.core_type = #tpu.core_type<tc>, window_params = [{transform_indices = @transform_0, window_bounds = array<i64: 1, 4, 4096>}, {pipeline_mode = #tpu.pipeline_mode<synchronous>, transform_indices = @transform_1, window_bounds = array<i64: 192, 4>}, {pipeline_mode = #tpu.pipeline_mode<synchronous>, transform_indices = @transform_2, window_bounds = array<i64: 2, 128>}, {pipeline_mode = #tpu.pipeline_mode<synchronous>, transform_indices = @transform_3, window_bounds = array<i64: 64, 2>}, {pipeline_mode = #tpu.pipeline_mode<synchronous>, transform_indices = @transform_4, window_bounds = array<i64: 1, 64>}, {pipeline_mode = #tpu.pipeline_mode<synchronous>, transform_indices = @transform_5, window_bounds = array<i64: 208, 1>}, {transform_indices = @transform_6, window_bounds = array<i64: 1, 1, 4096>}]} {
    %c0 = arith.constant 0 : index
    %c0_0 = arith.constant 0 : index
    %c0_1 = arith.constant 0 : index
    %0 = vector.load %arg2[%c0, %c0_0, %c0_1] : memref<1x4x4096xf32, #tpu.memory_space<vmem>>, vector<1x4x4096xf32>
    %1 = vector.shape_cast %0 : vector<1x4x4096xf32> to vector<4x4096xf32>
    %2 = arith.truncf %1 : vector<4x4096xf32> to vector<4x4096xbf16>
    %c0_2 = arith.constant 0 : index
    %c0_3 = arith.constant 0 : index
    %3 = vector.load %arg3[%c0_2, %c0_3] : memref<192x4xbf16, #tpu.memory_space<vmem>>, vector<192x4xbf16>
    %cst = arith.constant dense<0.000000e+00> : vector<192x4096xf32>
    %4 = tpu.matmul %3, %2, %cst {dimension_numbers = #tpu.dot_dimension_numbers<[1], [0], [0], [1], [0, 0, 1, 1], [], []>} : vector<192x4xbf16>, vector<4x4096xbf16>, vector<192x4096xf32> -> vector<192x4096xf32>
    %c0_4 = arith.constant 0 : index
    %c0_5 = arith.constant 0 : index
    %5 = vector.load %arg7[%c0_4, %c0_5] : memref<208x1xf32, #tpu.memory_space<vmem>>, vector<128x1xf32>
    %6 = vector.extract_strided_slice %4 {offsets = [0, 0], sizes = [128, 4096], strides = [1, 1]} : vector<192x4096xf32> to vector<128x4096xf32>
    %7 = vector.broadcast %5 : vector<128x1xf32> to vector<128x4096xf32>
    %8 = arith.addf %6, %7 : vector<128x4096xf32>
    %cst_6 = arith.constant 0.000000e+00 : f32
    %9 = vector.broadcast %cst_6 : f32 to vector<128x4096xf32>
    %10 = arith.maximumf %8, %9 : vector<128x4096xf32>
    %11 = arith.truncf %10 : vector<128x4096xf32> to vector<128x4096xbf16>
    %12 = vector.extract_strided_slice %4 {offsets = [128, 0], sizes = [64, 4096], strides = [1, 1]} : vector<192x4096xf32> to vector<64x4096xf32>
    %c128 = arith.constant 128 : index
    %c0_7 = arith.constant 0 : index
    %13 = vector.load %arg7[%c128, %c0_7] : memref<208x1xf32, #tpu.memory_space<vmem>>, vector<2x1xf32>
    %c0_8 = arith.constant 0 : index
    %c0_9 = arith.constant 0 : index
    %14 = vector.load %arg4[%c0_8, %c0_9] : memref<2x128xbf16, #tpu.memory_space<vmem>>, vector<2x128xbf16>
    %cst_10 = arith.constant dense<0.000000e+00> : vector<2x4096xf32>
    %15 = tpu.matmul %14, %11, %cst_10 {dimension_numbers = #tpu.dot_dimension_numbers<[1], [0], [0], [1], [0, 0, 1, 1], [], []>} : vector<2x128xbf16>, vector<128x4096xbf16>, vector<2x4096xf32> -> vector<2x4096xf32>
    %16 = vector.broadcast %13 : vector<2x1xf32> to vector<2x4096xf32>
    %17 = arith.addf %15, %16 : vector<2x4096xf32>
    %18 = math.tanh %17 : vector<2x4096xf32>
    %19 = vector.extract_strided_slice %18 {offsets = [0, 0], sizes = [1, 4096], strides = [1, 1]} : vector<2x4096xf32> to vector<1x4096xf32>
    %20 = vector.extract_strided_slice %18 {offsets = [1, 0], sizes = [1, 4096], strides = [1, 1]} : vector<2x4096xf32> to vector<1x4096xf32>
    %c136 = arith.constant 136 : index
    %c0_11 = arith.constant 0 : index
    %21 = vector.load %arg7[%c136, %c0_11] : memref<208x1xf32, #tpu.memory_space<vmem>>, vector<64x1xf32>
    %c0_12 = arith.constant 0 : index
    %c0_13 = arith.constant 0 : index
    %22 = vector.load %arg5[%c0_12, %c0_13] : memref<64x2xbf16, #tpu.memory_space<vmem>>, vector<64x2xbf16>
    %23 = arith.truncf %18 : vector<2x4096xf32> to vector<2x4096xbf16>
    %cst_14 = arith.constant dense<0.000000e+00> : vector<64x4096xf32>
    %24 = tpu.matmul %22, %23, %cst_14 {dimension_numbers = #tpu.dot_dimension_numbers<[1], [0], [0], [1], [0, 0, 1, 1], [], []>} : vector<64x2xbf16>, vector<2x4096xbf16>, vector<64x4096xf32> -> vector<64x4096xf32>
    %25 = arith.addf %12, %24 : vector<64x4096xf32>
    %26 = vector.broadcast %21 : vector<64x1xf32> to vector<64x4096xf32>
    %27 = arith.addf %25, %26 : vector<64x4096xf32>
    %cst_15 = arith.constant 0.000000e+00 : f32
    %28 = vector.broadcast %cst_15 : f32 to vector<64x4096xf32>
    %29 = arith.maximumf %27, %28 : vector<64x4096xf32>
    %30 = arith.truncf %29 : vector<64x4096xf32> to vector<64x4096xbf16>
    %c200 = arith.constant 200 : index
    %c0_16 = arith.constant 0 : index
    %31 = vector.load %arg7[%c200, %c0_16] : memref<208x1xf32, #tpu.memory_space<vmem>>, vector<1x1xf32>
    %c0_17 = arith.constant 0 : index
    %c0_18 = arith.constant 0 : index
    %32 = vector.load %arg6[%c0_17, %c0_18] : memref<1x64xbf16, #tpu.memory_space<vmem>>, vector<1x64xbf16>
    %cst_19 = arith.constant dense<0.000000e+00> : vector<1x4096xf32>
    %33 = tpu.matmul %32, %30, %cst_19 {dimension_numbers = #tpu.dot_dimension_numbers<[1], [0], [0], [1], [0, 0, 1, 1], [], []>} : vector<1x64xbf16>, vector<64x4096xbf16>, vector<1x4096xf32> -> vector<1x4096xf32>
    %34 = vector.broadcast %31 : vector<1x1xf32> to vector<1x4096xf32>
    %35 = arith.addf %33, %34 : vector<1x4096xf32>
    %cst_20 = arith.constant 0.000000e+00 : f32
    %36 = vector.broadcast %cst_20 : f32 to vector<1x4096xf32>
    %37 = arith.subf %36, %35 : vector<1x4096xf32>
    %38 = math.exp %37 : vector<1x4096xf32>
    %cst_21 = arith.constant 1.000000e+00 : f32
    %39 = vector.broadcast %cst_21 : f32 to vector<1x4096xf32>
    %40 = arith.addf %39, %38 : vector<1x4096xf32>
    %41 = tpu.reciprocal %40 {approx = true} : vector<1x4096xf32> -> vector<1x4096xf32>
    %42 = arith.subf %19, %20 : vector<1x4096xf32>
    %43 = arith.mulf %41, %42 : vector<1x4096xf32>
    %44 = arith.addf %20, %43 : vector<1x4096xf32>
    %c0_22 = arith.constant 0 : index
    %c0_23 = arith.constant 0 : index
    %c0_24 = arith.constant 0 : index
    %45 = vector.load %arg8[%c0_22, %c0_23, %c0_24] : memref<1x1x4096xf32, #tpu.memory_space<vmem>>, vector<1x1x4096xf32>
    %46 = vector.shape_cast %45 : vector<1x1x4096xf32> to vector<1x4096xf32>
    %47 = vector.shape_cast %44 : vector<1x4096xf32> to vector<1x1x4096xf32>
    tpu.vector_store %arg8[%c0_22, %c0_23, %c0_24], %47 {strides = array<i32>} : memref<1x1x4096xf32, #tpu.memory_space<vmem>>, vector<1x1x4096xf32>,
    return
  }
  func.func @transform_0(%arg0: i32, %arg1: i32) -> (i32, i32, i32) {
    %c0_i32 = arith.constant 0 : i32
    %c0_i32_0 = arith.constant 0 : i32
    return %arg0, %c0_i32, %arg1 : i32, i32, i32
  }
  func.func @transform_1(%arg0: i32, %arg1: i32) -> (i32, i32) {
    %c0_i32 = arith.constant 0 : i32
    %c0_i32_0 = arith.constant 0 : i32
    %c0_i32_1 = arith.constant 0 : i32
    return %c0_i32, %c0_i32_0 : i32, i32
  }
  func.func @transform_2(%arg0: i32, %arg1: i32) -> (i32, i32) {
    %c0_i32 = arith.constant 0 : i32
    %c0_i32_0 = arith.constant 0 : i32
    %c0_i32_1 = arith.constant 0 : i32
    return %c0_i32, %c0_i32_0 : i32, i32
  }
  func.func @transform_3(%arg0: i32, %arg1: i32) -> (i32, i32) {
    %c0_i32 = arith.constant 0 : i32
    %c0_i32_0 = arith.constant 0 : i32
    %c0_i32_1 = arith.constant 0 : i32
    return %c0_i32, %c0_i32_0 : i32, i32
  }
  func.func @transform_4(%arg0: i32, %arg1: i32) -> (i32, i32) {
    %c0_i32 = arith.constant 0 : i32
    %c0_i32_0 = arith.constant 0 : i32
    %c0_i32_1 = arith.constant 0 : i32
    return %c0_i32, %c0_i32_0 : i32, i32
  }
  func.func @transform_5(%arg0: i32, %arg1: i32) -> (i32, i32) {
    %c0_i32 = arith.constant 0 : i32
    %c0_i32_0 = arith.constant 0 : i32
    %c0_i32_1 = arith.constant 0 : i32
    return %c0_i32, %c0_i32_0 : i32, i32
  }
  func.func @transform_6(%arg0: i32, %arg1: i32) -> (i32, i32, i32) {
    %c0_i32 = arith.constant 0 : i32
    %c0_i32_0 = arith.constant 0 : i32
    return %arg0, %c0_i32, %arg1 : i32, i32, i32
  }
}

</mosaic_0001>

<bundles_post_ra>
// kernel: model_ensemble_forward.1
= control target key start
LH: loop header
LB: loop body
LE: loop exit
PB: predicated region body
PF: predicated region fallthrough
CT: control target
= control target key end

     0   :  { %s13591_s0 = inlined_call_operand.hbm [shape: f32[2,4,4096], index: 0, kind: input, shape index: {}]   ;;  %s13592_s1 = inlined_call_operand.hbm [shape: bf16[192,4], index: 1, kind: input, shape index: {}]   ;;  %s13593_s2 = inlined_call_operand.hbm [shape: bf16[2,128], index: 2, kind: input, shape index: {}]   ;;  %s13594_s3 = inlined_call_operand.hbm [shape: bf16[64,2], index: 3, kind: input, shape index: {}]   ;;  %s13595_s4 = inlined_call_operand.hbm [shape: bf16[1,64], index: 4, kind: input, shape index: {}]   ;;  %s13596_s5 = inlined_call_operand.hbm [shape: f32[208,1], index: 5, kind: input, shape index: {}]   ;;  %s13597_s6 = inlined_call_operand.hbm [shape: f32[2,1,4096], index: 6, kind: output, shape index: {}]  }
   0x1   :  { %13613 = sst [smem:[#allocation154_spill]] %s13592_s1 }
   0x2   :  { %11 = vsyncpa [#allocation3], 0 }
   0x3   :  { %13 = vsyncpa [#allocation3 + $0x1], 0 }
   0x4   :  { %14 = vsyncpa [#allocation6], 0 }
   0x5   :  { %15 = vsyncpa [#allocation9], 0 }
   0x6   :  { %16 = vsyncpa [#allocation12], 0 }
   0x7   :  { %17 = vsyncpa [#allocation4], 0 }
   0x8   :  { %19 = vsyncpa [#allocation4 + $0x1], 0  ;;  %s10268_s21 = smov 0   ;;  %s10270_s22 = smov 0  }
   0x9   :  { %s10272_s23 = smov 0   ;;  %s10274_s24 = smov 0  }
   0xa   :  { %s10276_s25 = smov 0   ;;  %s10278_s26 = smov 0  }
   0xb LB: > { %s13598_s27 = sadd.s32 4294967295, %s10218_s26   ;;  %p8975_p0 = scmp.ge.s32.totalorder %s10218_s26, 1  ;;  %s10218_s26 = sphi %s10278_s26, %s25_s26   ;;  %s10214_s25 = sphi %s10276_s25, %s14002_s25   ;;  %s10210_s24 = sphi %s10274_s24, %s14001_s24   ;;  %s10206_s23 = sphi %s10272_s23, %s14000_s23   ;;  %s10202_s22 = sphi %s10270_s22, %s13999_s22   ;;  %s10198_s21 = sphi %s10268_s21, %s13998_s21  }
   0xc   : > { %p10302_p1 = scmp.eq.s32.totalorder %s13598_s27, 0  ;;  %p203_p2 = scmp.lt.s32.totalorder %s10218_s26, 3 }
   0xd   : > { %s10220_s30 = smov [#allocation5]   ;;  %s10221_s9 = smov [#allocation8]  }
   0xe   : > { %s13614_s28 = scalar_select %p10302_p1, 1, 0 }
   0xf   : > { %p10307_p3 = pnand %p8975_p0, %p203_p2  ;;  %s215_s7 = sshll.u32 %s10220_s30, 4  ;;  %s10311_s7 = int_to_ptr.vmem [resolvable:$true] %s215_s7 }
  0x10   : > { %s239_s10 = sshll.u32 %s10221_s9, 4  ;;  %s10222_s11 = smov [#allocation7]   ;;  %s10322_s10 = int_to_ptr.vmem [resolvable:$true] %s239_s10 }
  0x11   : > { %s13615_s29 = scalar_select %p10307_p3, 1, 0 }
  0x12   : > { %p9600_p4 = pneg %p10307_p3  ;;  %s10324_s12 = sshll.u32 %s10222_s11, 4  ;;  %s230_s12 = int_to_ptr.vmem [resolvable:$true] %s10324_s12 }
  0x13   : > { %s13617_s1 = sld [smem:[#allocation154_spill]] }
  0x14   : > { %p10318_p6 = pnand %p9600_p4, %p10302_p1 }
  0x16   : > { %p10334_p8 = pneg %p10318_p6 }
  0x19   : > { %s9954_s15 = scalar_lea.hbm %s13617_s1, 1536 }
  0x1a   : > { %p9955_p7 = scmp.ne.s32.totalorder %s13617_s1, %s9954_s15  ;;  %p9961_p11 = scmp.lt.u32.totalorder %s9954_s15, %s13617_s1 }
  0x1c   : > { %p9957_p9 = pnand %p10334_p8, %p9955_p7 }
  0x1e   : > { %p9958_p10 = pneg %p9957_p9 }
  0x20   : > { %p9963_p12 = pnand %p9961_p11, %p9958_p10 }
  0x22   : > { %9966 = shalt.err (!%p9963_p12)
}
  0x23   : > { %s9967_s30 = scalar_lea.vmem %s10311_s7, 1536  ;;  %p9975_p4 = scmp.lt.s32.totalorder %s10311_s7, %s10311_s7 }
  0x24   : > { %p9968_p13 = scmp.ne.s32.totalorder %s10311_s7, %s9967_s30  ;;  %p9976_p5 = scmp.lt.s32.totalorder %s9967_s30, %s9967_s30 }
  0x26   : > { %p9970_p0 = pnand %p9968_p13, %p10334_p8  ;;  %p9977_p7 = por %p9976_p5, %p9975_p4 }
  0x28   : > { %p9971_p2 = pneg %p9970_p0 }
  0x2a   : > { %p9978_p9 = pnand %p9977_p7, %p9971_p2 }
  0x2c   : > { %9981 = shalt.err (!%p9978_p9)
}
  0x2d   : > { %s10223_s9 = smov 64   ;;  %s10224_s11 = smov 4  }
  0x2e   : > { %9603 = dma.hbm_to_vmem [thread:$0]  (!%p10318_p6), %s13617_s1, 1536, %s10311_s7, [#allocation6], %s10223_s9, %s10223_s9, %s10224_s11  }
  0x2f   : > { %s9982_s17 = scalar_lea.hbm %s13594_s3, 512 }
  0x30   : > { %p9983_p5 = scmp.ne.s32.totalorder %s13594_s3, %s9982_s17  ;;  %p9989_p12 = scmp.lt.u32.totalorder %s9982_s17, %s13594_s3 }
  0x32   : > { %p9985_p10 = pnand %p9983_p5, %p10334_p8 }
  0x34   : > { %p9986_p11 = pneg %p9985_p10 }
  0x36   : > { %p9991_p13 = pnand %p9989_p12, %p9986_p11 }
  0x38   : > { %9994 = shalt.err (!%p9991_p13)
}
  0x39   : > { %s9995_s7 = scalar_lea.vmem %s10322_s10, 512  ;;  %p10003_p7 = scmp.lt.s32.totalorder %s10322_s10, %s10322_s10 }
  0x3a   : > { %p9996_p0 = scmp.ne.s32.totalorder %s10322_s10, %s9995_s7  ;;  %p10004_p9 = scmp.lt.s32.totalorder %s9995_s7, %s9995_s7 }
  0x3c   : > { %p9998_p2 = pnand %p9996_p0, %p10334_p8  ;;  %p10005_p5 = por %p10004_p9, %p10003_p7 }
  0x3e   : > { %p9999_p4 = pneg %p9998_p2 }
  0x40   : > { %p10006_p10 = pnand %p10005_p5, %p9999_p4 }
  0x42   : > { %10009 = shalt.err (!%p10006_p10)
}
  0x43   : > { %9609 = dma.hbm_to_vmem [thread:$0]  (!%p10318_p6), %s13594_s3, 512, %s10322_s10, [#allocation9], %s10223_s9, %s10223_s9, %s10224_s11  }
  0x44   : > { %s10010_s16 = scalar_lea.hbm %s13593_s2, 16 }
  0x45   : > { %p10011_p11 = scmp.ne.s32.totalorder %s13593_s2, %s10010_s16  ;;  %p10017_p0 = scmp.lt.u32.totalorder %s10010_s16, %s13593_s2 }
  0x47   : > { %p10013_p12 = pnand %p10011_p11, %p10334_p8 }
  0x49   : > { %p10014_p13 = pneg %p10013_p12 }
  0x4b   : > { %p10019_p2 = pnand %p10017_p0, %p10014_p13 }
  0x4d   : > { %10022 = shalt.err (!%p10019_p2)
}
  0x4e   : > { %s10023_s7 = scalar_lea.vmem %s230_s12, 16  ;;  %s10030_s10 = scalar_lea.vmem %s230_s12, 32 }
  0x4f   : > { %p10024_p4 = scmp.ne.s32.totalorder %s230_s12, %s10023_s7  ;;  %p10031_p5 = scmp.lt.s32.totalorder %s230_s12, %s230_s12 }
  0x50   : > { %p10032_p10 = scmp.lt.s32.totalorder %s10030_s10, %s10023_s7 }
  0x51   : > { %p10026_p7 = pnand %p10024_p4, %p10334_p8 }
  0x52   : > { %p10033_p3 = por %p10032_p10, %p10031_p5 }
  0x53   : > { %p10027_p9 = pneg %p10026_p7 }
  0x55   : > { %p10034_p1 = pnand %p10033_p3, %p10027_p9 }
  0x57   : > { %10037 = shalt.err (!%p10034_p1)
}
  0x58   : > { %9606 = dma.hbm_to_vmem [thread:$0]  (!%p10318_p6), %s13593_s2, 16, %s230_s12, [#allocation6]  }
  0x59   : > { %s10225_s27 = smov [#allocation10]   ;;  %s10226_s14 = smov [#allocation11]  }
  0x5a   : > { %s253_s13 = sshll.u32 %s10225_s27, 4  ;;  %s263_s15 = sshll.u32 %s10226_s14, 4  ;;  %s254_s13 = int_to_ptr.vmem [resolvable:$true] %s253_s13  ;;  %s264_s15 = int_to_ptr.vmem [resolvable:$true] %s263_s15 }
  0x5b   : > { %s10038_s19 = scalar_lea.hbm %s13595_s4, 16 }
  0x5c   : > { %p10039_p1 = scmp.ne.s32.totalorder %s13595_s4, %s10038_s19  ;;  %p10045_p12 = scmp.lt.u32.totalorder %s10038_s19, %s13595_s4 }
  0x5e   : > { %p10041_p3 = pnand %p10039_p1, %p10334_p8 }
  0x60   : > { %p10042_p11 = pneg %p10041_p3 }
  0x62   : > { %p10047_p13 = pnand %p10045_p12, %p10042_p11 }
  0x64   : > { %10050 = shalt.err (!%p10047_p13)
}
  0x65   : > { %s10051_s12 = scalar_lea.vmem %s254_s13, 16  ;;  %s10058_s9 = scalar_lea.vmem %s254_s13, 32 }
  0x66   : > { %p10052_p0 = scmp.ne.s32.totalorder %s254_s13, %s10051_s12  ;;  %p10059_p7 = scmp.lt.s32.totalorder %s254_s13, %s254_s13 }
  0x67   : > { %p10060_p9 = scmp.lt.s32.totalorder %s10058_s9, %s10051_s12 }
  0x68   : > { %p10054_p2 = pnand %p10052_p0, %p10334_p8 }
  0x69   : > { %p10061_p5 = por %p10060_p9, %p10059_p7 }
  0x6a   : > { %p10055_p4 = pneg %p10054_p2 }
  0x6c   : > { %p10062_p10 = pnand %p10061_p5, %p10055_p4 }
  0x6e   : > { %10065 = shalt.err (!%p10062_p10)
}
  0x6f   : > { %9612 = dma.hbm_to_vmem [thread:$0]  (!%p10318_p6), %s13595_s4, 16, %s254_s13, [#allocation9]  }
  0x70   : > { %s10066_s17 = scalar_lea.hbm %s13596_s5, 3328 }
  0x71   : > { %p10067_p1 = scmp.ne.s32.totalorder %s13596_s5, %s10066_s17  ;;  %p10073_p12 = scmp.lt.u32.totalorder %s10066_s17, %s13596_s5 }
  0x73   : > { %p10069_p3 = pnand %p10067_p1, %p10334_p8 }
  0x75   : > { %p10070_p11 = pneg %p10069_p3 }
  0x77   : > { %p10075_p13 = pnand %p10073_p12, %p10070_p11 }
  0x79   : > { %10078 = shalt.err (!%p10075_p13)
}
  0x7a   : > { %s10079_s10 = scalar_lea.vmem %s264_s15, 3328  ;;  %p10087_p7 = scmp.lt.s32.totalorder %s264_s15, %s264_s15 }
  0x7b   : > { %p10080_p0 = scmp.ne.s32.totalorder %s264_s15, %s10079_s10  ;;  %p10088_p9 = scmp.lt.s32.totalorder %s10079_s10, %s10079_s10 }
  0x7d   : > { %p10082_p2 = pnand %p10080_p0, %p10334_p8  ;;  %p10089_p5 = por %p10088_p9, %p10087_p7 }
  0x7f   : > { %p10083_p4 = pneg %p10082_p2 }
  0x81   : > { %p10090_p10 = pnand %p10089_p5, %p10083_p4 }
  0x83   : > { %10093 = shalt.err (!%p10090_p10)
}
  0x84   : > { %s10227_s13 = smov 128   ;;  %s10228_s18 = smov 8  }
  0x85   : > { %9615 = dma.hbm_to_vmem [thread:$0]  (!%p10318_p6), %s13596_s5, 3328, %s264_s15, [#allocation12], %s10227_s13, %s10227_s13, %s10228_s18  }
  0x86   : > { %s8974_s11 = sadd.s32 4294967294, %s10218_s26   ;;  %s37_s27 = sadd.s32 1, %s10214_s25 }
  0x87   : > { %s46_s14 = sadd.s32 1, %s10206_s23  ;;  %p39_p8 = scmp.ge.s32.totalorder %s37_s27, 2 }
  0x88   : > { %p53_p1 = scmp.ne.s32.totalorder %s10206_s23, %s10202_s22  ;;  %p54_p3 = scmp.eq.s32.totalorder %s10218_s26, 0 }
  0x89   : > { %p59_p11 = scmp.ne.s32.totalorder %s10202_s22, %s10198_s21  ;;  %s14004_s27 = smov (%p39_p8, %s37_s27), 0 }
  0x8a   : > { %p10443_p12 = por %p54_p3, %p53_p1  ;;  %p13620_p13 = scmp.ne.s32.totalorder %s13614_s28, 0 }
  0x8b   : > { %s41_s16 = ssub.s32 %s10214_s25, %s14004_s27  ;;  %s13622_s17 = sadd.s32 4294967295, %s10218_s26  }
  0x8c   : > { %p10449_p6 = por %p13620_p13, %p59_p11  ;;  %p190_p0 = scmp.eq.s32.totalorder %s13622_s17, 1 }
  0x8d   : > { %p44_p2 = scmp.eq.s32.totalorder %s41_s16, 0  ;;  %p196_p4 = scmp.eq.s32.totalorder %s8974_s11, 1 }
  0x8e   : > { %p10457_p7 = por %p190_p0, %p53_p1  ;;  %p9629_p9 = scmp.lt.s32.totalorder %s10218_s26, 2 }
  0x8f   : > { %s10463_s20 = scalar_select %p44_p2, %s10206_s23, %s46_s14  }
  0x90   : > { %s13623_s19 = scalar_select %p10457_p7, 1, 0 }
  0x91   : > { %p10465_p5 = por %p196_p4, %p59_p11  ;;  %s277_s7 = sand.u32 1, %s10206_s23  }
  0x92   : > { %s8982_s10 = sshll.u32 %s277_s7, 7  ;;  %s9318_s13 = sshll.u32 %s10214_s25, 11 }
  0x93   : > { %s13624_s30 = scalar_select %p10465_p5, 1, 0 }
  0x94   : > { %s10474_s9 = scalar_lea.hbm %s13591_s0, %s9318_s13  ;;  %s281_s11 = scalar_lea.vmem [#allocation2], %s8982_s10 }
  0x95   : > { %s291_s16 = sshll.u32 %s281_s11, 4  ;;  %p10480_p10 = pnand %p9629_p9, %p10443_p12  ;;  %s10476_s16 = int_to_ptr.vmem [resolvable:$true] %s291_s16 }
  0x96   : > { %s278_s17 = scalar_lea.sflag [#allocation3], %s277_s7  ;;  %s10094_s1 = scalar_lea.hbm %s10474_s9, 2048 }
  0x97   : > { %p10095_p8 = scmp.ne.s32.totalorder %s10474_s9, %s10094_s1  ;;  %p10096_p1 = pneg %p10480_p10 }
  0x98   : > { %s10099_s18 = scalar_lea.hbm %s13591_s0, 4096  ;;  %p10100_p12 = scmp.lt.u32.totalorder %s10474_s9, %s13591_s0 }
  0x99   : > { %p10097_p3 = pnand %p10096_p1, %p10095_p8  ;;  %p10101_p13 = scmp.lt.u32.totalorder %s10099_s18, %s10094_s1 }
  0x9a   : > { %p10103_p2 = scmp.lt.u32.totalorder %s10094_s1, %s10474_s9 }
  0x9b   : > { %p10098_p11 = pneg %p10097_p3  ;;  %p10102_p0 = por %p10101_p13, %p10100_p12 }
  0x9d   : > { %p10104_p4 = por %p10103_p2, %p10102_p0 }
  0x9f   : > { %p10105_p9 = pnand %p10104_p4, %p10098_p11 }
  0xa1   : > { %10108 = shalt.err (!%p10105_p9)
}
  0xa2   : > { %s10109_s7 = scalar_lea.vmem %s10476_s16, 2048  ;;  %s10229_s11 = smov [#allocation2]  }
  0xa3   : > { %p10110_p8 = scmp.ne.s32.totalorder %s10476_s16, %s10109_s7  ;;  %s10114_s10 = sshll.u32 %s10229_s11, 4  ;;  %s10115_s10 = int_to_ptr.vmem [resolvable:$false] %s10114_s10 }
  0xa4   : > { %s10116_s13 = scalar_lea.vmem %s10115_s10, 4096  ;;  %p10117_p7 = scmp.lt.s32.totalorder %s10476_s16, %s10115_s10 }
  0xa5   : > { %p10112_p3 = pnand %p10110_p8, %p10096_p1  ;;  %p10118_p12 = scmp.lt.s32.totalorder %s10116_s13, %s10109_s7 }
  0xa7   : > { %p10113_p5 = pneg %p10112_p3  ;;  %p10119_p13 = por %p10118_p12, %p10117_p7 }
  0xa9   : > { %p10120_p0 = pnand %p10119_p13, %p10113_p5 }
  0xab   : > { %10123 = shalt.err (!%p10120_p0)
}
  0xac   : > { %9619 = dma.hbm_to_vmem [thread:$0]  (!%p10480_p10), %s10474_s9, 2048, %s10476_s16, %s278_s17  }
  0xad   : > { %p13626_p11 = scmp.ne.s32.totalorder %s13615_s29, 0 }
  0xaf   : > { %300 = sbr.rel (%p13626_p11) target bundleno = 1951 (0x79f), region = 44 }
  0xb6   : > { %s10512_s1 = sand.u32 1, %s10202_s22  }
  0xb7   : > { %s8986_s18 = sshll.u32 %s10512_s1, 7  ;;  %s303_s8 = scalar_lea.sflag [#allocation3], %s10512_s1 }
  0xb8   : > { %s10516_s12 = scalar_lea.vmem [#allocation2], %s8986_s18 }
  0xb9   : > { %10177 = dma.done.wait (%p10449_p6), %s303_s8, 2048  }
  0xba   : > { %10179 = vsyncadd (%p10449_p6), %s303_s8, 4294965248  ;;  %p13627_p7 = scmp.ne.s32.totalorder %s13614_s28, 0 }
  0xbc   : > { %10181 = dma.done.wait (%p13627_p7), [#allocation6], 1552  }
  0xbd   : > { %10183 = vsyncadd (%p13627_p7), [#allocation6], 4294965744 }
  0xbe   : > { %10185 = dma.done.wait (%p13627_p7), [#allocation9], 528  }
  0xbf   : > { %10187 = vsyncadd (%p13627_p7), [#allocation9], 4294966768 }
  0xc0   : > { %10189 = dma.done.wait (%p13627_p7), [#allocation12], 3328  }
  0xc1   : > { %10191 = vsyncadd (%p13627_p7), [#allocation12], 4294963968  ;;  %v13603_v0 = vmov 0   ;;  %v358_v1 = vld [vmem:[%s10516_s12] sm:$0xff]  ;;  %vm575_vm0 = vcmask 1041408   ;;  %v359_v2 = vld [vmem:[%s10516_s12 + $0x8] sm:$0xff] }
  0xc2   : > { %704 = vmatprep.mubr.bf16.mxu0 %v13603_v0  ;;  %857 = vmatprep.mubr.bf16.mxu1 %v13603_v0  ;;  %v390_v3 = vcombine.high %v358_v1, %v358_v1  ;;  %v391_v4 = vcombine.high %v359_v2, %v359_v2  ;;  %v422_v5 = vpack.c.bf16 %v358_v1, %v358_v1  ;;  %v10542_v11 = vld [vmem:[#allocation5] sm:$0xff]   ;;  %v360_v12 = vld [vmem:[%s10516_s12 + $0x10] sm:$0xff]  ;;  %v361_v14 = vld [vmem:[%s10516_s12 + $0x18] sm:$0xff]  ;;  %vm538_vm1 = vcmask 31744   ;;  %s8992_s28 = sshll.u32 %s10512_s1, 5  ;;  %s9319_s15 = sshll.u32 %s10210_s24, 9 }
  0xc3   : > { %9695 = vset.pattern.permute.xlu0 %v13603_v0  ;;  %9696 = vset.pattern.permute.xlu1 %v13603_v0  ;;  %v424_v6 = vpack.c.bf16 %v359_v2, %v359_v2  ;;  %v392_v13 = vcombine.high %v360_v12, %v360_v12  ;;  %v426_v15 = vpack.c.bf16 %v360_v12, %v360_v12  ;;  %v3120_v22 = vld [vmem:[#allocation11] sm:$0xff]  ;;  %v3122_v24 = vld [vmem:[#allocation11 + $0x10] sm:$0xff]  ;;  %v3121_v25 = vld [vmem:[#allocation11 + $0x8] sm:$0xff]  ;;  %vm5272_vm2 = vcmask 1040384   ;;  %s13403_s29 = scalar_lea.vmem [#allocation13], %s8992_s28  ;;  %s13541_s17 = scalar_lea.hbm %s13597_s6, %s9319_s15 }
  0xc4   : > { %v423_v7 = vpack.c.bf16 %v390_v3, %v390_v3  ;;  %v425_v8 = vpack.c.bf16 %v391_v4, %v391_v4  ;;  %v577_v9 = vsel %vm575_vm0, %v422_v5, 0  ;;  %v393_v16 = vcombine.high %v361_v14, %v361_v14  ;;  %v10558_v23 = vld [vmem:[#allocation5 + $0x8] sm:$0xff]   ;;  %3138 = vperm.xlu0 %9695, %v3120_v22   ;;  %3148 = vperm.xlu1 %9696, %v3122_v24   ;;  %v3123_v26 = vld [vmem:[#allocation11 + $0x18] sm:$0xff]  ;;  %v10576_v31 = vld [vmem:[#allocation5 + $0x10] sm:$0xff]   ;;  %s8841_s9 = sshll.u32 %s13403_s29, 4  ;;  %s8825_s7 = scalar_lea.sflag [#allocation4], %s10512_s1  ;;  %s13543_s9 = int_to_ptr.vmem [resolvable:$true] %s8841_s9 }
  0xc5   : > { %v583_v10 = vsel %vm575_vm0, %v424_v6, 0  ;;  %v428_v17 = vpack.c.bf16 %v361_v14, %v361_v14  ;;  %v427_v18 = vpack.c.bf16 %v392_v13, %v392_v13  ;;  %v589_v20 = vsel %vm575_vm0, %v426_v15, 0  ;;  %v10561_v27 = vld [vmem:[%s10516_s12 + $0x20] sm:$0xff]  ;;  %v10570_v29 = vld [vmem:[%s10516_s12 + $0x28] sm:$0xff]  ;;  %v3126_v36 = vld [vmem:[#allocation11 + $0x30] sm:$0xff]  ;;  %s10124_s11 = scalar_lea.vmem %s13543_s9, 512 }
  0xc6   : > { %9005 = vmatprep.subr.msk.bf16.mxu0 %vm575_vm0, %v423_v7  ;;  %9018 = vmatprep.subr.msk.bf16.mxu1 %vm575_vm0, %v425_v8  ;;  %v429_v19 = vpack.c.bf16 %v393_v16, %v393_v16  ;;  %v394_v28 = vcombine.high %v10561_v27, %v10561_v27  ;;  %v395_v30 = vcombine.high %v10570_v29, %v10570_v29  ;;  %v3124_v32 = vld [vmem:[#allocation11 + $0x20] sm:$0xff]  ;;  %v3125_v34 = vld [vmem:[#allocation11 + $0x28] sm:$0xff]  ;;  %v3127_v37 = vld [vmem:[#allocation11 + $0x38] sm:$0xff]  ;;  %vm5259_vm3 = vcmask 15360   ;;  %p10125_p6 = scmp.ne.s32.totalorder %s13543_s9, %s10124_s11  ;;  %p13995_p5 = scmp.ne.s32.totalorder %s13623_s19, 0 }
  0xc7   : > { %673 = vmatpush1.bf16.msra.mxu0 %v577_v9  ;;  %826 = vmatpush1.bf16.msra.mxu1 %v583_v10  ;;  %v595_v21 = vsel %vm575_vm0, %v428_v17, 0  ;;  %v3128_v38 = vld [vmem:[#allocation11 + $0x40] sm:$0xff]  ;;  %v3129_v39 = vld [vmem:[#allocation11 + $0x48] sm:$0xff]  ;;  %v10586_v40 = vld [vmem:[#allocation5 + $0x18] sm:$0xff]   ;;  %v430_v55 = vpack.c.bf16 %v10561_v27, %v10561_v27  ;;  %v432_v56 = vpack.c.bf16 %v10570_v29, %v10570_v29  ;;  %vm7480_vm4 = vcmask 523264   ;;  %s10232_s24 = smov [#allocation13]  }
  0xc8   : > { %9031 = vmatprep.subr.msk.bf16.mxu0 %vm575_vm0, %v427_v18  ;;  %9044 = vmatprep.subr.msk.bf16.mxu1 %vm575_vm0, %v429_v19  ;;  %v431_v33 = vpack.c.bf16 %v394_v28, %v394_v28  ;;  %v433_v35 = vpack.c.bf16 %v395_v30, %v395_v30  ;;  %v3130_v41 = vld [vmem:[#allocation11 + $0x50] sm:$0xff]  ;;  %v3131_v42 = vld [vmem:[#allocation11 + $0x58] sm:$0xff]  ;;  %v3132_v43 = vld [vmem:[#allocation11 + $0x60] sm:$0xff]  ;;  %p10126_p10 = pnand %p10125_p6, %p13995_p5  ;;  %s10128_s10 = sshll.u32 %s10232_s24, 4  ;;  %s10129_s10 = int_to_ptr.vmem [resolvable:$false] %s10128_s10 }
  0xc9   : > { %3143 = vperm.xlu0 %9695, %v3121_v25   ;;  %3153 = vperm.xlu1 %9696, %v3123_v26   ;;  %v3133_v44 = vld [vmem:[#allocation11 + $0x68] sm:$0xff]  ;;  %v10594_v45 = vld [vmem:[#allocation5 + $0x20] sm:$0xff]   ;;  %v3134_v46 = vld [vmem:[#allocation11 + $0x70] sm:$0xff]  ;;  %v601_v59 = vsel %vm575_vm0, %v430_v55, 0  ;;  %v607_v60 = vsel %vm575_vm0, %v432_v56, 0  ;;  %s10130_s13 = scalar_lea.vmem %s10129_s10, 1024  ;;  %p10131_p2 = scmp.lt.s32.totalorder %s13543_s9, %s10129_s10 }
  0xca   : > { %9006 = vmatmul.mubr.msk.bf16.vlgmr.msra.gmra.mrb[0].mxu0 %vm538_vm1, %v10542_v11  ;;  %9019 = vmatmul.mubr.msk.bf16.vlgmr.msra.gmra.mrb[0].mxu1 %vm538_vm1, %v10542_v11  ;;  %v3135_v47 = vld [vmem:[#allocation11 + $0x78] sm:$0xff]  ;;  %v10602_v48 = vld [vmem:[#allocation5 + $0x28] sm:$0xff]   ;;  %v10610_v49 = vld [vmem:[#allocation5 + $0x30] sm:$0xff]   ;;  %p10127_p1 = pneg %p10126_p10  ;;  %p10132_p4 = scmp.lt.s32.totalorder %s10130_s13, %s10124_s11 }
  0xcb   : > { %714 = vmatprep.mubr.bf16.mxu0 %v13603_v0  ;;  %867 = vmatprep.mubr.bf16.mxu1 %v13603_v0  ;;  %v10618_v50 = vld [vmem:[#allocation5 + $0x38] sm:$0xff]   ;;  %v10626_v51 = vld [vmem:[#allocation5 + $0x40] sm:$0xff]   ;;  %v10634_v52 = vld [vmem:[#allocation5 + $0x48] sm:$0xff]  }
  0xcc   : > { %979 = vmatpush1.bf16.msra.mxu0 %v589_v20  ;;  %1132 = vmatpush1.bf16.msra.mxu1 %v595_v21  ;;  %v10642_v53 = vld [vmem:[#allocation5 + $0x50] sm:$0xff]   ;;  %v10650_v54 = vld [vmem:[#allocation5 + $0x58] sm:$0xff]   ;;  %v10753_v4 = vld [vmem:[%s10516_s12 + $0x40] sm:$0xff]  ;;  %p10133_p9 = por %p10132_p4, %p10131_p2 }
  0xcd   : > { %9057 = vmatprep.subr.msk.bf16.mxu0 %vm575_vm0, %v431_v33  ;;  %9070 = vmatprep.subr.msk.bf16.mxu1 %vm575_vm0, %v433_v35  ;;  %v10663_v57 = vld [vmem:[%s10516_s12 + $0x30] sm:$0xff]  ;;  %v10666_v58 = vld [vmem:[%s10516_s12 + $0x38] sm:$0xff]  ;;  %v10756_v5 = vld [vmem:[%s10516_s12 + $0x48] sm:$0xff]  ;;  %v398_v8 = vcombine.high %v10753_v4, %v10753_v4 }
  0xce   : > { %3158 = vperm.xlu0 %9695, %v3124_v32   ;;  %3163 = vperm.xlu1 %9696, %v3125_v34   ;;  %v396_v61 = vcombine.high %v10663_v57, %v10663_v57  ;;  %v397_v62 = vcombine.high %v10666_v58, %v10666_v58  ;;  %v434_v2 = vpack.c.bf16 %v10663_v57, %v10663_v57  ;;  %p10134_p8 = pnand %p10133_p9, %p10127_p1 }
  0xcf   : > { %v436_v3 = vpack.c.bf16 %v10666_v58, %v10666_v58  ;;  %v399_v9 = vcombine.high %v10756_v5, %v10756_v5  ;;  %v439_v10 = vpack.c.bf16 %v398_v8, %v398_v8 }
  0xd0   : > { %v435_v63 = vpack.c.bf16 %v396_v61, %v396_v61  ;;  %v437_v1 = vpack.c.bf16 %v397_v62, %v397_v62  ;;  %v613_v6 = vsel %vm575_vm0, %v434_v2, 0 }
  0xd1   : > { %v619_v7 = vsel %vm575_vm0, %v436_v3, 0  ;;  %v441_v12 = vpack.c.bf16 %v399_v9, %v399_v9 }
  0xd2   : > { %9007 = vmatmul.mubr.msk.bf16.gmra.mrb[4].mxu0 %vm538_vm1, %v10558_v23  ;;  %9020 = vmatmul.mubr.msk.bf16.gmra.mrb[4].mxu1 %vm538_vm1, %v10558_v23 }
  0xd3   : > { %724 = vmatprep.mubr.bf16.mxu0 %v13603_v0  ;;  %877 = vmatprep.mubr.bf16.mxu1 %v13603_v0 }
  0xd4   : > { %3168 = vperm.xlu0 %9695, %v3126_v36   ;;  %3173 = vperm.xlu1 %9696, %v3127_v37  }
  0xd8   : > { %3178 = vperm.xlu0 %9695, %v3128_v38   ;;  %3183 = vperm.xlu1 %9696, %v3129_v39  }
  0xda   : > { %9008 = vmatmul.mubr.msk.bf16.gmra.mrb[8].mxu0 %vm538_vm1, %v10576_v31  ;;  %9021 = vmatmul.mubr.msk.bf16.gmra.mrb[8].mxu1 %vm538_vm1, %v10576_v31 }
  0xdb   : > { %734 = vmatprep.mubr.bf16.mxu0 %v13603_v0  ;;  %887 = vmatprep.mubr.bf16.mxu1 %v13603_v0 }
  0xdc   : > { %3188 = vperm.xlu0 %9695, %v3130_v41   ;;  %3193 = vperm.xlu1 %9696, %v3131_v42  }
  0xe0   : > { %3198 = vperm.xlu0 %9695, %v3132_v43   ;;  %3203 = vperm.xlu1 %9696, %v3133_v44  }
  0xe2   : > { %9009 = vmatmul.mubr.msk.bf16.gmra.mrb[12].mxu0 %vm538_vm1, %v10586_v40  ;;  %9022 = vmatmul.mubr.msk.bf16.gmra.mrb[12].mxu1 %vm538_vm1, %v10586_v40 }
  0xe3   : > { %744 = vmatprep.mubr.bf16.mxu0 %v13603_v0  ;;  %897 = vmatprep.mubr.bf16.mxu1 %v13603_v0 }
  0xe4   : > { %3208 = vperm.xlu0 %9695, %v3134_v46   ;;  %3213 = vperm.xlu1 %9696, %v3135_v47  }
  0xea   : > { %9010 = vmatmul.mubr.msk.bf16.gmra.mrb[16].mxu0 %vm538_vm1, %v10594_v45  ;;  %9023 = vmatmul.mubr.msk.bf16.gmra.mrb[16].mxu1 %vm538_vm1, %v10594_v45 }
  0xeb   : > { %754 = vmatprep.mubr.bf16.mxu0 %v13603_v0  ;;  %907 = vmatprep.mubr.bf16.mxu1 %v13603_v0 }
  0xf2   : > { %9011 = vmatmul.mubr.msk.bf16.gmra.mrb[20].mxu0 %vm538_vm1, %v10602_v48  ;;  %9024 = vmatmul.mubr.msk.bf16.gmra.mrb[20].mxu1 %vm538_vm1, %v10602_v48 }
  0xf3   : > { %764 = vmatprep.mubr.bf16.mxu0 %v13603_v0  ;;  %917 = vmatprep.mubr.bf16.mxu1 %v13603_v0 }
  0xfa   : > { %9012 = vmatmul.mubr.msk.bf16.gmra.mrb[24].mxu0 %vm538_vm1, %v10610_v49  ;;  %9025 = vmatmul.mubr.msk.bf16.gmra.mrb[24].mxu1 %vm538_vm1, %v10610_v49 }
  0xfb   : > { %774 = vmatprep.mubr.bf16.mxu0 %v13603_v0  ;;  %927 = vmatprep.mubr.bf16.mxu1 %v13603_v0 }
 0x102   : > { %9013 = vmatmul.mubr.msk.bf16.gmra.mrb[28].mxu0 %vm538_vm1, %v10618_v50  ;;  %9026 = vmatmul.mubr.msk.bf16.gmra.mrb[28].mxu1 %vm538_vm1, %v10618_v50 }
 0x103   : > { %784 = vmatprep.mubr.bf16.mxu0 %v13603_v0  ;;  %937 = vmatprep.mubr.bf16.mxu1 %v13603_v0 }
 0x10a   : > { %9014 = vmatmul.mubr.msk.bf16.gmra.mrb[32].mxu0 %vm538_vm1, %v10626_v51  ;;  %9027 = vmatmul.mubr.msk.bf16.gmra.mrb[32].mxu1 %vm538_vm1, %v10626_v51 }
 0x10b   : > { %794 = vmatprep.mubr.bf16.mxu0 %v13603_v0  ;;  %947 = vmatprep.mubr.bf16.mxu1 %v13603_v0 }
 0x112   : > { %9015 = vmatmul.mubr.msk.bf16.gmra.mrb[36].mxu0 %vm538_vm1, %v10634_v52  ;;  %9028 = vmatmul.mubr.msk.bf16.gmra.mrb[36].mxu1 %vm538_vm1, %v10634_v52 }
 0x113   : > { %804 = vmatprep.mubr.bf16.mxu0 %v13603_v0  ;;  %957 = vmatprep.mubr.bf16.mxu1 %v13603_v0 }
 0x11a   : > { %9016 = vmatmul.mubr.msk.bf16.gmra.mrb[40].mxu0 %vm538_vm1, %v10642_v53  ;;  %9029 = vmatmul.mubr.msk.bf16.gmra.mrb[40].mxu1 %vm538_vm1, %v10642_v53 }
 0x11b   : > { %814 = vmatprep.mubr.bf16.mxu0 %v13603_v0  ;;  %967 = vmatprep.mubr.bf16.mxu1 %v13603_v0 }
 0x122   : > { %9017 = vmatmul.mubr.msk.bf16.gmra.mrb[44].mxu0 %vm538_vm1, %v10650_v54  ;;  %9030 = vmatmul.mubr.msk.bf16.gmra.mrb[44].mxu1 %vm538_vm1, %v10650_v54 }
 0x123   : > { %1010 = vmatprep.mubr.bf16.mxu0 %v13603_v0  ;;  %1163 = vmatprep.mubr.bf16.mxu1 %v13603_v0 }
 0x12a   : > { %9032 = vmatmul.mubr.msk.bf16.vlgmr.msra.gmra.mrb[48].mxu0 %vm538_vm1, %v10542_v11  ;;  %9045 = vmatmul.mubr.msk.bf16.vlgmr.msra.gmra.mrb[48].mxu1 %vm538_vm1, %v10542_v11 }
 0x12b   : > { %1020 = vmatprep.mubr.bf16.mxu0 %v13603_v0  ;;  %1173 = vmatprep.mubr.bf16.mxu1 %v13603_v0 }
 0x12c   : > { %1285 = vmatpush1.bf16.msra.mxu0 %v601_v59  ;;  %1438 = vmatpush1.bf16.msra.mxu1 %v607_v60 }
 0x12d   : > { %9083 = vmatprep.subr.msk.bf16.mxu0 %vm575_vm0, %v435_v63  ;;  %9096 = vmatprep.subr.msk.bf16.mxu1 %vm575_vm0, %v437_v1 }
 0x132   : > { %9033 = vmatmul.mubr.msk.bf16.gmra.mrb[52].mxu0 %vm538_vm1, %v10558_v23  ;;  %9046 = vmatmul.mubr.msk.bf16.gmra.mrb[52].mxu1 %vm538_vm1, %v10558_v23 }
 0x133   : > { %1030 = vmatprep.mubr.bf16.mxu0 %v13603_v0  ;;  %1183 = vmatprep.mubr.bf16.mxu1 %v13603_v0 }
 0x13a   : > { %9034 = vmatmul.mubr.msk.bf16.gmra.mrb[56].mxu0 %vm538_vm1, %v10576_v31  ;;  %9047 = vmatmul.mubr.msk.bf16.gmra.mrb[56].mxu1 %vm538_vm1, %v10576_v31 }
 0x13b   : > { %1040 = vmatprep.mubr.bf16.mxu0 %v13603_v0  ;;  %1193 = vmatprep.mubr.bf16.mxu1 %v13603_v0 }
 0x142   : > { %9035 = vmatmul.mubr.msk.bf16.gmra.mrb[60].mxu0 %vm538_vm1, %v10586_v40  ;;  %9048 = vmatmul.mubr.msk.bf16.gmra.mrb[60].mxu1 %vm538_vm1, %v10586_v40 }
 0x143   : > { %1050 = vmatprep.mubr.bf16.mxu0 %v13603_v0  ;;  %1203 = vmatprep.mubr.bf16.mxu1 %v13603_v0  ;;  %v10788_v14 = vpop.permute.xlu1 %3148 }
 0x148   : > { %v10808_v44 = vpop.permute.xlu1 %3153 }
 0x14a   : > { %9036 = vmatmul.mubr.msk.bf16.gmra.mrb[64].mxu0 %vm538_vm1, %v10594_v45  ;;  %9049 = vmatmul.mubr.msk.bf16.gmra.mrb[64].mxu1 %vm538_vm1, %v10594_v45 }
 0x14b   : > { %1060 = vmatprep.mubr.bf16.mxu0 %v13603_v0  ;;  %1213 = vmatprep.mubr.bf16.mxu1 %v13603_v0 }
 0x152   : > { %9037 = vmatmul.mubr.msk.bf16.gmra.mrb[68].mxu0 %vm538_vm1, %v10602_v48  ;;  %9050 = vmatmul.mubr.msk.bf16.gmra.mrb[68].mxu1 %vm538_vm1, %v10602_v48 }
 0x153   : > { %1070 = vmatprep.mubr.bf16.mxu0 %v13603_v0  ;;  %1223 = vmatprep.mubr.bf16.mxu1 %v13603_v0 }
 0x15a   : > { %9038 = vmatmul.mubr.msk.bf16.gmra.mrb[72].mxu0 %vm538_vm1, %v10610_v49  ;;  %9051 = vmatmul.mubr.msk.bf16.gmra.mrb[72].mxu1 %vm538_vm1, %v10610_v49 }
 0x15b   : > { %1080 = vmatprep.mubr.bf16.mxu0 %v13603_v0  ;;  %1233 = vmatprep.mubr.bf16.mxu1 %v13603_v0 }
 0x162   : > { %9039 = vmatmul.mubr.msk.bf16.gmra.mrb[76].mxu0 %vm538_vm1, %v10618_v50  ;;  %9052 = vmatmul.mubr.msk.bf16.gmra.mrb[76].mxu1 %vm538_vm1, %v10618_v50 }
 0x163   : > { %1090 = vmatprep.mubr.bf16.mxu0 %v13603_v0  ;;  %1243 = vmatprep.mubr.bf16.mxu1 %v13603_v0 }
 0x16a   : > { %9040 = vmatmul.mubr.msk.bf16.gmra.mrb[80].mxu0 %vm538_vm1, %v10626_v51  ;;  %9053 = vmatmul.mubr.msk.bf16.gmra.mrb[80].mxu1 %vm538_vm1, %v10626_v51 }
 0x16b   : > { %1100 = vmatprep.mubr.bf16.mxu0 %v13603_v0  ;;  %1253 = vmatprep.mubr.bf16.mxu1 %v13603_v0 }
 0x172   : > { %9041 = vmatmul.mubr.msk.bf16.gmra.mrb[84].mxu0 %vm538_vm1, %v10634_v52  ;;  %9054 = vmatmul.mubr.msk.bf16.gmra.mrb[84].mxu1 %vm538_vm1, %v10634_v52 }
 0x173   : > { %1110 = vmatprep.mubr.bf16.mxu0 %v13603_v0  ;;  %1263 = vmatprep.mubr.bf16.mxu1 %v13603_v0 }
 0x17a   : > { %9042 = vmatmul.mubr.msk.bf16.gmra.mrb[88].mxu0 %vm538_vm1, %v10642_v53  ;;  %9055 = vmatmul.mubr.msk.bf16.gmra.mrb[88].mxu1 %vm538_vm1, %v10642_v53 }
 0x17b   : > { %1120 = vmatprep.mubr.bf16.mxu0 %v13603_v0  ;;  %1273 = vmatprep.mubr.bf16.mxu1 %v13603_v0 }
 0x182   : > { %9043 = vmatmul.mubr.msk.bf16.gmra.mrb[92].mxu0 %vm538_vm1, %v10650_v54  ;;  %9056 = vmatmul.mubr.msk.bf16.gmra.mrb[92].mxu1 %vm538_vm1, %v10650_v54 }
 0x183   : > { %1316 = vmatprep.mubr.bf16.mxu0 %v13603_v0  ;;  %1469 = vmatprep.mubr.bf16.mxu1 %v13603_v0 }
 0x18a   : > { %9058 = vmatmul.mubr.msk.bf16.vlgmr.msra.gmra.mrb[96].mxu0 %vm538_vm1, %v10542_v11  ;;  %9071 = vmatmul.mubr.msk.bf16.vlgmr.msra.gmra.mrb[96].mxu1 %vm538_vm1, %v10542_v11  ;;  %v10778_v11 = vpop.permute.xlu0 %3138 }
 0x18b   : > { %1326 = vmatprep.mubr.bf16.mxu0 %v13603_v0  ;;  %1479 = vmatprep.mubr.bf16.mxu1 %v13603_v0 }
 0x18c   : > { %1591 = vmatpush1.bf16.msra.mxu0 %v613_v6  ;;  %1744 = vmatpush1.bf16.msra.mxu1 %v619_v7 }
 0x18d   : > { %9109 = vmatprep.subr.msk.bf16.mxu0 %vm575_vm0, %v439_v10  ;;  %9122 = vmatprep.subr.msk.bf16.mxu1 %vm575_vm0, %v441_v12 }
 0x18e   : > { %v10786_v13 = vpop.permute.xlu0 %3143 }
 0x192   : > { %9059 = vmatmul.mubr.msk.bf16.gmra.mrb[100].mxu0 %vm538_vm1, %v10558_v23  ;;  %9072 = vmatmul.mubr.msk.bf16.gmra.mrb[100].mxu1 %vm538_vm1, %v10558_v23 }
 0x193   : > { %1336 = vmatprep.mubr.bf16.mxu0 %v13603_v0  ;;  %1489 = vmatprep.mubr.bf16.mxu1 %v13603_v0 }
 0x19a   : > { %9060 = vmatmul.mubr.msk.bf16.gmra.mrb[104].mxu0 %vm538_vm1, %v10576_v31  ;;  %9073 = vmatmul.mubr.msk.bf16.gmra.mrb[104].mxu1 %vm538_vm1, %v10576_v31 }
 0x19b   : > { %1346 = vmatprep.mubr.bf16.mxu0 %v13603_v0  ;;  %1499 = vmatprep.mubr.bf16.mxu1 %v13603_v0 }
 0x19d   : > { %v706_v15 = vpop.f32.mrb[0].mxu0  ;;  %v859_v16 = vpop.f32.mrb[0].mxu1 }
 0x19e   : > { %v3216_v17 = vadd.f32 %v10778_v11, %v706_v15  ;;  %v3218_v18 = vadd.f32 %v10778_v11, %v859_v16  ;;  %v708_v19 = vpop.f32.mrb[1].mxu0  ;;  %v861_v20 = vpop.f32.mrb[1].mxu1 }
 0x19f   : > { %v3217_v21 = vadd.f32 %v10778_v11, %v708_v19  ;;  %v3219_v22 = vadd.f32 %v10778_v11, %v861_v20  ;;  %v710_v24 = vpop.f32.mrb[2].mxu0  ;;  %v863_v25 = vpop.f32.mrb[2].mxu1 }
 0x1a0   : > { %v3248_v26 = vadd.f32 %v10786_v13, %v710_v24  ;;  %v3250_v27 = vadd.f32 %v10786_v13, %v863_v25  ;;  %v712_v28 = vpop.f32.mrb[3].mxu0  ;;  %v865_v29 = vpop.f32.mrb[3].mxu1  ;;  %v3728_v33 = vmax.f32 %v3216_v17, 0.0  ;;  %v3730_v34 = vmax.f32 %v3218_v18, 0.0 }
 0x1a1   : > { %v3249_v30 = vadd.f32 %v10786_v13, %v712_v28  ;;  %v3251_v32 = vadd.f32 %v10786_v13, %v865_v29  ;;  %v3729_v37 = vmax.f32 %v3217_v21, 0.0  ;;  %v3731_v38 = vmax.f32 %v3219_v22, 0.0  ;;  %v10826_v21 = vpop.permute.xlu0 %3158  ;;  %v10834_v25 = vpop.permute.xlu1 %3163 }
 0x1a2   : > { %v3760_v35 = vmax.f32 %v3248_v26, 0.0  ;;  %v3762_v36 = vmax.f32 %v3250_v27, 0.0  ;;  %9061 = vmatmul.mubr.msk.bf16.gmra.mrb[108].mxu0 %vm538_vm1, %v10586_v40  ;;  %9074 = vmatmul.mubr.msk.bf16.gmra.mrb[108].mxu1 %vm538_vm1, %v10586_v40 }
 0x1a3   : > { %v3761_v39 = vmax.f32 %v3249_v30, 0.0  ;;  %v3763_v41 = vmax.f32 %v3251_v32, 0.0  ;;  %1356 = vmatprep.mubr.bf16.mxu0 %v13603_v0  ;;  %1509 = vmatprep.mubr.bf16.mxu1 %v13603_v0 }
 0x1a4   : > { %v10804_v42 = vpack.c.bf16 %v3760_v35, %v3728_v33  ;;  %v10806_v43 = vpack.c.bf16 %v3762_v36, %v3730_v34 }
 0x1a5   : > { %v716_v46 = vpop.f32.mrb[4].mxu0  ;;  %v869_v47 = vpop.f32.mrb[4].mxu1  ;;  %v10810_v55 = vpack.c.bf16 %v3761_v39, %v3729_v37  ;;  %v10812_v56 = vpack.c.bf16 %v3763_v41, %v3731_v38 }
 0x1a6   : > { %v3280_v57 = vadd.f32 %v10788_v14, %v716_v46  ;;  %v3282_v58 = vadd.f32 %v10788_v14, %v869_v47  ;;  %v718_v59 = vpop.f32.mrb[5].mxu0  ;;  %v871_v60 = vpop.f32.mrb[5].mxu1 }
 0x1a7   : > { %v3281_v61 = vadd.f32 %v10788_v14, %v718_v59  ;;  %v3283_v62 = vadd.f32 %v10788_v14, %v871_v60  ;;  %v720_v63 = vpop.f32.mrb[6].mxu0  ;;  %v873_v1 = vpop.f32.mrb[6].mxu1 }
 0x1a8   : > { %v3312_v2 = vadd.f32 %v10808_v44, %v720_v63  ;;  %v3314_v3 = vadd.f32 %v10808_v44, %v873_v1  ;;  %v722_v6 = vpop.f32.mrb[7].mxu0  ;;  %v875_v7 = vpop.f32.mrb[7].mxu1  ;;  %v3792_v10 = vmax.f32 %v3280_v57, 0.0  ;;  %v3794_v12 = vmax.f32 %v3282_v58, 0.0 }
 0x1a9   : > { %v3313_v8 = vadd.f32 %v10808_v44, %v722_v6  ;;  %v3315_v9 = vadd.f32 %v10808_v44, %v875_v7  ;;  %v3793_v17 = vmax.f32 %v3281_v61, 0.0  ;;  %v3795_v18 = vmax.f32 %v3283_v62, 0.0  ;;  %v10852_v6 = vpop.permute.xlu0 %3168 }
 0x1aa   : > { %v3824_v15 = vmax.f32 %v3312_v2, 0.0  ;;  %v3826_v16 = vmax.f32 %v3314_v3, 0.0  ;;  %9062 = vmatmul.mubr.msk.bf16.gmra.mrb[112].mxu0 %vm538_vm1, %v10594_v45  ;;  %9075 = vmatmul.mubr.msk.bf16.gmra.mrb[112].mxu1 %vm538_vm1, %v10594_v45 }
 0x1ab   : > { %v3825_v19 = vmax.f32 %v3313_v8, 0.0  ;;  %v3827_v20 = vmax.f32 %v3315_v9, 0.0  ;;  %1366 = vmatprep.mubr.bf16.mxu0 %v13603_v0  ;;  %1519 = vmatprep.mubr.bf16.mxu1 %v13603_v0  ;;  %v10860_v9 = vpop.permute.xlu1 %3173 }
 0x1ac   : > { %v10830_v22 = vpack.c.bf16 %v3824_v15, %v3792_v10  ;;  %v10832_v24 = vpack.c.bf16 %v3826_v16, %v3794_v12 }
 0x1ad   : > { %v726_v26 = vpop.f32.mrb[8].mxu0  ;;  %v879_v27 = vpop.f32.mrb[8].mxu1  ;;  %v10836_v28 = vpack.c.bf16 %v3825_v19, %v3793_v17  ;;  %v10838_v29 = vpack.c.bf16 %v3827_v20, %v3795_v18 }
 0x1ae   : > { %v3344_v30 = vadd.f32 %v10826_v21, %v726_v26  ;;  %v3346_v32 = vadd.f32 %v10826_v21, %v879_v27  ;;  %v728_v33 = vpop.f32.mrb[9].mxu0  ;;  %v881_v34 = vpop.f32.mrb[9].mxu1 }
 0x1af   : > { %v3345_v35 = vadd.f32 %v10826_v21, %v728_v33  ;;  %v3347_v36 = vadd.f32 %v10826_v21, %v881_v34  ;;  %v730_v37 = vpop.f32.mrb[10].mxu0  ;;  %v883_v38 = vpop.f32.mrb[10].mxu1 }
 0x1b0   : > { %v3376_v39 = vadd.f32 %v10834_v25, %v730_v37  ;;  %v3378_v41 = vadd.f32 %v10834_v25, %v883_v38  ;;  %v732_v46 = vpop.f32.mrb[11].mxu0  ;;  %v885_v47 = vpop.f32.mrb[11].mxu1  ;;  %v3856_v59 = vmax.f32 %v3344_v30, 0.0  ;;  %v3858_v60 = vmax.f32 %v3346_v32, 0.0 }
 0x1b1   : > { %v3377_v57 = vadd.f32 %v10834_v25, %v732_v46  ;;  %v3379_v58 = vadd.f32 %v10834_v25, %v885_v47  ;;  %v3857_v63 = vmax.f32 %v3345_v35, 0.0  ;;  %v3859_v1 = vmax.f32 %v3347_v36, 0.0 }
 0x1b2   : > { %v3888_v61 = vmax.f32 %v3376_v39, 0.0  ;;  %v3890_v62 = vmax.f32 %v3378_v41, 0.0  ;;  %9063 = vmatmul.mubr.msk.bf16.gmra.mrb[116].mxu0 %vm538_vm1, %v10602_v48  ;;  %9076 = vmatmul.mubr.msk.bf16.gmra.mrb[116].mxu1 %vm538_vm1, %v10602_v48 }
 0x1b3   : > { %v3889_v2 = vmax.f32 %v3377_v57, 0.0  ;;  %v3891_v3 = vmax.f32 %v3379_v58, 0.0  ;;  %1376 = vmatprep.mubr.bf16.mxu0 %v13603_v0  ;;  %1529 = vmatprep.mubr.bf16.mxu1 %v13603_v0 }
 0x1b4   : > { %v10856_v7 = vpack.c.bf16 %v3888_v61, %v3856_v59  ;;  %v10858_v8 = vpack.c.bf16 %v3890_v62, %v3858_v60  ;;  %v10878_v61 = vpop.permute.xlu0 %3178 }
 0x1b5   : > { %v736_v10 = vpop.f32.mrb[12].mxu0  ;;  %v889_v12 = vpop.f32.mrb[12].mxu1  ;;  %v10862_v15 = vpack.c.bf16 %v3889_v2, %v3857_v63  ;;  %v10864_v16 = vpack.c.bf16 %v3891_v3, %v3859_v1 }
 0x1b6   : > { %v3408_v17 = vadd.f32 %v10852_v6, %v736_v10  ;;  %v3410_v18 = vadd.f32 %v10852_v6, %v889_v12  ;;  %v738_v19 = vpop.f32.mrb[13].mxu0  ;;  %v891_v20 = vpop.f32.mrb[13].mxu1 }
 0x1b7   : > { %v3409_v26 = vadd.f32 %v10852_v6, %v738_v19  ;;  %v3411_v27 = vadd.f32 %v10852_v6, %v891_v20  ;;  %v740_v30 = vpop.f32.mrb[14].mxu0  ;;  %v893_v32 = vpop.f32.mrb[14].mxu1 }
 0x1b8   : > { %v3440_v33 = vadd.f32 %v10860_v9, %v740_v30  ;;  %v3442_v34 = vadd.f32 %v10860_v9, %v893_v32  ;;  %v742_v35 = vpop.f32.mrb[15].mxu0  ;;  %v895_v36 = vpop.f32.mrb[15].mxu1  ;;  %v3920_v39 = vmax.f32 %v3408_v17, 0.0  ;;  %v3922_v41 = vmax.f32 %v3410_v18, 0.0 }
 0x1b9   : > { %v3441_v37 = vadd.f32 %v10860_v9, %v742_v35  ;;  %v3443_v38 = vadd.f32 %v10860_v9, %v895_v36  ;;  %v3921_v57 = vmax.f32 %v3409_v26, 0.0  ;;  %v3923_v58 = vmax.f32 %v3411_v27, 0.0  ;;  %v10886_v1 = vpop.permute.xlu1 %3183 }
 0x1ba   : > { %v3952_v46 = vmax.f32 %v3440_v33, 0.0  ;;  %v3954_v47 = vmax.f32 %v3442_v34, 0.0  ;;  %9064 = vmatmul.mubr.msk.bf16.gmra.mrb[120].mxu0 %vm538_vm1, %v10610_v49  ;;  %9077 = vmatmul.mubr.msk.bf16.gmra.mrb[120].mxu1 %vm538_vm1, %v10610_v49 }
 0x1bb   : > { %v3953_v59 = vmax.f32 %v3441_v37, 0.0  ;;  %v3955_v60 = vmax.f32 %v3443_v38, 0.0  ;;  %1386 = vmatprep.mubr.bf16.mxu0 %v13603_v0  ;;  %1539 = vmatprep.mubr.bf16.mxu1 %v13603_v0 }
 0x1bc   : > { %v10882_v62 = vpack.c.bf16 %v3952_v46, %v3920_v39  ;;  %v10884_v63 = vpack.c.bf16 %v3954_v47, %v3922_v41  ;;  %v10904_v47 = vpop.permute.xlu0 %3188 }
 0x1bd   : > { %v746_v2 = vpop.f32.mrb[16].mxu0  ;;  %v899_v3 = vpop.f32.mrb[16].mxu1  ;;  %v10888_v10 = vpack.c.bf16 %v3953_v59, %v3921_v57  ;;  %v10890_v49 = vpack.c.bf16 %v3955_v60, %v3923_v58 }
 0x1be   : > { %13628 = vst [vmem:[#allocation19_spill] sm:$0xff] %v10882_v62  ;;  %13629 = vst [vmem:[#allocation20_spill] sm:$0xff] %v10884_v63  ;;  %v3472_v12 = vadd.f32 %v10878_v61, %v746_v2  ;;  %v3474_v17 = vadd.f32 %v10878_v61, %v899_v3  ;;  %v748_v18 = vpop.f32.mrb[17].mxu0  ;;  %v901_v19 = vpop.f32.mrb[17].mxu1 }
 0x1bf   : > { %13630 = vst [vmem:[#allocation21_spill] sm:$0xff] %v10888_v10  ;;  %13631 = vst [vmem:[#allocation22_spill] sm:$0xff] %v10890_v49  ;;  %v3473_v20 = vadd.f32 %v10878_v61, %v748_v18  ;;  %v3475_v26 = vadd.f32 %v10878_v61, %v901_v19  ;;  %v750_v27 = vpop.f32.mrb[18].mxu0  ;;  %v903_v30 = vpop.f32.mrb[18].mxu1 }
 0x1c0   : > { %v3504_v32 = vadd.f32 %v10886_v1, %v750_v27  ;;  %v3506_v33 = vadd.f32 %v10886_v1, %v903_v30  ;;  %v752_v34 = vpop.f32.mrb[19].mxu0  ;;  %v905_v35 = vpop.f32.mrb[19].mxu1  ;;  %v3984_v38 = vmax.f32 %v3472_v12, 0.0  ;;  %v3986_v39 = vmax.f32 %v3474_v17, 0.0 }
 0x1c1   : > { %v3505_v36 = vadd.f32 %v10886_v1, %v752_v34  ;;  %v3507_v37 = vadd.f32 %v10886_v1, %v905_v35  ;;  %v3985_v57 = vmax.f32 %v3473_v20, 0.0  ;;  %v3987_v59 = vmax.f32 %v3475_v26, 0.0  ;;  %v10908_v2 = vpop.permute.xlu1 %3193 }
 0x1c2   : > { %v4016_v41 = vmax.f32 %v3504_v32, 0.0  ;;  %v4018_v46 = vmax.f32 %v3506_v33, 0.0  ;;  %9065 = vmatmul.mubr.msk.bf16.gmra.mrb[124].mxu0 %vm538_vm1, %v10618_v50  ;;  %9078 = vmatmul.mubr.msk.bf16.gmra.mrb[124].mxu1 %vm538_vm1, %v10618_v50 }
 0x1c3   : > { %1396 = vmatprep.mubr.bf16.mxu0 %v13603_v0  ;;  %1549 = vmatprep.mubr.bf16.mxu1 %v13603_v0  ;;  %v4017_v58 = vmax.f32 %v3505_v36, 0.0  ;;  %v4019_v60 = vmax.f32 %v3507_v37, 0.0 }
 0x1c4   : > { %v10910_v3 = vpack.c.bf16 %v4016_v41, %v3984_v38  ;;  %v10912_v12 = vpack.c.bf16 %v4018_v46, %v3986_v39 }
 0x1c5   : > { %v756_v17 = vpop.f32.mrb[20].mxu0  ;;  %v909_v18 = vpop.f32.mrb[20].mxu1  ;;  %v10914_v19 = vpack.c.bf16 %v4017_v58, %v3985_v57  ;;  %v10916_v50 = vpack.c.bf16 %v4019_v60, %v3987_v59 }
 0x1c6   : > { %13632 = vst [vmem:[#allocation23_spill] sm:$0xff] %v10910_v3  ;;  %13633 = vst [vmem:[#allocation24_spill] sm:$0xff] %v10912_v12  ;;  %v3536_v27 = vadd.f32 %v10904_v47, %v756_v17  ;;  %v3538_v30 = vadd.f32 %v10904_v47, %v909_v18  ;;  %v758_v20 = vpop.f32.mrb[21].mxu0  ;;  %v911_v32 = vpop.f32.mrb[21].mxu1 }
 0x1c7   : > { %13634 = vst [vmem:[#allocation25_spill] sm:$0xff] %v10914_v19  ;;  %13635 = vst [vmem:[#allocation26_spill] sm:$0xff] %v10916_v50  ;;  %v3537_v26 = vadd.f32 %v10904_v47, %v758_v20  ;;  %v3539_v33 = vadd.f32 %v10904_v47, %v911_v32  ;;  %v760_v34 = vpop.f32.mrb[22].mxu0  ;;  %v913_v35 = vpop.f32.mrb[22].mxu1 }
 0x1c8   : > { %v3568_v36 = vadd.f32 %v10908_v2, %v760_v34  ;;  %v3570_v37 = vadd.f32 %v10908_v2, %v913_v35  ;;  %v762_v38 = vpop.f32.mrb[23].mxu0  ;;  %v915_v39 = vpop.f32.mrb[23].mxu1  ;;  %v4048_v57 = vmax.f32 %v3536_v27, 0.0  ;;  %v4050_v58 = vmax.f32 %v3538_v30, 0.0 }
 0x1c9   : > { %v3569_v41 = vadd.f32 %v10908_v2, %v762_v38  ;;  %v3571_v46 = vadd.f32 %v10908_v2, %v915_v39  ;;  %v10930_v17 = vpop.permute.xlu0 %3198  ;;  %v4049_v18 = vmax.f32 %v3537_v26, 0.0  ;;  %v4051_v32 = vmax.f32 %v3539_v33, 0.0  ;;  %v10934_v27 = vpop.permute.xlu1 %3203 }
 0x1ca   : > { %v4080_v59 = vmax.f32 %v3568_v36, 0.0  ;;  %v4082_v60 = vmax.f32 %v3570_v37, 0.0  ;;  %9066 = vmatmul.mubr.msk.bf16.gmra.mrb[128].mxu0 %vm538_vm1, %v10626_v51  ;;  %9079 = vmatmul.mubr.msk.bf16.gmra.mrb[128].mxu1 %vm538_vm1, %v10626_v51 }
 0x1cb   : > { %1406 = vmatprep.mubr.bf16.mxu0 %v13603_v0  ;;  %1559 = vmatprep.mubr.bf16.mxu1 %v13603_v0  ;;  %v4081_v20 = vmax.f32 %v3569_v41, 0.0  ;;  %v4083_v34 = vmax.f32 %v3571_v46, 0.0 }
 0x1cc   : > { %v10936_v30 = vpack.c.bf16 %v4080_v59, %v4048_v57  ;;  %v10938_v35 = vpack.c.bf16 %v4082_v60, %v4050_v58 }
 0x1cd   : > { %v766_v36 = vpop.f32.mrb[24].mxu0  ;;  %v919_v37 = vpop.f32.mrb[24].mxu1  ;;  %v10940_v38 = vpack.c.bf16 %v4081_v20, %v4049_v18  ;;  %v10942_v51 = vpack.c.bf16 %v4083_v34, %v4051_v32 }
 0x1ce   : > { %13636 = vst [vmem:[#allocation27_spill] sm:$0xff] %v10936_v30  ;;  %13637 = vst [vmem:[#allocation28_spill] sm:$0xff] %v10938_v35  ;;  %v3600_v39 = vadd.f32 %v10930_v17, %v766_v36  ;;  %v3602_v0 = vadd.f32 %v10930_v17, %v919_v37  ;;  %v768_v26 = vpop.f32.mrb[25].mxu0  ;;  %v921_v41 = vpop.f32.mrb[25].mxu1 }
 0x1cf   : > { %13638 = vst [vmem:[#allocation29_spill] sm:$0xff] %v10940_v38  ;;  %13639 = vst [vmem:[#allocation30_spill] sm:$0xff] %v10942_v51  ;;  %v3601_v33 = vadd.f32 %v10930_v17, %v768_v26  ;;  %v3603_v46 = vadd.f32 %v10930_v17, %v921_v41  ;;  %v770_v57 = vpop.f32.mrb[26].mxu0  ;;  %v923_v59 = vpop.f32.mrb[26].mxu1  ;;  %v13640_v41 = vmov 0  }
 0x1d0   : > { %v3632_v58 = vadd.f32 %v10934_v27, %v770_v57  ;;  %v3634_v60 = vadd.f32 %v10934_v27, %v923_v59  ;;  %v772_v18 = vpop.f32.mrb[27].mxu0  ;;  %v925_v20 = vpop.f32.mrb[27].mxu1  ;;  %v4112_v36 = vmax.f32 %v3600_v39, 0.0  ;;  %v4114_v37 = vmax.f32 %v3602_v0, 0.0 }
 0x1d1   : > { %v3633_v32 = vadd.f32 %v10934_v27, %v772_v18  ;;  %v3635_v34 = vadd.f32 %v10934_v27, %v925_v20  ;;  %v10956_v26 = vpop.permute.xlu0 %3208  ;;  %v4113_v57 = vmax.f32 %v3601_v33, 0.0  ;;  %v4115_v18 = vmax.f32 %v3603_v46, 0.0  ;;  %v10960_v39 = vpop.permute.xlu1 %3213 }
 0x1d2   : > { %v4144_v35 = vmax.f32 %v3632_v58, 0.0  ;;  %v4146_v30 = vmax.f32 %v3634_v60, 0.0  ;;  %9067 = vmatmul.mubr.msk.bf16.gmra.mrb[132].mxu0 %vm538_vm1, %v10634_v52  ;;  %9080 = vmatmul.mubr.msk.bf16.gmra.mrb[132].mxu1 %vm538_vm1, %v10634_v52 }
 0x1d3   : > { %1416 = vmatprep.mubr.bf16.mxu0 %v13640_v41  ;;  %1569 = vmatprep.mubr.bf16.mxu1 %v13640_v41  ;;  %v4145_v59 = vmax.f32 %v3633_v32, 0.0  ;;  %v4147_v20 = vmax.f32 %v3635_v34, 0.0 }
 0x1d4   : > { %v10962_v0 = vpack.c.bf16 %v4144_v35, %v4112_v36  ;;  %v10964_v58 = vpack.c.bf16 %v4146_v30, %v4114_v37 }
 0x1d5   : > { %v776_v60 = vpop.f32.mrb[28].mxu0  ;;  %v929_v51 = vpop.f32.mrb[28].mxu1  ;;  %v10966_v38 = vpack.c.bf16 %v4145_v59, %v4113_v57  ;;  %v10968_v52 = vpack.c.bf16 %v4147_v20, %v4115_v18 }
 0x1d6   : > { %13641 = vst [vmem:[#allocation31_spill] sm:$0xff] %v10962_v0  ;;  %13642 = vst [vmem:[#allocation32_spill] sm:$0xff] %v10964_v58  ;;  %v3664_v12 = vadd.f32 %v10956_v26, %v776_v60  ;;  %v3666_v3 = vadd.f32 %v10956_v26, %v929_v51  ;;  %v778_v33 = vpop.f32.mrb[29].mxu0  ;;  %v931_v32 = vpop.f32.mrb[29].mxu1 }
 0x1d7   : > { %13643 = vst [vmem:[#allocation33_spill] sm:$0xff] %v10966_v38  ;;  %13644 = vst [vmem:[#allocation34_spill] sm:$0xff] %v10968_v52  ;;  %v3665_v46 = vadd.f32 %v10956_v26, %v778_v33  ;;  %v3667_v34 = vadd.f32 %v10956_v26, %v931_v32  ;;  %v780_v35 = vpop.f32.mrb[30].mxu0  ;;  %v933_v36 = vpop.f32.mrb[30].mxu1  ;;  %v11278_v38 = vld [vmem:[#allocation5 + $0x18] sm:$0xff]  }
 0x1d8   : > { %v3696_v30 = vadd.f32 %v10960_v39, %v780_v35  ;;  %v3698_v37 = vadd.f32 %v10960_v39, %v933_v36  ;;  %v782_v57 = vpop.f32.mrb[31].mxu0  ;;  %v935_v59 = vpop.f32.mrb[31].mxu1  ;;  %v4176_v60 = vmax.f32 %v3664_v12, 0.0  ;;  %v4178_v51 = vmax.f32 %v3666_v3, 0.0 }
 0x1d9   : > { %v3697_v18 = vadd.f32 %v10960_v39, %v782_v57  ;;  %v3699_v20 = vadd.f32 %v10960_v39, %v935_v59  ;;  %v4177_v33 = vmax.f32 %v3665_v46, 0.0  ;;  %v4179_v35 = vmax.f32 %v3667_v34, 0.0  ;;  %v11006_v46 = vld [vmem:[%s10516_s12 + $0x58] sm:$0xff] }
 0x1da   : > { %v4208_v58 = vmax.f32 %v3696_v30, 0.0  ;;  %v4210_v0 = vmax.f32 %v3698_v37, 0.0  ;;  %9068 = vmatmul.mubr.msk.bf16.gmra.mrb[136].mxu0 %vm538_vm1, %v10642_v53  ;;  %9081 = vmatmul.mubr.msk.bf16.gmra.mrb[136].mxu1 %vm538_vm1, %v10642_v53  ;;  %v438_v53 = vpack.c.bf16 %v10753_v4, %v10753_v4  ;;  %v401_v59 = vcombine.high %v11006_v46, %v11006_v46 }
 0x1db   : > { %1426 = vmatprep.mubr.bf16.mxu0 %v13640_v41  ;;  %1579 = vmatprep.mubr.bf16.mxu1 %v13640_v41  ;;  %v4209_v32 = vmax.f32 %v3697_v18, 0.0  ;;  %v4211_v36 = vmax.f32 %v3699_v20, 0.0  ;;  %v11014_v18 = vld [vmem:[#allocation5] sm:$0xff]  }
 0x1dc   : > { %v10984_v12 = vpack.c.bf16 %v4208_v58, %v4176_v60  ;;  %v10986_v3 = vpack.c.bf16 %v4210_v0, %v4178_v51  ;;  %v440_v0 = vpack.c.bf16 %v10756_v5, %v10756_v5  ;;  %v11003_v58 = vld [vmem:[%s10516_s12 + $0x50] sm:$0xff]  ;;  %v625_v34 = vsel %vm575_vm0, %v438_v53, 0 }
 0x1dd   : > { %v10988_v30 = vpack.c.bf16 %v4209_v32, %v4177_v33  ;;  %v10990_v37 = vpack.c.bf16 %v4211_v36, %v4179_v35  ;;  %v445_v5 = vpack.c.bf16 %v401_v59, %v401_v59 }
 0x1de   : > { %13645 = vst [vmem:[#allocation35_spill] sm:$0xff] %v10984_v12  ;;  %13646 = vst [vmem:[#allocation36_spill] sm:$0xff] %v10986_v3  ;;  %v631_v57 = vsel %vm575_vm0, %v440_v0, 0 }
 0x1df   : > { %13647 = vst [vmem:[#allocation37_spill] sm:$0xff] %v10988_v30  ;;  %13648 = vst [vmem:[#allocation38_spill] sm:$0xff] %v10990_v37 }
 0x1e2   : > { %9069 = vmatmul.mubr.msk.bf16.gmra.mrb[140].mxu0 %vm538_vm1, %v10650_v54  ;;  %9082 = vmatmul.mubr.msk.bf16.gmra.mrb[140].mxu1 %vm538_vm1, %v10650_v54  ;;  %v400_v54 = vcombine.high %v11003_v58, %v11003_v58 }
 0x1e3   : > { %1622 = vmatprep.mubr.bf16.mxu0 %v13640_v41  ;;  %1775 = vmatprep.mubr.bf16.mxu1 %v13640_v41 }
 0x1e4   : > { %v443_v4 = vpack.c.bf16 %v400_v54, %v400_v54 }
 0x1ea   : > { %9084 = vmatmul.mubr.msk.bf16.vlgmr.msra.gmra.mrb[144].mxu0 %vm538_vm1, %v11014_v18  ;;  %9097 = vmatmul.mubr.msk.bf16.vlgmr.msra.gmra.mrb[144].mxu1 %vm538_vm1, %v11014_v18 }
 0x1eb   : > { %1632 = vmatprep.mubr.bf16.mxu0 %v13640_v41  ;;  %1785 = vmatprep.mubr.bf16.mxu1 %v13640_v41 }
 0x1ec   : > { %1897 = vmatpush1.bf16.msra.mxu0 %v625_v34  ;;  %2050 = vmatpush1.bf16.msra.mxu1 %v631_v57 }
 0x1ed   : > { %9135 = vmatprep.subr.msk.bf16.mxu0 %vm575_vm0, %v443_v4  ;;  %9148 = vmatprep.subr.msk.bf16.mxu1 %vm575_vm0, %v445_v5 }
 0x1f2   : > { %9085 = vmatmul.mubr.msk.bf16.gmra.mrb[148].mxu0 %vm538_vm1, %v10558_v23  ;;  %9098 = vmatmul.mubr.msk.bf16.gmra.mrb[148].mxu1 %vm538_vm1, %v10558_v23 }
 0x1f3   : > { %1642 = vmatprep.mubr.bf16.mxu0 %v13640_v41  ;;  %1795 = vmatprep.mubr.bf16.mxu1 %v13640_v41 }
 0x1fa   : > { %9086 = vmatmul.mubr.msk.bf16.gmra.mrb[152].mxu0 %vm538_vm1, %v10576_v31  ;;  %9099 = vmatmul.mubr.msk.bf16.gmra.mrb[152].mxu1 %vm538_vm1, %v10576_v31 }
 0x1fb   : > { %1652 = vmatprep.mubr.bf16.mxu0 %v13640_v41  ;;  %1805 = vmatprep.mubr.bf16.mxu1 %v13640_v41 }
 0x1fd   : > { %v1012_v20 = vpop.f32.mrb[48].mxu0  ;;  %v1165_v60 = vpop.f32.mrb[48].mxu1 }
 0x1fe   : > { %v3220_v51 = vadd.f32 %v10778_v11, %v1012_v20  ;;  %v3222_v23 = vadd.f32 %v10778_v11, %v1165_v60  ;;  %v1014_v33 = vpop.f32.mrb[49].mxu0  ;;  %v1167_v32 = vpop.f32.mrb[49].mxu1 }
 0x1ff   : > { %v3221_v35 = vadd.f32 %v10778_v11, %v1014_v33  ;;  %v3223_v36 = vadd.f32 %v10778_v11, %v1167_v32  ;;  %v1016_v53 = vpop.f32.mrb[50].mxu0  ;;  %v1169_v0 = vpop.f32.mrb[50].mxu1 }
 0x200   : > { %v3252_v31 = vadd.f32 %v10786_v13, %v1016_v53  ;;  %v3254_v34 = vadd.f32 %v10786_v13, %v1169_v0  ;;  %v1018_v57 = vpop.f32.mrb[51].mxu0  ;;  %v1171_v54 = vpop.f32.mrb[51].mxu1  ;;  %v3732_v5 = vmax.f32 %v3220_v51, 0.0  ;;  %v3734_v20 = vmax.f32 %v3222_v23, 0.0 }
 0x201   : > { %v3253_v59 = vadd.f32 %v10786_v13, %v1018_v57  ;;  %v3255_v4 = vadd.f32 %v10786_v13, %v1171_v54  ;;  %v3733_v33 = vmax.f32 %v3221_v35, 0.0  ;;  %v3735_v32 = vmax.f32 %v3223_v36, 0.0 }
 0x202   : > { %v3764_v60 = vmax.f32 %v3252_v31, 0.0  ;;  %v3766_v3 = vmax.f32 %v3254_v34, 0.0  ;;  %9087 = vmatmul.mubr.msk.bf16.gmra.mrb[156].mxu0 %vm538_vm1, %v10586_v40  ;;  %9100 = vmatmul.mubr.msk.bf16.gmra.mrb[156].mxu1 %vm538_vm1, %v10586_v40 }
 0x203   : > { %v3765_v53 = vmax.f32 %v3253_v59, 0.0  ;;  %v3767_v0 = vmax.f32 %v3255_v4, 0.0  ;;  %1662 = vmatprep.mubr.bf16.mxu0 %v13640_v41  ;;  %1815 = vmatprep.mubr.bf16.mxu1 %v13640_v41 }
 0x204   : > { %v11050_v57 = vpack.c.bf16 %v3764_v60, %v3732_v5  ;;  %v11052_v51 = vpack.c.bf16 %v3766_v3, %v3734_v20 }
 0x205   : > { %v1022_v23 = vpop.f32.mrb[52].mxu0  ;;  %v1175_v31 = vpop.f32.mrb[52].mxu1  ;;  %v11054_v34 = vpack.c.bf16 %v3765_v53, %v3733_v33  ;;  %v11056_v54 = vpack.c.bf16 %v3767_v0, %v3735_v32 }
 0x206   : > { %13649 = vst [vmem:[#allocation39_spill] sm:$0xff] %v11050_v57  ;;  %13650 = vst [vmem:[#allocation40_spill] sm:$0xff] %v11052_v51  ;;  %v3284_v40 = vadd.f32 %v10788_v14, %v1022_v23  ;;  %v3286_v35 = vadd.f32 %v10788_v14, %v1175_v31  ;;  %v1024_v36 = vpop.f32.mrb[53].mxu0  ;;  %v1177_v59 = vpop.f32.mrb[53].mxu1 }
 0x207   : > { %13651 = vst [vmem:[#allocation41_spill] sm:$0xff] %v11054_v34  ;;  %13652 = vst [vmem:[#allocation42_spill] sm:$0xff] %v11056_v54  ;;  %v3285_v4 = vadd.f32 %v10788_v14, %v1024_v36  ;;  %v3287_v12 = vadd.f32 %v10788_v14, %v1177_v59  ;;  %v1026_v5 = vpop.f32.mrb[54].mxu0  ;;  %v1179_v60 = vpop.f32.mrb[54].mxu1 }
 0x208   : > { %v3316_v3 = vadd.f32 %v10808_v44, %v1026_v5  ;;  %v3318_v20 = vadd.f32 %v10808_v44, %v1179_v60  ;;  %v1028_v33 = vpop.f32.mrb[55].mxu0  ;;  %v1181_v53 = vpop.f32.mrb[55].mxu1  ;;  %v3796_v23 = vmax.f32 %v3284_v40, 0.0  ;;  %v3798_v31 = vmax.f32 %v3286_v35, 0.0 }
 0x209   : > { %v3317_v32 = vadd.f32 %v10808_v44, %v1028_v33  ;;  %v3319_v0 = vadd.f32 %v10808_v44, %v1181_v53  ;;  %v3797_v36 = vmax.f32 %v3285_v4, 0.0  ;;  %v3799_v59 = vmax.f32 %v3287_v12, 0.0 }
 0x20a   : > { %v3828_v51 = vmax.f32 %v3316_v3, 0.0  ;;  %v3830_v57 = vmax.f32 %v3318_v20, 0.0  ;;  %9088 = vmatmul.mubr.msk.bf16.gmra.mrb[160].mxu0 %vm538_vm1, %v10594_v45  ;;  %9101 = vmatmul.mubr.msk.bf16.gmra.mrb[160].mxu1 %vm538_vm1, %v10594_v45 }
 0x20b   : > { %v3829_v5 = vmax.f32 %v3317_v32, 0.0  ;;  %v3831_v60 = vmax.f32 %v3319_v0, 0.0  ;;  %1672 = vmatprep.mubr.bf16.mxu0 %v13640_v41  ;;  %1825 = vmatprep.mubr.bf16.mxu1 %v13640_v41 }
 0x20c   : > { %v11072_v33 = vpack.c.bf16 %v3828_v51, %v3796_v23  ;;  %v11074_v40 = vpack.c.bf16 %v3830_v57, %v3798_v31 }
 0x20d   : > { %v1032_v35 = vpop.f32.mrb[56].mxu0  ;;  %v1185_v3 = vpop.f32.mrb[56].mxu1  ;;  %v11076_v20 = vpack.c.bf16 %v3829_v5, %v3797_v36  ;;  %v11078_v53 = vpack.c.bf16 %v3831_v60, %v3799_v59 }
 0x20e   : > { %13653 = vst [vmem:[#allocation43_spill] sm:$0xff] %v11072_v33  ;;  %13654 = vst [vmem:[#allocation44_spill] sm:$0xff] %v11074_v40  ;;  %v3348_v45 = vadd.f32 %v10826_v21, %v1032_v35  ;;  %v3350_v12 = vadd.f32 %v10826_v21, %v1185_v3  ;;  %v1034_v4 = vpop.f32.mrb[57].mxu0  ;;  %v1187_v32 = vpop.f32.mrb[57].mxu1 }
 0x20f   : > { %13655 = vst [vmem:[#allocation45_spill] sm:$0xff] %v11076_v20  ;;  %13656 = vst [vmem:[#allocation46_spill] sm:$0xff] %v11078_v53  ;;  %v3349_v0 = vadd.f32 %v10826_v21, %v1034_v4  ;;  %v3351_v54 = vadd.f32 %v10826_v21, %v1187_v32  ;;  %v1036_v51 = vpop.f32.mrb[58].mxu0  ;;  %v1189_v23 = vpop.f32.mrb[58].mxu1 }
 0x210   : > { %v3380_v57 = vadd.f32 %v10834_v25, %v1036_v51  ;;  %v3382_v31 = vadd.f32 %v10834_v25, %v1189_v23  ;;  %v1038_v36 = vpop.f32.mrb[59].mxu0  ;;  %v1191_v5 = vpop.f32.mrb[59].mxu1  ;;  %v3860_v35 = vmax.f32 %v3348_v45, 0.0  ;;  %v3862_v3 = vmax.f32 %v3350_v12, 0.0 }
 0x211   : > { %v3381_v59 = vadd.f32 %v10834_v25, %v1038_v36  ;;  %v3383_v60 = vadd.f32 %v10834_v25, %v1191_v5  ;;  %v3861_v4 = vmax.f32 %v3349_v0, 0.0  ;;  %v3863_v32 = vmax.f32 %v3351_v54, 0.0 }
 0x212   : > { %v3892_v40 = vmax.f32 %v3380_v57, 0.0  ;;  %v3894_v33 = vmax.f32 %v3382_v31, 0.0  ;;  %9089 = vmatmul.mubr.msk.bf16.gmra.mrb[164].mxu0 %vm538_vm1, %v10602_v48  ;;  %9102 = vmatmul.mubr.msk.bf16.gmra.mrb[164].mxu1 %vm538_vm1, %v10602_v48 }
 0x213   : > { %v3893_v51 = vmax.f32 %v3381_v59, 0.0  ;;  %v3895_v23 = vmax.f32 %v3383_v60, 0.0  ;;  %1682 = vmatprep.mubr.bf16.mxu0 %v13640_v41  ;;  %1835 = vmatprep.mubr.bf16.mxu1 %v13640_v41 }
 0x214   : > { %v11094_v36 = vpack.c.bf16 %v3892_v40, %v3860_v35  ;;  %v11096_v45 = vpack.c.bf16 %v3894_v33, %v3862_v3 }
 0x215   : > { %v1042_v12 = vpop.f32.mrb[60].mxu0  ;;  %v1195_v57 = vpop.f32.mrb[60].mxu1  ;;  %v11098_v31 = vpack.c.bf16 %v3893_v51, %v3861_v4  ;;  %v11100_v5 = vpack.c.bf16 %v3895_v23, %v3863_v32 }
 0x216   : > { %13657 = vst [vmem:[#allocation47_spill] sm:$0xff] %v11094_v36  ;;  %13658 = vst [vmem:[#allocation48_spill] sm:$0xff] %v11096_v45  ;;  %v3412_v48 = vadd.f32 %v10852_v6, %v1042_v12  ;;  %v3414_v54 = vadd.f32 %v10852_v6, %v1195_v57  ;;  %v1044_v0 = vpop.f32.mrb[61].mxu0  ;;  %v1197_v59 = vpop.f32.mrb[61].mxu1 }
 0x217   : > { %13659 = vst [vmem:[#allocation49_spill] sm:$0xff] %v11098_v31  ;;  %13660 = vst [vmem:[#allocation50_spill] sm:$0xff] %v11100_v5  ;;  %v3413_v60 = vadd.f32 %v10852_v6, %v1044_v0  ;;  %v3415_v53 = vadd.f32 %v10852_v6, %v1197_v59  ;;  %v1046_v40 = vpop.f32.mrb[62].mxu0  ;;  %v1199_v35 = vpop.f32.mrb[62].mxu1  ;;  %v11110_v5 = vld [vmem:[#allocation5 + $0x30] sm:$0xff]  }
 0x218   : > { %v3444_v33 = vadd.f32 %v10860_v9, %v1046_v40  ;;  %v3446_v3 = vadd.f32 %v10860_v9, %v1199_v35  ;;  %v1048_v4 = vpop.f32.mrb[63].mxu0  ;;  %v1201_v51 = vpop.f32.mrb[63].mxu1  ;;  %v3924_v12 = vmax.f32 %v3412_v48, 0.0  ;;  %v3926_v57 = vmax.f32 %v3414_v54, 0.0 }
 0x219   : > { %v3445_v32 = vadd.f32 %v10860_v9, %v1048_v4  ;;  %v3447_v23 = vadd.f32 %v10860_v9, %v1201_v51  ;;  %v3925_v0 = vmax.f32 %v3413_v60, 0.0  ;;  %v3927_v59 = vmax.f32 %v3415_v53, 0.0 }
 0x21a   : > { %v3956_v45 = vmax.f32 %v3444_v33, 0.0  ;;  %v3958_v36 = vmax.f32 %v3446_v3, 0.0  ;;  %9090 = vmatmul.mubr.msk.bf16.gmra.mrb[168].mxu0 %vm538_vm1, %v11110_v5  ;;  %9103 = vmatmul.mubr.msk.bf16.gmra.mrb[168].mxu1 %vm538_vm1, %v11110_v5 }
 0x21b   : > { %v3957_v40 = vmax.f32 %v3445_v32, 0.0  ;;  %v3959_v35 = vmax.f32 %v3447_v23, 0.0  ;;  %1692 = vmatprep.mubr.bf16.mxu0 %v13640_v41  ;;  %1845 = vmatprep.mubr.bf16.mxu1 %v13640_v41 }
 0x21c   : > { %v11118_v48 = vpack.c.bf16 %v3956_v45, %v3924_v12  ;;  %v11120_v54 = vpack.c.bf16 %v3958_v36, %v3926_v57 }
 0x21d   : > { %v1052_v33 = vpop.f32.mrb[64].mxu0  ;;  %v1205_v3 = vpop.f32.mrb[64].mxu1  ;;  %v11122_v4 = vpack.c.bf16 %v3957_v40, %v3925_v0  ;;  %v11124_v51 = vpack.c.bf16 %v3959_v35, %v3927_v59 }
 0x21e   : > { %13661 = vst [vmem:[#allocation51_spill] sm:$0xff] %v11118_v48  ;;  %13662 = vst [vmem:[#allocation52_spill] sm:$0xff] %v11120_v54  ;;  %v3476_v31 = vadd.f32 %v10878_v61, %v1052_v33  ;;  %v3478_v53 = vadd.f32 %v10878_v61, %v1205_v3  ;;  %v1054_v60 = vpop.f32.mrb[65].mxu0  ;;  %v1207_v32 = vpop.f32.mrb[65].mxu1 }
 0x21f   : > { %13663 = vst [vmem:[#allocation53_spill] sm:$0xff] %v11122_v4  ;;  %13664 = vst [vmem:[#allocation54_spill] sm:$0xff] %v11124_v51  ;;  %v3477_v23 = vadd.f32 %v10878_v61, %v1054_v60  ;;  %v3479_v20 = vadd.f32 %v10878_v61, %v1207_v32  ;;  %v1056_v45 = vpop.f32.mrb[66].mxu0  ;;  %v1209_v12 = vpop.f32.mrb[66].mxu1  ;;  %v11134_v51 = vld [vmem:[#allocation5 + $0x38] sm:$0xff]  }
 0x220   : > { %v3508_v36 = vadd.f32 %v10886_v1, %v1056_v45  ;;  %v3510_v57 = vadd.f32 %v10886_v1, %v1209_v12  ;;  %v1058_v0 = vpop.f32.mrb[67].mxu0  ;;  %v1211_v40 = vpop.f32.mrb[67].mxu1  ;;  %v3988_v33 = vmax.f32 %v3476_v31, 0.0  ;;  %v3990_v3 = vmax.f32 %v3478_v53, 0.0 }
 0x221   : > { %v3509_v59 = vadd.f32 %v10886_v1, %v1058_v0  ;;  %v3511_v35 = vadd.f32 %v10886_v1, %v1211_v40  ;;  %v3989_v60 = vmax.f32 %v3477_v23, 0.0  ;;  %v3991_v32 = vmax.f32 %v3479_v20, 0.0 }
 0x222   : > { %v4020_v54 = vmax.f32 %v3508_v36, 0.0  ;;  %v4022_v48 = vmax.f32 %v3510_v57, 0.0  ;;  %9091 = vmatmul.mubr.msk.bf16.gmra.mrb[172].mxu0 %vm538_vm1, %v11134_v51  ;;  %9104 = vmatmul.mubr.msk.bf16.gmra.mrb[172].mxu1 %vm538_vm1, %v11134_v51 }
 0x223   : > { %v4021_v45 = vmax.f32 %v3509_v59, 0.0  ;;  %v4023_v12 = vmax.f32 %v3511_v35, 0.0  ;;  %1702 = vmatprep.mubr.bf16.mxu0 %v13640_v41  ;;  %1855 = vmatprep.mubr.bf16.mxu1 %v13640_v41 }
 0x224   : > { %v11142_v31 = vpack.c.bf16 %v4020_v54, %v3988_v33  ;;  %v11144_v53 = vpack.c.bf16 %v4022_v48, %v3990_v3 }
 0x225   : > { %v1062_v36 = vpop.f32.mrb[68].mxu0  ;;  %v1215_v57 = vpop.f32.mrb[68].mxu1  ;;  %v11146_v0 = vpack.c.bf16 %v4021_v45, %v3989_v60  ;;  %v11148_v40 = vpack.c.bf16 %v4023_v12, %v3991_v32 }
 0x226   : > { %13665 = vst [vmem:[#allocation55_spill] sm:$0xff] %v11142_v31  ;;  %13666 = vst [vmem:[#allocation56_spill] sm:$0xff] %v11144_v53  ;;  %v3540_v4 = vadd.f32 %v10904_v47, %v1062_v36  ;;  %v3542_v20 = vadd.f32 %v10904_v47, %v1215_v57  ;;  %v1064_v23 = vpop.f32.mrb[69].mxu0  ;;  %v1217_v59 = vpop.f32.mrb[69].mxu1 }
 0x227   : > { %13667 = vst [vmem:[#allocation57_spill] sm:$0xff] %v11146_v0  ;;  %13668 = vst [vmem:[#allocation58_spill] sm:$0xff] %v11148_v40  ;;  %v3541_v35 = vadd.f32 %v10904_v47, %v1064_v23  ;;  %v3543_v34 = vadd.f32 %v10904_v47, %v1217_v59  ;;  %v1066_v54 = vpop.f32.mrb[70].mxu0  ;;  %v1219_v33 = vpop.f32.mrb[70].mxu1  ;;  %v11158_v40 = vld [vmem:[#allocation5 + $0x40] sm:$0xff]  }
 0x228   : > { %v3572_v48 = vadd.f32 %v10908_v2, %v1066_v54  ;;  %v3574_v3 = vadd.f32 %v10908_v2, %v1219_v33  ;;  %v1068_v60 = vpop.f32.mrb[71].mxu0  ;;  %v1221_v45 = vpop.f32.mrb[71].mxu1  ;;  %v4052_v36 = vmax.f32 %v3540_v4, 0.0  ;;  %v4054_v57 = vmax.f32 %v3542_v20, 0.0 }
 0x229   : > { %v3573_v32 = vadd.f32 %v10908_v2, %v1068_v60  ;;  %v3575_v12 = vadd.f32 %v10908_v2, %v1221_v45  ;;  %v4053_v23 = vmax.f32 %v3541_v35, 0.0  ;;  %v4055_v59 = vmax.f32 %v3543_v34, 0.0 }
 0x22a   : > { %v4084_v53 = vmax.f32 %v3572_v48, 0.0  ;;  %v4086_v31 = vmax.f32 %v3574_v3, 0.0  ;;  %9092 = vmatmul.mubr.msk.bf16.gmra.mrb[176].mxu0 %vm538_vm1, %v11158_v40  ;;  %9105 = vmatmul.mubr.msk.bf16.gmra.mrb[176].mxu1 %vm538_vm1, %v11158_v40 }
 0x22b   : > { %v4085_v54 = vmax.f32 %v3573_v32, 0.0  ;;  %v4087_v33 = vmax.f32 %v3575_v12, 0.0  ;;  %1712 = vmatprep.mubr.bf16.mxu0 %v13640_v41  ;;  %1865 = vmatprep.mubr.bf16.mxu1 %v13640_v41 }
 0x22c   : > { %v11166_v4 = vpack.c.bf16 %v4084_v53, %v4052_v36  ;;  %v11168_v20 = vpack.c.bf16 %v4086_v31, %v4054_v57 }
 0x22d   : > { %v1072_v48 = vpop.f32.mrb[72].mxu0  ;;  %v1225_v3 = vpop.f32.mrb[72].mxu1  ;;  %v11170_v60 = vpack.c.bf16 %v4085_v54, %v4053_v23  ;;  %v11172_v45 = vpack.c.bf16 %v4087_v33, %v4055_v59 }
 0x22e   : > { %13669 = vst [vmem:[#allocation59_spill] sm:$0xff] %v11166_v4  ;;  %13670 = vst [vmem:[#allocation60_spill] sm:$0xff] %v11168_v20  ;;  %v3604_v0 = vadd.f32 %v10930_v17, %v1072_v48  ;;  %v3606_v34 = vadd.f32 %v10930_v17, %v1225_v3  ;;  %v1074_v35 = vpop.f32.mrb[73].mxu0  ;;  %v1227_v32 = vpop.f32.mrb[73].mxu1 }
 0x22f   : > { %13671 = vst [vmem:[#allocation61_spill] sm:$0xff] %v11170_v60  ;;  %13672 = vst [vmem:[#allocation62_spill] sm:$0xff] %v11172_v45  ;;  %v3605_v12 = vadd.f32 %v10930_v17, %v1074_v35  ;;  %v3607_v37 = vadd.f32 %v10930_v17, %v1227_v32  ;;  %v1076_v53 = vpop.f32.mrb[74].mxu0  ;;  %v1229_v36 = vpop.f32.mrb[74].mxu1  ;;  %v11182_v45 = vld [vmem:[#allocation5 + $0x48] sm:$0xff]  }
 0x230   : > { %v3636_v31 = vadd.f32 %v10934_v27, %v1076_v53  ;;  %v3638_v57 = vadd.f32 %v10934_v27, %v1229_v36  ;;  %v1078_v23 = vpop.f32.mrb[75].mxu0  ;;  %v1231_v54 = vpop.f32.mrb[75].mxu1  ;;  %v4116_v48 = vmax.f32 %v3604_v0, 0.0  ;;  %v4118_v3 = vmax.f32 %v3606_v34, 0.0 }
 0x231   : > { %v3637_v59 = vadd.f32 %v10934_v27, %v1078_v23  ;;  %v3639_v33 = vadd.f32 %v10934_v27, %v1231_v54  ;;  %v4117_v35 = vmax.f32 %v3605_v12, 0.0  ;;  %v4119_v32 = vmax.f32 %v3607_v37, 0.0 }
 0x232   : > { %v4148_v20 = vmax.f32 %v3636_v31, 0.0  ;;  %v4150_v4 = vmax.f32 %v3638_v57, 0.0  ;;  %9093 = vmatmul.mubr.msk.bf16.gmra.mrb[180].mxu0 %vm538_vm1, %v11182_v45  ;;  %9106 = vmatmul.mubr.msk.bf16.gmra.mrb[180].mxu1 %vm538_vm1, %v11182_v45 }
 0x233   : > { %v4149_v53 = vmax.f32 %v3637_v59, 0.0  ;;  %v4151_v36 = vmax.f32 %v3639_v33, 0.0  ;;  %1722 = vmatprep.mubr.bf16.mxu0 %v13640_v41  ;;  %1875 = vmatprep.mubr.bf16.mxu1 %v13640_v41 }
 0x234   : > { %v11190_v0 = vpack.c.bf16 %v4148_v20, %v4116_v48  ;;  %v11192_v34 = vpack.c.bf16 %v4150_v4, %v4118_v3 }
 0x235   : > { %v1082_v31 = vpop.f32.mrb[76].mxu0  ;;  %v1235_v57 = vpop.f32.mrb[76].mxu1  ;;  %v11194_v23 = vpack.c.bf16 %v4149_v53, %v4117_v35  ;;  %v11196_v54 = vpack.c.bf16 %v4151_v36, %v4119_v32 }
 0x236   : > { %13673 = vst [vmem:[#allocation63_spill] sm:$0xff] %v11190_v0  ;;  %13674 = vst [vmem:[#allocation64_spill] sm:$0xff] %v11192_v34  ;;  %v3668_v60 = vadd.f32 %v10956_v26, %v1082_v31  ;;  %v3670_v37 = vadd.f32 %v10956_v26, %v1235_v57  ;;  %v1084_v12 = vpop.f32.mrb[77].mxu0  ;;  %v1237_v59 = vpop.f32.mrb[77].mxu1 }
 0x237   : > { %13675 = vst [vmem:[#allocation65_spill] sm:$0xff] %v11194_v23  ;;  %13676 = vst [vmem:[#allocation66_spill] sm:$0xff] %v11196_v54  ;;  %v3669_v33 = vadd.f32 %v10956_v26, %v1084_v12  ;;  %v3671_v30 = vadd.f32 %v10956_v26, %v1237_v59  ;;  %v1086_v20 = vpop.f32.mrb[78].mxu0  ;;  %v1239_v48 = vpop.f32.mrb[78].mxu1  ;;  %v11206_v54 = vld [vmem:[#allocation5 + $0x50] sm:$0xff]  }
 0x238   : > { %v3700_v4 = vadd.f32 %v10960_v39, %v1086_v20  ;;  %v3702_v3 = vadd.f32 %v10960_v39, %v1239_v48  ;;  %v1088_v35 = vpop.f32.mrb[79].mxu0  ;;  %v1241_v53 = vpop.f32.mrb[79].mxu1  ;;  %v4180_v31 = vmax.f32 %v3668_v60, 0.0  ;;  %v4182_v57 = vmax.f32 %v3670_v37, 0.0 }
 0x239   : > { %v3701_v32 = vadd.f32 %v10960_v39, %v1088_v35  ;;  %v3703_v36 = vadd.f32 %v10960_v39, %v1241_v53  ;;  %v4181_v12 = vmax.f32 %v3669_v33, 0.0  ;;  %v4183_v59 = vmax.f32 %v3671_v30, 0.0  ;;  %v11222_v35 = vld [vmem:[#allocation5 + $0x58] sm:$0xff]   ;;  %v11238_v33 = vld [vmem:[%s10516_s12 + $0x68] sm:$0xff] }
 0x23a   : > { %v4212_v34 = vmax.f32 %v3700_v4, 0.0  ;;  %v4214_v0 = vmax.f32 %v3702_v3, 0.0  ;;  %9094 = vmatmul.mubr.msk.bf16.gmra.mrb[184].mxu0 %vm538_vm1, %v11206_v54  ;;  %9107 = vmatmul.mubr.msk.bf16.gmra.mrb[184].mxu1 %vm538_vm1, %v11206_v54  ;;  %v442_v30 = vpack.c.bf16 %v11003_v58, %v11003_v58 }
 0x23b   : > { %v4213_v20 = vmax.f32 %v3701_v32, 0.0  ;;  %v4215_v48 = vmax.f32 %v3703_v36, 0.0  ;;  %1732 = vmatprep.mubr.bf16.mxu0 %v13640_v41  ;;  %1885 = vmatprep.mubr.bf16.mxu1 %v13640_v41 }
 0x23c   : > { %v11214_v60 = vpack.c.bf16 %v4212_v34, %v4180_v31  ;;  %v11216_v37 = vpack.c.bf16 %v4214_v0, %v4182_v57  ;;  %v444_v0 = vpack.c.bf16 %v11006_v46, %v11006_v46  ;;  %v11235_v34 = vld [vmem:[%s10516_s12 + $0x60] sm:$0xff]  ;;  %v637_v53 = vsel %vm575_vm0, %v442_v30, 0  ;;  %v11254_v57 = vld [vmem:[#allocation5 + $0x8] sm:$0xff]  }
 0x23d   : > { %v11218_v4 = vpack.c.bf16 %v4213_v20, %v4181_v12  ;;  %v11220_v3 = vpack.c.bf16 %v4215_v48, %v4183_v59  ;;  %v402_v36 = vcombine.high %v11235_v34, %v11235_v34  ;;  %v403_v31 = vcombine.high %v11238_v33, %v11238_v33 }
 0x23e   : > { %13677 = vst [vmem:[#allocation67_spill] sm:$0xff] %v11214_v60  ;;  %13678 = vst [vmem:[#allocation68_spill] sm:$0xff] %v11216_v37  ;;  %v643_v32 = vsel %vm575_vm0, %v444_v0, 0 }
 0x23f   : > { %13679 = vst [vmem:[#allocation69_spill] sm:$0xff] %v11218_v4  ;;  %13680 = vst [vmem:[#allocation70_spill] sm:$0xff] %v11220_v3  ;;  %v447_v58 = vpack.c.bf16 %v402_v36, %v402_v36  ;;  %v449_v46 = vpack.c.bf16 %v403_v31, %v403_v31 }
 0x242   : > { %9095 = vmatmul.mubr.msk.bf16.gmra.mrb[188].mxu0 %vm538_vm1, %v11222_v35  ;;  %9108 = vmatmul.mubr.msk.bf16.gmra.mrb[188].mxu1 %vm538_vm1, %v11222_v35 }
 0x243   : > { %1928 = vmatprep.mubr.bf16.mxu0 %v13640_v41  ;;  %2081 = vmatprep.mubr.bf16.mxu1 %v13640_v41 }
 0x24a   : > { %9110 = vmatmul.mubr.msk.bf16.vlgmr.msra.gmra.mrb[192].mxu0 %vm538_vm1, %v11014_v18  ;;  %9123 = vmatmul.mubr.msk.bf16.vlgmr.msra.gmra.mrb[192].mxu1 %vm538_vm1, %v11014_v18  ;;  %v11262_v18 = vld [vmem:[#allocation5 + $0x10] sm:$0xff]  }
 0x24b   : > { %1938 = vmatprep.mubr.bf16.mxu0 %v13640_v41  ;;  %2091 = vmatprep.mubr.bf16.mxu1 %v13640_v41 }
 0x24c   : > { %2203 = vmatpush1.bf16.msra.mxu0 %v637_v53  ;;  %2356 = vmatpush1.bf16.msra.mxu1 %v643_v32 }
 0x24d   : > { %9161 = vmatprep.subr.msk.bf16.mxu0 %vm575_vm0, %v447_v58  ;;  %9174 = vmatprep.subr.msk.bf16.mxu1 %vm575_vm0, %v449_v46 }
 0x252   : > { %9111 = vmatmul.mubr.msk.bf16.gmra.mrb[196].mxu0 %vm538_vm1, %v11254_v57  ;;  %9124 = vmatmul.mubr.msk.bf16.gmra.mrb[196].mxu1 %vm538_vm1, %v11254_v57 }
 0x253   : > { %1948 = vmatprep.mubr.bf16.mxu0 %v13640_v41  ;;  %2101 = vmatprep.mubr.bf16.mxu1 %v13640_v41 }
 0x25a   : > { %9112 = vmatmul.mubr.msk.bf16.gmra.mrb[200].mxu0 %vm538_vm1, %v11262_v18  ;;  %9125 = vmatmul.mubr.msk.bf16.gmra.mrb[200].mxu1 %vm538_vm1, %v11262_v18 }
 0x25b   : > { %1958 = vmatprep.mubr.bf16.mxu0 %v13640_v41  ;;  %2111 = vmatprep.mubr.bf16.mxu1 %v13640_v41 }
 0x25d   : > { %v1318_v12 = vpop.f32.mrb[96].mxu0  ;;  %v1471_v59 = vpop.f32.mrb[96].mxu1 }
 0x25e   : > { %v3224_v20 = vadd.f32 %v10778_v11, %v1318_v12  ;;  %v3226_v48 = vadd.f32 %v10778_v11, %v1471_v59  ;;  %v1320_v30 = vpop.f32.mrb[97].mxu0  ;;  %v1473_v0 = vpop.f32.mrb[97].mxu1 }
 0x25f   : > { %v3225_v53 = vadd.f32 %v10778_v11, %v1320_v30  ;;  %v3227_v32 = vadd.f32 %v10778_v11, %v1473_v0  ;;  %v1322_v36 = vpop.f32.mrb[98].mxu0  ;;  %v1475_v31 = vpop.f32.mrb[98].mxu1 }
 0x260   : > { %v3256_v58 = vadd.f32 %v10786_v13, %v1322_v36  ;;  %v3258_v46 = vadd.f32 %v10786_v13, %v1475_v31  ;;  %v1324_v37 = vpop.f32.mrb[99].mxu0  ;;  %v1477_v60 = vpop.f32.mrb[99].mxu1  ;;  %v3736_v4 = vmax.f32 %v3224_v20, 0.0  ;;  %v3738_v59 = vmax.f32 %v3226_v48, 0.0 }
 0x261   : > { %v3257_v3 = vadd.f32 %v10786_v13, %v1324_v37  ;;  %v3259_v12 = vadd.f32 %v10786_v13, %v1477_v60  ;;  %v3737_v30 = vmax.f32 %v3225_v53, 0.0  ;;  %v3739_v0 = vmax.f32 %v3227_v32, 0.0 }
 0x262   : > { %v3768_v23 = vmax.f32 %v3256_v58, 0.0  ;;  %v3770_v52 = vmax.f32 %v3258_v46, 0.0  ;;  %9113 = vmatmul.mubr.msk.bf16.gmra.mrb[204].mxu0 %vm538_vm1, %v11278_v38  ;;  %9126 = vmatmul.mubr.msk.bf16.gmra.mrb[204].mxu1 %vm538_vm1, %v11278_v38 }
 0x263   : > { %1968 = vmatprep.mubr.bf16.mxu0 %v13640_v41  ;;  %2121 = vmatprep.mubr.bf16.mxu1 %v13640_v41  ;;  %v3769_v37 = vmax.f32 %v3257_v3, 0.0  ;;  %v3771_v60 = vmax.f32 %v3259_v12, 0.0 }
 0x264   : > { %v11286_v20 = vpack.c.bf16 %v3768_v23, %v3736_v4  ;;  %v11288_v48 = vpack.c.bf16 %v3770_v52, %v3738_v59 }
 0x265   : > { %v1328_v36 = vpop.f32.mrb[100].mxu0  ;;  %v1481_v31 = vpop.f32.mrb[100].mxu1  ;;  %v11290_v58 = vpack.c.bf16 %v3769_v37, %v3737_v30  ;;  %v11292_v46 = vpack.c.bf16 %v3771_v60, %v3739_v0 }
 0x266   : > { %13681 = vst [vmem:[#allocation71_spill] sm:$0xff] %v11286_v20  ;;  %13682 = vst [vmem:[#allocation72_spill] sm:$0xff] %v11288_v48  ;;  %v3288_v50 = vadd.f32 %v10788_v14, %v1328_v36  ;;  %v3290_v19 = vadd.f32 %v10788_v14, %v1481_v31  ;;  %v1330_v63 = vpop.f32.mrb[101].mxu0  ;;  %v1483_v62 = vpop.f32.mrb[101].mxu1  ;;  %v11302_v48 = vld [vmem:[#allocation5 + $0x20] sm:$0xff]  }
 0x267   : > { %13683 = vst [vmem:[#allocation73_spill] sm:$0xff] %v11290_v58  ;;  %13684 = vst [vmem:[#allocation74_spill] sm:$0xff] %v11292_v46  ;;  %v3289_v3 = vadd.f32 %v10788_v14, %v1330_v63  ;;  %v3291_v53 = vadd.f32 %v10788_v14, %v1483_v62  ;;  %v1332_v23 = vpop.f32.mrb[102].mxu0  ;;  %v1485_v4 = vpop.f32.mrb[102].mxu1  ;;  %v4496_v62 = vld [vmem:[#allocation11 + $0x80] sm:$0x3] }
 0x268   : > { %v3320_v52 = vadd.f32 %v10808_v44, %v1332_v23  ;;  %v3322_v32 = vadd.f32 %v10808_v44, %v1485_v4  ;;  %v1334_v12 = vpop.f32.mrb[103].mxu0  ;;  %v1487_v59 = vpop.f32.mrb[103].mxu1  ;;  %v3800_v0 = vmax.f32 %v3288_v50, 0.0  ;;  %v3802_v60 = vmax.f32 %v3290_v19, 0.0  ;;  %4500 = vperm.xlu0 %9695, %v4496_v62  }
 0x269   : > { %v3321_v30 = vadd.f32 %v10808_v44, %v1334_v12  ;;  %v3323_v37 = vadd.f32 %v10808_v44, %v1487_v59  ;;  %v3801_v63 = vmax.f32 %v3289_v3, 0.0  ;;  %v3803_v4 = vmax.f32 %v3291_v53, 0.0 }
 0x26a   : > { %v3832_v36 = vmax.f32 %v3320_v52, 0.0  ;;  %v3834_v31 = vmax.f32 %v3322_v32, 0.0  ;;  %9114 = vmatmul.mubr.msk.bf16.gmra.mrb[208].mxu0 %vm538_vm1, %v11302_v48  ;;  %9127 = vmatmul.mubr.msk.bf16.gmra.mrb[208].mxu1 %vm538_vm1, %v11302_v48 }
 0x26b   : > { %1978 = vmatprep.mubr.bf16.mxu0 %v13640_v41  ;;  %2131 = vmatprep.mubr.bf16.mxu1 %v13640_v41  ;;  %v3833_v23 = vmax.f32 %v3321_v30, 0.0  ;;  %v3835_v50 = vmax.f32 %v3323_v37, 0.0 }
 0x26c   : > { %v11310_v19 = vpack.c.bf16 %v3832_v36, %v3800_v0  ;;  %v11312_v52 = vpack.c.bf16 %v3834_v31, %v3802_v60 }
 0x26d   : > { %v1338_v32 = vpop.f32.mrb[104].mxu0  ;;  %v1491_v12 = vpop.f32.mrb[104].mxu1  ;;  %v11314_v59 = vpack.c.bf16 %v3833_v23, %v3801_v63  ;;  %v11316_v20 = vpack.c.bf16 %v3835_v50, %v3803_v4  ;;  %v5192_v63 = vld [vmem:[#allocation11 + $0x90] sm:$0xff] }
 0x26e   : > { %13685 = vst [vmem:[#allocation75_spill] sm:$0xff] %v11310_v19  ;;  %13686 = vst [vmem:[#allocation76_spill] sm:$0xff] %v11312_v52  ;;  %v3352_v46 = vadd.f32 %v10826_v21, %v1338_v32  ;;  %v3354_v58 = vadd.f32 %v10826_v21, %v1491_v12  ;;  %v1340_v49 = vpop.f32.mrb[105].mxu0  ;;  %v1493_v3 = vpop.f32.mrb[105].mxu1  ;;  %6800 = vperm.xlu0 %9695, %v5192_v63   ;;  %v11326_v52 = vld [vmem:[#allocation5 + $0x28] sm:$0xff]  }
 0x26f   : > { %13687 = vst [vmem:[#allocation77_spill] sm:$0xff] %v11314_v59  ;;  %13688 = vst [vmem:[#allocation78_spill] sm:$0xff] %v11316_v20  ;;  %v3353_v53 = vadd.f32 %v10826_v21, %v1340_v49  ;;  %v3355_v30 = vadd.f32 %v10826_v21, %v1493_v3  ;;  %v1342_v37 = vpop.f32.mrb[106].mxu0  ;;  %v1495_v0 = vpop.f32.mrb[106].mxu1  ;;  %v5194_v3 = vld [vmem:[#allocation11 + $0xa0] sm:$0xff] }
 0x270   : > { %v3384_v60 = vadd.f32 %v10834_v25, %v1342_v37  ;;  %v3386_v36 = vadd.f32 %v10834_v25, %v1495_v0  ;;  %v1344_v31 = vpop.f32.mrb[107].mxu0  ;;  %v1497_v62 = vpop.f32.mrb[107].mxu1  ;;  %v3864_v50 = vmax.f32 %v3352_v46, 0.0  ;;  %v3866_v32 = vmax.f32 %v3354_v58, 0.0 }
 0x271   : > { %v3385_v23 = vadd.f32 %v10834_v25, %v1344_v31  ;;  %v3387_v4 = vadd.f32 %v10834_v25, %v1497_v62  ;;  %v3865_v37 = vmax.f32 %v3353_v53, 0.0  ;;  %v3867_v31 = vmax.f32 %v3355_v30, 0.0 }
 0x272   : > { %v3896_v12 = vmax.f32 %v3384_v60, 0.0  ;;  %v3898_v49 = vmax.f32 %v3386_v36, 0.0  ;;  %9115 = vmatmul.mubr.msk.bf16.gmra.mrb[212].mxu0 %vm538_vm1, %v11326_v52  ;;  %9128 = vmatmul.mubr.msk.bf16.gmra.mrb[212].mxu1 %vm538_vm1, %v11326_v52 }
 0x273   : > { %1988 = vmatprep.mubr.bf16.mxu0 %v13640_v41  ;;  %2141 = vmatprep.mubr.bf16.mxu1 %v13640_v41  ;;  %v3897_v0 = vmax.f32 %v3385_v23, 0.0  ;;  %v3899_v46 = vmax.f32 %v3387_v4, 0.0 }
 0x274   : > { %v11334_v58 = vpack.c.bf16 %v3896_v12, %v3864_v50  ;;  %v11336_v60 = vpack.c.bf16 %v3898_v49, %v3866_v32  ;;  %6810 = vperm.xlu0 %9695, %v5194_v3  }
 0x275   : > { %v1348_v36 = vpop.f32.mrb[108].mxu0  ;;  %v1501_v62 = vpop.f32.mrb[108].mxu1  ;;  %v11338_v63 = vpack.c.bf16 %v3897_v0, %v3865_v37  ;;  %v11340_v19 = vpack.c.bf16 %v3899_v46, %v3867_v31  ;;  %v5191_v37 = vld [vmem:[#allocation11 + $0x88] sm:$0xff]  ;;  %v5196_v0 = vld [vmem:[#allocation11 + $0xb0] sm:$0xff] }
 0x276   : > { %13689 = vst [vmem:[#allocation79_spill] sm:$0xff] %v11334_v58  ;;  %13690 = vst [vmem:[#allocation80_spill] sm:$0xff] %v11336_v60  ;;  %v3416_v20 = vadd.f32 %v10852_v6, %v1348_v36  ;;  %v3418_v59 = vadd.f32 %v10852_v6, %v1501_v62  ;;  %v1350_v10 = vpop.f32.mrb[109].mxu0  ;;  %v1503_v53 = vpop.f32.mrb[109].mxu1  ;;  %6795 = vperm.xlu1 %9696, %v5191_v37  }
 0x277   : > { %13691 = vst [vmem:[#allocation81_spill] sm:$0xff] %v11340_v19  ;;  %v3417_v30 = vadd.f32 %v10852_v6, %v1350_v10  ;;  %v3419_v23 = vadd.f32 %v10852_v6, %v1503_v53  ;;  %v1352_v4 = vpop.f32.mrb[110].mxu0  ;;  %v1505_v50 = vpop.f32.mrb[110].mxu1 }
 0x278   : > { %v3448_v32 = vadd.f32 %v10860_v9, %v1352_v4  ;;  %v3450_v12 = vadd.f32 %v10860_v9, %v1505_v50  ;;  %v1354_v49 = vpop.f32.mrb[111].mxu0  ;;  %v1507_v3 = vpop.f32.mrb[111].mxu1  ;;  %6820 = vperm.xlu0 %9695, %v5196_v0   ;;  %v3928_v36 = vmax.f32 %v3416_v20, 0.0  ;;  %v3930_v10 = vmax.f32 %v3418_v59, 0.0  ;;  %v5193_v4 = vld [vmem:[#allocation11 + $0x98] sm:$0xff]  ;;  %v5198_v50 = vld [vmem:[#allocation11 + $0xc0] sm:$0xff] }
 0x279   : > { %v3449_v31 = vadd.f32 %v10860_v9, %v1354_v49  ;;  %v3451_v46 = vadd.f32 %v10860_v9, %v1507_v3  ;;  %v3929_v49 = vmax.f32 %v3417_v30, 0.0  ;;  %v3931_v37 = vmax.f32 %v3419_v23, 0.0  ;;  %v5195_v23 = vld [vmem:[#allocation11 + $0xa8] sm:$0xff] }
 0x27a   : > { %v3960_v62 = vmax.f32 %v3448_v32, 0.0  ;;  %v3962_v53 = vmax.f32 %v3450_v12, 0.0  ;;  %9116 = vmatmul.mubr.msk.bf16.gmra.mrb[216].mxu0 %vm538_vm1, %v11110_v5  ;;  %9129 = vmatmul.mubr.msk.bf16.gmra.mrb[216].mxu1 %vm538_vm1, %v11110_v5 }
 0x27b   : > { %1998 = vmatprep.mubr.bf16.mxu0 %v13640_v41  ;;  %2151 = vmatprep.mubr.bf16.mxu1 %v13640_v41  ;;  %v3961_v3 = vmax.f32 %v3449_v31, 0.0  ;;  %v3963_v0 = vmax.f32 %v3451_v46, 0.0 }
 0x27c   : > { %v11356_v20 = vpack.c.bf16 %v3960_v62, %v3928_v36  ;;  %v11358_v59 = vpack.c.bf16 %v3962_v53, %v3930_v10  ;;  %6805 = vperm.xlu1 %9696, %v5193_v4   ;;  %6830 = vperm.xlu0 %9695, %v5198_v50  }
 0x27d   : > { %v1358_v32 = vpop.f32.mrb[112].mxu0  ;;  %v1511_v12 = vpop.f32.mrb[112].mxu1  ;;  %v11360_v60 = vpack.c.bf16 %v3961_v3, %v3929_v49  ;;  %v11362_v5 = vpack.c.bf16 %v3963_v0, %v3931_v37 }
 0x27e   : > { %13692 = vst [vmem:[#allocation82_spill] sm:$0xff] %v11356_v20  ;;  %13693 = vst [vmem:[#allocation83_spill] sm:$0xff] %v11358_v59  ;;  %v3480_v58 = vadd.f32 %v10878_v61, %v1358_v32  ;;  %v3482_v19 = vadd.f32 %v10878_v61, %v1511_v12  ;;  %v1360_v30 = vpop.f32.mrb[113].mxu0  ;;  %v1513_v31 = vpop.f32.mrb[113].mxu1 }
 0x27f   : > { %v3481_v46 = vadd.f32 %v10878_v61, %v1360_v30  ;;  %v3483_v36 = vadd.f32 %v10878_v61, %v1513_v31  ;;  %v1362_v10 = vpop.f32.mrb[114].mxu0  ;;  %v1515_v62 = vpop.f32.mrb[114].mxu1  ;;  %v5197_v30 = vld [vmem:[#allocation11 + $0xb8] sm:$0xff] }
 0x280   : > { %v3512_v53 = vadd.f32 %v10886_v1, %v1362_v10  ;;  %v3514_v4 = vadd.f32 %v10886_v1, %v1515_v62  ;;  %v1364_v50 = vpop.f32.mrb[115].mxu0  ;;  %v1517_v49 = vpop.f32.mrb[115].mxu1  ;;  %6815 = vperm.xlu1 %9696, %v5195_v23   ;;  %v3992_v0 = vmax.f32 %v3480_v58, 0.0  ;;  %v3994_v32 = vmax.f32 %v3482_v19, 0.0 }
 0x281   : > { %v3513_v3 = vadd.f32 %v10886_v1, %v1364_v50  ;;  %v3515_v37 = vadd.f32 %v10886_v1, %v1517_v49  ;;  %v3993_v31 = vmax.f32 %v3481_v46, 0.0  ;;  %v3995_v10 = vmax.f32 %v3483_v36, 0.0 }
 0x282   : > { %v4024_v12 = vmax.f32 %v3512_v53, 0.0  ;;  %v4026_v59 = vmax.f32 %v3514_v4, 0.0  ;;  %9117 = vmatmul.mubr.msk.bf16.gmra.mrb[220].mxu0 %vm538_vm1, %v11134_v51  ;;  %9130 = vmatmul.mubr.msk.bf16.gmra.mrb[220].mxu1 %vm538_vm1, %v11134_v51 }
 0x283   : > { %v4025_v62 = vmax.f32 %v3513_v3, 0.0  ;;  %v4027_v20 = vmax.f32 %v3515_v37, 0.0  ;;  %2008 = vmatprep.mubr.bf16.mxu0 %v13640_v41  ;;  %2161 = vmatprep.mubr.bf16.mxu1 %v13640_v41  ;;  %v7473_v3 = vld [vmem:[#allocation11 + $0xc8] sm:$0x1] }
 0x284   : > { %v11378_v23 = vpack.c.bf16 %v4024_v12, %v3992_v0  ;;  %v11380_v19 = vpack.c.bf16 %v4026_v59, %v3994_v32  ;;  %6825 = vperm.xlu1 %9696, %v5197_v30  }
 0x285   : > { %v1368_v58 = vpop.f32.mrb[116].mxu0  ;;  %v1521_v53 = vpop.f32.mrb[116].mxu1  ;;  %v11382_v4 = vpack.c.bf16 %v4025_v62, %v3993_v31  ;;  %v11384_v50 = vpack.c.bf16 %v4027_v20, %v3995_v10 }
 0x286   : > { %13694 = vst [vmem:[#allocation84_spill] sm:$0xff] %v11378_v23  ;;  %13695 = vst [vmem:[#allocation85_spill] sm:$0xff] %v11380_v19  ;;  %v3544_v51 = vadd.f32 %v10904_v47, %v1368_v58  ;;  %v3546_v46 = vadd.f32 %v10904_v47, %v1521_v53  ;;  %v1370_v36 = vpop.f32.mrb[117].mxu0  ;;  %v1523_v49 = vpop.f32.mrb[117].mxu1 }
 0x287   : > { %v3545_v37 = vadd.f32 %v10904_v47, %v1370_v36  ;;  %v3547_v0 = vadd.f32 %v10904_v47, %v1523_v49  ;;  %v1372_v59 = vpop.f32.mrb[118].mxu0  ;;  %v1525_v32 = vpop.f32.mrb[118].mxu1 }
 0x288   : > { %v3576_v12 = vadd.f32 %v10908_v2, %v1372_v59  ;;  %v3578_v30 = vadd.f32 %v10908_v2, %v1525_v32  ;;  %v1374_v31 = vpop.f32.mrb[119].mxu0  ;;  %v1527_v20 = vpop.f32.mrb[119].mxu1  ;;  %7477 = vperm.xlu1 %9696, %v7473_v3   ;;  %v4056_v58 = vmax.f32 %v3544_v51, 0.0  ;;  %v4058_v53 = vmax.f32 %v3546_v46, 0.0 }
 0x289   : > { %v3577_v10 = vadd.f32 %v10908_v2, %v1374_v31  ;;  %v3579_v62 = vadd.f32 %v10908_v2, %v1527_v20  ;;  %v4057_v36 = vmax.f32 %v3545_v37, 0.0  ;;  %v4059_v49 = vmax.f32 %v3547_v0, 0.0 }
 0x28a   : > { %v4088_v19 = vmax.f32 %v3576_v12, 0.0  ;;  %v4090_v23 = vmax.f32 %v3578_v30, 0.0  ;;  %9118 = vmatmul.mubr.msk.bf16.gmra.mrb[224].mxu0 %vm538_vm1, %v11158_v40  ;;  %9131 = vmatmul.mubr.msk.bf16.gmra.mrb[224].mxu1 %vm538_vm1, %v11158_v40 }
 0x28b   : > { %v4089_v59 = vmax.f32 %v3577_v10, 0.0  ;;  %v4091_v32 = vmax.f32 %v3579_v62, 0.0  ;;  %2018 = vmatprep.mubr.bf16.mxu0 %v13640_v41  ;;  %2171 = vmatprep.mubr.bf16.mxu1 %v13640_v41 }
 0x28c   : > { %v11400_v31 = vpack.c.bf16 %v4088_v19, %v4056_v58  ;;  %v11402_v51 = vpack.c.bf16 %v4090_v23, %v4058_v53 }
 0x28d   : > { %v1378_v46 = vpop.f32.mrb[120].mxu0  ;;  %v1531_v3 = vpop.f32.mrb[120].mxu1  ;;  %v11404_v12 = vpack.c.bf16 %v4089_v59, %v4057_v36  ;;  %v11406_v30 = vpack.c.bf16 %v4091_v32, %v4059_v49 }
 0x28e   : > { %13696 = vst [vmem:[#allocation86_spill] sm:$0xff] %v11400_v31  ;;  %13697 = vst [vmem:[#allocation87_spill] sm:$0xff] %v11402_v51  ;;  %v3608_v40 = vadd.f32 %v10930_v17, %v1378_v46  ;;  %v3610_v37 = vadd.f32 %v10930_v17, %v1531_v3  ;;  %v1380_v0 = vpop.f32.mrb[121].mxu0  ;;  %v1533_v20 = vpop.f32.mrb[121].mxu1 }
 0x28f   : > { %13698 = vst [vmem:[#allocation88_spill] sm:$0xff] %v11406_v30  ;;  %v3609_v10 = vadd.f32 %v10930_v17, %v1380_v0  ;;  %v3611_v62 = vadd.f32 %v10930_v17, %v1533_v20  ;;  %v1382_v19 = vpop.f32.mrb[122].mxu0  ;;  %v1535_v58 = vpop.f32.mrb[122].mxu1 }
 0x290   : > { %v3640_v23 = vadd.f32 %v10934_v27, %v1382_v19  ;;  %v3642_v53 = vadd.f32 %v10934_v27, %v1535_v58  ;;  %v1384_v36 = vpop.f32.mrb[123].mxu0  ;;  %v1537_v59 = vpop.f32.mrb[123].mxu1  ;;  %v4120_v46 = vmax.f32 %v3608_v40, 0.0  ;;  %v4122_v3 = vmax.f32 %v3610_v37, 0.0 }
 0x291   : > { %v3641_v49 = vadd.f32 %v10934_v27, %v1384_v36  ;;  %v3643_v32 = vadd.f32 %v10934_v27, %v1537_v59  ;;  %v4121_v0 = vmax.f32 %v3609_v10, 0.0  ;;  %v4123_v20 = vmax.f32 %v3611_v62, 0.0 }
 0x292   : > { %v4152_v51 = vmax.f32 %v3640_v23, 0.0  ;;  %v4154_v31 = vmax.f32 %v3642_v53, 0.0  ;;  %9119 = vmatmul.mubr.msk.bf16.gmra.mrb[228].mxu0 %vm538_vm1, %v11182_v45  ;;  %9132 = vmatmul.mubr.msk.bf16.gmra.mrb[228].mxu1 %vm538_vm1, %v11182_v45 }
 0x293   : > { %v4153_v19 = vmax.f32 %v3641_v49, 0.0  ;;  %v4155_v58 = vmax.f32 %v3643_v32, 0.0  ;;  %2028 = vmatprep.mubr.bf16.mxu0 %v13640_v41  ;;  %2181 = vmatprep.mubr.bf16.mxu1 %v13640_v41 }
 0x294   : > { %v11422_v36 = vpack.c.bf16 %v4152_v51, %v4120_v46  ;;  %v11424_v40 = vpack.c.bf16 %v4154_v31, %v4122_v3 }
 0x295   : > { %v1388_v37 = vpop.f32.mrb[124].mxu0  ;;  %v1541_v23 = vpop.f32.mrb[124].mxu1  ;;  %v11426_v53 = vpack.c.bf16 %v4153_v19, %v4121_v0  ;;  %v11428_v59 = vpack.c.bf16 %v4155_v58, %v4123_v20 }
 0x296   : > { %13699 = vst [vmem:[#allocation89_spill] sm:$0xff] %v11422_v36  ;;  %13700 = vst [vmem:[#allocation90_spill] sm:$0xff] %v11424_v40  ;;  %v3672_v45 = vadd.f32 %v10956_v26, %v1388_v37  ;;  %v3674_v10 = vadd.f32 %v10956_v26, %v1541_v23  ;;  %v1390_v62 = vpop.f32.mrb[125].mxu0  ;;  %v1543_v49 = vpop.f32.mrb[125].mxu1 }
 0x297   : > { %13701 = vst [vmem:[#allocation91_spill] sm:$0xff] %v11426_v53  ;;  %13702 = vst [vmem:[#allocation92_spill] sm:$0xff] %v11428_v59  ;;  %v3673_v32 = vadd.f32 %v10956_v26, %v1390_v62  ;;  %v3675_v30 = vadd.f32 %v10956_v26, %v1543_v49  ;;  %v1392_v51 = vpop.f32.mrb[126].mxu0  ;;  %v1545_v46 = vpop.f32.mrb[126].mxu1 }
 0x298   : > { %v3704_v31 = vadd.f32 %v10960_v39, %v1392_v51  ;;  %v3706_v3 = vadd.f32 %v10960_v39, %v1545_v46  ;;  %v1394_v0 = vpop.f32.mrb[127].mxu0  ;;  %v1547_v19 = vpop.f32.mrb[127].mxu1  ;;  %v4184_v37 = vmax.f32 %v3672_v45, 0.0  ;;  %v4186_v23 = vmax.f32 %v3674_v10, 0.0 }
 0x299   : > { %v3705_v20 = vadd.f32 %v10960_v39, %v1394_v0  ;;  %v3707_v58 = vadd.f32 %v10960_v39, %v1547_v19  ;;  %v4185_v62 = vmax.f32 %v3673_v32, 0.0  ;;  %v4187_v49 = vmax.f32 %v3675_v30, 0.0  ;;  %v11460_v30 = vld [vmem:[%s10516_s12 + $0x78] sm:$0xff] }
 0x29a   : > { %v4216_v40 = vmax.f32 %v3704_v31, 0.0  ;;  %v4218_v36 = vmax.f32 %v3706_v3, 0.0  ;;  %9120 = vmatmul.mubr.msk.bf16.gmra.mrb[232].mxu0 %vm538_vm1, %v11206_v54  ;;  %9133 = vmatmul.mubr.msk.bf16.gmra.mrb[232].mxu1 %vm538_vm1, %v11206_v54  ;;  %v11457_v54 = vld [vmem:[%s10516_s12 + $0x70] sm:$0xff] }
 0x29b   : > { %v4217_v51 = vmax.f32 %v3705_v20, 0.0  ;;  %v4219_v46 = vmax.f32 %v3707_v58, 0.0  ;;  %2038 = vmatprep.mubr.bf16.mxu0 %v13640_v41  ;;  %2191 = vmatprep.mubr.bf16.mxu1 %v13640_v41  ;;  %v404_v32 = vcombine.high %v11457_v54, %v11457_v54 }
 0x29c   : > { %v11444_v45 = vpack.c.bf16 %v4216_v40, %v4184_v37  ;;  %v11446_v10 = vpack.c.bf16 %v4218_v36, %v4186_v23  ;;  %v446_v36 = vpack.c.bf16 %v11235_v34, %v11235_v34  ;;  %v448_v40 = vpack.c.bf16 %v11238_v33, %v11238_v33  ;;  %v11474_v37 = vld [vmem:[#allocation5] sm:$0xff]  }
 0x29d   : > { %v11448_v31 = vpack.c.bf16 %v4217_v51, %v4185_v62  ;;  %v11450_v3 = vpack.c.bf16 %v4219_v46, %v4187_v49  ;;  %v451_v20 = vpack.c.bf16 %v404_v32, %v404_v32 }
 0x29e   : > { %13703 = vst [vmem:[#allocation93_spill] sm:$0xff] %v11444_v45  ;;  %13704 = vst [vmem:[#allocation94_spill] sm:$0xff] %v11446_v10  ;;  %v649_v0 = vsel %vm575_vm0, %v446_v36, 0  ;;  %v655_v19 = vsel %vm575_vm0, %v448_v40, 0 }
 0x29f   : > { %13705 = vst [vmem:[#allocation95_spill] sm:$0xff] %v11448_v31  ;;  %13706 = vst [vmem:[#allocation96_spill] sm:$0xff] %v11450_v3 }
 0x2a2   : > { %9121 = vmatmul.mubr.msk.bf16.gmra.mrb[236].mxu0 %vm538_vm1, %v11222_v35  ;;  %9134 = vmatmul.mubr.msk.bf16.gmra.mrb[236].mxu1 %vm538_vm1, %v11222_v35  ;;  %v405_v35 = vcombine.high %v11460_v30, %v11460_v30 }
 0x2a3   : > { %2234 = vmatprep.mubr.bf16.mxu0 %v13640_v41  ;;  %2387 = vmatprep.mubr.bf16.mxu1 %v13640_v41 }
 0x2a4   : > { %v453_v58 = vpack.c.bf16 %v405_v35, %v405_v35 }
 0x2aa   : > { %9136 = vmatmul.mubr.msk.bf16.vlgmr.msra.gmra.mrb[240].mxu0 %vm538_vm1, %v11474_v37  ;;  %9149 = vmatmul.mubr.msk.bf16.vlgmr.msra.gmra.mrb[240].mxu1 %vm538_vm1, %v11474_v37 }
 0x2ab   : > { %2244 = vmatprep.mubr.bf16.mxu0 %v13640_v41  ;;  %2397 = vmatprep.mubr.bf16.mxu1 %v13640_v41 }
 0x2ac   : > { %2509 = vmatpush1.bf16.msra.mxu0 %v649_v0  ;;  %2662 = vmatpush1.bf16.msra.mxu1 %v655_v19 }
 0x2ad   : > { %9187 = vmatprep.subr.msk.bf16.mxu0 %vm575_vm0, %v451_v20  ;;  %9200 = vmatprep.subr.msk.bf16.mxu1 %vm575_vm0, %v453_v58 }
 0x2b2   : > { %9137 = vmatmul.mubr.msk.bf16.gmra.mrb[244].mxu0 %vm538_vm1, %v11254_v57  ;;  %9150 = vmatmul.mubr.msk.bf16.gmra.mrb[244].mxu1 %vm538_vm1, %v11254_v57 }
 0x2b3   : > { %2254 = vmatprep.mubr.bf16.mxu0 %v13640_v41  ;;  %2407 = vmatprep.mubr.bf16.mxu1 %v13640_v41 }
 0x2ba   : > { %9138 = vmatmul.mubr.msk.bf16.gmra.mrb[248].mxu0 %vm538_vm1, %v11262_v18  ;;  %9151 = vmatmul.mubr.msk.bf16.gmra.mrb[248].mxu1 %vm538_vm1, %v11262_v18 }
 0x2bb   : > { %2264 = vmatprep.mubr.bf16.mxu0 %v13640_v41  ;;  %2417 = vmatprep.mubr.bf16.mxu1 %v13640_v41 }
 0x2bd   : > { %v1624_v34 = vpop.f32.mrb[144].mxu0  ;;  %v1777_v33 = vpop.f32.mrb[144].mxu1 }
 0x2be   : > { %v3228_v23 = vadd.f32 %v10778_v11, %v1624_v34  ;;  %v3230_v57 = vadd.f32 %v10778_v11, %v1777_v33  ;;  %v1626_v62 = vpop.f32.mrb[145].mxu0  ;;  %v1779_v49 = vpop.f32.mrb[145].mxu1 }
 0x2bf   : > { %v3229_v51 = vadd.f32 %v10778_v11, %v1626_v62  ;;  %v3231_v46 = vadd.f32 %v10778_v11, %v1779_v49  ;;  %v1628_v36 = vpop.f32.mrb[146].mxu0  ;;  %v1781_v40 = vpop.f32.mrb[146].mxu1 }
 0x2c0   : > { %v3260_v18 = vadd.f32 %v10786_v13, %v1628_v36  ;;  %v3262_v32 = vadd.f32 %v10786_v13, %v1781_v40  ;;  %v1630_v35 = vpop.f32.mrb[147].mxu0  ;;  %v1783_v0 = vpop.f32.mrb[147].mxu1  ;;  %v3740_v58 = vmax.f32 %v3228_v23, 0.0  ;;  %v3742_v34 = vmax.f32 %v3230_v57, 0.0 }
 0x2c1   : > { %v3261_v19 = vadd.f32 %v10786_v13, %v1630_v35  ;;  %v3263_v20 = vadd.f32 %v10786_v13, %v1783_v0  ;;  %v3741_v62 = vmax.f32 %v3229_v51, 0.0  ;;  %v3743_v49 = vmax.f32 %v3231_v46, 0.0 }
 0x2c2   : > { %v3772_v33 = vmax.f32 %v3260_v18, 0.0  ;;  %v3774_v10 = vmax.f32 %v3262_v32, 0.0  ;;  %9139 = vmatmul.mubr.msk.bf16.gmra.mrb[252].mxu0 %vm538_vm1, %v11278_v38  ;;  %9152 = vmatmul.mubr.msk.bf16.gmra.mrb[252].mxu1 %vm538_vm1, %v11278_v38 }
 0x2c3   : > { %v3773_v36 = vmax.f32 %v3261_v19, 0.0  ;;  %v3775_v40 = vmax.f32 %v3263_v20, 0.0  ;;  %2274 = vmatprep.mubr.bf16.mxu0 %v13640_v41  ;;  %2427 = vmatprep.mubr.bf16.mxu1 %v13640_v41 }
 0x2c4   : > { %v11510_v35 = vpack.c.bf16 %v3772_v33, %v3740_v58  ;;  %v11512_v23 = vpack.c.bf16 %v3774_v10, %v3742_v34 }
 0x2c5   : > { %v1634_v57 = vpop.f32.mrb[148].mxu0  ;;  %v1787_v18 = vpop.f32.mrb[148].mxu1  ;;  %v11514_v32 = vpack.c.bf16 %v3773_v36, %v3741_v62  ;;  %v11516_v0 = vpack.c.bf16 %v3775_v40, %v3743_v49 }
 0x2c6   : > { %13707 = vst [vmem:[#allocation97_spill] sm:$0xff] %v11510_v35  ;;  %13708 = vst [vmem:[#allocation98_spill] sm:$0xff] %v11512_v23  ;;  %v3292_v38 = vadd.f32 %v10788_v14, %v1634_v57  ;;  %v3294_v51 = vadd.f32 %v10788_v14, %v1787_v18  ;;  %v1636_v46 = vpop.f32.mrb[149].mxu0  ;;  %v1789_v19 = vpop.f32.mrb[149].mxu1 }
 0x2c7   : > { %13709 = vst [vmem:[#allocation99_spill] sm:$0xff] %v11514_v32  ;;  %13710 = vst [vmem:[#allocation100_spill] sm:$0xff] %v11516_v0  ;;  %v3293_v20 = vadd.f32 %v10788_v14, %v1636_v46  ;;  %v3295_v45 = vadd.f32 %v10788_v14, %v1789_v19  ;;  %v1638_v58 = vpop.f32.mrb[150].mxu0  ;;  %v1791_v33 = vpop.f32.mrb[150].mxu1 }
 0x2c8   : > { %v3324_v10 = vadd.f32 %v10808_v44, %v1638_v58  ;;  %v3326_v34 = vadd.f32 %v10808_v44, %v1791_v33  ;;  %v1640_v62 = vpop.f32.mrb[151].mxu0  ;;  %v1793_v36 = vpop.f32.mrb[151].mxu1  ;;  %v3804_v57 = vmax.f32 %v3292_v38, 0.0  ;;  %v3806_v18 = vmax.f32 %v3294_v51, 0.0 }
 0x2c9   : > { %v3325_v49 = vadd.f32 %v10808_v44, %v1640_v62  ;;  %v3327_v40 = vadd.f32 %v10808_v44, %v1793_v36  ;;  %v3805_v46 = vmax.f32 %v3293_v20, 0.0  ;;  %v3807_v19 = vmax.f32 %v3295_v45, 0.0 }
 0x2ca   : > { %v3836_v23 = vmax.f32 %v3324_v10, 0.0  ;;  %v3838_v35 = vmax.f32 %v3326_v34, 0.0  ;;  %9140 = vmatmul.mubr.msk.bf16.gmra.mrb[0].mxu0 %vm538_vm1, %v11302_v48  ;;  %9153 = vmatmul.mubr.msk.bf16.gmra.mrb[0].mxu1 %vm538_vm1, %v11302_v48 }
 0x2cb   : > { %v3837_v58 = vmax.f32 %v3325_v49, 0.0  ;;  %v3839_v33 = vmax.f32 %v3327_v40, 0.0  ;;  %2284 = vmatprep.mubr.bf16.mxu0 %v13640_v41  ;;  %2437 = vmatprep.mubr.bf16.mxu1 %v13640_v41 }
 0x2cc   : > { %v11532_v62 = vpack.c.bf16 %v3836_v23, %v3804_v57  ;;  %v11534_v38 = vpack.c.bf16 %v3838_v35, %v3806_v18 }
 0x2cd   : > { %v1644_v51 = vpop.f32.mrb[152].mxu0  ;;  %v1797_v10 = vpop.f32.mrb[152].mxu1  ;;  %v11536_v34 = vpack.c.bf16 %v3837_v58, %v3805_v46  ;;  %v11538_v36 = vpack.c.bf16 %v3839_v33, %v3807_v19 }
 0x2ce   : > { %13711 = vst [vmem:[#allocation101_spill] sm:$0xff] %v11532_v62  ;;  %13712 = vst [vmem:[#allocation102_spill] sm:$0xff] %v11534_v38  ;;  %v3356_v48 = vadd.f32 %v10826_v21, %v1644_v51  ;;  %v3358_v45 = vadd.f32 %v10826_v21, %v1797_v10  ;;  %v1646_v20 = vpop.f32.mrb[153].mxu0  ;;  %v1799_v49 = vpop.f32.mrb[153].mxu1 }
 0x2cf   : > { %13713 = vst [vmem:[#allocation103_spill] sm:$0xff] %v11536_v34  ;;  %13714 = vst [vmem:[#allocation104_spill] sm:$0xff] %v11538_v36  ;;  %v3357_v40 = vadd.f32 %v10826_v21, %v1646_v20  ;;  %v3359_v0 = vadd.f32 %v10826_v21, %v1799_v49  ;;  %v1648_v23 = vpop.f32.mrb[154].mxu0  ;;  %v1801_v57 = vpop.f32.mrb[154].mxu1 }
 0x2d0   : > { %v3388_v35 = vadd.f32 %v10834_v25, %v1648_v23  ;;  %v3390_v18 = vadd.f32 %v10834_v25, %v1801_v57  ;;  %v1650_v46 = vpop.f32.mrb[155].mxu0  ;;  %v1803_v58 = vpop.f32.mrb[155].mxu1  ;;  %v3868_v51 = vmax.f32 %v3356_v48, 0.0  ;;  %v3870_v10 = vmax.f32 %v3358_v45, 0.0 }
 0x2d1   : > { %v3389_v19 = vadd.f32 %v10834_v25, %v1650_v46  ;;  %v3391_v33 = vadd.f32 %v10834_v25, %v1803_v58  ;;  %v3869_v20 = vmax.f32 %v3357_v40, 0.0  ;;  %v3871_v49 = vmax.f32 %v3359_v0, 0.0 }
 0x2d2   : > { %v3900_v38 = vmax.f32 %v3388_v35, 0.0  ;;  %v3902_v62 = vmax.f32 %v3390_v18, 0.0  ;;  %9141 = vmatmul.mubr.msk.bf16.gmra.mrb[4].mxu0 %vm538_vm1, %v11326_v52  ;;  %9154 = vmatmul.mubr.msk.bf16.gmra.mrb[4].mxu1 %vm538_vm1, %v11326_v52 }
 0x2d3   : > { %v3901_v23 = vmax.f32 %v3389_v19, 0.0  ;;  %v3903_v57 = vmax.f32 %v3391_v33, 0.0  ;;  %2294 = vmatprep.mubr.bf16.mxu0 %v13640_v41  ;;  %2447 = vmatprep.mubr.bf16.mxu1 %v13640_v41 }
 0x2d4   : > { %v11554_v46 = vpack.c.bf16 %v3900_v38, %v3868_v51  ;;  %v11556_v48 = vpack.c.bf16 %v3902_v62, %v3870_v10 }
 0x2d5   : > { %v1654_v45 = vpop.f32.mrb[156].mxu0  ;;  %v1807_v35 = vpop.f32.mrb[156].mxu1  ;;  %v11558_v18 = vpack.c.bf16 %v3901_v23, %v3869_v20  ;;  %v11560_v58 = vpack.c.bf16 %v3903_v57, %v3871_v49 }
 0x2d6   : > { %13715 = vst [vmem:[#allocation105_spill] sm:$0xff] %v11554_v46  ;;  %13716 = vst [vmem:[#allocation106_spill] sm:$0xff] %v11556_v48  ;;  %v3420_v52 = vadd.f32 %v10852_v6, %v1654_v45  ;;  %v3422_v0 = vadd.f32 %v10852_v6, %v1807_v35  ;;  %v1656_v40 = vpop.f32.mrb[157].mxu0  ;;  %v1809_v19 = vpop.f32.mrb[157].mxu1 }
 0x2d7   : > { %13717 = vst [vmem:[#allocation107_spill] sm:$0xff] %v11558_v18  ;;  %13718 = vst [vmem:[#allocation108_spill] sm:$0xff] %v11560_v58  ;;  %v3421_v33 = vadd.f32 %v10852_v6, %v1656_v40  ;;  %v3423_v36 = vadd.f32 %v10852_v6, %v1809_v19  ;;  %v1658_v38 = vpop.f32.mrb[158].mxu0  ;;  %v1811_v51 = vpop.f32.mrb[158].mxu1  ;;  %v11570_v58 = vld [vmem:[#allocation5 + $0x30] sm:$0xff]  }
 0x2d8   : > { %v3452_v62 = vadd.f32 %v10860_v9, %v1658_v38  ;;  %v3454_v10 = vadd.f32 %v10860_v9, %v1811_v51  ;;  %v1660_v20 = vpop.f32.mrb[159].mxu0  ;;  %v1813_v23 = vpop.f32.mrb[159].mxu1  ;;  %v3932_v45 = vmax.f32 %v3420_v52, 0.0  ;;  %v3934_v35 = vmax.f32 %v3422_v0, 0.0 }
 0x2d9   : > { %v3453_v49 = vadd.f32 %v10860_v9, %v1660_v20  ;;  %v3455_v57 = vadd.f32 %v10860_v9, %v1813_v23  ;;  %v3933_v40 = vmax.f32 %v3421_v33, 0.0  ;;  %v3935_v19 = vmax.f32 %v3423_v36, 0.0 }
 0x2da   : > { %v3964_v48 = vmax.f32 %v3452_v62, 0.0  ;;  %v3966_v46 = vmax.f32 %v3454_v10, 0.0  ;;  %9142 = vmatmul.mubr.msk.bf16.gmra.mrb[8].mxu0 %vm538_vm1, %v11570_v58  ;;  %9155 = vmatmul.mubr.msk.bf16.gmra.mrb[8].mxu1 %vm538_vm1, %v11570_v58 }
 0x2db   : > { %v3965_v38 = vmax.f32 %v3453_v49, 0.0  ;;  %v3967_v51 = vmax.f32 %v3455_v57, 0.0  ;;  %2304 = vmatprep.mubr.bf16.mxu0 %v13640_v41  ;;  %2457 = vmatprep.mubr.bf16.mxu1 %v13640_v41 }
 0x2dc   : > { %v11578_v52 = vpack.c.bf16 %v3964_v48, %v3932_v45  ;;  %v11580_v0 = vpack.c.bf16 %v3966_v46, %v3934_v35 }
 0x2dd   : > { %v1664_v62 = vpop.f32.mrb[160].mxu0  ;;  %v1817_v10 = vpop.f32.mrb[160].mxu1  ;;  %v11582_v20 = vpack.c.bf16 %v3965_v38, %v3933_v40  ;;  %v11584_v23 = vpack.c.bf16 %v3967_v51, %v3935_v19 }
 0x2de   : > { %13719 = vst [vmem:[#allocation109_spill] sm:$0xff] %v11578_v52  ;;  %13720 = vst [vmem:[#allocation110_spill] sm:$0xff] %v11580_v0  ;;  %v3484_v18 = vadd.f32 %v10878_v61, %v1664_v62  ;;  %v3486_v36 = vadd.f32 %v10878_v61, %v1817_v10  ;;  %v1666_v33 = vpop.f32.mrb[161].mxu0  ;;  %v1819_v49 = vpop.f32.mrb[161].mxu1 }
 0x2df   : > { %13721 = vst [vmem:[#allocation111_spill] sm:$0xff] %v11582_v20  ;;  %13722 = vst [vmem:[#allocation112_spill] sm:$0xff] %v11584_v23  ;;  %v3485_v57 = vadd.f32 %v10878_v61, %v1666_v33  ;;  %v3487_v34 = vadd.f32 %v10878_v61, %v1819_v49  ;;  %v1668_v48 = vpop.f32.mrb[162].mxu0  ;;  %v1821_v45 = vpop.f32.mrb[162].mxu1  ;;  %v11594_v23 = vld [vmem:[#allocation5 + $0x38] sm:$0xff]  }
 0x2e0   : > { %v3516_v46 = vadd.f32 %v10886_v1, %v1668_v48  ;;  %v3518_v35 = vadd.f32 %v10886_v1, %v1821_v45  ;;  %v1670_v40 = vpop.f32.mrb[163].mxu0  ;;  %v1823_v38 = vpop.f32.mrb[163].mxu1  ;;  %v3996_v62 = vmax.f32 %v3484_v18, 0.0  ;;  %v3998_v10 = vmax.f32 %v3486_v36, 0.0 }
 0x2e1   : > { %v3517_v19 = vadd.f32 %v10886_v1, %v1670_v40  ;;  %v3519_v51 = vadd.f32 %v10886_v1, %v1823_v38  ;;  %v3997_v33 = vmax.f32 %v3485_v57, 0.0  ;;  %v3999_v48 = vmax.f32 %v3487_v34, 0.0 }
 0x2e2   : > { %v4028_v0 = vmax.f32 %v3516_v46, 0.0  ;;  %v4030_v52 = vmax.f32 %v3518_v35, 0.0  ;;  %9143 = vmatmul.mubr.msk.bf16.gmra.mrb[12].mxu0 %vm538_vm1, %v11594_v23  ;;  %9156 = vmatmul.mubr.msk.bf16.gmra.mrb[12].mxu1 %vm538_vm1, %v11594_v23 }
 0x2e3   : > { %2314 = vmatprep.mubr.bf16.mxu0 %v13640_v41  ;;  %2467 = vmatprep.mubr.bf16.mxu1 %v13640_v41  ;;  %v4029_v49 = vmax.f32 %v3517_v19, 0.0  ;;  %v4031_v45 = vmax.f32 %v3519_v51, 0.0 }
 0x2e4   : > { %v11602_v18 = vpack.c.bf16 %v4028_v0, %v3996_v62  ;;  %v11604_v36 = vpack.c.bf16 %v4030_v52, %v3998_v10 }
 0x2e5   : > { %v1674_v46 = vpop.f32.mrb[164].mxu0  ;;  %v1827_v35 = vpop.f32.mrb[164].mxu1  ;;  %v11606_v40 = vpack.c.bf16 %v4029_v49, %v3997_v33  ;;  %v11608_v38 = vpack.c.bf16 %v4031_v45, %v3999_v48 }
 0x2e6   : > { %13723 = vst [vmem:[#allocation113_spill] sm:$0xff] %v11602_v18  ;;  %13724 = vst [vmem:[#allocation114_spill] sm:$0xff] %v11604_v36  ;;  %v3548_v20 = vadd.f32 %v10904_v47, %v1674_v46  ;;  %v3550_v32 = vadd.f32 %v10904_v47, %v1827_v35  ;;  %v1676_v3 = vpop.f32.mrb[165].mxu0  ;;  %v1829_v31 = vpop.f32.mrb[165].mxu1  ;;  %v11618_v36 = vld [vmem:[#allocation5 + $0x40] sm:$0xff]  }
 0x2e7   : > { %13725 = vst [vmem:[#allocation115_spill] sm:$0xff] %v11606_v40  ;;  %13726 = vst [vmem:[#allocation116_spill] sm:$0xff] %v11608_v38  ;;  %v3549_v57 = vadd.f32 %v10904_v47, %v1676_v3  ;;  %v3551_v34 = vadd.f32 %v10904_v47, %v1829_v31  ;;  %v1678_v0 = vpop.f32.mrb[166].mxu0  ;;  %v1831_v19 = vpop.f32.mrb[166].mxu1 }
 0x2e8   : > { %v3580_v52 = vadd.f32 %v10908_v2, %v1678_v0  ;;  %v3582_v51 = vadd.f32 %v10908_v2, %v1831_v19  ;;  %v1680_v62 = vpop.f32.mrb[167].mxu0  ;;  %v1833_v10 = vpop.f32.mrb[167].mxu1  ;;  %v4060_v48 = vmax.f32 %v3548_v20, 0.0  ;;  %v4062_v45 = vmax.f32 %v3550_v32, 0.0 }
 0x2e9   : > { %v3581_v33 = vadd.f32 %v10908_v2, %v1680_v62  ;;  %v3583_v49 = vadd.f32 %v10908_v2, %v1833_v10  ;;  %v4061_v31 = vmax.f32 %v3549_v57, 0.0  ;;  %v4063_v0 = vmax.f32 %v3551_v34, 0.0 }
 0x2ea   : > { %v4092_v46 = vmax.f32 %v3580_v52, 0.0  ;;  %v4094_v35 = vmax.f32 %v3582_v51, 0.0  ;;  %9144 = vmatmul.mubr.msk.bf16.gmra.mrb[16].mxu0 %vm538_vm1, %v11618_v36  ;;  %9157 = vmatmul.mubr.msk.bf16.gmra.mrb[16].mxu1 %vm538_vm1, %v11618_v36 }
 0x2eb   : > { %2324 = vmatprep.mubr.bf16.mxu0 %v13640_v41  ;;  %2477 = vmatprep.mubr.bf16.mxu1 %v13640_v41  ;;  %v4093_v3 = vmax.f32 %v3581_v33, 0.0  ;;  %v4095_v19 = vmax.f32 %v3583_v49, 0.0 }
 0x2ec   : > { %v11626_v20 = vpack.c.bf16 %v4092_v46, %v4060_v48  ;;  %v11628_v32 = vpack.c.bf16 %v4094_v35, %v4062_v45 }
 0x2ed   : > { %v1684_v52 = vpop.f32.mrb[168].mxu0  ;;  %v1837_v51 = vpop.f32.mrb[168].mxu1  ;;  %v11630_v62 = vpack.c.bf16 %v4093_v3, %v4061_v31  ;;  %v11632_v10 = vpack.c.bf16 %v4095_v19, %v4063_v0 }
 0x2ee   : > { %13727 = vst [vmem:[#allocation117_spill] sm:$0xff] %v11626_v20  ;;  %13728 = vst [vmem:[#allocation118_spill] sm:$0xff] %v11628_v32  ;;  %v3612_v18 = vadd.f32 %v10930_v17, %v1684_v52  ;;  %v3614_v38 = vadd.f32 %v10930_v17, %v1837_v51  ;;  %v1686_v40 = vpop.f32.mrb[169].mxu0  ;;  %v1839_v59 = vpop.f32.mrb[169].mxu1  ;;  %v11642_v32 = vld [vmem:[#allocation5 + $0x48] sm:$0xff]  }
 0x2ef   : > { %13729 = vst [vmem:[#allocation119_spill] sm:$0xff] %v11630_v62  ;;  %13730 = vst [vmem:[#allocation120_spill] sm:$0xff] %v11632_v10  ;;  %v3613_v57 = vadd.f32 %v10930_v17, %v1686_v40  ;;  %v3615_v34 = vadd.f32 %v10930_v17, %v1839_v59  ;;  %v1688_v33 = vpop.f32.mrb[170].mxu0  ;;  %v1841_v49 = vpop.f32.mrb[170].mxu1 }
 0x2f0   : > { %v3644_v48 = vadd.f32 %v10934_v27, %v1688_v33  ;;  %v3646_v45 = vadd.f32 %v10934_v27, %v1841_v49  ;;  %v1690_v46 = vpop.f32.mrb[171].mxu0  ;;  %v1843_v35 = vpop.f32.mrb[171].mxu1  ;;  %v4124_v0 = vmax.f32 %v3612_v18, 0.0  ;;  %v4126_v19 = vmax.f32 %v3614_v38, 0.0 }
 0x2f1   : > { %v3645_v31 = vadd.f32 %v10934_v27, %v1690_v46  ;;  %v3647_v3 = vadd.f32 %v10934_v27, %v1843_v35  ;;  %v4125_v59 = vmax.f32 %v3613_v57, 0.0  ;;  %v4127_v33 = vmax.f32 %v3615_v34, 0.0 }
 0x2f2   : > { %v4156_v52 = vmax.f32 %v3644_v48, 0.0  ;;  %v4158_v51 = vmax.f32 %v3646_v45, 0.0  ;;  %9145 = vmatmul.mubr.msk.bf16.gmra.mrb[20].mxu0 %vm538_vm1, %v11642_v32  ;;  %9158 = vmatmul.mubr.msk.bf16.gmra.mrb[20].mxu1 %vm538_vm1, %v11642_v32 }
 0x2f3   : > { %2334 = vmatprep.mubr.bf16.mxu0 %v13640_v41  ;;  %2487 = vmatprep.mubr.bf16.mxu1 %v13640_v41  ;;  %v4157_v40 = vmax.f32 %v3645_v31, 0.0  ;;  %v4159_v49 = vmax.f32 %v3647_v3, 0.0 }
 0x2f4   : > { %v11650_v18 = vpack.c.bf16 %v4156_v52, %v4124_v0  ;;  %v11652_v38 = vpack.c.bf16 %v4158_v51, %v4126_v19 }
 0x2f5   : > { %v1694_v48 = vpop.f32.mrb[172].mxu0  ;;  %v1847_v45 = vpop.f32.mrb[172].mxu1  ;;  %v11654_v46 = vpack.c.bf16 %v4157_v40, %v4125_v59  ;;  %v11656_v35 = vpack.c.bf16 %v4159_v49, %v4127_v33 }
 0x2f6   : > { %13731 = vst [vmem:[#allocation121_spill] sm:$0xff] %v11650_v18  ;;  %13732 = vst [vmem:[#allocation122_spill] sm:$0xff] %v11652_v38  ;;  %v3676_v20 = vadd.f32 %v10956_v26, %v1694_v48  ;;  %v3678_v10 = vadd.f32 %v10956_v26, %v1847_v45  ;;  %v1696_v62 = vpop.f32.mrb[173].mxu0  ;;  %v1849_v53 = vpop.f32.mrb[173].mxu1  ;;  %v11666_v38 = vld [vmem:[#allocation5 + $0x50] sm:$0xff]  }
 0x2f7   : > { %13733 = vst [vmem:[#allocation123_spill] sm:$0xff] %v11654_v46  ;;  %13734 = vst [vmem:[#allocation124_spill] sm:$0xff] %v11656_v35  ;;  %v3677_v57 = vadd.f32 %v10956_v26, %v1696_v62  ;;  %v3679_v34 = vadd.f32 %v10956_v26, %v1849_v53  ;;  %v1698_v31 = vpop.f32.mrb[174].mxu0  ;;  %v1851_v3 = vpop.f32.mrb[174].mxu1 }
 0x2f8   : > { %v3708_v0 = vadd.f32 %v10960_v39, %v1698_v31  ;;  %v3710_v19 = vadd.f32 %v10960_v39, %v1851_v3  ;;  %v1700_v52 = vpop.f32.mrb[175].mxu0  ;;  %v1853_v51 = vpop.f32.mrb[175].mxu1  ;;  %v4188_v33 = vmax.f32 %v3676_v20, 0.0  ;;  %v4190_v49 = vmax.f32 %v3678_v10, 0.0 }
 0x2f9   : > { %v3709_v59 = vadd.f32 %v10960_v39, %v1700_v52  ;;  %v3711_v40 = vadd.f32 %v10960_v39, %v1853_v51  ;;  %v4189_v53 = vmax.f32 %v3677_v57, 0.0  ;;  %v4191_v31 = vmax.f32 %v3679_v34, 0.0  ;;  %v11682_v52 = vld [vmem:[#allocation5 + $0x58] sm:$0xff]  }
 0x2fa   : > { %v4220_v48 = vmax.f32 %v3708_v0, 0.0  ;;  %v4222_v45 = vmax.f32 %v3710_v19, 0.0  ;;  %9146 = vmatmul.mubr.msk.bf16.gmra.mrb[24].mxu0 %vm538_vm1, %v11666_v38  ;;  %9159 = vmatmul.mubr.msk.bf16.gmra.mrb[24].mxu1 %vm538_vm1, %v11666_v38  ;;  %v450_v57 = vpack.c.bf16 %v11457_v54, %v11457_v54  ;;  %v452_v34 = vpack.c.bf16 %v11460_v30, %v11460_v30  ;;  %v11704_v54 = vld [vmem:[#allocation5 + $0x8] sm:$0xff]   ;;  %v11712_v30 = vld [vmem:[#allocation5 + $0x10] sm:$0xff]  }
 0x2fb   : > { %2344 = vmatprep.mubr.bf16.mxu0 %v13640_v41  ;;  %2497 = vmatprep.mubr.bf16.mxu1 %v13640_v41  ;;  %v4221_v62 = vmax.f32 %v3709_v59, 0.0  ;;  %v4223_v3 = vmax.f32 %v3711_v40, 0.0 }
 0x2fc   : > { %v11674_v20 = vpack.c.bf16 %v4220_v48, %v4188_v33  ;;  %v11676_v10 = vpack.c.bf16 %v4222_v45, %v4190_v49  ;;  %v661_v51 = vsel %vm575_vm0, %v450_v57, 0  ;;  %v667_v59 = vsel %vm575_vm0, %v452_v34, 0 }
 0x2fd   : > { %v11678_v0 = vpack.c.bf16 %v4221_v62, %v4189_v53  ;;  %v11680_v19 = vpack.c.bf16 %v4223_v3, %v4191_v31 }
 0x2fe   : > { %13735 = vst [vmem:[#allocation125_spill] sm:$0xff] %v11674_v20  ;;  %13736 = vst [vmem:[#allocation126_spill] sm:$0xff] %v11676_v10 }
 0x2ff   : > { %13737 = vst [vmem:[#allocation127_spill] sm:$0xff] %v11678_v0  ;;  %13738 = vst [vmem:[#allocation128_spill] sm:$0xff] %v11680_v19  ;;  %v11728_v19 = vld [vmem:[#allocation5 + $0x18] sm:$0xff]  }
 0x302   : > { %9147 = vmatmul.mubr.msk.bf16.gmra.mrb[28].mxu0 %vm538_vm1, %v11682_v52  ;;  %9160 = vmatmul.mubr.msk.bf16.gmra.mrb[28].mxu1 %vm538_vm1, %v11682_v52 }
 0x303   : > { %2540 = vmatprep.mubr.bf16.mxu0 %v13640_v41  ;;  %2693 = vmatprep.mubr.bf16.mxu1 %v13640_v41 }
 0x30a   : > { %9162 = vmatmul.mubr.msk.bf16.vlgmr.msra.gmra.mrb[48].mxu0 %vm538_vm1, %v11474_v37  ;;  %9175 = vmatmul.mubr.msk.bf16.vlgmr.msra.gmra.mrb[48].mxu1 %vm538_vm1, %v11474_v37 }
 0x30b   : > { %2815 = vmatpush1.bf16.msra.mxu0 %v661_v51  ;;  %2968 = vmatpush1.bf16.msra.mxu1 %v667_v59 }
 0x30c   : > { %4503 = vmatprep.subr.bf16.mxu0 %v10810_v55  ;;  %4544 = vmatprep.subr.bf16.mxu1 %v10812_v56 }
 0x30d   : > { %2550 = vmatprep.mubr.bf16.mxu0 %v13640_v41  ;;  %2703 = vmatprep.mubr.bf16.mxu1 %v13640_v41 }
 0x312   : > { %9163 = vmatmul.mubr.msk.bf16.gmra.mrb[52].mxu0 %vm538_vm1, %v11704_v54  ;;  %9176 = vmatmul.mubr.msk.bf16.gmra.mrb[52].mxu1 %vm538_vm1, %v11704_v54 }
 0x313   : > { %2560 = vmatprep.mubr.bf16.mxu0 %v13640_v41  ;;  %2713 = vmatprep.mubr.bf16.mxu1 %v13640_v41 }
 0x31a   : > { %9164 = vmatmul.mubr.msk.bf16.gmra.mrb[56].mxu0 %vm538_vm1, %v11712_v30  ;;  %9177 = vmatmul.mubr.msk.bf16.gmra.mrb[56].mxu1 %vm538_vm1, %v11712_v30 }
 0x31b   : > { %2570 = vmatprep.mubr.bf16.mxu0 %v13640_v41  ;;  %2723 = vmatprep.mubr.bf16.mxu1 %v13640_v41 }
 0x31d   : > { %v1930_v55 = vpop.f32.mrb[192].mxu0  ;;  %v2083_v56 = vpop.f32.mrb[192].mxu1 }
 0x31e   : > { %v3232_v37 = vadd.f32 %v10778_v11, %v1930_v55  ;;  %v3234_v40 = vadd.f32 %v10778_v11, %v2083_v56  ;;  %v1932_v33 = vpop.f32.mrb[193].mxu0  ;;  %v2085_v49 = vpop.f32.mrb[193].mxu1 }
 0x31f   : > { %v3233_v48 = vadd.f32 %v10778_v11, %v1932_v33  ;;  %v3235_v45 = vadd.f32 %v10778_v11, %v2085_v49  ;;  %v1934_v53 = vpop.f32.mrb[194].mxu0  ;;  %v2087_v62 = vpop.f32.mrb[194].mxu1 }
 0x320   : > { %v3264_v31 = vadd.f32 %v10786_v13, %v1934_v53  ;;  %v3266_v3 = vadd.f32 %v10786_v13, %v2087_v62  ;;  %v1936_v57 = vpop.f32.mrb[195].mxu0  ;;  %v2089_v34 = vpop.f32.mrb[195].mxu1  ;;  %v3744_v55 = vmax.f32 %v3232_v37, 0.0  ;;  %v3746_v56 = vmax.f32 %v3234_v40, 0.0 }
 0x321   : > { %v3265_v51 = vadd.f32 %v10786_v13, %v1936_v57  ;;  %v3267_v59 = vadd.f32 %v10786_v13, %v2089_v34  ;;  %v3745_v33 = vmax.f32 %v3233_v48, 0.0  ;;  %v3747_v49 = vmax.f32 %v3235_v45, 0.0 }
 0x322   : > { %v3776_v10 = vmax.f32 %v3264_v31, 0.0  ;;  %v3778_v20 = vmax.f32 %v3266_v3, 0.0  ;;  %9165 = vmatmul.mubr.msk.bf16.gmra.mrb[60].mxu0 %vm538_vm1, %v11728_v19  ;;  %9178 = vmatmul.mubr.msk.bf16.gmra.mrb[60].mxu1 %vm538_vm1, %v11728_v19 }
 0x323   : > { %v3777_v53 = vmax.f32 %v3265_v51, 0.0  ;;  %v3779_v62 = vmax.f32 %v3267_v59, 0.0  ;;  %2580 = vmatprep.mubr.bf16.mxu0 %v13640_v41  ;;  %2733 = vmatprep.mubr.bf16.mxu1 %v13640_v41 }
 0x324   : > { %v11736_v37 = vpack.c.bf16 %v3776_v10, %v3744_v55  ;;  %v11738_v40 = vpack.c.bf16 %v3778_v20, %v3746_v56 }
 0x325   : > { %v1940_v31 = vpop.f32.mrb[196].mxu0  ;;  %v2093_v3 = vpop.f32.mrb[196].mxu1  ;;  %v11740_v57 = vpack.c.bf16 %v3777_v53, %v3745_v33  ;;  %v11742_v34 = vpack.c.bf16 %v3779_v62, %v3747_v49 }
 0x326   : > { %13739 = vst [vmem:[#allocation129_spill] sm:$0xff] %v11736_v37  ;;  %13740 = vst [vmem:[#allocation130_spill] sm:$0xff] %v11738_v40  ;;  %v3296_v0 = vadd.f32 %v10788_v14, %v1940_v31  ;;  %v3298_v48 = vadd.f32 %v10788_v14, %v2093_v3  ;;  %v1942_v45 = vpop.f32.mrb[197].mxu0  ;;  %v2095_v51 = vpop.f32.mrb[197].mxu1 }
 0x327   : > { %13741 = vst [vmem:[#allocation131_spill] sm:$0xff] %v11740_v57  ;;  %13742 = vst [vmem:[#allocation132_spill] sm:$0xff] %v11742_v34  ;;  %v3297_v59 = vadd.f32 %v10788_v14, %v1942_v45  ;;  %v3299_v18 = vadd.f32 %v10788_v14, %v2095_v51  ;;  %v1944_v10 = vpop.f32.mrb[198].mxu0  ;;  %v2097_v55 = vpop.f32.mrb[198].mxu1  ;;  %v11752_v34 = vld [vmem:[#allocation5 + $0x20] sm:$0xff]  }
 0x328   : > { %v3328_v20 = vadd.f32 %v10808_v44, %v1944_v10  ;;  %v3330_v56 = vadd.f32 %v10808_v44, %v2097_v55  ;;  %v1946_v33 = vpop.f32.mrb[199].mxu0  ;;  %v2099_v53 = vpop.f32.mrb[199].mxu1  ;;  %v3808_v31 = vmax.f32 %v3296_v0, 0.0  ;;  %v3810_v3 = vmax.f32 %v3298_v48, 0.0 }
 0x329   : > { %v3329_v49 = vadd.f32 %v10808_v44, %v1946_v33  ;;  %v3331_v62 = vadd.f32 %v10808_v44, %v2099_v53  ;;  %v3809_v45 = vmax.f32 %v3297_v59, 0.0  ;;  %v3811_v51 = vmax.f32 %v3299_v18, 0.0 }
 0x32a   : > { %v3840_v40 = vmax.f32 %v3328_v20, 0.0  ;;  %v3842_v37 = vmax.f32 %v3330_v56, 0.0  ;;  %9166 = vmatmul.mubr.msk.bf16.gmra.mrb[64].mxu0 %vm538_vm1, %v11752_v34  ;;  %9179 = vmatmul.mubr.msk.bf16.gmra.mrb[64].mxu1 %vm538_vm1, %v11752_v34 }
 0x32b   : > { %v3841_v10 = vmax.f32 %v3329_v49, 0.0  ;;  %v3843_v55 = vmax.f32 %v3331_v62, 0.0  ;;  %2590 = vmatprep.mubr.bf16.mxu0 %v13640_v41  ;;  %2743 = vmatprep.mubr.bf16.mxu1 %v13640_v41 }
 0x32c   : > { %v11760_v0 = vpack.c.bf16 %v3840_v40, %v3808_v31  ;;  %v11762_v48 = vpack.c.bf16 %v3842_v37, %v3810_v3 }
 0x32d   : > { %v1950_v20 = vpop.f32.mrb[200].mxu0  ;;  %v2103_v56 = vpop.f32.mrb[200].mxu1  ;;  %v11764_v33 = vpack.c.bf16 %v3841_v10, %v3809_v45  ;;  %v11766_v53 = vpack.c.bf16 %v3843_v55, %v3811_v51 }
 0x32e   : > { %13743 = vst [vmem:[#allocation133_spill] sm:$0xff] %v11760_v0  ;;  %13744 = vst [vmem:[#allocation134_spill] sm:$0xff] %v11762_v48  ;;  %v3360_v57 = vadd.f32 %v10826_v21, %v1950_v20  ;;  %v3362_v18 = vadd.f32 %v10826_v21, %v2103_v56  ;;  %v1952_v59 = vpop.f32.mrb[201].mxu0  ;;  %v2105_v49 = vpop.f32.mrb[201].mxu1 }
 0x32f   : > { %13745 = vst [vmem:[#allocation135_spill] sm:$0xff] %v11764_v33  ;;  %13746 = vst [vmem:[#allocation136_spill] sm:$0xff] %v11766_v53  ;;  %v3361_v62 = vadd.f32 %v10826_v21, %v1952_v59  ;;  %v3363_v35 = vadd.f32 %v10826_v21, %v2105_v49  ;;  %v1954_v40 = vpop.f32.mrb[202].mxu0  ;;  %v2107_v31 = vpop.f32.mrb[202].mxu1  ;;  %v11776_v53 = vld [vmem:[#allocation5 + $0x28] sm:$0xff]  }
 0x330   : > { %v3392_v37 = vadd.f32 %v10834_v25, %v1954_v40  ;;  %v3394_v3 = vadd.f32 %v10834_v25, %v2107_v31  ;;  %v1956_v45 = vpop.f32.mrb[203].mxu0  ;;  %v2109_v10 = vpop.f32.mrb[203].mxu1  ;;  %v3872_v20 = vmax.f32 %v3360_v57, 0.0  ;;  %v3874_v56 = vmax.f32 %v3362_v18, 0.0 }
 0x331   : > { %v3393_v51 = vadd.f32 %v10834_v25, %v1956_v45  ;;  %v3395_v55 = vadd.f32 %v10834_v25, %v2109_v10  ;;  %v3873_v59 = vmax.f32 %v3361_v62, 0.0  ;;  %v3875_v49 = vmax.f32 %v3363_v35, 0.0 }
 0x332   : > { %v3904_v48 = vmax.f32 %v3392_v37, 0.0  ;;  %v3906_v0 = vmax.f32 %v3394_v3, 0.0  ;;  %9167 = vmatmul.mubr.msk.bf16.gmra.mrb[68].mxu0 %vm538_vm1, %v11776_v53  ;;  %9180 = vmatmul.mubr.msk.bf16.gmra.mrb[68].mxu1 %vm538_vm1, %v11776_v53 }
 0x333   : > { %v3905_v40 = vmax.f32 %v3393_v51, 0.0  ;;  %v3907_v31 = vmax.f32 %v3395_v55, 0.0  ;;  %2600 = vmatprep.mubr.bf16.mxu0 %v13640_v41  ;;  %2753 = vmatprep.mubr.bf16.mxu1 %v13640_v41 }
 0x334   : > { %v11784_v57 = vpack.c.bf16 %v3904_v48, %v3872_v20  ;;  %v11786_v18 = vpack.c.bf16 %v3906_v0, %v3874_v56 }
 0x335   : > { %v1960_v37 = vpop.f32.mrb[204].mxu0  ;;  %v2113_v3 = vpop.f32.mrb[204].mxu1  ;;  %v11788_v45 = vpack.c.bf16 %v3905_v40, %v3873_v59  ;;  %v11790_v10 = vpack.c.bf16 %v3907_v31, %v3875_v49 }
 0x336   : > { %13747 = vst [vmem:[#allocation137_spill] sm:$0xff] %v11784_v57  ;;  %13748 = vst [vmem:[#allocation138_spill] sm:$0xff] %v11786_v18  ;;  %v3424_v33 = vadd.f32 %v10852_v6, %v1960_v37  ;;  %v3426_v35 = vadd.f32 %v10852_v6, %v2113_v3  ;;  %v1962_v62 = vpop.f32.mrb[205].mxu0  ;;  %v2115_v51 = vpop.f32.mrb[205].mxu1 }
 0x337   : > { %13749 = vst [vmem:[#allocation139_spill] sm:$0xff] %v11790_v10  ;;  %v3425_v55 = vadd.f32 %v10852_v6, %v1962_v62  ;;  %v3427_v46 = vadd.f32 %v10852_v6, %v2115_v51  ;;  %v1964_v48 = vpop.f32.mrb[206].mxu0  ;;  %v2117_v20 = vpop.f32.mrb[206].mxu1 }
 0x338   : > { %v3456_v0 = vadd.f32 %v10860_v9, %v1964_v48  ;;  %v3458_v56 = vadd.f32 %v10860_v9, %v2117_v20  ;;  %v1966_v59 = vpop.f32.mrb[207].mxu0  ;;  %v2119_v40 = vpop.f32.mrb[207].mxu1  ;;  %v3936_v37 = vmax.f32 %v3424_v33, 0.0  ;;  %v3938_v3 = vmax.f32 %v3426_v35, 0.0 }
 0x339   : > { %v3457_v49 = vadd.f32 %v10860_v9, %v1966_v59  ;;  %v3459_v31 = vadd.f32 %v10860_v9, %v2119_v40  ;;  %v3937_v62 = vmax.f32 %v3425_v55, 0.0  ;;  %v3939_v51 = vmax.f32 %v3427_v46, 0.0 }
 0x33a   : > { %v3968_v18 = vmax.f32 %v3456_v0, 0.0  ;;  %v3970_v57 = vmax.f32 %v3458_v56, 0.0  ;;  %9168 = vmatmul.mubr.msk.bf16.gmra.mrb[72].mxu0 %vm538_vm1, %v11570_v58  ;;  %9181 = vmatmul.mubr.msk.bf16.gmra.mrb[72].mxu1 %vm538_vm1, %v11570_v58 }
 0x33b   : > { %v3969_v48 = vmax.f32 %v3457_v49, 0.0  ;;  %v3971_v20 = vmax.f32 %v3459_v31, 0.0  ;;  %2610 = vmatprep.mubr.bf16.mxu0 %v13640_v41  ;;  %2763 = vmatprep.mubr.bf16.mxu1 %v13640_v41 }
 0x33c   : > { %v11806_v59 = vpack.c.bf16 %v3968_v18, %v3936_v37  ;;  %v11808_v33 = vpack.c.bf16 %v3970_v57, %v3938_v3 }
 0x33d   : > { %v1970_v35 = vpop.f32.mrb[208].mxu0  ;;  %v2123_v0 = vpop.f32.mrb[208].mxu1  ;;  %v11810_v56 = vpack.c.bf16 %v3969_v48, %v3937_v62  ;;  %v11812_v40 = vpack.c.bf16 %v3971_v20, %v3939_v51 }
 0x33e   : > { %13750 = vst [vmem:[#allocation140_spill] sm:$0xff] %v11806_v59  ;;  %13751 = vst [vmem:[#allocation141_spill] sm:$0xff] %v11808_v33  ;;  %v3488_v58 = vadd.f32 %v10878_v61, %v1970_v35  ;;  %v3490_v46 = vadd.f32 %v10878_v61, %v2123_v0  ;;  %v1972_v55 = vpop.f32.mrb[209].mxu0  ;;  %v2125_v49 = vpop.f32.mrb[209].mxu1 }
 0x33f   : > { %13752 = vst [vmem:[#allocation142_spill] sm:$0xff] %v11812_v40  ;;  %v3489_v31 = vadd.f32 %v10878_v61, %v1972_v55  ;;  %v3491_v10 = vadd.f32 %v10878_v61, %v2125_v49  ;;  %v1974_v18 = vpop.f32.mrb[210].mxu0  ;;  %v2127_v37 = vpop.f32.mrb[210].mxu1 }
 0x340   : > { %v3520_v57 = vadd.f32 %v10886_v1, %v1974_v18  ;;  %v3522_v3 = vadd.f32 %v10886_v1, %v2127_v37  ;;  %v1976_v62 = vpop.f32.mrb[211].mxu0  ;;  %v2129_v48 = vpop.f32.mrb[211].mxu1  ;;  %v4000_v35 = vmax.f32 %v3488_v58, 0.0  ;;  %v4002_v0 = vmax.f32 %v3490_v46, 0.0 }
 0x341   : > { %v3521_v51 = vadd.f32 %v10886_v1, %v1976_v62  ;;  %v3523_v20 = vadd.f32 %v10886_v1, %v2129_v48  ;;  %v4001_v55 = vmax.f32 %v3489_v31, 0.0  ;;  %v4003_v49 = vmax.f32 %v3491_v10, 0.0 }
 0x342   : > { %v4032_v33 = vmax.f32 %v3520_v57, 0.0  ;;  %v4034_v59 = vmax.f32 %v3522_v3, 0.0  ;;  %9169 = vmatmul.mubr.msk.bf16.gmra.mrb[76].mxu0 %vm538_vm1, %v11594_v23  ;;  %9182 = vmatmul.mubr.msk.bf16.gmra.mrb[76].mxu1 %vm538_vm1, %v11594_v23 }
 0x343   : > { %v4033_v18 = vmax.f32 %v3521_v51, 0.0  ;;  %v4035_v37 = vmax.f32 %v3523_v20, 0.0  ;;  %2620 = vmatprep.mubr.bf16.mxu0 %v13640_v41  ;;  %2773 = vmatprep.mubr.bf16.mxu1 %v13640_v41 }
 0x344   : > { %v11828_v62 = vpack.c.bf16 %v4032_v33, %v4000_v35  ;;  %v11830_v58 = vpack.c.bf16 %v4034_v59, %v4002_v0 }
 0x345   : > { %v1980_v46 = vpop.f32.mrb[212].mxu0  ;;  %v2133_v57 = vpop.f32.mrb[212].mxu1  ;;  %v11832_v3 = vpack.c.bf16 %v4033_v18, %v4001_v55  ;;  %v11834_v48 = vpack.c.bf16 %v4035_v37, %v4003_v49 }
 0x346   : > { %13753 = vst [vmem:[#allocation143_spill] sm:$0xff] %v11828_v62  ;;  %13754 = vst [vmem:[#allocation144_spill] sm:$0xff] %v11830_v58  ;;  %v3552_v23 = vadd.f32 %v10904_v47, %v1980_v46  ;;  %v3554_v10 = vadd.f32 %v10904_v47, %v2133_v57  ;;  %v1982_v31 = vpop.f32.mrb[213].mxu0  ;;  %v2135_v51 = vpop.f32.mrb[213].mxu1 }
 0x347   : > { %13755 = vst [vmem:[#allocation145_spill] sm:$0xff] %v11834_v48  ;;  %v3553_v20 = vadd.f32 %v10904_v47, %v1982_v31  ;;  %v3555_v40 = vadd.f32 %v10904_v47, %v2135_v51  ;;  %v1984_v33 = vpop.f32.mrb[214].mxu0  ;;  %v2137_v35 = vpop.f32.mrb[214].mxu1 }
 0x348   : > { %v3584_v59 = vadd.f32 %v10908_v2, %v1984_v33  ;;  %v3586_v0 = vadd.f32 %v10908_v2, %v2137_v35  ;;  %v1986_v55 = vpop.f32.mrb[215].mxu0  ;;  %v2139_v18 = vpop.f32.mrb[215].mxu1  ;;  %v4064_v46 = vmax.f32 %v3552_v23, 0.0  ;;  %v4066_v57 = vmax.f32 %v3554_v10, 0.0 }
 0x349   : > { %v3585_v49 = vadd.f32 %v10908_v2, %v1986_v55  ;;  %v3587_v37 = vadd.f32 %v10908_v2, %v2139_v18  ;;  %v4065_v31 = vmax.f32 %v3553_v20, 0.0  ;;  %v4067_v51 = vmax.f32 %v3555_v40, 0.0 }
 0x34a   : > { %v4096_v58 = vmax.f32 %v3584_v59, 0.0  ;;  %v4098_v62 = vmax.f32 %v3586_v0, 0.0  ;;  %9170 = vmatmul.mubr.msk.bf16.gmra.mrb[96].mxu0 %vm538_vm1, %v11618_v36  ;;  %9183 = vmatmul.mubr.msk.bf16.gmra.mrb[96].mxu1 %vm538_vm1, %v11618_v36 }
 0x34b   : > { %v4097_v33 = vmax.f32 %v3585_v49, 0.0  ;;  %v4099_v35 = vmax.f32 %v3587_v37, 0.0  ;;  %2630 = vmatprep.mubr.bf16.mxu0 %v13640_v41  ;;  %2783 = vmatprep.mubr.bf16.mxu1 %v13640_v41 }
 0x34c   : > { %v11850_v55 = vpack.c.bf16 %v4096_v58, %v4064_v46  ;;  %v11852_v23 = vpack.c.bf16 %v4098_v62, %v4066_v57 }
 0x34d   : > { %v1990_v10 = vpop.f32.mrb[216].mxu0  ;;  %v2143_v59 = vpop.f32.mrb[216].mxu1  ;;  %v11854_v0 = vpack.c.bf16 %v4097_v33, %v4065_v31  ;;  %v11856_v18 = vpack.c.bf16 %v4099_v35, %v4067_v51 }
 0x34e   : > { %13756 = vst [vmem:[#allocation146_spill] sm:$0xff] %v11850_v55  ;;  %13757 = vst [vmem:[#allocation147_spill] sm:$0xff] %v11852_v23  ;;  %v3616_v36 = vadd.f32 %v10930_v17, %v1990_v10  ;;  %v3618_v40 = vadd.f32 %v10930_v17, %v2143_v59  ;;  %v1992_v20 = vpop.f32.mrb[217].mxu0  ;;  %v2145_v49 = vpop.f32.mrb[217].mxu1 }
 0x34f   : > { %13758 = vst [vmem:[#allocation148_spill] sm:$0xff] %v11856_v18  ;;  %v3617_v37 = vadd.f32 %v10930_v17, %v1992_v20  ;;  %v3619_v48 = vadd.f32 %v10930_v17, %v2145_v49  ;;  %v1994_v58 = vpop.f32.mrb[218].mxu0  ;;  %v2147_v46 = vpop.f32.mrb[218].mxu1 }
 0x350   : > { %v3648_v62 = vadd.f32 %v10934_v27, %v1994_v58  ;;  %v3650_v57 = vadd.f32 %v10934_v27, %v2147_v46  ;;  %v1996_v31 = vpop.f32.mrb[219].mxu0  ;;  %v2149_v33 = vpop.f32.mrb[219].mxu1  ;;  %v4128_v10 = vmax.f32 %v3616_v36, 0.0  ;;  %v4130_v59 = vmax.f32 %v3618_v40, 0.0 }
 0x351   : > { %v3649_v51 = vadd.f32 %v10934_v27, %v1996_v31  ;;  %v3651_v35 = vadd.f32 %v10934_v27, %v2149_v33  ;;  %v4129_v20 = vmax.f32 %v3617_v37, 0.0  ;;  %v4131_v49 = vmax.f32 %v3619_v48, 0.0 }
 0x352   : > { %v4160_v23 = vmax.f32 %v3648_v62, 0.0  ;;  %v4162_v55 = vmax.f32 %v3650_v57, 0.0  ;;  %9171 = vmatmul.mubr.msk.bf16.gmra.mrb[100].mxu0 %vm538_vm1, %v11642_v32  ;;  %9184 = vmatmul.mubr.msk.bf16.gmra.mrb[100].mxu1 %vm538_vm1, %v11642_v32 }
 0x353   : > { %v4161_v58 = vmax.f32 %v3649_v51, 0.0  ;;  %v4163_v46 = vmax.f32 %v3651_v35, 0.0  ;;  %2640 = vmatprep.mubr.bf16.mxu0 %v13640_v41  ;;  %2793 = vmatprep.mubr.bf16.mxu1 %v13640_v41 }
 0x354   : > { %v11872_v31 = vpack.c.bf16 %v4160_v23, %v4128_v10  ;;  %v11874_v36 = vpack.c.bf16 %v4162_v55, %v4130_v59 }
 0x355   : > { %v2000_v40 = vpop.f32.mrb[220].mxu0  ;;  %v2153_v62 = vpop.f32.mrb[220].mxu1  ;;  %v11876_v57 = vpack.c.bf16 %v4161_v58, %v4129_v20  ;;  %v11878_v33 = vpack.c.bf16 %v4163_v46, %v4131_v49 }
 0x356   : > { %13759 = vst [vmem:[#allocation149_spill] sm:$0xff] %v11872_v31  ;;  %13760 = vst [vmem:[#allocation150_spill] sm:$0xff] %v11874_v36  ;;  %v3680_v32 = vadd.f32 %v10956_v26, %v2000_v40  ;;  %v3682_v48 = vadd.f32 %v10956_v26, %v2153_v62  ;;  %v2002_v37 = vpop.f32.mrb[221].mxu0  ;;  %v2155_v51 = vpop.f32.mrb[221].mxu1 }
 0x357   : > { %v3681_v35 = vadd.f32 %v10956_v26, %v2002_v37  ;;  %v3683_v18 = vadd.f32 %v10956_v26, %v2155_v51  ;;  %v2004_v23 = vpop.f32.mrb[222].mxu0  ;;  %v2157_v10 = vpop.f32.mrb[222].mxu1 }
 0x358   : > { %v3712_v55 = vadd.f32 %v10960_v39, %v2004_v23  ;;  %v3714_v59 = vadd.f32 %v10960_v39, %v2157_v10  ;;  %v2006_v20 = vpop.f32.mrb[223].mxu0  ;;  %v2159_v58 = vpop.f32.mrb[223].mxu1  ;;  %v4192_v40 = vmax.f32 %v3680_v32, 0.0  ;;  %v4194_v62 = vmax.f32 %v3682_v48, 0.0 }
 0x359   : > { %v3713_v49 = vadd.f32 %v10960_v39, %v2006_v20  ;;  %v3715_v46 = vadd.f32 %v10960_v39, %v2159_v58  ;;  %v4193_v37 = vmax.f32 %v3681_v35, 0.0  ;;  %v4195_v51 = vmax.f32 %v3683_v18, 0.0  ;;  %v13771_v58 = vld [vmem:[#allocation27_spill] sm:$0xff] }
 0x35a   : > { %v4224_v36 = vmax.f32 %v3712_v55, 0.0  ;;  %v4226_v31 = vmax.f32 %v3714_v59, 0.0  ;;  %9172 = vmatmul.mubr.msk.bf16.gmra.mrb[104].mxu0 %vm538_vm1, %v11666_v38  ;;  %9185 = vmatmul.mubr.msk.bf16.gmra.mrb[104].mxu1 %vm538_vm1, %v11666_v38  ;;  %v9945_v38 = vld [vmem:[#allocation5] sm:$0xff]  }
 0x35b   : > { %v4225_v23 = vmax.f32 %v3713_v49, 0.0  ;;  %v4227_v10 = vmax.f32 %v3715_v46, 0.0  ;;  %2650 = vmatprep.mubr.bf16.mxu0 %v13640_v41  ;;  %2803 = vmatprep.mubr.bf16.mxu1 %v13640_v41  ;;  %v13772_v49 = vld [vmem:[#allocation28_spill] sm:$0xff] }
 0x35c   : > { %v11894_v20 = vpack.c.bf16 %v4224_v36, %v4192_v40  ;;  %v11896_v32 = vpack.c.bf16 %v4226_v31, %v4194_v62 }
 0x35d   : > { %v11898_v48 = vpack.c.bf16 %v4225_v23, %v4193_v37  ;;  %v11900_v55 = vpack.c.bf16 %v4227_v10, %v4195_v51  ;;  %v13773_v51 = vld [vmem:[#allocation33_spill] sm:$0xff]  ;;  %v13774_v23 = vld [vmem:[#allocation34_spill] sm:$0xff] }
 0x362   : > { %9173 = vmatmul.mubr.msk.bf16.gmra.mrb[108].mxu0 %vm538_vm1, %v11682_v52  ;;  %9186 = vmatmul.mubr.msk.bf16.gmra.mrb[108].mxu1 %vm538_vm1, %v11682_v52 }
 0x363   : > { %2846 = vmatprep.mubr.bf16.mxu0 %v13640_v41  ;;  %2999 = vmatprep.mubr.bf16.mxu1 %v13640_v41 }
 0x36a   : > { %9188 = vmatmul.mubr.msk.bf16.vlgmr.msra.gmra.mrb[112].mxu0 %vm538_vm1, %v9945_v38  ;;  %9201 = vmatmul.mubr.msk.bf16.vlgmr.msra.gmra.mrb[112].mxu1 %vm538_vm1, %v9945_v38 }
 0x36b   : > { %4504 = vmatpush1.bf16.msra.mxu0 %v10804_v42  ;;  %4545 = vmatpush1.bf16.msra.mxu1 %v10806_v43  ;;  %v13761_v42 = vld [vmem:[#allocation21_spill] sm:$0xff]  ;;  %v13762_v43 = vld [vmem:[#allocation22_spill] sm:$0xff] }
 0x36c   : > { %4505 = vmatprep.subr.bf16.mxu0 %v10836_v28  ;;  %4546 = vmatprep.subr.bf16.mxu1 %v10838_v29  ;;  %v13765_v28 = vld [vmem:[#allocation25_spill] sm:$0xff]  ;;  %v13766_v29 = vld [vmem:[#allocation26_spill] sm:$0xff] }
 0x36d   : > { %2856 = vmatprep.mubr.bf16.mxu0 %v13640_v41  ;;  %3009 = vmatprep.mubr.bf16.mxu1 %v13640_v41 }
 0x36f   : > { %4506 = vmatpush1.bf16.msra.mxu0 %v10830_v22  ;;  %4547 = vmatpush1.bf16.msra.mxu1 %v10832_v24  ;;  %v13763_v22 = vld [vmem:[#allocation19_spill] sm:$0xff]  ;;  %v13764_v24 = vld [vmem:[#allocation20_spill] sm:$0xff] }
 0x370   : > { %4507 = vmatprep.subr.bf16.mxu0 %v10862_v15  ;;  %4548 = vmatprep.subr.bf16.mxu1 %v10864_v16  ;;  %v13769_v15 = vld [vmem:[#allocation29_spill] sm:$0xff]  ;;  %v13770_v16 = vld [vmem:[#allocation30_spill] sm:$0xff] }
 0x372   : > { %9189 = vmatmul.mubr.msk.bf16.gmra.mrb[116].mxu0 %vm538_vm1, %v11704_v54  ;;  %9202 = vmatmul.mubr.msk.bf16.gmra.mrb[116].mxu1 %vm538_vm1, %v11704_v54 }
 0x373   : > { %4508 = vmatpush1.bf16.msra.mxu0 %v10856_v7  ;;  %4549 = vmatpush1.bf16.msra.mxu1 %v10858_v8  ;;  %v13767_v7 = vld [vmem:[#allocation23_spill] sm:$0xff]  ;;  %v13768_v8 = vld [vmem:[#allocation24_spill] sm:$0xff] }
 0x374   : > { %4509 = vmatprep.subr.bf16.mxu0 %v13761_v42  ;;  %4550 = vmatprep.subr.bf16.mxu1 %v13762_v43 }
 0x375   : > { %2866 = vmatprep.mubr.bf16.mxu0 %v13640_v41  ;;  %3019 = vmatprep.mubr.bf16.mxu1 %v13640_v41 }
 0x377   : > { %4510 = vmatpush1.bf16.msra.mxu0 %v13763_v22  ;;  %4551 = vmatpush1.bf16.msra.mxu1 %v13764_v24 }
 0x378   : > { %4511 = vmatprep.subr.bf16.mxu0 %v13765_v28  ;;  %4552 = vmatprep.subr.bf16.mxu1 %v13766_v29 }
 0x37a   : > { %9190 = vmatmul.mubr.msk.bf16.gmra.mrb[120].mxu0 %vm538_vm1, %v11712_v30  ;;  %9203 = vmatmul.mubr.msk.bf16.gmra.mrb[120].mxu1 %vm538_vm1, %v11712_v30 }
 0x37b   : > { %4512 = vmatpush1.bf16.msra.mxu0 %v13767_v7  ;;  %4553 = vmatpush1.bf16.msra.mxu1 %v13768_v8 }
 0x37c   : > { %4513 = vmatprep.subr.bf16.mxu0 %v13769_v15  ;;  %4554 = vmatprep.subr.bf16.mxu1 %v13770_v16 }
 0x37d   : > { %v2236_v52 = vpop.f32.mrb[240].mxu0  ;;  %v2389_v54 = vpop.f32.mrb[240].mxu1  ;;  %2876 = vmatprep.mubr.bf16.mxu0 %v13640_v41  ;;  %3029 = vmatprep.mubr.bf16.mxu1 %v13640_v41 }
 0x37e   : > { %v3236_v18 = vadd.f32 %v10778_v11, %v2236_v52  ;;  %v3238_v31 = vadd.f32 %v10778_v11, %v2389_v54  ;;  %v2238_v36 = vpop.f32.mrb[241].mxu0  ;;  %v2391_v30 = vpop.f32.mrb[241].mxu1  ;;  %v13775_v52 = vld [vmem:[#allocation31_spill] sm:$0xff]  ;;  %v13776_v54 = vld [vmem:[#allocation32_spill] sm:$0xff] }
 0x37f   : > { %v3237_v35 = vadd.f32 %v10778_v11, %v2238_v36  ;;  %v3239_v59 = vadd.f32 %v10778_v11, %v2391_v30  ;;  %4514 = vmatpush1.bf16.msra.mxu0 %v13771_v58  ;;  %4555 = vmatpush1.bf16.msra.mxu1 %v13772_v49  ;;  %v2240_v46 = vpop.f32.mrb[242].mxu0  ;;  %v2393_v40 = vpop.f32.mrb[242].mxu1  ;;  %v13778_v30 = vld [vmem:[#allocation38_spill] sm:$0xff] }
 0x380   : > { %v3268_v62 = vadd.f32 %v10786_v13, %v2240_v46  ;;  %v3270_v37 = vadd.f32 %v10786_v13, %v2393_v40  ;;  %4515 = vmatprep.subr.bf16.mxu0 %v13773_v51  ;;  %4556 = vmatprep.subr.bf16.mxu1 %v13774_v23  ;;  %v2242_v10 = vpop.f32.mrb[243].mxu0  ;;  %v2395_v38 = vpop.f32.mrb[243].mxu1  ;;  %v3748_v22 = vmax.f32 %v3236_v18, 0.0  ;;  %v3750_v24 = vmax.f32 %v3238_v31, 0.0  ;;  %v13777_v31 = vld [vmem:[#allocation37_spill] sm:$0xff]  ;;  %v13779_v23 = vld [vmem:[#allocation35_spill] sm:$0xff] }
 0x381   : > { %v3269_v42 = vadd.f32 %v10786_v13, %v2242_v10  ;;  %v3271_v43 = vadd.f32 %v10786_v13, %v2395_v38  ;;  %v3749_v7 = vmax.f32 %v3237_v35, 0.0  ;;  %v3751_v8 = vmax.f32 %v3239_v59, 0.0  ;;  %v13780_v10 = vld [vmem:[#allocation36_spill] sm:$0xff] }
 0x382   : > { %v3780_v28 = vmax.f32 %v3268_v62, 0.0  ;;  %v3782_v29 = vmax.f32 %v3270_v37, 0.0  ;;  %9191 = vmatmul.mubr.msk.bf16.gmra.mrb[124].mxu0 %vm538_vm1, %v11728_v19  ;;  %9204 = vmatmul.mubr.msk.bf16.gmra.mrb[124].mxu1 %vm538_vm1, %v11728_v19 }
 0x383   : > { %v3781_v15 = vmax.f32 %v3269_v42, 0.0  ;;  %v3783_v16 = vmax.f32 %v3271_v43, 0.0  ;;  %4516 = vmatpush1.bf16.msra.mxu0 %v13775_v52  ;;  %4557 = vmatpush1.bf16.msra.mxu1 %v13776_v54 }
 0x384   : > { %v11962_v36 = vpack.c.bf16 %v3780_v28, %v3748_v22  ;;  %v11964_v18 = vpack.c.bf16 %v3782_v29, %v3750_v24  ;;  %4517 = vmatprep.subr.bf16.mxu0 %v13777_v31  ;;  %4558 = vmatprep.subr.bf16.mxu1 %v13778_v30  ;;  %v13781_v24 = vld [vmem:[#allocation41_spill] sm:$0xff]  ;;  %v13782_v28 = vld [vmem:[#allocation42_spill] sm:$0xff] }
 0x385   : > { %v2246_v58 = vpop.f32.mrb[244].mxu0  ;;  %v2399_v49 = vpop.f32.mrb[244].mxu1  ;;  %2886 = vmatprep.mubr.bf16.mxu0 %v13640_v41  ;;  %3039 = vmatprep.mubr.bf16.mxu1 %v13640_v41  ;;  %v11970_v19 = vpack.c.bf16 %v3781_v15, %v3749_v7  ;;  %v11972_v35 = vpack.c.bf16 %v3783_v16, %v3751_v8 }
 0x386   : > { %v3300_v59 = vadd.f32 %v10788_v14, %v2246_v58  ;;  %v3302_v46 = vadd.f32 %v10788_v14, %v2399_v49  ;;  %v2248_v40 = vpop.f32.mrb[245].mxu0  ;;  %v2401_v62 = vpop.f32.mrb[245].mxu1 }
 0x387   : > { %v3301_v37 = vadd.f32 %v10788_v14, %v2248_v40  ;;  %v3303_v51 = vadd.f32 %v10788_v14, %v2401_v62  ;;  %4518 = vmatpush1.bf16.msra.mxu0 %v13779_v23  ;;  %4559 = vmatpush1.bf16.msra.mxu1 %v13780_v10  ;;  %v2250_v38 = vpop.f32.mrb[246].mxu0  ;;  %v2403_v42 = vpop.f32.mrb[246].mxu1 }
 0x388   : > { %v3332_v43 = vadd.f32 %v10808_v44, %v2250_v38  ;;  %v3334_v22 = vadd.f32 %v10808_v44, %v2403_v42  ;;  %4585 = vmatprep.subr.bf16.mxu0 %v13781_v24  ;;  %4626 = vmatprep.subr.bf16.mxu1 %v13782_v28  ;;  %v2252_v29 = vpop.f32.mrb[247].mxu0  ;;  %v2405_v7 = vpop.f32.mrb[247].mxu1  ;;  %v3812_v16 = vmax.f32 %v3300_v59, 0.0  ;;  %v3814_v52 = vmax.f32 %v3302_v46, 0.0 }
 0x389   : > { %v3333_v8 = vadd.f32 %v10808_v44, %v2252_v29  ;;  %v3335_v15 = vadd.f32 %v10808_v44, %v2405_v7  ;;  %v3813_v30 = vmax.f32 %v3301_v37, 0.0  ;;  %v3815_v58 = vmax.f32 %v3303_v51, 0.0 }
 0x38a   : > { %v3844_v54 = vmax.f32 %v3332_v43, 0.0  ;;  %v3846_v31 = vmax.f32 %v3334_v22, 0.0  ;;  %9192 = vmatmul.mubr.msk.bf16.gmra.mrb[144].mxu0 %vm538_vm1, %v11752_v34  ;;  %9205 = vmatmul.mubr.msk.bf16.gmra.mrb[144].mxu1 %vm538_vm1, %v11752_v34 }
 0x38b   : > { %v3845_v49 = vmax.f32 %v3333_v8, 0.0  ;;  %v3847_v40 = vmax.f32 %v3335_v15, 0.0  ;;  %2896 = vmatprep.mubr.bf16.mxu0 %v13640_v41  ;;  %3049 = vmatprep.mubr.bf16.mxu1 %v13640_v41 }
 0x38c   : > { %v11992_v62 = vpack.c.bf16 %v3844_v54, %v3812_v16  ;;  %v11994_v59 = vpack.c.bf16 %v3846_v31, %v3814_v52 }
 0x38d   : > { %v2256_v46 = vpop.f32.mrb[248].mxu0  ;;  %v2409_v23 = vpop.f32.mrb[248].mxu1  ;;  %v11996_v10 = vpack.c.bf16 %v3845_v49, %v3813_v30  ;;  %v11998_v38 = vpack.c.bf16 %v3847_v40, %v3815_v58 }
 0x38e   : > { %13783 = vst [vmem:[#allocation21_spill] sm:$0xff] %v11994_v59  ;;  %v3364_v34 = vadd.f32 %v10826_v21, %v2256_v46  ;;  %v3366_v37 = vadd.f32 %v10826_v21, %v2409_v23  ;;  %v2258_v51 = vpop.f32.mrb[249].mxu0  ;;  %v2411_v42 = vpop.f32.mrb[249].mxu1  ;;  %v13836_v59 = vld [vmem:[#allocation69_spill] sm:$0xff] }
 0x38f   : > { %v3365_v43 = vadd.f32 %v10826_v21, %v2258_v51  ;;  %v3367_v22 = vadd.f32 %v10826_v21, %v2411_v42  ;;  %v2260_v24 = vpop.f32.mrb[250].mxu0  ;;  %v2413_v28 = vpop.f32.mrb[250].mxu1 }
 0x390   : > { %v3396_v29 = vadd.f32 %v10834_v25, %v2260_v24  ;;  %v3398_v7 = vadd.f32 %v10834_v25, %v2413_v28  ;;  %v2262_v8 = vpop.f32.mrb[251].mxu0  ;;  %v2415_v15 = vpop.f32.mrb[251].mxu1  ;;  %v3876_v54 = vmax.f32 %v3364_v34, 0.0  ;;  %v3878_v31 = vmax.f32 %v3366_v37, 0.0 }
 0x391   : > { %v3397_v16 = vadd.f32 %v10834_v25, %v2262_v8  ;;  %v3399_v52 = vadd.f32 %v10834_v25, %v2415_v15  ;;  %v3877_v49 = vmax.f32 %v3365_v43, 0.0  ;;  %v3879_v40 = vmax.f32 %v3367_v22, 0.0 }
 0x392   : > { %v3908_v30 = vmax.f32 %v3396_v29, 0.0  ;;  %v3910_v58 = vmax.f32 %v3398_v7, 0.0  ;;  %9193 = vmatmul.mubr.msk.bf16.gmra.mrb[148].mxu0 %vm538_vm1, %v11776_v53  ;;  %9206 = vmatmul.mubr.msk.bf16.gmra.mrb[148].mxu1 %vm538_vm1, %v11776_v53 }
 0x393   : > { %v3909_v46 = vmax.f32 %v3397_v16, 0.0  ;;  %v3911_v23 = vmax.f32 %v3399_v52, 0.0  ;;  %2906 = vmatprep.mubr.bf16.mxu0 %v13640_v41  ;;  %3059 = vmatprep.mubr.bf16.mxu1 %v13640_v41 }
 0x394   : > { %v12014_v51 = vpack.c.bf16 %v3908_v30, %v3876_v54  ;;  %v12016_v34 = vpack.c.bf16 %v3910_v58, %v3878_v31 }
 0x395   : > { %v2266_v37 = vpop.f32.mrb[252].mxu0  ;;  %v2419_v42 = vpop.f32.mrb[252].mxu1  ;;  %v12018_v24 = vpack.c.bf16 %v3909_v46, %v3877_v49  ;;  %v12020_v28 = vpack.c.bf16 %v3911_v23, %v3879_v40 }
 0x396   : > { %13784 = vst [vmem:[#allocation22_spill] sm:$0xff] %v12014_v51  ;;  %13785 = vst [vmem:[#allocation19_spill] sm:$0xff] %v12016_v34  ;;  %v3428_v53 = vadd.f32 %v10852_v6, %v2266_v37  ;;  %v3430_v43 = vadd.f32 %v10852_v6, %v2419_v42  ;;  %v2268_v22 = vpop.f32.mrb[253].mxu0  ;;  %v2421_v29 = vpop.f32.mrb[253].mxu1  ;;  %v9946_v42 = vld [vmem:[#allocation5 + $0x30] sm:$0xff]  }
 0x397   : > { %13786 = vst [vmem:[#allocation20_spill] sm:$0xff] %v12018_v24  ;;  %13787 = vst [vmem:[#allocation25_spill] sm:$0xff] %v12020_v28  ;;  %v3429_v7 = vadd.f32 %v10852_v6, %v2268_v22  ;;  %v3431_v8 = vadd.f32 %v10852_v6, %v2421_v29  ;;  %v2270_v15 = vpop.f32.mrb[254].mxu0  ;;  %v2423_v16 = vpop.f32.mrb[254].mxu1  ;;  %v13832_v24 = vld [vmem:[#allocation63_spill] sm:$0xff] }
 0x398   : > { %v3460_v52 = vadd.f32 %v10860_v9, %v2270_v15  ;;  %v3462_v54 = vadd.f32 %v10860_v9, %v2423_v16  ;;  %v2272_v31 = vpop.f32.mrb[255].mxu0  ;;  %v2425_v30 = vpop.f32.mrb[255].mxu1  ;;  %v3940_v40 = vmax.f32 %v3428_v53, 0.0  ;;  %v3942_v46 = vmax.f32 %v3430_v43, 0.0 }
 0x399   : > { %v3461_v58 = vadd.f32 %v10860_v9, %v2272_v31  ;;  %v3463_v49 = vadd.f32 %v10860_v9, %v2425_v30  ;;  %v3941_v22 = vmax.f32 %v3429_v7, 0.0  ;;  %v3943_v29 = vmax.f32 %v3431_v8, 0.0 }
 0x39a   : > { %v3972_v23 = vmax.f32 %v3460_v52, 0.0  ;;  %v3974_v37 = vmax.f32 %v3462_v54, 0.0  ;;  %9194 = vmatmul.mubr.msk.bf16.gmra.mrb[152].mxu0 %vm538_vm1, %v9946_v42  ;;  %9207 = vmatmul.mubr.msk.bf16.gmra.mrb[152].mxu1 %vm538_vm1, %v9946_v42 }
 0x39b   : > { %v3973_v15 = vmax.f32 %v3461_v58, 0.0  ;;  %v3975_v34 = vmax.f32 %v3463_v49, 0.0  ;;  %2916 = vmatprep.mubr.bf16.mxu0 %v13640_v41  ;;  %3069 = vmatprep.mubr.bf16.mxu1 %v13640_v41 }
 0x39c   : > { %v12034_v16 = vpack.c.bf16 %v3972_v23, %v3940_v40  ;;  %v12036_v31 = vpack.c.bf16 %v3974_v37, %v3942_v46 }
 0x39d   : > { %v2276_v53 = vpop.f32.mrb[0].mxu0  ;;  %v2429_v43 = vpop.f32.mrb[0].mxu1  ;;  %v12038_v52 = vpack.c.bf16 %v3973_v15, %v3941_v22  ;;  %v12040_v54 = vpack.c.bf16 %v3975_v34, %v3943_v29 }
 0x39e   : > { %13788 = vst [vmem:[#allocation26_spill] sm:$0xff] %v12034_v16  ;;  %13789 = vst [vmem:[#allocation23_spill] sm:$0xff] %v12036_v31  ;;  %v3492_v30 = vadd.f32 %v10878_v61, %v2276_v53  ;;  %v3494_v7 = vadd.f32 %v10878_v61, %v2429_v43  ;;  %v2278_v8 = vpop.f32.mrb[1].mxu0  ;;  %v2431_v58 = vpop.f32.mrb[1].mxu1 }
 0x39f   : > { %13790 = vst [vmem:[#allocation24_spill] sm:$0xff] %v12038_v52  ;;  %13791 = vst [vmem:[#allocation29_spill] sm:$0xff] %v12040_v54  ;;  %v3493_v49 = vadd.f32 %v10878_v61, %v2278_v8  ;;  %v3495_v42 = vadd.f32 %v10878_v61, %v2431_v58  ;;  %v2280_v40 = vpop.f32.mrb[2].mxu0  ;;  %v2433_v23 = vpop.f32.mrb[2].mxu1  ;;  %v9947_v54 = vld [vmem:[#allocation5 + $0x38] sm:$0xff]  }
 0x3a0   : > { %v3524_v46 = vadd.f32 %v10886_v1, %v2280_v40  ;;  %v3526_v37 = vadd.f32 %v10886_v1, %v2433_v23  ;;  %v2282_v22 = vpop.f32.mrb[3].mxu0  ;;  %v2435_v15 = vpop.f32.mrb[3].mxu1  ;;  %v4004_v53 = vmax.f32 %v3492_v30, 0.0  ;;  %v4006_v43 = vmax.f32 %v3494_v7, 0.0 }
 0x3a1   : > { %v3525_v34 = vadd.f32 %v10886_v1, %v2282_v22  ;;  %v3527_v29 = vadd.f32 %v10886_v1, %v2435_v15  ;;  %v4005_v8 = vmax.f32 %v3493_v49, 0.0  ;;  %v4007_v58 = vmax.f32 %v3495_v42, 0.0 }
 0x3a2   : > { %v4036_v31 = vmax.f32 %v3524_v46, 0.0  ;;  %v4038_v16 = vmax.f32 %v3526_v37, 0.0  ;;  %9195 = vmatmul.mubr.msk.bf16.gmra.mrb[156].mxu0 %vm538_vm1, %v9947_v54  ;;  %9208 = vmatmul.mubr.msk.bf16.gmra.mrb[156].mxu1 %vm538_vm1, %v9947_v54 }
 0x3a3   : > { %v4037_v40 = vmax.f32 %v3525_v34, 0.0  ;;  %v4039_v52 = vmax.f32 %v3527_v29, 0.0  ;;  %2926 = vmatprep.mubr.bf16.mxu0 %v13640_v41  ;;  %3079 = vmatprep.mubr.bf16.mxu1 %v13640_v41 }
 0x3a4   : > { %v12054_v23 = vpack.c.bf16 %v4036_v31, %v4004_v53  ;;  %v12056_v22 = vpack.c.bf16 %v4038_v16, %v4006_v43 }
 0x3a5   : > { %v2286_v30 = vpop.f32.mrb[4].mxu0  ;;  %v2439_v7 = vpop.f32.mrb[4].mxu1  ;;  %v12058_v46 = vpack.c.bf16 %v4037_v40, %v4005_v8  ;;  %v12060_v37 = vpack.c.bf16 %v4039_v52, %v4007_v58 }
 0x3a6   : > { %13792 = vst [vmem:[#allocation30_spill] sm:$0xff] %v12054_v23  ;;  %13793 = vst [vmem:[#allocation27_spill] sm:$0xff] %v12056_v22  ;;  %v3556_v54 = vadd.f32 %v10904_v47, %v2286_v30  ;;  %v3558_v49 = vadd.f32 %v10904_v47, %v2439_v7  ;;  %v2288_v42 = vpop.f32.mrb[5].mxu0  ;;  %v2441_v15 = vpop.f32.mrb[5].mxu1 }
 0x3a7   : > { %13794 = vst [vmem:[#allocation28_spill] sm:$0xff] %v12058_v46  ;;  %13795 = vst [vmem:[#allocation33_spill] sm:$0xff] %v12060_v37  ;;  %v3557_v34 = vadd.f32 %v10904_v47, %v2288_v42  ;;  %v3559_v29 = vadd.f32 %v10904_v47, %v2441_v15  ;;  %v2290_v31 = vpop.f32.mrb[6].mxu0  ;;  %v2443_v53 = vpop.f32.mrb[6].mxu1  ;;  %v9948_v37 = vld [vmem:[#allocation5 + $0x40] sm:$0xff]  }
 0x3a8   : > { %v3588_v16 = vadd.f32 %v10908_v2, %v2290_v31  ;;  %v3590_v43 = vadd.f32 %v10908_v2, %v2443_v53  ;;  %v2292_v8 = vpop.f32.mrb[7].mxu0  ;;  %v2445_v40 = vpop.f32.mrb[7].mxu1  ;;  %v4068_v30 = vmax.f32 %v3556_v54, 0.0  ;;  %v4070_v7 = vmax.f32 %v3558_v49, 0.0 }
 0x3a9   : > { %v3589_v52 = vadd.f32 %v10908_v2, %v2292_v8  ;;  %v3591_v58 = vadd.f32 %v10908_v2, %v2445_v40  ;;  %v4069_v42 = vmax.f32 %v3557_v34, 0.0  ;;  %v4071_v15 = vmax.f32 %v3559_v29, 0.0 }
 0x3aa   : > { %v4100_v22 = vmax.f32 %v3588_v16, 0.0  ;;  %v4102_v23 = vmax.f32 %v3590_v43, 0.0  ;;  %9196 = vmatmul.mubr.msk.bf16.gmra.mrb[160].mxu0 %vm538_vm1, %v9948_v37  ;;  %9209 = vmatmul.mubr.msk.bf16.gmra.mrb[160].mxu1 %vm538_vm1, %v9948_v37 }
 0x3ab   : > { %v4101_v31 = vmax.f32 %v3589_v52, 0.0  ;;  %v4103_v46 = vmax.f32 %v3591_v58, 0.0  ;;  %2936 = vmatprep.mubr.bf16.mxu0 %v13640_v41  ;;  %3089 = vmatprep.mubr.bf16.mxu1 %v13640_v41 }
 0x3ac   : > { %v12074_v53 = vpack.c.bf16 %v4100_v22, %v4068_v30  ;;  %v12076_v8 = vpack.c.bf16 %v4102_v23, %v4070_v7 }
 0x3ad   : > { %v2296_v54 = vpop.f32.mrb[8].mxu0  ;;  %v2449_v49 = vpop.f32.mrb[8].mxu1  ;;  %v12078_v16 = vpack.c.bf16 %v4101_v31, %v4069_v42  ;;  %v12080_v43 = vpack.c.bf16 %v4103_v46, %v4071_v15 }
 0x3ae   : > { %13796 = vst [vmem:[#allocation34_spill] sm:$0xff] %v12074_v53  ;;  %13797 = vst [vmem:[#allocation31_spill] sm:$0xff] %v12076_v8  ;;  %v3620_v37 = vadd.f32 %v10930_v17, %v2296_v54  ;;  %v3622_v34 = vadd.f32 %v10930_v17, %v2449_v49  ;;  %v2298_v29 = vpop.f32.mrb[9].mxu0  ;;  %v2451_v40 = vpop.f32.mrb[9].mxu1 }
 0x3af   : > { %13798 = vst [vmem:[#allocation32_spill] sm:$0xff] %v12078_v16  ;;  %13799 = vst [vmem:[#allocation37_spill] sm:$0xff] %v12080_v43  ;;  %v3621_v52 = vadd.f32 %v10930_v17, %v2298_v29  ;;  %v3623_v58 = vadd.f32 %v10930_v17, %v2451_v40  ;;  %v2300_v22 = vpop.f32.mrb[10].mxu0  ;;  %v2453_v30 = vpop.f32.mrb[10].mxu1  ;;  %v9949_v43 = vld [vmem:[#allocation5 + $0x48] sm:$0xff]  }
 0x3b0   : > { %v3652_v23 = vadd.f32 %v10934_v27, %v2300_v22  ;;  %v3654_v7 = vadd.f32 %v10934_v27, %v2453_v30  ;;  %v2302_v42 = vpop.f32.mrb[11].mxu0  ;;  %v2455_v31 = vpop.f32.mrb[11].mxu1  ;;  %v4132_v54 = vmax.f32 %v3620_v37, 0.0  ;;  %v4134_v49 = vmax.f32 %v3622_v34, 0.0 }
 0x3b1   : > { %v3653_v46 = vadd.f32 %v10934_v27, %v2302_v42  ;;  %v3655_v15 = vadd.f32 %v10934_v27, %v2455_v31  ;;  %v4133_v29 = vmax.f32 %v3621_v52, 0.0  ;;  %v4135_v40 = vmax.f32 %v3623_v58, 0.0 }
 0x3b2   : > { %v4164_v8 = vmax.f32 %v3652_v23, 0.0  ;;  %v4166_v53 = vmax.f32 %v3654_v7, 0.0  ;;  %9197 = vmatmul.mubr.msk.bf16.gmra.mrb[164].mxu0 %vm538_vm1, %v9949_v43  ;;  %9210 = vmatmul.mubr.msk.bf16.gmra.mrb[164].mxu1 %vm538_vm1, %v9949_v43 }
 0x3b3   : > { %v4165_v22 = vmax.f32 %v3653_v46, 0.0  ;;  %v4167_v16 = vmax.f32 %v3655_v15, 0.0  ;;  %2946 = vmatprep.mubr.bf16.mxu0 %v13640_v41  ;;  %3099 = vmatprep.mubr.bf16.mxu1 %v13640_v41 }
 0x3b4   : > { %v12094_v30 = vpack.c.bf16 %v4164_v8, %v4132_v54  ;;  %v12096_v42 = vpack.c.bf16 %v4166_v53, %v4134_v49 }
 0x3b5   : > { %v2306_v37 = vpop.f32.mrb[12].mxu0  ;;  %v2459_v34 = vpop.f32.mrb[12].mxu1  ;;  %v12098_v23 = vpack.c.bf16 %v4165_v22, %v4133_v29  ;;  %v12100_v7 = vpack.c.bf16 %v4167_v16, %v4135_v40 }
 0x3b6   : > { %13800 = vst [vmem:[#allocation38_spill] sm:$0xff] %v12094_v30  ;;  %13801 = vst [vmem:[#allocation35_spill] sm:$0xff] %v12096_v42  ;;  %v3684_v43 = vadd.f32 %v10956_v26, %v2306_v37  ;;  %v3686_v52 = vadd.f32 %v10956_v26, %v2459_v34  ;;  %v2308_v58 = vpop.f32.mrb[13].mxu0  ;;  %v2461_v31 = vpop.f32.mrb[13].mxu1 }
 0x3b7   : > { %13802 = vst [vmem:[#allocation36_spill] sm:$0xff] %v12098_v23  ;;  %13803 = vst [vmem:[#allocation41_spill] sm:$0xff] %v12100_v7  ;;  %v3685_v46 = vadd.f32 %v10956_v26, %v2308_v58  ;;  %v3687_v15 = vadd.f32 %v10956_v26, %v2461_v31  ;;  %v2310_v8 = vpop.f32.mrb[14].mxu0  ;;  %v2463_v54 = vpop.f32.mrb[14].mxu1  ;;  %v9950_v7 = vld [vmem:[#allocation5 + $0x50] sm:$0xff]  }
 0x3b8   : > { %v3716_v53 = vadd.f32 %v10960_v39, %v2310_v8  ;;  %v3718_v49 = vadd.f32 %v10960_v39, %v2463_v54  ;;  %v2312_v29 = vpop.f32.mrb[15].mxu0  ;;  %v2465_v22 = vpop.f32.mrb[15].mxu1  ;;  %v4196_v37 = vmax.f32 %v3684_v43, 0.0  ;;  %v4198_v34 = vmax.f32 %v3686_v52, 0.0 }
 0x3b9   : > { %v3717_v16 = vadd.f32 %v10960_v39, %v2312_v29  ;;  %v3719_v40 = vadd.f32 %v10960_v39, %v2465_v22  ;;  %v4197_v58 = vmax.f32 %v3685_v46, 0.0  ;;  %v4199_v31 = vmax.f32 %v3687_v15, 0.0  ;;  %v13811_v46 = vld [vmem:[#allocation46_spill] sm:$0xff]  ;;  %v13812_v15 = vld [vmem:[#allocation43_spill] sm:$0xff]  ;;  %v13814_v22 = vld [vmem:[#allocation49_spill] sm:$0xff] }
 0x3ba   : > { %v4228_v42 = vmax.f32 %v3716_v53, 0.0  ;;  %v4230_v30 = vmax.f32 %v3718_v49, 0.0  ;;  %9198 = vmatmul.mubr.msk.bf16.gmra.mrb[168].mxu0 %vm538_vm1, %v9950_v7  ;;  %9211 = vmatmul.mubr.msk.bf16.gmra.mrb[168].mxu1 %vm538_vm1, %v9950_v7  ;;  %v9951_v53 = vld [vmem:[#allocation5 + $0x58] sm:$0xff]   ;;  %v12126_v7 = vld [vmem:[#allocation7] sm:$0x1] }
 0x3bb   : > { %v4229_v8 = vmax.f32 %v3717_v16, 0.0  ;;  %v4231_v23 = vmax.f32 %v3719_v40, 0.0  ;;  %2956 = vmatprep.mubr.bf16.mxu0 %v13640_v41  ;;  %3109 = vmatprep.mubr.bf16.mxu1 %v13640_v41  ;;  %v13813_v49 = vld [vmem:[#allocation44_spill] sm:$0xff]  ;;  %v13815_v16 = vld [vmem:[#allocation50_spill] sm:$0xff]  ;;  %v13816_v40 = vld [vmem:[#allocation47_spill] sm:$0xff] }
 0x3bc   : > { %v12114_v54 = vpack.c.bf16 %v4228_v42, %v4196_v37  ;;  %v12116_v29 = vpack.c.bf16 %v4230_v30, %v4198_v34  ;;  %v13808_v30 = vld [vmem:[#allocation39_spill] sm:$0xff]  ;;  %v13809_v42 = vld [vmem:[#allocation40_spill] sm:$0xff]  ;;  %v13818_v34 = vld [vmem:[#allocation53_spill] sm:$0xff] }
 0x3bd   : > { %v12118_v43 = vpack.c.bf16 %v4229_v8, %v4197_v58  ;;  %v12120_v52 = vpack.c.bf16 %v4231_v23, %v4199_v31  ;;  %v13810_v23 = vld [vmem:[#allocation45_spill] sm:$0xff]  ;;  %v13817_v37 = vld [vmem:[#allocation48_spill] sm:$0xff]  ;;  %v13819_v58 = vld [vmem:[#allocation54_spill] sm:$0xff] }
 0x3be   : > { %13804 = vst [vmem:[#allocation42_spill] sm:$0xff] %v12114_v54  ;;  %13805 = vst [vmem:[#allocation151_spill] sm:$0xff] %v12116_v29  ;;  %v13820_v31 = vld [vmem:[#allocation51_spill] sm:$0xff]  ;;  %v13821_v8 = vld [vmem:[#allocation52_spill] sm:$0xff] }
 0x3bf   : > { %13806 = vst [vmem:[#allocation152_spill] sm:$0xff] %v12118_v43  ;;  %13807 = vst [vmem:[#allocation153_spill] sm:$0xff] %v12120_v52 }
 0x3c2   : > { %9199 = vmatmul.mubr.msk.bf16.gmra.mrb[172].mxu0 %vm538_vm1, %v9951_v53  ;;  %9212 = vmatmul.mubr.msk.bf16.gmra.mrb[172].mxu1 %vm538_vm1, %v9951_v53  ;;  %v13822_v53 = vld [vmem:[#allocation57_spill] sm:$0xff] }
 0x3c3   : > { %4535 = vmatprep.mubr.bf16.mxu0 %v13640_v41  ;;  %4576 = vmatprep.mubr.bf16.mxu1 %v13640_v41 }
 0x3ca   : > { %4536 = vmatmul.mubr.bf16.vlgmr.msra.gmra.mrb[192].mxu0 %v12126_v7  ;;  %4577 = vmatmul.mubr.bf16.vlgmr.msra.gmra.mrb[192].mxu1 %v12126_v7 }
 0x3cb   : > { %4586 = vmatpush1.bf16.msra.mxu0 %v13808_v30  ;;  %4627 = vmatpush1.bf16.msra.mxu1 %v13809_v42  ;;  %v13823_v30 = vld [vmem:[#allocation58_spill] sm:$0xff]  ;;  %v13824_v42 = vld [vmem:[#allocation55_spill] sm:$0xff] }
 0x3cc   : > { %4587 = vmatprep.subr.bf16.mxu0 %v13810_v23  ;;  %4628 = vmatprep.subr.bf16.mxu1 %v13811_v46  ;;  %v13825_v23 = vld [vmem:[#allocation56_spill] sm:$0xff]  ;;  %v13826_v46 = vld [vmem:[#allocation61_spill] sm:$0xff] }
 0x3cd   : > { %4617 = vmatprep.mubr.bf16.mxu0 %v13640_v41  ;;  %4658 = vmatprep.mubr.bf16.mxu1 %v13640_v41 }
 0x3cf   : > { %4588 = vmatpush1.bf16.msra.mxu0 %v13812_v15  ;;  %4629 = vmatpush1.bf16.msra.mxu1 %v13813_v49  ;;  %v13827_v15 = vld [vmem:[#allocation62_spill] sm:$0xff] }
 0x3d0   : > { %4589 = vmatprep.subr.bf16.mxu0 %v13814_v22  ;;  %4630 = vmatprep.subr.bf16.mxu1 %v13815_v16 }
 0x3d3   : > { %4590 = vmatpush1.bf16.msra.mxu0 %v13816_v40  ;;  %4631 = vmatpush1.bf16.msra.mxu1 %v13817_v37 }
 0x3d4   : > { %4591 = vmatprep.subr.bf16.mxu0 %v13818_v34  ;;  %4632 = vmatprep.subr.bf16.mxu1 %v13819_v58 }
 0x3d7   : > { %4592 = vmatpush1.bf16.msra.mxu0 %v13820_v31  ;;  %4633 = vmatpush1.bf16.msra.mxu1 %v13821_v8  ;;  %v13828_v8 = vld [vmem:[#allocation59_spill] sm:$0xff] }
 0x3d8   : > { %4593 = vmatprep.subr.bf16.mxu0 %v13822_v53  ;;  %4634 = vmatprep.subr.bf16.mxu1 %v13823_v30  ;;  %v13829_v53 = vld [vmem:[#allocation60_spill] sm:$0xff] }
 0x3db   : > { %4594 = vmatpush1.bf16.msra.mxu0 %v13824_v42  ;;  %4635 = vmatpush1.bf16.msra.mxu1 %v13825_v23 }
 0x3dc   : > { %4595 = vmatprep.subr.bf16.mxu0 %v13826_v46  ;;  %4636 = vmatprep.subr.bf16.mxu1 %v13827_v15  ;;  %v13830_v15 = vld [vmem:[#allocation65_spill] sm:$0xff] }
 0x3dd   : > { %v2542_v49 = vpop.f32.mrb[48].mxu0  ;;  %v2695_v22 = vpop.f32.mrb[48].mxu1 }
 0x3de   : > { %v3240_v16 = vadd.f32 %v10778_v11, %v2542_v49  ;;  %v3242_v40 = vadd.f32 %v10778_v11, %v2695_v22  ;;  %v2544_v37 = vpop.f32.mrb[49].mxu0  ;;  %v2697_v34 = vpop.f32.mrb[49].mxu1  ;;  %v13831_v49 = vld [vmem:[#allocation66_spill] sm:$0xff] }
 0x3df   : > { %v3241_v58 = vadd.f32 %v10778_v11, %v2544_v37  ;;  %v3243_v31 = vadd.f32 %v10778_v11, %v2697_v34  ;;  %4596 = vmatpush1.bf16.msra.mxu0 %v13828_v8  ;;  %4637 = vmatpush1.bf16.msra.mxu1 %v13829_v53  ;;  %v2546_v30 = vpop.f32.mrb[50].mxu0  ;;  %v2699_v42 = vpop.f32.mrb[50].mxu1 }
 0x3e0   : > { %v3272_v23 = vadd.f32 %v10786_v13, %v2546_v30  ;;  %v3274_v46 = vadd.f32 %v10786_v13, %v2699_v42  ;;  %4597 = vmatprep.subr.bf16.mxu0 %v13830_v15  ;;  %4638 = vmatprep.subr.bf16.mxu1 %v13831_v49  ;;  %v2548_v22 = vpop.f32.mrb[51].mxu0  ;;  %v2701_v29 = vpop.f32.mrb[51].mxu1  ;;  %v3752_v54 = vmax.f32 %v3240_v16, 0.0  ;;  %v3754_v8 = vmax.f32 %v3242_v40, 0.0  ;;  %v13833_v42 = vld [vmem:[#allocation64_spill] sm:$0xff] }
 0x3e1   : > { %v3273_v37 = vadd.f32 %v10786_v13, %v2548_v22  ;;  %v3275_v34 = vadd.f32 %v10786_v13, %v2701_v29  ;;  %v3753_v43 = vmax.f32 %v3241_v58, 0.0  ;;  %v3755_v51 = vmax.f32 %v3243_v31, 0.0  ;;  %v13837_v22 = vld [vmem:[#allocation70_spill] sm:$0xff] }
 0x3e2   : > { %v3784_v52 = vmax.f32 %v3272_v23, 0.0  ;;  %v3786_v53 = vmax.f32 %v3274_v46, 0.0 }
 0x3e3   : > { %v3785_v28 = vmax.f32 %v3273_v37, 0.0  ;;  %v3787_v30 = vmax.f32 %v3275_v34, 0.0  ;;  %4598 = vmatpush1.bf16.msra.mxu0 %v13832_v24  ;;  %4639 = vmatpush1.bf16.msra.mxu1 %v13833_v42  ;;  %v13838_v37 = vld [vmem:[#allocation67_spill] sm:$0xff] }
 0x3e4   : > { %v12166_v15 = vpack.c.bf16 %v3784_v52, %v3752_v54  ;;  %v12168_v49 = vpack.c.bf16 %v3786_v53, %v3754_v8  ;;  %4599 = vmatprep.subr.bf16.mxu0 %v13836_v59  ;;  %4640 = vmatprep.subr.bf16.mxu1 %v13837_v22  ;;  %v13839_v59 = vld [vmem:[#allocation68_spill] sm:$0xff]  ;;  %v13840_v8 = vld [vmem:[#allocation73_spill] sm:$0xff]  ;;  %v13841_v53 = vld [vmem:[#allocation74_spill] sm:$0xff] }
 0x3e5   : > { %v12172_v29 = vpack.c.bf16 %v3785_v28, %v3753_v43  ;;  %v12174_v16 = vpack.c.bf16 %v3787_v30, %v3755_v51  ;;  %v2552_v40 = vpop.f32.mrb[52].mxu0  ;;  %v2705_v58 = vpop.f32.mrb[52].mxu1 }
 0x3e6   : > { %13834 = vst [vmem:[#allocation39_spill] sm:$0xff] %v12166_v15  ;;  %13835 = vst [vmem:[#allocation40_spill] sm:$0xff] %v12168_v49  ;;  %v3304_v31 = vadd.f32 %v10788_v14, %v2552_v40  ;;  %v3306_v24 = vadd.f32 %v10788_v14, %v2705_v58  ;;  %v2554_v23 = vpop.f32.mrb[53].mxu0  ;;  %v2707_v46 = vpop.f32.mrb[53].mxu1  ;;  %v13842_v49 = vld [vmem:[#allocation71_spill] sm:$0xff] }
 0x3e7   : > { %v3305_v54 = vadd.f32 %v10788_v14, %v2554_v23  ;;  %v3307_v52 = vadd.f32 %v10788_v14, %v2707_v46  ;;  %4600 = vmatpush1.bf16.msra.mxu0 %v13838_v37  ;;  %4641 = vmatpush1.bf16.msra.mxu1 %v13839_v59  ;;  %v2556_v28 = vpop.f32.mrb[54].mxu0  ;;  %v2709_v43 = vpop.f32.mrb[54].mxu1 }
 0x3e8   : > { %v3336_v51 = vadd.f32 %v10808_v44, %v2556_v28  ;;  %v3338_v34 = vadd.f32 %v10808_v44, %v2709_v43  ;;  %4667 = vmatprep.subr.bf16.mxu0 %v13840_v8  ;;  %4708 = vmatprep.subr.bf16.mxu1 %v13841_v53  ;;  %v2558_v30 = vpop.f32.mrb[55].mxu0  ;;  %v2711_v42 = vpop.f32.mrb[55].mxu1  ;;  %v3816_v58 = vmax.f32 %v3304_v31, 0.0  ;;  %v3818_v23 = vmax.f32 %v3306_v24, 0.0  ;;  %v13843_v53 = vld [vmem:[#allocation72_spill] sm:$0xff]  ;;  %v13846_v31 = vld [vmem:[#allocation77_spill] sm:$0xff] }
 0x3e9   : > { %v3337_v22 = vadd.f32 %v10808_v44, %v2558_v30  ;;  %v3339_v40 = vadd.f32 %v10808_v44, %v2711_v42  ;;  %v3817_v59 = vmax.f32 %v3305_v54, 0.0  ;;  %v3819_v28 = vmax.f32 %v3307_v52, 0.0  ;;  %v13847_v24 = vld [vmem:[#allocation78_spill] sm:$0xff] }
 0x3ea   : > { %v3848_v46 = vmax.f32 %v3336_v51, 0.0  ;;  %v3850_v37 = vmax.f32 %v3338_v34, 0.0  ;;  %4618 = vmatmul.mubr.bf16.vlgmr.msra.gmra.mrb[196].mxu0 %v12126_v7  ;;  %4659 = vmatmul.mubr.bf16.vlgmr.msra.gmra.mrb[196].mxu1 %v12126_v7 }
 0x3eb   : > { %v3849_v43 = vmax.f32 %v3337_v22, 0.0  ;;  %v3851_v8 = vmax.f32 %v3339_v40, 0.0  ;;  %4668 = vmatpush1.bf16.msra.mxu0 %v13842_v49  ;;  %4709 = vmatpush1.bf16.msra.mxu1 %v13843_v53  ;;  %v13852_v53 = vld [vmem:[#allocation81_spill] sm:$0xff] }
 0x3ec   : > { %v12192_v15 = vpack.c.bf16 %v3848_v46, %v3816_v58  ;;  %v12194_v30 = vpack.c.bf16 %v3850_v37, %v3818_v23  ;;  %4669 = vmatprep.subr.bf16.mxu0 %v13846_v31  ;;  %4710 = vmatprep.subr.bf16.mxu1 %v13847_v24  ;;  %v13850_v46 = vld [vmem:[#allocation75_spill] sm:$0xff]  ;;  %v13851_v37 = vld [vmem:[#allocation76_spill] sm:$0xff] }
 0x3ed   : > { %v12198_v51 = vpack.c.bf16 %v3849_v43, %v3817_v59  ;;  %v12200_v34 = vpack.c.bf16 %v3851_v8, %v3819_v28  ;;  %v2562_v54 = vpop.f32.mrb[56].mxu0  ;;  %v2715_v52 = vpop.f32.mrb[56].mxu1  ;;  %4699 = vmatprep.mubr.bf16.mxu0 %v13640_v41  ;;  %4740 = vmatprep.mubr.bf16.mxu1 %v13640_v41 }
 0x3ee   : > { %13844 = vst [vmem:[#allocation45_spill] sm:$0xff] %v12192_v15  ;;  %13845 = vst [vmem:[#allocation46_spill] sm:$0xff] %v12194_v30  ;;  %v3368_v49 = vadd.f32 %v10826_v21, %v2562_v54  ;;  %v3370_v42 = vadd.f32 %v10826_v21, %v2715_v52  ;;  %v2564_v22 = vpop.f32.mrb[57].mxu0  ;;  %v2717_v40 = vpop.f32.mrb[57].mxu1 }
 0x3ef   : > { %13848 = vst [vmem:[#allocation43_spill] sm:$0xff] %v12198_v51  ;;  %13849 = vst [vmem:[#allocation44_spill] sm:$0xff] %v12200_v34  ;;  %v3369_v58 = vadd.f32 %v10826_v21, %v2564_v22  ;;  %v3371_v23 = vadd.f32 %v10826_v21, %v2717_v40  ;;  %4670 = vmatpush1.bf16.msra.mxu0 %v13850_v46  ;;  %4711 = vmatpush1.bf16.msra.mxu1 %v13851_v37  ;;  %v2566_v59 = vpop.f32.mrb[58].mxu0  ;;  %v2719_v28 = vpop.f32.mrb[58].mxu1  ;;  %v13853_v51 = vld [vmem:[#allocation79_spill] sm:$0xff] }
 0x3f0   : > { %v3400_v43 = vadd.f32 %v10834_v25, %v2566_v59  ;;  %v3402_v8 = vadd.f32 %v10834_v25, %v2719_v28  ;;  %4671 = vmatprep.subr.bf16.mxu0 %v11338_v63  ;;  %4712 = vmatprep.subr.bf16.mxu1 %v13852_v53  ;;  %v2568_v31 = vpop.f32.mrb[59].mxu0  ;;  %v2721_v24 = vpop.f32.mrb[59].mxu1  ;;  %v3880_v22 = vmax.f32 %v3368_v49, 0.0  ;;  %v3882_v40 = vmax.f32 %v3370_v42, 0.0  ;;  %v13854_v28 = vld [vmem:[#allocation80_spill] sm:$0xff] }
 0x3f1   : > { %v3401_v54 = vadd.f32 %v10834_v25, %v2568_v31  ;;  %v3403_v52 = vadd.f32 %v10834_v25, %v2721_v24  ;;  %v3881_v30 = vmax.f32 %v3369_v58, 0.0  ;;  %v3883_v15 = vmax.f32 %v3371_v23, 0.0 }
 0x3f2   : > { %v3912_v46 = vmax.f32 %v3400_v43, 0.0  ;;  %v3914_v37 = vmax.f32 %v3402_v8, 0.0 }
 0x3f3   : > { %v3913_v34 = vmax.f32 %v3401_v54, 0.0  ;;  %v3915_v59 = vmax.f32 %v3403_v52, 0.0  ;;  %4672 = vmatpush1.bf16.msra.mxu0 %v13853_v51  ;;  %4713 = vmatpush1.bf16.msra.mxu1 %v13854_v28  ;;  %v13855_v52 = vld [vmem:[#allocation82_spill] sm:$0xff] }
 0x3f4   : > { %v12218_v63 = vpack.c.bf16 %v3912_v46, %v3880_v22  ;;  %v12220_v53 = vpack.c.bf16 %v3914_v37, %v3882_v40  ;;  %4673 = vmatprep.subr.bf16.mxu0 %v11360_v60  ;;  %4714 = vmatprep.subr.bf16.mxu1 %v11362_v5  ;;  %v13856_v60 = vld [vmem:[#allocation83_spill] sm:$0xff] }
 0x3f5   : > { %v12224_v49 = vpack.c.bf16 %v3913_v34, %v3881_v30  ;;  %v12226_v42 = vpack.c.bf16 %v3915_v59, %v3883_v15  ;;  %v2572_v58 = vpop.f32.mrb[60].mxu0  ;;  %v2725_v23 = vpop.f32.mrb[60].mxu1 }
 0x3f6   : > { %v3432_v43 = vadd.f32 %v10852_v6, %v2572_v58  ;;  %v3434_v51 = vadd.f32 %v10852_v6, %v2725_v23  ;;  %v2574_v8 = vpop.f32.mrb[61].mxu0  ;;  %v2727_v31 = vpop.f32.mrb[61].mxu1 }
 0x3f7   : > { %v3433_v24 = vadd.f32 %v10852_v6, %v2574_v8  ;;  %v3435_v54 = vadd.f32 %v10852_v6, %v2727_v31  ;;  %4674 = vmatpush1.bf16.msra.mxu0 %v13855_v52  ;;  %4715 = vmatpush1.bf16.msra.mxu1 %v13856_v60  ;;  %v2576_v5 = vpop.f32.mrb[62].mxu0  ;;  %v2729_v30 = vpop.f32.mrb[62].mxu1 }
 0x3f8   : > { %v3464_v15 = vadd.f32 %v10860_v9, %v2576_v5  ;;  %v3466_v34 = vadd.f32 %v10860_v9, %v2729_v30  ;;  %4675 = vmatprep.subr.bf16.mxu0 %v11382_v4  ;;  %4716 = vmatprep.subr.bf16.mxu1 %v11384_v50  ;;  %v2578_v22 = vpop.f32.mrb[63].mxu0  ;;  %v2731_v40 = vpop.f32.mrb[63].mxu1  ;;  %v3944_v59 = vmax.f32 %v3432_v43, 0.0  ;;  %v3946_v28 = vmax.f32 %v3434_v51, 0.0  ;;  %v13857_v5 = vld [vmem:[#allocation84_spill] sm:$0xff]  ;;  %v13858_v30 = vld [vmem:[#allocation85_spill] sm:$0xff] }
 0x3f9   : > { %v3465_v46 = vadd.f32 %v10860_v9, %v2578_v22  ;;  %v3467_v37 = vadd.f32 %v10860_v9, %v2731_v40  ;;  %v3945_v8 = vmax.f32 %v3433_v24, 0.0  ;;  %v3947_v31 = vmax.f32 %v3435_v54, 0.0  ;;  %v13861_v22 = vld [vmem:[#allocation88_spill] sm:$0xff] }
 0x3fa   : > { %v3976_v58 = vmax.f32 %v3464_v15, 0.0  ;;  %v3978_v23 = vmax.f32 %v3466_v34, 0.0 }
 0x3fb   : > { %v3977_v52 = vmax.f32 %v3465_v46, 0.0  ;;  %v3979_v60 = vmax.f32 %v3467_v37, 0.0  ;;  %4676 = vmatpush1.bf16.msra.mxu0 %v13857_v5  ;;  %4717 = vmatpush1.bf16.msra.mxu1 %v13858_v30 }
 0x3fc   : > { %v12242_v4 = vpack.c.bf16 %v3976_v58, %v3944_v59  ;;  %v12244_v50 = vpack.c.bf16 %v3978_v23, %v3946_v28  ;;  %4677 = vmatprep.subr.bf16.mxu0 %v11404_v12  ;;  %4718 = vmatprep.subr.bf16.mxu1 %v13861_v22  ;;  %v13864_v28 = vld [vmem:[#allocation86_spill] sm:$0xff]  ;;  %v13865_v12 = vld [vmem:[#allocation87_spill] sm:$0xff] }
 0x3fd   : > { %v12248_v43 = vpack.c.bf16 %v3977_v52, %v3945_v8  ;;  %v12250_v51 = vpack.c.bf16 %v3979_v60, %v3947_v31  ;;  %v2582_v24 = vpop.f32.mrb[64].mxu0  ;;  %v2735_v54 = vpop.f32.mrb[64].mxu1  ;;  %v13866_v52 = vld [vmem:[#allocation91_spill] sm:$0xff]  ;;  %v13867_v60 = vld [vmem:[#allocation92_spill] sm:$0xff] }
 0x3fe   : > { %13859 = vst [vmem:[#allocation49_spill] sm:$0xff] %v12242_v4  ;;  %13860 = vst [vmem:[#allocation50_spill] sm:$0xff] %v12244_v50  ;;  %v3496_v15 = vadd.f32 %v10878_v61, %v2582_v24  ;;  %v3498_v34 = vadd.f32 %v10878_v61, %v2735_v54  ;;  %v2584_v40 = vpop.f32.mrb[65].mxu0  ;;  %v2737_v46 = vpop.f32.mrb[65].mxu1 }
 0x3ff   : > { %13862 = vst [vmem:[#allocation47_spill] sm:$0xff] %v12248_v43  ;;  %13863 = vst [vmem:[#allocation48_spill] sm:$0xff] %v12250_v51  ;;  %v3497_v37 = vadd.f32 %v10878_v61, %v2584_v40  ;;  %v3499_v59 = vadd.f32 %v10878_v61, %v2737_v46  ;;  %4678 = vmatpush1.bf16.msra.mxu0 %v13864_v28  ;;  %4719 = vmatpush1.bf16.msra.mxu1 %v13865_v12  ;;  %v2586_v58 = vpop.f32.mrb[66].mxu0  ;;  %v2739_v23 = vpop.f32.mrb[66].mxu1  ;;  %v13868_v51 = vld [vmem:[#allocation89_spill] sm:$0xff]  ;;  %v13872_v43 = vld [vmem:[#allocation95_spill] sm:$0xff] }
 0x400   : > { %v3528_v8 = vadd.f32 %v10886_v1, %v2586_v58  ;;  %v3530_v31 = vadd.f32 %v10886_v1, %v2739_v23  ;;  %4679 = vmatprep.subr.bf16.mxu0 %v13866_v52  ;;  %4720 = vmatprep.subr.bf16.mxu1 %v13867_v60  ;;  %v2588_v5 = vpop.f32.mrb[67].mxu0  ;;  %v2741_v30 = vpop.f32.mrb[67].mxu1  ;;  %v4008_v54 = vmax.f32 %v3496_v15, 0.0  ;;  %v4010_v40 = vmax.f32 %v3498_v34, 0.0  ;;  %v13869_v23 = vld [vmem:[#allocation90_spill] sm:$0xff] }
 0x401   : > { %v3529_v22 = vadd.f32 %v10886_v1, %v2588_v5  ;;  %v3531_v24 = vadd.f32 %v10886_v1, %v2741_v30  ;;  %v4009_v12 = vmax.f32 %v3497_v37, 0.0  ;;  %v4011_v50 = vmax.f32 %v3499_v59, 0.0  ;;  %v13873_v5 = vld [vmem:[#allocation96_spill] sm:$0xff] }
 0x402   : > { %v4040_v46 = vmax.f32 %v3528_v8, 0.0  ;;  %v4042_v28 = vmax.f32 %v3530_v31, 0.0 }
 0x403   : > { %v4041_v4 = vmax.f32 %v3529_v22, 0.0  ;;  %v4043_v58 = vmax.f32 %v3531_v24, 0.0  ;;  %4680 = vmatpush1.bf16.msra.mxu0 %v13868_v51  ;;  %4721 = vmatpush1.bf16.msra.mxu1 %v13869_v23 }
 0x404   : > { %v12266_v52 = vpack.c.bf16 %v4040_v46, %v4008_v54  ;;  %v12268_v60 = vpack.c.bf16 %v4042_v28, %v4010_v40  ;;  %4681 = vmatprep.subr.bf16.mxu0 %v13872_v43  ;;  %4722 = vmatprep.subr.bf16.mxu1 %v13873_v5  ;;  %v13876_v54 = vld [vmem:[#allocation93_spill] sm:$0xff]  ;;  %v13877_v43 = vld [vmem:[#allocation94_spill] sm:$0xff]  ;;  %v13878_v28 = vld [vmem:[#allocation99_spill] sm:$0xff] }
 0x405   : > { %v12272_v15 = vpack.c.bf16 %v4041_v4, %v4009_v12  ;;  %v12274_v34 = vpack.c.bf16 %v4043_v58, %v4011_v50  ;;  %v2592_v37 = vpop.f32.mrb[68].mxu0  ;;  %v2745_v59 = vpop.f32.mrb[68].mxu1  ;;  %v13879_v12 = vld [vmem:[#allocation100_spill] sm:$0xff] }
 0x406   : > { %13870 = vst [vmem:[#allocation53_spill] sm:$0xff] %v12266_v52  ;;  %13871 = vst [vmem:[#allocation54_spill] sm:$0xff] %v12268_v60  ;;  %v3560_v8 = vadd.f32 %v10904_v47, %v2592_v37  ;;  %v3562_v51 = vadd.f32 %v10904_v47, %v2745_v59  ;;  %v2594_v31 = vpop.f32.mrb[69].mxu0  ;;  %v2747_v30 = vpop.f32.mrb[69].mxu1  ;;  %v13880_v60 = vld [vmem:[#allocation97_spill] sm:$0xff] }
 0x407   : > { %13874 = vst [vmem:[#allocation51_spill] sm:$0xff] %v12272_v15  ;;  %13875 = vst [vmem:[#allocation52_spill] sm:$0xff] %v12274_v34  ;;  %v3561_v22 = vadd.f32 %v10904_v47, %v2594_v31  ;;  %v3563_v24 = vadd.f32 %v10904_v47, %v2747_v30  ;;  %4682 = vmatpush1.bf16.msra.mxu0 %v13876_v54  ;;  %4723 = vmatpush1.bf16.msra.mxu1 %v13877_v43  ;;  %v2596_v4 = vpop.f32.mrb[70].mxu0  ;;  %v2749_v40 = vpop.f32.mrb[70].mxu1  ;;  %v13892_v34 = vld [vmem:[#allocation105_spill] sm:$0xff]  ;;  %v13896_v15 = vld [vmem:[#allocation111_spill] sm:$0xff] }
 0x408   : > { %v3592_v50 = vadd.f32 %v10908_v2, %v2596_v4  ;;  %v3594_v46 = vadd.f32 %v10908_v2, %v2749_v40  ;;  %4749 = vmatprep.subr.bf16.mxu0 %v13878_v28  ;;  %4790 = vmatprep.subr.bf16.mxu1 %v13879_v12  ;;  %v2598_v58 = vpop.f32.mrb[71].mxu0  ;;  %v2751_v23 = vpop.f32.mrb[71].mxu1  ;;  %v4072_v59 = vmax.f32 %v3560_v8, 0.0  ;;  %v4074_v31 = vmax.f32 %v3562_v51, 0.0  ;;  %v13881_v12 = vld [vmem:[#allocation98_spill] sm:$0xff]  ;;  %v13884_v8 = vld [vmem:[#allocation103_spill] sm:$0xff] }
 0x409   : > { %v3593_v5 = vadd.f32 %v10908_v2, %v2598_v58  ;;  %v3595_v37 = vadd.f32 %v10908_v2, %v2751_v23  ;;  %v4073_v43 = vmax.f32 %v3561_v22, 0.0  ;;  %v4075_v4 = vmax.f32 %v3563_v24, 0.0  ;;  %v13885_v51 = vld [vmem:[#allocation104_spill] sm:$0xff] }
 0x40a   : > { %v4104_v30 = vmax.f32 %v3592_v50, 0.0  ;;  %v4106_v54 = vmax.f32 %v3594_v46, 0.0  ;;  %4700 = vmatmul.mubr.bf16.vlgmr.msra.gmra.mrb[200].mxu0 %v12126_v7  ;;  %4741 = vmatmul.mubr.bf16.vlgmr.msra.gmra.mrb[200].mxu1 %v12126_v7 }
 0x40b   : > { %v4105_v40 = vmax.f32 %v3593_v5, 0.0  ;;  %v4107_v28 = vmax.f32 %v3595_v37, 0.0  ;;  %4750 = vmatpush1.bf16.msra.mxu0 %v13880_v60  ;;  %4791 = vmatpush1.bf16.msra.mxu1 %v13881_v12  ;;  %v13890_v12 = vld [vmem:[#allocation107_spill] sm:$0xff] }
 0x40c   : > { %v12292_v52 = vpack.c.bf16 %v4104_v30, %v4072_v59  ;;  %v12294_v58 = vpack.c.bf16 %v4106_v54, %v4074_v31  ;;  %4751 = vmatprep.subr.bf16.mxu0 %v13884_v8  ;;  %4792 = vmatprep.subr.bf16.mxu1 %v13885_v51  ;;  %v13888_v30 = vld [vmem:[#allocation101_spill] sm:$0xff]  ;;  %v13889_v54 = vld [vmem:[#allocation102_spill] sm:$0xff]  ;;  %v13891_v8 = vld [vmem:[#allocation108_spill] sm:$0xff] }
 0x40d   : > { %v12298_v50 = vpack.c.bf16 %v4105_v40, %v4073_v43  ;;  %v12300_v46 = vpack.c.bf16 %v4107_v28, %v4075_v4  ;;  %v2602_v22 = vpop.f32.mrb[72].mxu0  ;;  %v2755_v24 = vpop.f32.mrb[72].mxu1  ;;  %4781 = vmatprep.mubr.bf16.mxu0 %v13640_v41  ;;  %4822 = vmatprep.mubr.bf16.mxu1 %v13640_v41 }
 0x40e   : > { %13882 = vst [vmem:[#allocation57_spill] sm:$0xff] %v12292_v52  ;;  %13883 = vst [vmem:[#allocation58_spill] sm:$0xff] %v12294_v58  ;;  %v3624_v60 = vadd.f32 %v10930_v17, %v2602_v22  ;;  %v3626_v23 = vadd.f32 %v10930_v17, %v2755_v24  ;;  %v2604_v5 = vpop.f32.mrb[73].mxu0  ;;  %v2757_v37 = vpop.f32.mrb[73].mxu1 }
 0x40f   : > { %13886 = vst [vmem:[#allocation55_spill] sm:$0xff] %v12298_v50  ;;  %13887 = vst [vmem:[#allocation56_spill] sm:$0xff] %v12300_v46  ;;  %v3625_v59 = vadd.f32 %v10930_v17, %v2604_v5  ;;  %v3627_v31 = vadd.f32 %v10930_v17, %v2757_v37  ;;  %4752 = vmatpush1.bf16.msra.mxu0 %v13888_v30  ;;  %4793 = vmatpush1.bf16.msra.mxu1 %v13889_v54  ;;  %v2606_v43 = vpop.f32.mrb[74].mxu0  ;;  %v2759_v4 = vpop.f32.mrb[74].mxu1 }
 0x410   : > { %v3656_v40 = vadd.f32 %v10934_v27, %v2606_v43  ;;  %v3658_v28 = vadd.f32 %v10934_v27, %v2759_v4  ;;  %4753 = vmatprep.subr.bf16.mxu0 %v13890_v12  ;;  %4794 = vmatprep.subr.bf16.mxu1 %v13891_v8  ;;  %v2608_v51 = vpop.f32.mrb[75].mxu0  ;;  %v2761_v22 = vpop.f32.mrb[75].mxu1  ;;  %v4136_v37 = vmax.f32 %v3624_v60, 0.0  ;;  %v4138_v30 = vmax.f32 %v3626_v23, 0.0  ;;  %v13893_v4 = vld [vmem:[#allocation106_spill] sm:$0xff] }
 0x411   : > { %v3657_v24 = vadd.f32 %v10934_v27, %v2608_v51  ;;  %v3659_v5 = vadd.f32 %v10934_v27, %v2761_v22  ;;  %v4137_v52 = vmax.f32 %v3625_v59, 0.0  ;;  %v4139_v46 = vmax.f32 %v3627_v31, 0.0  ;;  %v13897_v51 = vld [vmem:[#allocation112_spill] sm:$0xff] }
 0x412   : > { %v4168_v58 = vmax.f32 %v3656_v40, 0.0  ;;  %v4170_v54 = vmax.f32 %v3658_v28, 0.0 }
 0x413   : > { %v4169_v50 = vmax.f32 %v3657_v24, 0.0  ;;  %v4171_v43 = vmax.f32 %v3659_v5, 0.0  ;;  %4754 = vmatpush1.bf16.msra.mxu0 %v13892_v34  ;;  %4795 = vmatpush1.bf16.msra.mxu1 %v13893_v4  ;;  %v13900_v5 = vld [vmem:[#allocation109_spill] sm:$0xff] }
 0x414   : > { %v12318_v12 = vpack.c.bf16 %v4168_v58, %v4136_v37  ;;  %v12320_v8 = vpack.c.bf16 %v4170_v54, %v4138_v30  ;;  %4755 = vmatprep.subr.bf16.mxu0 %v13896_v15  ;;  %4796 = vmatprep.subr.bf16.mxu1 %v13897_v51  ;;  %v13901_v15 = vld [vmem:[#allocation110_spill] sm:$0xff]  ;;  %v13902_v30 = vld [vmem:[#allocation115_spill] sm:$0xff]  ;;  %v13903_v54 = vld [vmem:[#allocation116_spill] sm:$0xff] }
 0x415   : > { %v12324_v60 = vpack.c.bf16 %v4169_v50, %v4137_v52  ;;  %v12326_v23 = vpack.c.bf16 %v4171_v43, %v4139_v46  ;;  %v2612_v59 = vpop.f32.mrb[76].mxu0  ;;  %v2765_v31 = vpop.f32.mrb[76].mxu1 }
 0x416   : > { %13894 = vst [vmem:[#allocation61_spill] sm:$0xff] %v12318_v12  ;;  %13895 = vst [vmem:[#allocation62_spill] sm:$0xff] %v12320_v8  ;;  %v3688_v40 = vadd.f32 %v10956_v26, %v2612_v59  ;;  %v3690_v34 = vadd.f32 %v10956_v26, %v2765_v31  ;;  %v2614_v28 = vpop.f32.mrb[77].mxu0  ;;  %v2767_v22 = vpop.f32.mrb[77].mxu1 }
 0x417   : > { %13898 = vst [vmem:[#allocation59_spill] sm:$0xff] %v12324_v60  ;;  %13899 = vst [vmem:[#allocation60_spill] sm:$0xff] %v12326_v23  ;;  %v3689_v58 = vadd.f32 %v10956_v26, %v2614_v28  ;;  %v3691_v24 = vadd.f32 %v10956_v26, %v2767_v22  ;;  %4756 = vmatpush1.bf16.msra.mxu0 %v13900_v5  ;;  %4797 = vmatpush1.bf16.msra.mxu1 %v13901_v15  ;;  %v2616_v52 = vpop.f32.mrb[78].mxu0  ;;  %v2769_v50 = vpop.f32.mrb[78].mxu1  ;;  %v13904_v23 = vld [vmem:[#allocation113_spill] sm:$0xff]  ;;  %v13906_v60 = vld [vmem:[#allocation119_spill] sm:$0xff] }
 0x418   : > { %v3720_v46 = vadd.f32 %v10960_v39, %v2616_v52  ;;  %v3722_v37 = vadd.f32 %v10960_v39, %v2769_v50  ;;  %4757 = vmatprep.subr.bf16.mxu0 %v13902_v30  ;;  %4798 = vmatprep.subr.bf16.mxu1 %v13903_v54  ;;  %v2618_v43 = vpop.f32.mrb[79].mxu0  ;;  %v2771_v4 = vpop.f32.mrb[79].mxu1  ;;  %v4200_v31 = vmax.f32 %v3688_v40, 0.0  ;;  %v4202_v28 = vmax.f32 %v3690_v34, 0.0  ;;  %v13905_v50 = vld [vmem:[#allocation114_spill] sm:$0xff] }
 0x419   : > { %v3721_v51 = vadd.f32 %v10960_v39, %v2618_v43  ;;  %v3723_v59 = vadd.f32 %v10960_v39, %v2771_v4  ;;  %v4201_v15 = vmax.f32 %v3689_v58, 0.0  ;;  %v4203_v8 = vmax.f32 %v3691_v24, 0.0  ;;  %v13907_v43 = vld [vmem:[#allocation120_spill] sm:$0xff]  ;;  %v13908_v58 = vld [vmem:[#allocation117_spill] sm:$0xff]  ;;  %v13909_v24 = vld [vmem:[#allocation118_spill] sm:$0xff] }
 0x41a   : > { %v4232_v22 = vmax.f32 %v3720_v46, 0.0  ;;  %v4234_v5 = vmax.f32 %v3722_v37, 0.0  ;;  %v13910_v46 = vld [vmem:[#allocation123_spill] sm:$0xff]  ;;  %v13912_v37 = vld [vmem:[#allocation121_spill] sm:$0xff]  ;;  %v13913_v4 = vld [vmem:[#allocation122_spill] sm:$0xff] }
 0x41b   : > { %v4233_v12 = vmax.f32 %v3721_v51, 0.0  ;;  %v4235_v52 = vmax.f32 %v3723_v59, 0.0  ;;  %4758 = vmatpush1.bf16.msra.mxu0 %v13904_v23  ;;  %4799 = vmatpush1.bf16.msra.mxu1 %v13905_v50  ;;  %v13911_v23 = vld [vmem:[#allocation124_spill] sm:$0xff]  ;;  %v13914_v51 = vld [vmem:[#allocation127_spill] sm:$0xff]  ;;  %v13925_v50 = vld [vmem:[#allocation134_spill] sm:$0xff] }
 0x41c   : > { %v12342_v30 = vpack.c.bf16 %v4232_v22, %v4200_v31  ;;  %v12344_v54 = vpack.c.bf16 %v4234_v5, %v4202_v28  ;;  %4759 = vmatprep.subr.bf16.mxu0 %v13906_v60  ;;  %4800 = vmatprep.subr.bf16.mxu1 %v13907_v43  ;;  %v13915_v60 = vld [vmem:[#allocation128_spill] sm:$0xff]  ;;  %v13918_v59 = vld [vmem:[#allocation131_spill] sm:$0xff]  ;;  %v13920_v28 = vld [vmem:[#allocation129_spill] sm:$0xff] }
 0x41d   : > { %v12348_v40 = vpack.c.bf16 %v4233_v12, %v4201_v15  ;;  %v12350_v34 = vpack.c.bf16 %v4235_v52, %v4203_v8  ;;  %v13916_v12 = vld [vmem:[#allocation125_spill] sm:$0xff]  ;;  %v13917_v8 = vld [vmem:[#allocation126_spill] sm:$0xff]  ;;  %v13919_v31 = vld [vmem:[#allocation132_spill] sm:$0xff] }
 0x41e   : > { %v13921_v22 = vld [vmem:[#allocation130_spill] sm:$0xff]  ;;  %v13922_v5 = vld [vmem:[#allocation135_spill] sm:$0xff]  ;;  %v13923_v15 = vld [vmem:[#allocation136_spill] sm:$0xff] }
 0x41f   : > { %4760 = vmatpush1.bf16.msra.mxu0 %v13908_v58  ;;  %4801 = vmatpush1.bf16.msra.mxu1 %v13909_v24  ;;  %v13924_v52 = vld [vmem:[#allocation133_spill] sm:$0xff]  ;;  %v13926_v43 = vld [vmem:[#allocation139_spill] sm:$0xff]  ;;  %v13928_v24 = vld [vmem:[#allocation138_spill] sm:$0xff] }
 0x420   : > { %4761 = vmatprep.subr.bf16.mxu0 %v13910_v46  ;;  %4802 = vmatprep.subr.bf16.mxu1 %v13911_v23  ;;  %v13927_v58 = vld [vmem:[#allocation137_spill] sm:$0xff]  ;;  %v13929_v46 = vld [vmem:[#allocation142_spill] sm:$0xff]  ;;  %v13930_v23 = vld [vmem:[#allocation140_spill] sm:$0xff] }
 0x423   : > { %4762 = vmatpush1.bf16.msra.mxu0 %v13912_v37  ;;  %4803 = vmatpush1.bf16.msra.mxu1 %v13913_v4  ;;  %v13931_v37 = vld [vmem:[#allocation141_spill] sm:$0xff] }
 0x424   : > { %4763 = vmatprep.subr.bf16.mxu0 %v13914_v51  ;;  %4804 = vmatprep.subr.bf16.mxu1 %v13915_v60  ;;  %v13932_v4 = vld [vmem:[#allocation145_spill] sm:$0xff]  ;;  %v13933_v51 = vld [vmem:[#allocation143_spill] sm:$0xff]  ;;  %v13935_v60 = vld [vmem:[#allocation148_spill] sm:$0xff] }
 0x427   : > { %4764 = vmatpush1.bf16.msra.mxu0 %v13916_v12  ;;  %4805 = vmatpush1.bf16.msra.mxu1 %v13917_v8 }
 0x428   : > { %4831 = vmatprep.subr.bf16.mxu0 %v13918_v59  ;;  %4872 = vmatprep.subr.bf16.mxu1 %v13919_v31 }
 0x42a   : > { %4782 = vmatmul.mubr.bf16.vlgmr.msra.gmra.mrb[204].mxu0 %v12126_v7  ;;  %4823 = vmatmul.mubr.bf16.vlgmr.msra.gmra.mrb[204].mxu1 %v12126_v7 }
 0x42b   : > { %4832 = vmatpush1.bf16.msra.mxu0 %v13920_v28  ;;  %4873 = vmatpush1.bf16.msra.mxu1 %v13921_v22 }
 0x42c   : > { %4833 = vmatprep.subr.bf16.mxu0 %v13922_v5  ;;  %4874 = vmatprep.subr.bf16.mxu1 %v13923_v15  ;;  %v13936_v5 = vld [vmem:[#allocation146_spill] sm:$0xff]  ;;  %v13937_v15 = vld [vmem:[#allocation147_spill] sm:$0xff] }
 0x42d   : > { %4863 = vmatprep.mubr.bf16.mxu0 %v13640_v41  ;;  %4904 = vmatprep.mubr.bf16.mxu1 %v13640_v41 }
 0x42f   : > { %4834 = vmatpush1.bf16.msra.mxu0 %v13924_v52  ;;  %4875 = vmatpush1.bf16.msra.mxu1 %v13925_v50 }
 0x430   : > { %4835 = vmatprep.subr.bf16.mxu0 %v11788_v45  ;;  %4876 = vmatprep.subr.bf16.mxu1 %v13926_v43  ;;  %v13934_v45 = vld [vmem:[#allocation144_spill] sm:$0xff] }
 0x433   : > { %4836 = vmatpush1.bf16.msra.mxu0 %v13927_v58  ;;  %4877 = vmatpush1.bf16.msra.mxu1 %v13928_v24 }
 0x434   : > { %4837 = vmatprep.subr.bf16.mxu0 %v11810_v56  ;;  %4878 = vmatprep.subr.bf16.mxu1 %v13929_v46 }
 0x437   : > { %4838 = vmatpush1.bf16.msra.mxu0 %v13930_v23  ;;  %4879 = vmatpush1.bf16.msra.mxu1 %v13931_v37 }
 0x438   : > { %4839 = vmatprep.subr.bf16.mxu0 %v11832_v3  ;;  %4880 = vmatprep.subr.bf16.mxu1 %v13932_v4 }
 0x43b   : > { %4840 = vmatpush1.bf16.msra.mxu0 %v13933_v51  ;;  %4881 = vmatpush1.bf16.msra.mxu1 %v13934_v45 }
 0x43c   : > { %4841 = vmatprep.subr.bf16.mxu0 %v11854_v0  ;;  %4882 = vmatprep.subr.bf16.mxu1 %v13935_v60 }
 0x43d   : > { %v2848_v12 = vpop.f32.mrb[112].mxu0  ;;  %v3001_v56 = vpop.f32.mrb[112].mxu1 }
 0x43e   : > { %v3244_v8 = vadd.f32 %v10778_v11, %v2848_v12  ;;  %v3246_v59 = vadd.f32 %v10778_v11, %v3001_v56  ;;  %v2850_v31 = vpop.f32.mrb[113].mxu0  ;;  %v3003_v28 = vpop.f32.mrb[113].mxu1 }
 0x43f   : > { %v3245_v3 = vadd.f32 %v10778_v11, %v2850_v31  ;;  %v3247_v22 = vadd.f32 %v10778_v11, %v3003_v28  ;;  %4842 = vmatpush1.bf16.msra.mxu0 %v13936_v5  ;;  %4883 = vmatpush1.bf16.msra.mxu1 %v13937_v15  ;;  %v2852_v52 = vpop.f32.mrb[114].mxu0  ;;  %v3005_v0 = vpop.f32.mrb[114].mxu1  ;;  %v13938_v31 = vld [vmem:[#allocation149_spill] sm:$0xff]  ;;  %v13939_v28 = vld [vmem:[#allocation150_spill] sm:$0xff] }
 0x440   : > { %v3276_v50 = vadd.f32 %v10786_v13, %v2852_v52  ;;  %v3278_v43 = vadd.f32 %v10786_v13, %v3005_v0  ;;  %4843 = vmatprep.subr.bf16.mxu0 %v11876_v57  ;;  %4884 = vmatprep.subr.bf16.mxu1 %v11878_v33  ;;  %v2854_v58 = vpop.f32.mrb[115].mxu0  ;;  %v3007_v24 = vpop.f32.mrb[115].mxu1  ;;  %v3756_v23 = vmax.f32 %v3244_v8, 0.0  ;;  %v3758_v37 = vmax.f32 %v3246_v59, 0.0 }
 0x441   : > { %v3277_v46 = vadd.f32 %v10786_v13, %v2854_v58  ;;  %v3279_v11 = vadd.f32 %v10786_v13, %v3007_v24  ;;  %v3757_v45 = vmax.f32 %v3245_v3, 0.0  ;;  %v3759_v60 = vmax.f32 %v3247_v22, 0.0 }
 0x442   : > { %v3788_v4 = vmax.f32 %v3276_v50, 0.0  ;;  %v3790_v51 = vmax.f32 %v3278_v43, 0.0 }
 0x443   : > { %v3789_v12 = vmax.f32 %v3277_v46, 0.0  ;;  %v3791_v56 = vmax.f32 %v3279_v11, 0.0  ;;  %4844 = vmatpush1.bf16.msra.mxu0 %v13938_v31  ;;  %4885 = vmatpush1.bf16.msra.mxu1 %v13939_v28 }
 0x444   : > { %v12402_v57 = vpack.c.bf16 %v3788_v4, %v3756_v23  ;;  %v12404_v33 = vpack.c.bf16 %v3790_v51, %v3758_v37  ;;  %4845 = vmatprep.subr.bf16.mxu0 %v11898_v48  ;;  %4886 = vmatprep.subr.bf16.mxu1 %v11900_v55 }
 0x445   : > { %v12408_v13 = vpack.c.bf16 %v3789_v12, %v3757_v45  ;;  %v12410_v8 = vpack.c.bf16 %v3791_v56, %v3759_v60  ;;  %v2858_v59 = vpop.f32.mrb[116].mxu0  ;;  %v3011_v3 = vpop.f32.mrb[116].mxu1 }
 0x446   : > { %v3308_v22 = vadd.f32 %v10788_v14, %v2858_v59  ;;  %v3310_v5 = vadd.f32 %v10788_v14, %v3011_v3  ;;  %v2860_v15 = vpop.f32.mrb[117].mxu0  ;;  %v3013_v52 = vpop.f32.mrb[117].mxu1  ;;  %v13940_v59 = vld [vmem:[#allocation21_spill] sm:$0xff] }
 0x447   : > { %v3309_v0 = vadd.f32 %v10788_v14, %v2860_v15  ;;  %v3311_v50 = vadd.f32 %v10788_v14, %v3013_v52  ;;  %4846 = vmatpush1.bf16.msra.mxu0 %v11894_v20  ;;  %4887 = vmatpush1.bf16.msra.mxu1 %v11896_v32  ;;  %v2862_v48 = vpop.f32.mrb[118].mxu0  ;;  %v3015_v55 = vpop.f32.mrb[118].mxu1  ;;  %v13941_v52 = vld [vmem:[#allocation20_spill] sm:$0xff] }
 0x448   : > { %v3340_v43 = vadd.f32 %v10808_v44, %v2862_v48  ;;  %v3342_v58 = vadd.f32 %v10808_v44, %v3015_v55  ;;  %4913 = vmatprep.subr.bf16.mxu0 %v11970_v19  ;;  %4954 = vmatprep.subr.bf16.mxu1 %v11972_v35  ;;  %v2864_v24 = vpop.f32.mrb[119].mxu0  ;;  %v3017_v46 = vpop.f32.mrb[119].mxu1  ;;  %v3820_v23 = vmax.f32 %v3308_v22, 0.0  ;;  %v3822_v20 = vmax.f32 %v3310_v5, 0.0 }
 0x449   : > { %v3341_v11 = vadd.f32 %v10808_v44, %v2864_v24  ;;  %v3343_v14 = vadd.f32 %v10808_v44, %v3017_v46  ;;  %v3821_v4 = vmax.f32 %v3309_v0, 0.0  ;;  %v3823_v51 = vmax.f32 %v3311_v50, 0.0  ;;  %v13942_v0 = vld [vmem:[#allocation25_spill] sm:$0xff] }
 0x44a   : > { %v3852_v37 = vmax.f32 %v3340_v43, 0.0  ;;  %v3854_v32 = vmax.f32 %v3342_v58, 0.0  ;;  %4864 = vmatmul.mubr.bf16.vlgmr.msra.gmra.mrb[208].mxu0 %v12126_v7  ;;  %4905 = vmatmul.mubr.bf16.vlgmr.msra.gmra.mrb[208].mxu1 %v12126_v7 }
 0x44b   : > { %v3853_v45 = vmax.f32 %v3341_v11, 0.0  ;;  %v3855_v19 = vmax.f32 %v3343_v14, 0.0  ;;  %4914 = vmatpush1.bf16.msra.mxu0 %v11962_v36  ;;  %4955 = vmatpush1.bf16.msra.mxu1 %v11964_v18 }
 0x44c   : > { %v12428_v35 = vpack.c.bf16 %v3852_v37, %v3820_v23  ;;  %v12430_v60 = vpack.c.bf16 %v3854_v32, %v3822_v20  ;;  %4915 = vmatprep.subr.bf16.mxu0 %v11996_v10  ;;  %4956 = vmatprep.subr.bf16.mxu1 %v11998_v38  ;;  %v13943_v20 = vld [vmem:[#allocation22_spill] sm:$0xff]  ;;  %v13944_v37 = vld [vmem:[#allocation19_spill] sm:$0xff] }
 0x44d   : > { %v12434_v44 = vpack.c.bf16 %v3853_v45, %v3821_v4  ;;  %v12436_v12 = vpack.c.bf16 %v3855_v19, %v3823_v51  ;;  %v2868_v7 = vpop.f32.mrb[120].mxu0  ;;  %v3021_v56 = vpop.f32.mrb[120].mxu1  ;;  %4945 = vmatprep.mubr.bf16.mxu0 %v13640_v41  ;;  %4986 = vmatprep.mubr.bf16.mxu1 %v13640_v41  ;;  %v13945_v51 = vld [vmem:[#allocation24_spill] sm:$0xff]  ;;  %v13946_v45 = vld [vmem:[#allocation29_spill] sm:$0xff] }
 0x44e   : > { %v3372_v36 = vadd.f32 %v10826_v21, %v2868_v7  ;;  %v3374_v18 = vadd.f32 %v10826_v21, %v3021_v56  ;;  %v2870_v31 = vpop.f32.mrb[121].mxu0  ;;  %v3023_v28 = vpop.f32.mrb[121].mxu1 }
 0x44f   : > { %v3373_v10 = vadd.f32 %v10826_v21, %v2870_v31  ;;  %v3375_v38 = vadd.f32 %v10826_v21, %v3023_v28  ;;  %4916 = vmatpush1.bf16.msra.mxu0 %v11992_v62  ;;  %4957 = vmatpush1.bf16.msra.mxu1 %v13940_v59  ;;  %v2872_v3 = vpop.f32.mrb[122].mxu0  ;;  %v3025_v22 = vpop.f32.mrb[122].mxu1  ;;  %v13947_v59 = vld [vmem:[#allocation26_spill] sm:$0xff] }
 0x450   : > { %v3404_v5 = vadd.f32 %v10834_v25, %v2872_v3  ;;  %v3406_v15 = vadd.f32 %v10834_v25, %v3025_v22  ;;  %4917 = vmatprep.subr.bf16.mxu0 %v13941_v52  ;;  %4958 = vmatprep.subr.bf16.mxu1 %v13942_v0  ;;  %v2874_v50 = vpop.f32.mrb[123].mxu0  ;;  %v3027_v48 = vpop.f32.mrb[123].mxu1  ;;  %v3884_v43 = vmax.f32 %v3372_v36, 0.0  ;;  %v3886_v62 = vmax.f32 %v3374_v18, 0.0  ;;  %v13948_v3 = vld [vmem:[#allocation23_spill] sm:$0xff]  ;;  %v13949_v0 = vld [vmem:[#allocation28_spill] sm:$0xff] }
 0x451   : > { %v3405_v55 = vadd.f32 %v10834_v25, %v2874_v50  ;;  %v3407_v21 = vadd.f32 %v10834_v25, %v3027_v48  ;;  %v3885_v46 = vmax.f32 %v3373_v10, 0.0  ;;  %v3887_v11 = vmax.f32 %v3375_v38, 0.0  ;;  %v13950_v50 = vld [vmem:[#allocation33_spill] sm:$0xff] }
 0x452   : > { %v3916_v58 = vmax.f32 %v3404_v5, 0.0  ;;  %v3918_v24 = vmax.f32 %v3406_v15, 0.0 }
 0x453   : > { %v3917_v14 = vmax.f32 %v3405_v55, 0.0  ;;  %v3919_v23 = vmax.f32 %v3407_v21, 0.0  ;;  %4918 = vmatpush1.bf16.msra.mxu0 %v13943_v20  ;;  %4959 = vmatpush1.bf16.msra.mxu1 %v13944_v37  ;;  %v13951_v20 = vld [vmem:[#allocation30_spill] sm:$0xff]  ;;  %v13952_v37 = vld [vmem:[#allocation27_spill] sm:$0xff] }
 0x454   : > { %v12454_v32 = vpack.c.bf16 %v3916_v58, %v3884_v43  ;;  %v12456_v4 = vpack.c.bf16 %v3918_v24, %v3886_v62  ;;  %4919 = vmatprep.subr.bf16.mxu0 %v13945_v51  ;;  %4960 = vmatprep.subr.bf16.mxu1 %v13946_v45 }
 0x455   : > { %v12460_v25 = vpack.c.bf16 %v3917_v14, %v3885_v46  ;;  %v12462_v19 = vpack.c.bf16 %v3919_v23, %v3887_v11  ;;  %v2878_v7 = vpop.f32.mrb[124].mxu0  ;;  %v3031_v56 = vpop.f32.mrb[124].mxu1 }
 0x456   : > { %v3436_v36 = vadd.f32 %v10852_v6, %v2878_v7  ;;  %v3438_v18 = vadd.f32 %v10852_v6, %v3031_v56  ;;  %v2880_v31 = vpop.f32.mrb[125].mxu0  ;;  %v3033_v28 = vpop.f32.mrb[125].mxu1  ;;  %v13953_v7 = vld [vmem:[#allocation32_spill] sm:$0xff]  ;;  %v13954_v56 = vld [vmem:[#allocation37_spill] sm:$0xff] }
 0x457   : > { %v3437_v10 = vadd.f32 %v10852_v6, %v2880_v31  ;;  %v3439_v38 = vadd.f32 %v10852_v6, %v3033_v28  ;;  %4920 = vmatpush1.bf16.msra.mxu0 %v13947_v59  ;;  %4961 = vmatpush1.bf16.msra.mxu1 %v13948_v3  ;;  %v2882_v22 = vpop.f32.mrb[126].mxu0  ;;  %v3035_v5 = vpop.f32.mrb[126].mxu1 }
 0x458   : > { %v3468_v15 = vadd.f32 %v10860_v9, %v2882_v22  ;;  %v3470_v52 = vadd.f32 %v10860_v9, %v3035_v5  ;;  %4921 = vmatprep.subr.bf16.mxu0 %v13949_v0  ;;  %4962 = vmatprep.subr.bf16.mxu1 %v13950_v50  ;;  %v2884_v48 = vpop.f32.mrb[127].mxu0  ;;  %v3037_v55 = vpop.f32.mrb[127].mxu1  ;;  %v3948_v43 = vmax.f32 %v3436_v36, 0.0  ;;  %v3950_v62 = vmax.f32 %v3438_v18, 0.0  ;;  %v13955_v5 = vld [vmem:[#allocation34_spill] sm:$0xff] }
 0x459   : > { %v3469_v21 = vadd.f32 %v10860_v9, %v2884_v48  ;;  %v3471_v6 = vadd.f32 %v10860_v9, %v3037_v55  ;;  %v3949_v46 = vmax.f32 %v3437_v10, 0.0  ;;  %v3951_v11 = vmax.f32 %v3439_v38, 0.0  ;;  %v13957_v55 = vld [vmem:[#allocation36_spill] sm:$0xff] }
 0x45a   : > { %v3980_v58 = vmax.f32 %v3468_v15, 0.0  ;;  %v3982_v24 = vmax.f32 %v3470_v52, 0.0  ;;  %v13956_v15 = vld [vmem:[#allocation31_spill] sm:$0xff] }
 0x45b   : > { %v3981_v14 = vmax.f32 %v3469_v21, 0.0  ;;  %v3983_v23 = vmax.f32 %v3471_v6, 0.0  ;;  %4922 = vmatpush1.bf16.msra.mxu0 %v13951_v20  ;;  %4963 = vmatpush1.bf16.msra.mxu1 %v13952_v37  ;;  %v13958_v21 = vld [vmem:[#allocation41_spill] sm:$0xff] }
 0x45c   : > { %v12478_v51 = vpack.c.bf16 %v3980_v58, %v3948_v43  ;;  %v12480_v45 = vpack.c.bf16 %v3982_v24, %v3950_v62  ;;  %4923 = vmatprep.subr.bf16.mxu0 %v13953_v7  ;;  %4964 = vmatprep.subr.bf16.mxu1 %v13954_v56  ;;  %v13959_v7 = vld [vmem:[#allocation38_spill] sm:$0xff]  ;;  %v13960_v56 = vld [vmem:[#allocation35_spill] sm:$0xff] }
 0x45d   : > { %v12484_v9 = vpack.c.bf16 %v3981_v14, %v3949_v46  ;;  %v12486_v36 = vpack.c.bf16 %v3983_v23, %v3951_v11  ;;  %v2888_v18 = vpop.f32.mrb[144].mxu0  ;;  %v3041_v31 = vpop.f32.mrb[144].mxu1 }
 0x45e   : > { %v3500_v28 = vadd.f32 %v10878_v61, %v2888_v18  ;;  %v3502_v10 = vadd.f32 %v10878_v61, %v3041_v31  ;;  %v2890_v38 = vpop.f32.mrb[145].mxu0  ;;  %v3043_v59 = vpop.f32.mrb[145].mxu1 }
 0x45f   : > { %v3501_v3 = vadd.f32 %v10878_v61, %v2890_v38  ;;  %v3503_v22 = vadd.f32 %v10878_v61, %v3043_v59  ;;  %4924 = vmatpush1.bf16.msra.mxu0 %v13955_v5  ;;  %4965 = vmatpush1.bf16.msra.mxu1 %v13956_v15  ;;  %v2892_v52 = vpop.f32.mrb[146].mxu0  ;;  %v3045_v0 = vpop.f32.mrb[146].mxu1  ;;  %v13961_v38 = vld [vmem:[#allocation152_spill] sm:$0xff]  ;;  %v13962_v59 = vld [vmem:[#allocation153_spill] sm:$0xff] }
 0x460   : > { %v3532_v50 = vadd.f32 %v10886_v1, %v2892_v52  ;;  %v3534_v48 = vadd.f32 %v10886_v1, %v3045_v0  ;;  %4925 = vmatprep.subr.bf16.mxu0 %v13957_v55  ;;  %4966 = vmatprep.subr.bf16.mxu1 %v13958_v21  ;;  %v2894_v6 = vpop.f32.mrb[147].mxu0  ;;  %v3047_v43 = vpop.f32.mrb[147].mxu1  ;;  %v4012_v58 = vmax.f32 %v3500_v28, 0.0  ;;  %v4014_v24 = vmax.f32 %v3502_v10, 0.0  ;;  %v13964_v55 = vld [vmem:[#allocation151_spill] sm:$0xff] }
 0x461   : > { %v3533_v62 = vadd.f32 %v10886_v1, %v2894_v6  ;;  %v3535_v61 = vadd.f32 %v10886_v1, %v3047_v43  ;;  %v4013_v14 = vmax.f32 %v3501_v3, 0.0  ;;  %v4015_v23 = vmax.f32 %v3503_v22, 0.0 }
 0x462   : > { %v4044_v46 = vmax.f32 %v3532_v50, 0.0  ;;  %v4046_v11 = vmax.f32 %v3534_v48, 0.0  ;;  %v13963_v48 = vld [vmem:[#allocation42_spill] sm:$0xff] }
 0x463   : > { %v4045_v20 = vmax.f32 %v3533_v62, 0.0  ;;  %v4047_v37 = vmax.f32 %v3535_v61, 0.0  ;;  %4926 = vmatpush1.bf16.msra.mxu0 %v13959_v7  ;;  %4967 = vmatpush1.bf16.msra.mxu1 %v13960_v56  ;;  %v13965_v56 = vld [vmem:[#allocation39_spill] sm:$0xff] }
 0x464   : > { %v12502_v18 = vpack.c.bf16 %v4044_v46, %v4012_v58  ;;  %v12504_v31 = vpack.c.bf16 %v4046_v11, %v4014_v24  ;;  %4927 = vmatprep.subr.bf16.mxu0 %v13961_v38  ;;  %4968 = vmatprep.subr.bf16.mxu1 %v13962_v59  ;;  %v13966_v38 = vld [vmem:[#allocation40_spill] sm:$0xff] }
 0x465   : > { %v12508_v1 = vpack.c.bf16 %v4045_v20, %v4013_v14  ;;  %v12510_v28 = vpack.c.bf16 %v4047_v37, %v4015_v23  ;;  %v2898_v10 = vpop.f32.mrb[148].mxu0  ;;  %v3051_v3 = vpop.f32.mrb[148].mxu1  ;;  %v12524_v20 = vld [vmem:[#allocation7] sm:$0x1] }
 0x466   : > { %v3564_v22 = vadd.f32 %v10904_v47, %v2898_v10  ;;  %v3566_v5 = vadd.f32 %v10904_v47, %v3051_v3  ;;  %v2900_v15 = vpop.f32.mrb[149].mxu0  ;;  %v3053_v52 = vpop.f32.mrb[149].mxu1  ;;  %v13967_v10 = vld [vmem:[#allocation43_spill] sm:$0xff]  ;;  %v13968_v3 = vld [vmem:[#allocation44_spill] sm:$0xff] }
 0x467   : > { %v3565_v0 = vadd.f32 %v10904_v47, %v2900_v15  ;;  %v3567_v50 = vadd.f32 %v10904_v47, %v3053_v52  ;;  %4928 = vmatpush1.bf16.msra.mxu0 %v13963_v48  ;;  %4969 = vmatpush1.bf16.msra.mxu1 %v13964_v55  ;;  %v2902_v21 = vpop.f32.mrb[150].mxu0  ;;  %v3055_v6 = vpop.f32.mrb[150].mxu1 }
 0x468   : > { %v3596_v43 = vadd.f32 %v10908_v2, %v2902_v21  ;;  %v3598_v62 = vadd.f32 %v10908_v2, %v3055_v6  ;;  %4995 = vmatprep.subr.bf16.mxu0 %v12172_v29  ;;  %5036 = vmatprep.subr.bf16.mxu1 %v12174_v16  ;;  %v2904_v61 = vpop.f32.mrb[151].mxu0  ;;  %v3057_v58 = vpop.f32.mrb[151].mxu1  ;;  %v4076_v46 = vmax.f32 %v3564_v22, 0.0  ;;  %v4078_v11 = vmax.f32 %v3566_v5, 0.0 }
 0x469   : > { %v3597_v24 = vadd.f32 %v10908_v2, %v2904_v61  ;;  %v3599_v47 = vadd.f32 %v10908_v2, %v3057_v58  ;;  %v4077_v37 = vmax.f32 %v3565_v0, 0.0  ;;  %v4079_v29 = vmax.f32 %v3567_v50, 0.0 }
 0x46a   : > { %v4108_v14 = vmax.f32 %v3596_v43, 0.0  ;;  %v4110_v23 = vmax.f32 %v3598_v62, 0.0  ;;  %4946 = vmatmul.mubr.bf16.vlgmr.msra.gmra.mrb[212].mxu0 %v12524_v20  ;;  %4987 = vmatmul.mubr.bf16.vlgmr.msra.gmra.mrb[212].mxu1 %v12524_v20  ;;  %v13969_v43 = vld [vmem:[#allocation45_spill] sm:$0xff]  ;;  %v13970_v62 = vld [vmem:[#allocation46_spill] sm:$0xff] }
 0x46b   : > { %v4109_v7 = vmax.f32 %v3597_v24, 0.0  ;;  %v4111_v16 = vmax.f32 %v3599_v47, 0.0  ;;  %4996 = vmatpush1.bf16.msra.mxu0 %v13965_v56  ;;  %5037 = vmatpush1.bf16.msra.mxu1 %v13966_v38 }
 0x46c   : > { %v12530_v59 = vpack.c.bf16 %v4108_v14, %v4076_v46  ;;  %v12532_v2 = vpack.c.bf16 %v4110_v23, %v4078_v11  ;;  %4997 = vmatprep.subr.bf16.mxu0 %v13967_v10  ;;  %5038 = vmatprep.subr.bf16.mxu1 %v13968_v3  ;;  %v13971_v3 = vld [vmem:[#allocation47_spill] sm:$0xff] }
 0x46d   : > { %v12536_v22 = vpack.c.bf16 %v4109_v7, %v4077_v37  ;;  %v12538_v5 = vpack.c.bf16 %v4111_v16, %v4079_v29  ;;  %v2908_v15 = vpop.f32.mrb[152].mxu0  ;;  %v3061_v52 = vpop.f32.mrb[152].mxu1  ;;  %5027 = vmatprep.mubr.bf16.mxu0 %v13640_v41  ;;  %5068 = vmatprep.mubr.bf16.mxu1 %v13640_v41 }
 0x46e   : > { %v3628_v0 = vadd.f32 %v10930_v17, %v2908_v15  ;;  %v3630_v50 = vadd.f32 %v10930_v17, %v3061_v52  ;;  %v2910_v48 = vpop.f32.mrb[153].mxu0  ;;  %v3063_v55 = vpop.f32.mrb[153].mxu1  ;;  %v13972_v15 = vld [vmem:[#allocation48_spill] sm:$0xff] }
 0x46f   : > { %v3629_v21 = vadd.f32 %v10930_v17, %v2910_v48  ;;  %v3631_v6 = vadd.f32 %v10930_v17, %v3063_v55  ;;  %4998 = vmatpush1.bf16.msra.mxu0 %v13969_v43  ;;  %5039 = vmatpush1.bf16.msra.mxu1 %v13970_v62  ;;  %v2912_v61 = vpop.f32.mrb[154].mxu0  ;;  %v3065_v58 = vpop.f32.mrb[154].mxu1  ;;  %v13973_v43 = vld [vmem:[#allocation49_spill] sm:$0xff]  ;;  %v13974_v62 = vld [vmem:[#allocation50_spill] sm:$0xff] }
 0x470   : > { %v3660_v24 = vadd.f32 %v10934_v27, %v2912_v61  ;;  %v3662_v47 = vadd.f32 %v10934_v27, %v3065_v58  ;;  %4999 = vmatprep.subr.bf16.mxu0 %v12224_v49  ;;  %5040 = vmatprep.subr.bf16.mxu1 %v12226_v42  ;;  %v2914_v46 = vpop.f32.mrb[155].mxu0  ;;  %v3067_v11 = vpop.f32.mrb[155].mxu1  ;;  %v4140_v23 = vmax.f32 %v3628_v0, 0.0  ;;  %v4142_v37 = vmax.f32 %v3630_v50, 0.0 }
 0x471   : > { %v3661_v14 = vadd.f32 %v10934_v27, %v2914_v46  ;;  %v3663_v17 = vadd.f32 %v10934_v27, %v3067_v11  ;;  %v4141_v16 = vmax.f32 %v3629_v21, 0.0  ;;  %v4143_v56 = vmax.f32 %v3631_v6, 0.0  ;;  %v13975_v46 = vld [vmem:[#allocation51_spill] sm:$0xff]  ;;  %v13976_v11 = vld [vmem:[#allocation52_spill] sm:$0xff] }
 0x472   : > { %v4172_v29 = vmax.f32 %v3660_v24, 0.0  ;;  %v4174_v7 = vmax.f32 %v3662_v47, 0.0 }
 0x473   : > { %v4173_v38 = vmax.f32 %v3661_v14, 0.0  ;;  %v4175_v10 = vmax.f32 %v3663_v17, 0.0  ;;  %5000 = vmatpush1.bf16.msra.mxu0 %v12218_v63  ;;  %5041 = vmatpush1.bf16.msra.mxu1 %v12220_v53 }
 0x474   : > { %v12556_v49 = vpack.c.bf16 %v4172_v29, %v4140_v23  ;;  %v12558_v42 = vpack.c.bf16 %v4174_v7, %v4142_v37  ;;  %5001 = vmatprep.subr.bf16.mxu0 %v13971_v3  ;;  %5042 = vmatprep.subr.bf16.mxu1 %v13972_v15  ;;  %v13977_v15 = vld [vmem:[#allocation53_spill] sm:$0xff] }
 0x475   : > { %v12562_v27 = vpack.c.bf16 %v4173_v38, %v4141_v16  ;;  %v12564_v52 = vpack.c.bf16 %v4175_v10, %v4143_v56  ;;  %v2918_v0 = vpop.f32.mrb[156].mxu0  ;;  %v3071_v50 = vpop.f32.mrb[156].mxu1 }
 0x476   : > { %v3692_v48 = vadd.f32 %v10956_v26, %v2918_v0  ;;  %v3694_v63 = vadd.f32 %v10956_v26, %v3071_v50  ;;  %v2920_v55 = vpop.f32.mrb[157].mxu0  ;;  %v3073_v53 = vpop.f32.mrb[157].mxu1  ;;  %v13978_v0 = vld [vmem:[#allocation54_spill] sm:$0xff] }
 0x477   : > { %v3693_v21 = vadd.f32 %v10956_v26, %v2920_v55  ;;  %v3695_v6 = vadd.f32 %v10956_v26, %v3073_v53  ;;  %5002 = vmatpush1.bf16.msra.mxu0 %v13973_v43  ;;  %5043 = vmatpush1.bf16.msra.mxu1 %v13974_v62  ;;  %v2922_v61 = vpop.f32.mrb[158].mxu0  ;;  %v3075_v58 = vpop.f32.mrb[158].mxu1  ;;  %v13979_v53 = vld [vmem:[#allocation55_spill] sm:$0xff]  ;;  %v13980_v43 = vld [vmem:[#allocation56_spill] sm:$0xff] }
 0x478   : > { %v3724_v24 = vadd.f32 %v10960_v39, %v2922_v61  ;;  %v3726_v47 = vadd.f32 %v10960_v39, %v3075_v58  ;;  %5003 = vmatprep.subr.bf16.mxu0 %v13975_v46  ;;  %5044 = vmatprep.subr.bf16.mxu1 %v13976_v11  ;;  %v2924_v14 = vpop.f32.mrb[159].mxu0  ;;  %v3077_v17 = vpop.f32.mrb[159].mxu1  ;;  %v4204_v37 = vmax.f32 %v3692_v48, 0.0  ;;  %v4206_v29 = vmax.f32 %v3694_v63, 0.0  ;;  %v13981_v63 = vld [vmem:[#allocation57_spill] sm:$0xff]  ;;  %v13984_v62 = vld [vmem:[#allocation60_spill] sm:$0xff] }
 0x479   : > { %v3725_v23 = vadd.f32 %v10960_v39, %v2924_v14  ;;  %v3727_v26 = vadd.f32 %v10960_v39, %v3077_v17  ;;  %v4205_v56 = vmax.f32 %v3693_v21, 0.0  ;;  %v4207_v38 = vmax.f32 %v3695_v6, 0.0  ;;  %v13982_v21 = vld [vmem:[#allocation58_spill] sm:$0xff]  ;;  %v13983_v6 = vld [vmem:[#allocation59_spill] sm:$0xff]  ;;  %v13985_v61 = vld [vmem:[#allocation61_spill] sm:$0xff] }
 0x47a   : > { %v4236_v7 = vmax.f32 %v3724_v24, 0.0  ;;  %v4238_v16 = vmax.f32 %v3726_v47, 0.0  ;;  %v13986_v58 = vld [vmem:[#allocation62_spill] sm:$0xff]  ;;  %v12688_v17 = vld [vmem:[#allocation8 + $0x18] sm:$0xff]  }
 0x47b   : > { %v4237_v10 = vmax.f32 %v3725_v23, 0.0  ;;  %v4239_v3 = vmax.f32 %v3727_v26, 0.0  ;;  %5004 = vmatpush1.bf16.msra.mxu0 %v13977_v15  ;;  %5045 = vmatpush1.bf16.msra.mxu1 %v13978_v0  ;;  %v12680_v46 = vld [vmem:[#allocation8 + $0x10] sm:$0xff]  }
 0x47c   : > { %v12580_v50 = vpack.c.bf16 %v4236_v7, %v4204_v37  ;;  %v12582_v55 = vpack.c.bf16 %v4238_v16, %v4206_v29  ;;  %5005 = vmatprep.subr.bf16.mxu0 %v13979_v53  ;;  %5046 = vmatprep.subr.bf16.mxu1 %v13980_v43 }
 0x47d   : > { %v4493_v39 = vpack.c.bf16 %v4237_v10, %v4205_v56  ;;  %v4495_v48 = vpack.c.bf16 %v4239_v3, %v4207_v38 }
 0x47f   : > { %5006 = vmatpush1.bf16.msra.mxu0 %v13981_v63  ;;  %5047 = vmatpush1.bf16.msra.mxu1 %v13982_v21 }
 0x480   : > { %5007 = vmatprep.subr.bf16.mxu0 %v13983_v6  ;;  %5048 = vmatprep.subr.bf16.mxu1 %v13984_v62 }
 0x483   : > { %5008 = vmatpush1.bf16.msra.mxu0 %v13985_v61  ;;  %5049 = vmatpush1.bf16.msra.mxu1 %v13986_v58 }
 0x484   : > { %5009 = vmatprep.subr.bf16.mxu0 %v12348_v40  ;;  %5050 = vmatprep.subr.bf16.mxu1 %v12350_v34 }
 0x487   : > { %5010 = vmatpush1.bf16.msra.mxu0 %v12342_v30  ;;  %5051 = vmatpush1.bf16.msra.mxu1 %v12344_v54  ;;  %v12620_v30 = vpop.permute.xlu0 %4500 }
 0x488   : > { %5077 = vmatprep.subr.bf16.mxu0 %v12408_v13  ;;  %5118 = vmatprep.subr.bf16.mxu1 %v12410_v8 }
 0x48a   : > { %5028 = vmatmul.mubr.bf16.vlgmr.msra.gmra.mrb[216].mxu0 %v12524_v20  ;;  %5069 = vmatmul.mubr.bf16.vlgmr.msra.gmra.mrb[216].mxu1 %v12524_v20 }
 0x48b   : > { %5078 = vmatpush1.bf16.msra.mxu0 %v12402_v57  ;;  %5119 = vmatpush1.bf16.msra.mxu1 %v12404_v33 }
 0x48c   : > { %5079 = vmatprep.subr.bf16.mxu0 %v12434_v44  ;;  %5120 = vmatprep.subr.bf16.mxu1 %v12436_v12 }
 0x48d   : > { %5109 = vmatprep.mubr.bf16.mxu0 %v13640_v41  ;;  %5150 = vmatprep.mubr.bf16.mxu1 %v13640_v41 }
 0x48f   : > { %5080 = vmatpush1.bf16.msra.mxu0 %v12428_v35  ;;  %5121 = vmatpush1.bf16.msra.mxu1 %v12430_v60 }
 0x490   : > { %5081 = vmatprep.subr.bf16.mxu0 %v12460_v25  ;;  %5122 = vmatprep.subr.bf16.mxu1 %v12462_v19 }
 0x493   : > { %5082 = vmatpush1.bf16.msra.mxu0 %v12454_v32  ;;  %5123 = vmatpush1.bf16.msra.mxu1 %v12456_v4 }
 0x494   : > { %5083 = vmatprep.subr.bf16.mxu0 %v12484_v9  ;;  %5124 = vmatprep.subr.bf16.mxu1 %v12486_v36 }
 0x497   : > { %5084 = vmatpush1.bf16.msra.mxu0 %v12478_v51  ;;  %5125 = vmatpush1.bf16.msra.mxu1 %v12480_v45 }
 0x498   : > { %5085 = vmatprep.subr.bf16.mxu0 %v12508_v1  ;;  %5126 = vmatprep.subr.bf16.mxu1 %v12510_v28  ;;  %v12659_v28 = vld [vmem:[#allocation8] sm:$0xff]  }
 0x49b   : > { %5086 = vmatpush1.bf16.msra.mxu0 %v12502_v18  ;;  %5127 = vmatpush1.bf16.msra.mxu1 %v12504_v31 }
 0x49c   : > { %5087 = vmatprep.subr.bf16.mxu0 %v12536_v22  ;;  %5128 = vmatprep.subr.bf16.mxu1 %v12538_v5 }
 0x49d   : > { %v4537_v54 = vpop.f32.mrb[192].mxu0  ;;  %v4578_v40 = vpop.f32.mrb[192].mxu1 }
 0x49e   : > { %v4538_v34 = vadd.f32 %v4537_v54, %v12620_v30  ;;  %v4579_v57 = vadd.f32 %v4578_v40, %v12620_v30  ;;  %v4539_v33 = vpop.f32.mrb[193].mxu0  ;;  %v4580_v13 = vpop.f32.mrb[193].mxu1 }
 0x49f   : > { %v4540_v8 = vadd.f32 %v4539_v33, %v12620_v30  ;;  %v4581_v35 = vadd.f32 %v4580_v13, %v12620_v30  ;;  %5088 = vmatpush1.bf16.msra.mxu0 %v12530_v59  ;;  %5129 = vmatpush1.bf16.msra.mxu1 %v12532_v2  ;;  %v4541_v60 = vpop.f32.mrb[194].mxu0  ;;  %v4582_v44 = vpop.f32.mrb[194].mxu1 }
 0x4a0   : > { %9729 = vtanh.f32 %v4538_v34  ;;  %5089 = vmatprep.subr.bf16.mxu0 %v12562_v27  ;;  %5130 = vmatprep.subr.bf16.mxu1 %v12564_v52  ;;  %v4542_v12 = vpop.f32.mrb[195].mxu0  ;;  %v4583_v32 = vpop.f32.mrb[195].mxu1 }
 0x4a1   : > { %9731 = vtanh.f32 %v4579_v57 }
 0x4a2   : > { %9733 = vtanh.f32 %v4540_v8 }
 0x4a3   : > { %9735 = vtanh.f32 %v4581_v35  ;;  %5090 = vmatpush1.bf16.msra.mxu0 %v12556_v49  ;;  %5131 = vmatpush1.bf16.msra.mxu1 %v12558_v42 }
 0x4a4   : > { %5091 = vmatprep.subr.bf16.mxu0 %v4493_v39  ;;  %5132 = vmatprep.subr.bf16.mxu1 %v4495_v48 }
 0x4a7   : > { %5092 = vmatpush1.bf16.msra.mxu0 %v12580_v50  ;;  %5133 = vmatpush1.bf16.msra.mxu1 %v12582_v55 }
 0x4aa   : > { %v12636_v4 = vpop.eup %9729  ;;  %5110 = vmatmul.mubr.bf16.vlgmr.msra.gmra.mrb[220].mxu0 %v12524_v20  ;;  %5151 = vmatmul.mubr.bf16.vlgmr.msra.gmra.mrb[220].mxu1 %v12524_v20  ;;  %v12668_v20 = vld [vmem:[#allocation8 + $0x8] sm:$0xff]  }
 0x4ab   : > { %v12640_v25 = vpop.eup %9731  ;;  %v5207_v19 = vpack.c.bf16 %v12636_v4, %v12636_v4  ;;  %5401 = vmatprep.mubr.bf16.mxu0 %v13640_v41  ;;  %5474 = vmatprep.mubr.bf16.mxu1 %v13640_v41 }
 0x4ac   : > { %v12646_v51 = vpop.eup %9733  ;;  %v5209_v45 = vpack.c.bf16 %v12640_v25, %v12640_v25 }
 0x4ad   : > { %v12650_v9 = vpop.eup %9735  ;;  %v5208_v36 = vpack.c.bf16 %v12646_v51, %v12646_v51  ;;  %v5274_v18 = vsel %vm5272_vm2, %v5207_v19, 0 }
 0x4ae   : > { %v5210_v31 = vpack.c.bf16 %v12650_v9, %v12650_v9  ;;  %v5280_v1 = vsel %vm5272_vm2, %v5209_v45, 0 }
 0x4af   : > { %9217 = vmatprep.subr.msk.bf16.mxu0 %vm5272_vm2, %v5208_v36 }
 0x4b0   : > { %9222 = vmatprep.subr.msk.bf16.mxu1 %vm5272_vm2, %v5210_v31  ;;  %5370 = vmatpush1.bf16.msra.mxu0 %v5274_v18 }
 0x4b1   : > { %5443 = vmatpush1.bf16.msra.mxu1 %v5280_v1 }
 0x4b3   : > { %9218 = vmatmul.mubr.msk.bf16.vlgmr.msra.gmra.mrb[32].mxu0 %vm5259_vm3, %v12659_v28 }
 0x4b4   : > { %9223 = vmatmul.mubr.msk.bf16.vlgmr.msra.gmra.mrb[32].mxu1 %vm5259_vm3, %v12659_v28  ;;  %5411 = vmatprep.mubr.bf16.mxu0 %v13640_v41 }
 0x4b5   : > { %5484 = vmatprep.mubr.bf16.mxu1 %v13640_v41 }
 0x4bb   : > { %9219 = vmatmul.mubr.msk.bf16.gmra.mrb[36].mxu0 %vm5259_vm3, %v12668_v20 }
 0x4bc   : > { %9224 = vmatmul.mubr.msk.bf16.gmra.mrb[36].mxu1 %vm5259_vm3, %v12668_v20  ;;  %5421 = vmatprep.mubr.bf16.mxu0 %v13640_v41 }
 0x4bd   : > { %v4619_v59 = vpop.f32.mrb[196].mxu0  ;;  %v4660_v2 = vpop.f32.mrb[196].mxu1  ;;  %5494 = vmatprep.mubr.bf16.mxu1 %v13640_v41 }
 0x4be   : > { %v4620_v22 = vadd.f32 %v4619_v59, %v12620_v30  ;;  %v4661_v5 = vadd.f32 %v4660_v2, %v12620_v30  ;;  %v4621_v49 = vpop.f32.mrb[197].mxu0  ;;  %v4662_v42 = vpop.f32.mrb[197].mxu1 }
 0x4bf   : > { %v4622_v27 = vadd.f32 %v4621_v49, %v12620_v30  ;;  %v4663_v52 = vadd.f32 %v4662_v42, %v12620_v30  ;;  %v4623_v24 = vpop.f32.mrb[198].mxu0  ;;  %v4664_v47 = vpop.f32.mrb[198].mxu1 }
 0x4c0   : > { %9737 = vtanh.f32 %v4620_v22  ;;  %v4624_v11 = vpop.f32.mrb[199].mxu0  ;;  %v4665_v14 = vpop.f32.mrb[199].mxu1 }
 0x4c1   : > { %9739 = vtanh.f32 %v4661_v5 }
 0x4c2   : > { %9741 = vtanh.f32 %v4622_v27 }
 0x4c3   : > { %9743 = vtanh.f32 %v4663_v52  ;;  %9220 = vmatmul.mubr.msk.bf16.gmra.mrb[40].mxu0 %vm5259_vm3, %v12680_v46 }
 0x4c4   : > { %9225 = vmatmul.mubr.msk.bf16.gmra.mrb[40].mxu1 %vm5259_vm3, %v12680_v46  ;;  %5431 = vmatprep.mubr.bf16.mxu0 %v13640_v41 }
 0x4c5   : > { %5504 = vmatprep.mubr.bf16.mxu1 %v13640_v41 }
 0x4ca   : > { %v12690_v23 = vpop.eup %9737 }
 0x4cb   : > { %v12692_v26 = vpop.eup %9739  ;;  %9221 = vmatmul.mubr.msk.bf16.gmra.mrb[44].mxu0 %vm5259_vm3, %v12688_v17  ;;  %v5211_v37 = vpack.c.bf16 %v12690_v23, %v12690_v23 }
 0x4cc   : > { %v12698_v29 = vpop.eup %9741  ;;  %9226 = vmatmul.mubr.msk.bf16.gmra.mrb[44].mxu1 %vm5259_vm3, %v12688_v17  ;;  %v5213_v7 = vpack.c.bf16 %v12692_v26, %v12692_v26  ;;  %5547 = vmatprep.mubr.bf16.mxu0 %v13640_v41 }
 0x4cd   : > { %v12705_v16 = vpop.eup %9743  ;;  %v5212_v56 = vpack.c.bf16 %v12698_v29, %v12698_v29  ;;  %v5286_v38 = vsel %vm5272_vm2, %v5211_v37, 0  ;;  %5620 = vmatprep.mubr.bf16.mxu1 %v13640_v41 }
 0x4ce   : > { %v5214_v10 = vpack.c.bf16 %v12705_v16, %v12705_v16  ;;  %v5292_v3 = vsel %vm5272_vm2, %v5213_v7, 0 }
 0x4cf   : > { %9227 = vmatprep.subr.msk.bf16.mxu0 %vm5272_vm2, %v5212_v56 }
 0x4d0   : > { %9232 = vmatprep.subr.msk.bf16.mxu1 %vm5272_vm2, %v5214_v10  ;;  %5516 = vmatpush1.bf16.msra.mxu0 %v5286_v38 }
 0x4d1   : > { %5589 = vmatpush1.bf16.msra.mxu1 %v5292_v3 }
 0x4d3   : > { %9228 = vmatmul.mubr.msk.bf16.vlgmr.msra.gmra.mrb[80].mxu0 %vm5259_vm3, %v12659_v28 }
 0x4d4   : > { %9233 = vmatmul.mubr.msk.bf16.vlgmr.msra.gmra.mrb[80].mxu1 %vm5259_vm3, %v12659_v28  ;;  %5557 = vmatprep.mubr.bf16.mxu0 %v13640_v41 }
 0x4d5   : > { %5630 = vmatprep.mubr.bf16.mxu1 %v13640_v41 }
 0x4db   : > { %9229 = vmatmul.mubr.msk.bf16.gmra.mrb[84].mxu0 %vm5259_vm3, %v12668_v20 }
 0x4dc   : > { %9234 = vmatmul.mubr.msk.bf16.gmra.mrb[84].mxu1 %vm5259_vm3, %v12668_v20  ;;  %5567 = vmatprep.mubr.bf16.mxu0 %v13640_v41 }
 0x4dd   : > { %v4701_v15 = vpop.f32.mrb[200].mxu0  ;;  %v4742_v0 = vpop.f32.mrb[200].mxu1  ;;  %5640 = vmatprep.mubr.bf16.mxu1 %v13640_v41 }
 0x4de   : > { %v4702_v50 = vadd.f32 %v4701_v15, %v12620_v30  ;;  %v4743_v55 = vadd.f32 %v4742_v0, %v12620_v30  ;;  %v4703_v53 = vpop.f32.mrb[201].mxu0  ;;  %v4744_v43 = vpop.f32.mrb[201].mxu1 }
 0x4df   : > { %v4704_v39 = vadd.f32 %v4703_v53, %v12620_v30  ;;  %v4745_v48 = vadd.f32 %v4744_v43, %v12620_v30  ;;  %v4705_v63 = vpop.f32.mrb[202].mxu0  ;;  %v4746_v21 = vpop.f32.mrb[202].mxu1 }
 0x4e0   : > { %9745 = vtanh.f32 %v4702_v50  ;;  %v4706_v6 = vpop.f32.mrb[203].mxu0  ;;  %v4747_v62 = vpop.f32.mrb[203].mxu1 }
 0x4e1   : > { %9747 = vtanh.f32 %v4743_v55 }
 0x4e2   : > { %9749 = vtanh.f32 %v4704_v39 }
 0x4e3   : > { %9751 = vtanh.f32 %v4745_v48  ;;  %9230 = vmatmul.mubr.msk.bf16.gmra.mrb[88].mxu0 %vm5259_vm3, %v12680_v46 }
 0x4e4   : > { %9235 = vmatmul.mubr.msk.bf16.gmra.mrb[88].mxu1 %vm5259_vm3, %v12680_v46  ;;  %5577 = vmatprep.mubr.bf16.mxu0 %v13640_v41 }
 0x4e5   : > { %5650 = vmatprep.mubr.bf16.mxu1 %v13640_v41 }
 0x4ea   : > { %v12738_v61 = vpop.eup %9745 }
 0x4eb   : > { %v12740_v58 = vpop.eup %9747  ;;  %9231 = vmatmul.mubr.msk.bf16.gmra.mrb[92].mxu0 %vm5259_vm3, %v12688_v17  ;;  %v5215_v54 = vpack.c.bf16 %v12738_v61, %v12738_v61 }
 0x4ec   : > { %v12746_v40 = vpop.eup %9749  ;;  %9236 = vmatmul.mubr.msk.bf16.gmra.mrb[92].mxu1 %vm5259_vm3, %v12688_v17  ;;  %v5217_v34 = vpack.c.bf16 %v12740_v58, %v12740_v58  ;;  %5693 = vmatprep.mubr.bf16.mxu0 %v13640_v41 }
 0x4ed   : > { %v12753_v57 = vpop.eup %9751  ;;  %v5216_v33 = vpack.c.bf16 %v12746_v40, %v12746_v40  ;;  %v5298_v13 = vsel %vm5272_vm2, %v5215_v54, 0  ;;  %5766 = vmatprep.mubr.bf16.mxu1 %v13640_v41 }
 0x4ee   : > { %v5218_v8 = vpack.c.bf16 %v12753_v57, %v12753_v57  ;;  %v5304_v35 = vsel %vm5272_vm2, %v5217_v34, 0 }
 0x4ef   : > { %9237 = vmatprep.subr.msk.bf16.mxu0 %vm5272_vm2, %v5216_v33 }
 0x4f0   : > { %9242 = vmatprep.subr.msk.bf16.mxu1 %vm5272_vm2, %v5218_v8  ;;  %5662 = vmatpush1.bf16.msra.mxu0 %v5298_v13 }
 0x4f1   : > { %5735 = vmatpush1.bf16.msra.mxu1 %v5304_v35 }
 0x4f3   : > { %9238 = vmatmul.mubr.msk.bf16.vlgmr.msra.gmra.mrb[128].mxu0 %vm5259_vm3, %v12659_v28 }
 0x4f4   : > { %9243 = vmatmul.mubr.msk.bf16.vlgmr.msra.gmra.mrb[128].mxu1 %vm5259_vm3, %v12659_v28  ;;  %5703 = vmatprep.mubr.bf16.mxu0 %v13640_v41 }
 0x4f5   : > { %5776 = vmatprep.mubr.bf16.mxu1 %v13640_v41 }
 0x4fb   : > { %9239 = vmatmul.mubr.msk.bf16.gmra.mrb[132].mxu0 %vm5259_vm3, %v12668_v20 }
 0x4fc   : > { %9244 = vmatmul.mubr.msk.bf16.gmra.mrb[132].mxu1 %vm5259_vm3, %v12668_v20  ;;  %5713 = vmatprep.mubr.bf16.mxu0 %v13640_v41 }
 0x4fd   : > { %v4783_v60 = vpop.f32.mrb[204].mxu0  ;;  %v4824_v44 = vpop.f32.mrb[204].mxu1  ;;  %5786 = vmatprep.mubr.bf16.mxu1 %v13640_v41 }
 0x4fe   : > { %v4784_v12 = vadd.f32 %v4783_v60, %v12620_v30  ;;  %v4825_v32 = vadd.f32 %v4824_v44, %v12620_v30  ;;  %v4785_v19 = vpop.f32.mrb[205].mxu0  ;;  %v4826_v45 = vpop.f32.mrb[205].mxu1 }
 0x4ff   : > { %v4786_v36 = vadd.f32 %v4785_v19, %v12620_v30  ;;  %v4827_v18 = vadd.f32 %v4826_v45, %v12620_v30  ;;  %v4787_v31 = vpop.f32.mrb[206].mxu0  ;;  %v4828_v1 = vpop.f32.mrb[206].mxu1 }
 0x500   : > { %9753 = vtanh.f32 %v4784_v12  ;;  %v4788_v59 = vpop.f32.mrb[207].mxu0  ;;  %v4829_v2 = vpop.f32.mrb[207].mxu1 }
 0x501   : > { %9755 = vtanh.f32 %v4825_v32 }
 0x502   : > { %9757 = vtanh.f32 %v4786_v36 }
 0x503   : > { %9759 = vtanh.f32 %v4827_v18  ;;  %9240 = vmatmul.mubr.msk.bf16.gmra.mrb[136].mxu0 %vm5259_vm3, %v12680_v46 }
 0x504   : > { %9245 = vmatmul.mubr.msk.bf16.gmra.mrb[136].mxu1 %vm5259_vm3, %v12680_v46  ;;  %5723 = vmatprep.mubr.bf16.mxu0 %v13640_v41 }
 0x505   : > { %5796 = vmatprep.mubr.bf16.mxu1 %v13640_v41 }
 0x50a   : > { %v12786_v22 = vpop.eup %9753 }
 0x50b   : > { %v12788_v5 = vpop.eup %9755  ;;  %9241 = vmatmul.mubr.msk.bf16.gmra.mrb[140].mxu0 %vm5259_vm3, %v12688_v17  ;;  %v5219_v49 = vpack.c.bf16 %v12786_v22, %v12786_v22 }
 0x50c   : > { %v12794_v42 = vpop.eup %9757  ;;  %9246 = vmatmul.mubr.msk.bf16.gmra.mrb[140].mxu1 %vm5259_vm3, %v12688_v17  ;;  %v5221_v27 = vpack.c.bf16 %v12788_v5, %v12788_v5  ;;  %5839 = vmatprep.mubr.bf16.mxu0 %v13640_v41 }
 0x50d   : > { %v12801_v52 = vpop.eup %9759  ;;  %v5220_v24 = vpack.c.bf16 %v12794_v42, %v12794_v42  ;;  %v5310_v47 = vsel %vm5272_vm2, %v5219_v49, 0  ;;  %5912 = vmatprep.mubr.bf16.mxu1 %v13640_v41 }
 0x50e   : > { %v5222_v11 = vpack.c.bf16 %v12801_v52, %v12801_v52  ;;  %v5316_v14 = vsel %vm5272_vm2, %v5221_v27, 0 }
 0x50f   : > { %9247 = vmatprep.subr.msk.bf16.mxu0 %vm5272_vm2, %v5220_v24 }
 0x510   : > { %9252 = vmatprep.subr.msk.bf16.mxu1 %vm5272_vm2, %v5222_v11  ;;  %5808 = vmatpush1.bf16.msra.mxu0 %v5310_v47 }
 0x511   : > { %5881 = vmatpush1.bf16.msra.mxu1 %v5316_v14 }
 0x513   : > { %9248 = vmatmul.mubr.msk.bf16.vlgmr.msra.gmra.mrb[176].mxu0 %vm5259_vm3, %v12659_v28 }
 0x514   : > { %9253 = vmatmul.mubr.msk.bf16.vlgmr.msra.gmra.mrb[176].mxu1 %vm5259_vm3, %v12659_v28  ;;  %5849 = vmatprep.mubr.bf16.mxu0 %v13640_v41 }
 0x515   : > { %5922 = vmatprep.mubr.bf16.mxu1 %v13640_v41 }
 0x51b   : > { %9249 = vmatmul.mubr.msk.bf16.gmra.mrb[180].mxu0 %vm5259_vm3, %v12668_v20 }
 0x51c   : > { %9254 = vmatmul.mubr.msk.bf16.gmra.mrb[180].mxu1 %vm5259_vm3, %v12668_v20  ;;  %5859 = vmatprep.mubr.bf16.mxu0 %v13640_v41 }
 0x51d   : > { %v4865_v37 = vpop.f32.mrb[208].mxu0  ;;  %v4906_v7 = vpop.f32.mrb[208].mxu1  ;;  %5932 = vmatprep.mubr.bf16.mxu1 %v13640_v41 }
 0x51e   : > { %v4866_v56 = vadd.f32 %v4865_v37, %v12620_v30  ;;  %v4907_v38 = vadd.f32 %v4906_v7, %v12620_v30  ;;  %v4867_v10 = vpop.f32.mrb[209].mxu0  ;;  %v4908_v3 = vpop.f32.mrb[209].mxu1 }
 0x51f   : > { %v4868_v15 = vadd.f32 %v4867_v10, %v12620_v30  ;;  %v4909_v0 = vadd.f32 %v4908_v3, %v12620_v30  ;;  %v4869_v50 = vpop.f32.mrb[210].mxu0  ;;  %v4910_v55 = vpop.f32.mrb[210].mxu1 }
 0x520   : > { %9761 = vtanh.f32 %v4866_v56  ;;  %v4870_v53 = vpop.f32.mrb[211].mxu0  ;;  %v4911_v43 = vpop.f32.mrb[211].mxu1 }
 0x521   : > { %9763 = vtanh.f32 %v4907_v38 }
 0x522   : > { %9765 = vtanh.f32 %v4868_v15 }
 0x523   : > { %9767 = vtanh.f32 %v4909_v0  ;;  %9250 = vmatmul.mubr.msk.bf16.gmra.mrb[184].mxu0 %vm5259_vm3, %v12680_v46 }
 0x524   : > { %9255 = vmatmul.mubr.msk.bf16.gmra.mrb[184].mxu1 %vm5259_vm3, %v12680_v46  ;;  %5869 = vmatprep.mubr.bf16.mxu0 %v13640_v41 }
 0x525   : > { %5942 = vmatprep.mubr.bf16.mxu1 %v13640_v41 }
 0x52a   : > { %v12834_v39 = vpop.eup %9761 }
 0x52b   : > { %v12836_v48 = vpop.eup %9763  ;;  %9251 = vmatmul.mubr.msk.bf16.gmra.mrb[188].mxu0 %vm5259_vm3, %v12688_v17  ;;  %v5223_v63 = vpack.c.bf16 %v12834_v39, %v12834_v39 }
 0x52c   : > { %v12842_v21 = vpop.eup %9765  ;;  %9256 = vmatmul.mubr.msk.bf16.gmra.mrb[188].mxu1 %vm5259_vm3, %v12688_v17  ;;  %v5225_v6 = vpack.c.bf16 %v12836_v48, %v12836_v48  ;;  %5985 = vmatprep.mubr.bf16.mxu0 %v13640_v41 }
 0x52d   : > { %v12849_v62 = vpop.eup %9767  ;;  %v5224_v54 = vpack.c.bf16 %v12842_v21, %v12842_v21  ;;  %v5322_v34 = vsel %vm5272_vm2, %v5223_v63, 0  ;;  %6058 = vmatprep.mubr.bf16.mxu1 %v13640_v41 }
 0x52e   : > { %v5226_v33 = vpack.c.bf16 %v12849_v62, %v12849_v62  ;;  %v5328_v13 = vsel %vm5272_vm2, %v5225_v6, 0 }
 0x52f   : > { %9257 = vmatprep.subr.msk.bf16.mxu0 %vm5272_vm2, %v5224_v54 }
 0x530   : > { %9262 = vmatprep.subr.msk.bf16.mxu1 %vm5272_vm2, %v5226_v33  ;;  %5954 = vmatpush1.bf16.msra.mxu0 %v5322_v34 }
 0x531   : > { %6027 = vmatpush1.bf16.msra.mxu1 %v5328_v13 }
 0x533   : > { %9258 = vmatmul.mubr.msk.bf16.vlgmr.msra.gmra.mrb[224].mxu0 %vm5259_vm3, %v12659_v28 }
 0x534   : > { %9263 = vmatmul.mubr.msk.bf16.vlgmr.msra.gmra.mrb[224].mxu1 %vm5259_vm3, %v12659_v28  ;;  %5995 = vmatprep.mubr.bf16.mxu0 %v13640_v41 }
 0x535   : > { %6068 = vmatprep.mubr.bf16.mxu1 %v13640_v41 }
 0x53b   : > { %9259 = vmatmul.mubr.msk.bf16.gmra.mrb[228].mxu0 %vm5259_vm3, %v12668_v20 }
 0x53c   : > { %9264 = vmatmul.mubr.msk.bf16.gmra.mrb[228].mxu1 %vm5259_vm3, %v12668_v20  ;;  %6005 = vmatprep.mubr.bf16.mxu0 %v13640_v41 }
 0x53d   : > { %v4947_v8 = vpop.f32.mrb[212].mxu0  ;;  %v4988_v35 = vpop.f32.mrb[212].mxu1  ;;  %6078 = vmatprep.mubr.bf16.mxu1 %v13640_v41 }
 0x53e   : > { %v4948_v60 = vadd.f32 %v4947_v8, %v12620_v30  ;;  %v4989_v44 = vadd.f32 %v4988_v35, %v12620_v30  ;;  %v4949_v12 = vpop.f32.mrb[213].mxu0  ;;  %v4990_v32 = vpop.f32.mrb[213].mxu1 }
 0x53f   : > { %v4950_v19 = vadd.f32 %v4949_v12, %v12620_v30  ;;  %v4991_v45 = vadd.f32 %v4990_v32, %v12620_v30  ;;  %v4951_v36 = vpop.f32.mrb[214].mxu0  ;;  %v4992_v18 = vpop.f32.mrb[214].mxu1 }
 0x540   : > { %9769 = vtanh.f32 %v4948_v60  ;;  %v4952_v31 = vpop.f32.mrb[215].mxu0  ;;  %v4993_v1 = vpop.f32.mrb[215].mxu1 }
 0x541   : > { %9771 = vtanh.f32 %v4989_v44 }
 0x542   : > { %9773 = vtanh.f32 %v4950_v19 }
 0x543   : > { %9775 = vtanh.f32 %v4991_v45  ;;  %9260 = vmatmul.mubr.msk.bf16.gmra.mrb[232].mxu0 %vm5259_vm3, %v12680_v46 }
 0x544   : > { %9265 = vmatmul.mubr.msk.bf16.gmra.mrb[232].mxu1 %vm5259_vm3, %v12680_v46  ;;  %6015 = vmatprep.mubr.bf16.mxu0 %v13640_v41 }
 0x545   : > { %6088 = vmatprep.mubr.bf16.mxu1 %v13640_v41 }
 0x54a   : > { %v12882_v59 = vpop.eup %9769 }
 0x54b   : > { %v12884_v2 = vpop.eup %9771  ;;  %9261 = vmatmul.mubr.msk.bf16.gmra.mrb[236].mxu0 %vm5259_vm3, %v12688_v17  ;;  %v5227_v49 = vpack.c.bf16 %v12882_v59, %v12882_v59 }
 0x54c   : > { %v12890_v27 = vpop.eup %9773  ;;  %9266 = vmatmul.mubr.msk.bf16.gmra.mrb[236].mxu1 %vm5259_vm3, %v12688_v17  ;;  %v5229_v24 = vpack.c.bf16 %v12884_v2, %v12884_v2  ;;  %6131 = vmatprep.mubr.bf16.mxu0 %v13640_v41 }
 0x54d   : > { %v12897_v47 = vpop.eup %9775  ;;  %v5228_v11 = vpack.c.bf16 %v12890_v27, %v12890_v27  ;;  %v5334_v14 = vsel %vm5272_vm2, %v5227_v49, 0  ;;  %6204 = vmatprep.mubr.bf16.mxu1 %v13640_v41 }
 0x54e   : > { %v5230_v37 = vpack.c.bf16 %v12897_v47, %v12897_v47  ;;  %v5340_v7 = vsel %vm5272_vm2, %v5229_v24, 0 }
 0x54f   : > { %9267 = vmatprep.subr.msk.bf16.mxu0 %vm5272_vm2, %v5228_v11 }
 0x550   : > { %9272 = vmatprep.subr.msk.bf16.mxu1 %vm5272_vm2, %v5230_v37  ;;  %6100 = vmatpush1.bf16.msra.mxu0 %v5334_v14 }
 0x551   : > { %6173 = vmatpush1.bf16.msra.mxu1 %v5340_v7 }
 0x553   : > { %9268 = vmatmul.mubr.msk.bf16.vlgmr.msra.gmra.mrb[16].mxu0 %vm5259_vm3, %v12659_v28 }
 0x554   : > { %9273 = vmatmul.mubr.msk.bf16.vlgmr.msra.gmra.mrb[16].mxu1 %vm5259_vm3, %v12659_v28  ;;  %6141 = vmatprep.mubr.bf16.mxu0 %v13640_v41 }
 0x555   : > { %6214 = vmatprep.mubr.bf16.mxu1 %v13640_v41 }
 0x55b   : > { %9269 = vmatmul.mubr.msk.bf16.gmra.mrb[20].mxu0 %vm5259_vm3, %v12668_v20 }
 0x55c   : > { %9274 = vmatmul.mubr.msk.bf16.gmra.mrb[20].mxu1 %vm5259_vm3, %v12668_v20  ;;  %6151 = vmatprep.mubr.bf16.mxu0 %v13640_v41 }
 0x55d   : > { %v5029_v56 = vpop.f32.mrb[216].mxu0  ;;  %v5070_v38 = vpop.f32.mrb[216].mxu1  ;;  %6224 = vmatprep.mubr.bf16.mxu1 %v13640_v41 }
 0x55e   : > { %v5030_v10 = vadd.f32 %v5029_v56, %v12620_v30  ;;  %v5071_v3 = vadd.f32 %v5070_v38, %v12620_v30  ;;  %v5031_v15 = vpop.f32.mrb[217].mxu0  ;;  %v5072_v0 = vpop.f32.mrb[217].mxu1 }
 0x55f   : > { %v5032_v50 = vadd.f32 %v5031_v15, %v12620_v30  ;;  %v5073_v55 = vadd.f32 %v5072_v0, %v12620_v30  ;;  %v5033_v53 = vpop.f32.mrb[218].mxu0  ;;  %v5074_v43 = vpop.f32.mrb[218].mxu1 }
 0x560   : > { %9777 = vtanh.f32 %v5030_v10  ;;  %v5034_v63 = vpop.f32.mrb[219].mxu0  ;;  %v5075_v6 = vpop.f32.mrb[219].mxu1 }
 0x561   : > { %9779 = vtanh.f32 %v5071_v3  ;;  %v12977_v56 = vpop.permute.xlu0 %6800 }
 0x562   : > { %9781 = vtanh.f32 %v5032_v50 }
 0x563   : > { %9783 = vtanh.f32 %v5073_v55  ;;  %9270 = vmatmul.mubr.msk.bf16.gmra.mrb[24].mxu0 %vm5259_vm3, %v12680_v46 }
 0x564   : > { %9275 = vmatmul.mubr.msk.bf16.gmra.mrb[24].mxu1 %vm5259_vm3, %v12680_v46  ;;  %6161 = vmatprep.mubr.bf16.mxu0 %v13640_v41 }
 0x565   : > { %6234 = vmatprep.mubr.bf16.mxu1 %v13640_v41 }
 0x56a   : > { %v12930_v54 = vpop.eup %9777 }
 0x56b   : > { %v12932_v34 = vpop.eup %9779  ;;  %9271 = vmatmul.mubr.msk.bf16.gmra.mrb[28].mxu0 %vm5259_vm3, %v12688_v17  ;;  %v5231_v33 = vpack.c.bf16 %v12930_v54, %v12930_v54 }
 0x56c   : > { %v12938_v13 = vpop.eup %9781  ;;  %9276 = vmatmul.mubr.msk.bf16.gmra.mrb[28].mxu1 %vm5259_vm3, %v12688_v17  ;;  %v5233_v8 = vpack.c.bf16 %v12932_v34, %v12932_v34  ;;  %6277 = vmatprep.mubr.bf16.mxu0 %v13640_v41 }
 0x56d   : > { %v12945_v35 = vpop.eup %9783  ;;  %v5232_v60 = vpack.c.bf16 %v12938_v13, %v12938_v13  ;;  %v5346_v44 = vsel %vm5272_vm2, %v5231_v33, 0  ;;  %6350 = vmatprep.mubr.bf16.mxu1 %v13640_v41 }
 0x56e   : > { %v5234_v12 = vpack.c.bf16 %v12945_v35, %v12945_v35  ;;  %v5352_v32 = vsel %vm5272_vm2, %v5233_v8, 0 }
 0x56f   : > { %9277 = vmatprep.subr.msk.bf16.mxu0 %vm5272_vm2, %v5232_v60 }
 0x570   : > { %9282 = vmatprep.subr.msk.bf16.mxu1 %vm5272_vm2, %v5234_v12  ;;  %6246 = vmatpush1.bf16.msra.mxu0 %v5346_v44 }
 0x571   : > { %6319 = vmatpush1.bf16.msra.mxu1 %v5352_v32 }
 0x573   : > { %9278 = vmatmul.mubr.msk.bf16.vlgmr.msra.gmra.mrb[96].mxu0 %vm5259_vm3, %v12659_v28 }
 0x574   : > { %9283 = vmatmul.mubr.msk.bf16.vlgmr.msra.gmra.mrb[96].mxu1 %vm5259_vm3, %v12659_v28  ;;  %6287 = vmatprep.mubr.bf16.mxu0 %v13640_v41 }
 0x575   : > { %6360 = vmatprep.mubr.bf16.mxu1 %v13640_v41 }
 0x57b   : > { %9279 = vmatmul.mubr.msk.bf16.gmra.mrb[100].mxu0 %vm5259_vm3, %v12668_v20 }
 0x57c   : > { %9284 = vmatmul.mubr.msk.bf16.gmra.mrb[100].mxu1 %vm5259_vm3, %v12668_v20  ;;  %6297 = vmatprep.mubr.bf16.mxu0 %v13640_v41 }
 0x57d   : > { %v5111_v19 = vpop.f32.mrb[220].mxu0  ;;  %v5152_v45 = vpop.f32.mrb[220].mxu1  ;;  %6370 = vmatprep.mubr.bf16.mxu1 %v13640_v41 }
 0x57e   : > { %v5112_v36 = vadd.f32 %v5111_v19, %v12620_v30  ;;  %v5153_v18 = vadd.f32 %v5152_v45, %v12620_v30  ;;  %v5113_v31 = vpop.f32.mrb[221].mxu0  ;;  %v5154_v1 = vpop.f32.mrb[221].mxu1 }
 0x57f   : > { %v5114_v49 = vadd.f32 %v5113_v31, %v12620_v30  ;;  %v5155_v24 = vadd.f32 %v5154_v1, %v12620_v30  ;;  %v5115_v11 = vpop.f32.mrb[222].mxu0  ;;  %v5156_v14 = vpop.f32.mrb[222].mxu1 }
 0x580   : > { %9785 = vtanh.f32 %v5112_v36  ;;  %v5116_v37 = vpop.f32.mrb[223].mxu0  ;;  %v5157_v7 = vpop.f32.mrb[223].mxu1 }
 0x581   : > { %9787 = vtanh.f32 %v5153_v18  ;;  %v12980_v30 = vpop.permute.xlu1 %6795 }
 0x582   : > { %9789 = vtanh.f32 %v5114_v49 }
 0x583   : > { %9791 = vtanh.f32 %v5155_v24  ;;  %9280 = vmatmul.mubr.msk.bf16.gmra.mrb[104].mxu0 %vm5259_vm3, %v12680_v46 }
 0x584   : > { %9285 = vmatmul.mubr.msk.bf16.gmra.mrb[104].mxu1 %vm5259_vm3, %v12680_v46  ;;  %6307 = vmatprep.mubr.bf16.mxu0 %v13640_v41 }
 0x585   : > { %6380 = vmatprep.mubr.bf16.mxu1 %v13640_v41 }
 0x586   : > { %v5403_v38 = vpop.f32.mrb[32].mxu0 }
 0x587   : > { %v6833_v10 = vadd.f32 %v12980_v30, %v5403_v38  ;;  %v5476_v3 = vpop.f32.mrb[32].mxu1  ;;  %v5405_v15 = vpop.f32.mrb[33].mxu0 }
 0x588   : > { %v6835_v0 = vadd.f32 %v12980_v30, %v5476_v3  ;;  %v6834_v50 = vadd.f32 %v12980_v30, %v5405_v15  ;;  %v5478_v55 = vpop.f32.mrb[33].mxu1  ;;  %v5407_v53 = vpop.f32.mrb[34].mxu0 }
 0x589   : > { %v6836_v43 = vadd.f32 %v12980_v30, %v5478_v55  ;;  %v6865_v63 = vadd.f32 %v12977_v56, %v5407_v53  ;;  %v5480_v6 = vpop.f32.mrb[34].mxu1  ;;  %v5409_v33 = vpop.f32.mrb[35].mxu0  ;;  %v7089_v60 = vmax.f32 %v6833_v10, 0.0 }
 0x58a   : > { %v12987_v8 = vpop.eup %9785  ;;  %v7091_v44 = vmax.f32 %v6835_v0, 0.0  ;;  %v6867_v12 = vadd.f32 %v12977_v56, %v5480_v6  ;;  %v6866_v32 = vadd.f32 %v12977_v56, %v5409_v33  ;;  %v5482_v19 = vpop.f32.mrb[35].mxu1  ;;  %v7090_v36 = vmax.f32 %v6834_v50, 0.0 }
 0x58b   : > { %13987 = vst [vmem:[#allocation65_spill] sm:$0xff] %v12987_v8  ;;  %v12991_v45 = vpop.eup %9787  ;;  %v7121_v18 = vmax.f32 %v6865_v63, 0.0  ;;  %v6868_v31 = vadd.f32 %v12977_v56, %v5482_v19  ;;  %9281 = vmatmul.mubr.msk.bf16.gmra.mrb[108].mxu0 %vm5259_vm3, %v12688_v17  ;;  %v5235_v1 = vpack.c.bf16 %v12987_v8, %v12987_v8  ;;  %v7092_v24 = vmax.f32 %v6836_v43, 0.0  ;;  %v13007_v38 = vpop.permute.xlu0 %6810 }
 0x58c   : > { %13988 = vst [vmem:[#allocation66_spill] sm:$0xff] %v12991_v45  ;;  %v12998_v49 = vpop.eup %9789  ;;  %v7123_v11 = vmax.f32 %v6867_v12, 0.0  ;;  %v7122_v14 = vmax.f32 %v6866_v32, 0.0  ;;  %9286 = vmatmul.mubr.msk.bf16.gmra.mrb[108].mxu1 %vm5259_vm3, %v12688_v17  ;;  %v5237_v37 = vpack.c.bf16 %v12991_v45, %v12991_v45  ;;  %6423 = vmatprep.mubr.bf16.mxu0 %v13640_v41  ;;  %v13013_v50 = vpop.permute.xlu1 %6805 }
 0x58d   : > { %13989 = vst [vmem:[#allocation63_spill] sm:$0xff] %v12998_v49  ;;  %v13005_v7 = vpop.eup %9791  ;;  %v7345_v10 = vpack.c.bf16 %v7121_v18, %v7089_v60  ;;  %v7124_v3 = vmax.f32 %v6868_v31, 0.0  ;;  %v5236_v15 = vpack.c.bf16 %v12998_v49, %v12998_v49  ;;  %v5358_v0 = vsel %vm5272_vm2, %v5235_v1, 0  ;;  %6496 = vmatprep.mubr.bf16.mxu1 %v13640_v41 }
 0x58e   : > { %13990 = vst [vmem:[#allocation64_spill] sm:$0xff] %v13005_v7  ;;  %v7347_v55 = vpack.c.bf16 %v7123_v11, %v7091_v44  ;;  %v7346_v53 = vpack.c.bf16 %v7122_v14, %v7090_v36  ;;  %v5413_v43 = vpop.f32.mrb[36].mxu0  ;;  %v5238_v63 = vpack.c.bf16 %v13005_v7, %v13005_v7  ;;  %v5364_v6 = vsel %vm5272_vm2, %v5237_v37, 0 }
 0x58f   : > { %v7348_v33 = vpack.c.bf16 %v7124_v3, %v7092_v24  ;;  %v6897_v60 = vadd.f32 %v13013_v50, %v5413_v43  ;;  %v5486_v12 = vpop.f32.mrb[36].mxu1  ;;  %9287 = vmatprep.subr.msk.bf16.mxu0 %vm5272_vm2, %v5236_v15  ;;  %v5415_v32 = vpop.f32.mrb[37].mxu0 }
 0x590   : > { %v6899_v19 = vadd.f32 %v13013_v50, %v5486_v12  ;;  %9292 = vmatprep.subr.msk.bf16.mxu1 %vm5272_vm2, %v5238_v63  ;;  %v6898_v44 = vadd.f32 %v13013_v50, %v5415_v32  ;;  %v5488_v36 = vpop.f32.mrb[37].mxu1  ;;  %6392 = vmatpush1.bf16.msra.mxu0 %v5358_v0  ;;  %v5417_v18 = vpop.f32.mrb[38].mxu0 }
 0x591   : > { %v6900_v31 = vadd.f32 %v13013_v50, %v5488_v36  ;;  %6465 = vmatpush1.bf16.msra.mxu1 %v5364_v6  ;;  %v6929_v1 = vadd.f32 %v13007_v38, %v5417_v18  ;;  %v5490_v24 = vpop.f32.mrb[38].mxu1  ;;  %7484 = vmatprep.subr.bf16.mxu0 %v7346_v53  ;;  %v5419_v11 = vpop.f32.mrb[39].mxu0  ;;  %v7153_v15 = vmax.f32 %v6897_v60, 0.0 }
 0x592   : > { %v6931_v14 = vadd.f32 %v13007_v38, %v5490_v24  ;;  %7525 = vmatprep.subr.bf16.mxu1 %v7348_v33  ;;  %v6930_v37 = vadd.f32 %v13007_v38, %v5419_v11  ;;  %v5492_v3 = vpop.f32.mrb[39].mxu1  ;;  %v7155_v0 = vmax.f32 %v6899_v19, 0.0  ;;  %v7154_v6 = vmax.f32 %v6898_v44, 0.0  ;;  %v13032_v53 = vpop.permute.xlu0 %6820 }
 0x593   : > { %v7185_v43 = vmax.f32 %v6929_v1, 0.0  ;;  %v6932_v63 = vadd.f32 %v13007_v38, %v5492_v3  ;;  %9288 = vmatmul.mubr.msk.bf16.vlgmr.msra.gmra.mrb[160].mxu0 %vm5259_vm3, %v12659_v28  ;;  %v7156_v33 = vmax.f32 %v6900_v31, 0.0  ;;  %v13035_v60 = vpop.permute.xlu1 %6815 }
 0x594   : > { %v7187_v12 = vmax.f32 %v6931_v14, 0.0  ;;  %v7186_v32 = vmax.f32 %v6930_v37, 0.0  ;;  %9293 = vmatmul.mubr.msk.bf16.vlgmr.msra.gmra.mrb[160].mxu1 %vm5259_vm3, %v12659_v28  ;;  %7485 = vmatpush1.bf16.msra.mxu0 %v7345_v10 }
 0x595   : > { %v7377_v36 = vpack.c.bf16 %v7185_v43, %v7153_v15  ;;  %v7188_v18 = vmax.f32 %v6932_v63, 0.0  ;;  %7526 = vmatpush1.bf16.msra.mxu1 %v7347_v55  ;;  %6433 = vmatprep.mubr.bf16.mxu0 %v13640_v41 }
 0x596   : > { %v7379_v1 = vpack.c.bf16 %v7187_v12, %v7155_v0  ;;  %v7378_v24 = vpack.c.bf16 %v7186_v32, %v7154_v6  ;;  %v5423_v19 = vpop.f32.mrb[40].mxu0  ;;  %6506 = vmatprep.mubr.bf16.mxu1 %v13640_v41 }
 0x597   : > { %v7380_v44 = vpack.c.bf16 %v7188_v18, %v7156_v33  ;;  %v6961_v11 = vadd.f32 %v13035_v60, %v5423_v19  ;;  %v5496_v28 = vpop.f32.mrb[40].mxu1  ;;  %v5425_v10 = vpop.f32.mrb[41].mxu0 }
 0x598   : > { %v6963_v14 = vadd.f32 %v13035_v60, %v5496_v28  ;;  %v6962_v31 = vadd.f32 %v13035_v60, %v5425_v10  ;;  %v5498_v37 = vpop.f32.mrb[41].mxu1  ;;  %v5427_v55 = vpop.f32.mrb[42].mxu0  ;;  %7486 = vmatprep.subr.bf16.mxu0 %v7378_v24 }
 0x599   : > { %v6964_v3 = vadd.f32 %v13035_v60, %v5498_v37  ;;  %v6993_v15 = vadd.f32 %v13032_v53, %v5427_v55  ;;  %v5500_v43 = vpop.f32.mrb[42].mxu1  ;;  %7527 = vmatprep.subr.bf16.mxu1 %v7380_v44  ;;  %v5429_v63 = vpop.f32.mrb[43].mxu0  ;;  %7487 = vmatpush1.bf16.msra.mxu0 %v7377_v36  ;;  %v7217_v32 = vmax.f32 %v6961_v11, 0.0 }
 0x59a   : > { %v6995_v0 = vadd.f32 %v13032_v53, %v5500_v43  ;;  %v6994_v6 = vadd.f32 %v13032_v53, %v5429_v63  ;;  %v5502_v12 = vpop.f32.mrb[43].mxu1  ;;  %7528 = vmatpush1.bf16.msra.mxu1 %v7379_v1  ;;  %v7219_v24 = vmax.f32 %v6963_v14, 0.0  ;;  %v7218_v19 = vmax.f32 %v6962_v31, 0.0  ;;  %v13051_v36 = vpop.permute.xlu0 %6830 }
 0x59b   : > { %v7249_v33 = vmax.f32 %v6993_v15, 0.0  ;;  %v6996_v18 = vadd.f32 %v13032_v53, %v5502_v12  ;;  %9289 = vmatmul.mubr.msk.bf16.gmra.mrb[164].mxu0 %vm5259_vm3, %v12668_v20  ;;  %v7220_v44 = vmax.f32 %v6964_v3, 0.0  ;;  %v13054_v37 = vpop.permute.xlu1 %6825 }
 0x59c   : > { %v7251_v28 = vmax.f32 %v6995_v0, 0.0  ;;  %v7250_v10 = vmax.f32 %v6994_v6, 0.0  ;;  %9294 = vmatmul.mubr.msk.bf16.gmra.mrb[164].mxu1 %vm5259_vm3, %v12668_v20  ;;  %6443 = vmatprep.mubr.bf16.mxu0 %v13640_v41 }
 0x59d   : > { %v7409_v1 = vpack.c.bf16 %v7249_v33, %v7217_v32  ;;  %v7252_v11 = vmax.f32 %v6996_v18, 0.0  ;;  %6516 = vmatprep.mubr.bf16.mxu1 %v13640_v41 }
 0x59e   : > { %v7411_v55 = vpack.c.bf16 %v7251_v28, %v7219_v24  ;;  %v7410_v15 = vpack.c.bf16 %v7250_v10, %v7218_v19  ;;  %v5433_v14 = vpop.f32.mrb[44].mxu0 }
 0x59f   : > { %v7412_v31 = vpack.c.bf16 %v7252_v11, %v7220_v44  ;;  %v7025_v43 = vadd.f32 %v13054_v37, %v5433_v14  ;;  %v5506_v63 = vpop.f32.mrb[44].mxu1  ;;  %v5435_v0 = vpop.f32.mrb[45].mxu0 }
 0x5a0   : > { %v7027_v20 = vadd.f32 %v13054_v37, %v5506_v63  ;;  %v7026_v6 = vadd.f32 %v13054_v37, %v5435_v0  ;;  %v5508_v12 = vpop.f32.mrb[45].mxu1  ;;  %v5437_v3 = vpop.f32.mrb[46].mxu0  ;;  %7488 = vmatprep.subr.bf16.mxu0 %v7410_v15 }
 0x5a1   : > { %v7028_v32 = vadd.f32 %v13054_v37, %v5508_v12  ;;  %v7057_v33 = vadd.f32 %v13051_v36, %v5437_v3  ;;  %v5510_v18 = vpop.f32.mrb[46].mxu1  ;;  %7529 = vmatprep.subr.bf16.mxu1 %v7412_v31  ;;  %v5439_v24 = vpop.f32.mrb[47].mxu0  ;;  %7489 = vmatpush1.bf16.msra.mxu0 %v7409_v1  ;;  %v7281_v44 = vmax.f32 %v7025_v43, 0.0 }
 0x5a2   : > { %v7059_v19 = vadd.f32 %v13051_v36, %v5510_v18  ;;  %v7058_v28 = vadd.f32 %v13051_v36, %v5439_v24  ;;  %v5512_v10 = vpop.f32.mrb[47].mxu1  ;;  %7530 = vmatpush1.bf16.msra.mxu1 %v7411_v55  ;;  %v7283_v15 = vmax.f32 %v7027_v20, 0.0  ;;  %v7282_v63 = vmax.f32 %v7026_v6, 0.0 }
 0x5a3   : > { %v7313_v11 = vmax.f32 %v7057_v33, 0.0  ;;  %v7060_v14 = vadd.f32 %v13051_v36, %v5512_v10  ;;  %9290 = vmatmul.mubr.msk.bf16.gmra.mrb[168].mxu0 %vm5259_vm3, %v12680_v46  ;;  %v7284_v1 = vmax.f32 %v7028_v32, 0.0 }
 0x5a4   : > { %v7315_v0 = vmax.f32 %v7059_v19, 0.0  ;;  %v7314_v12 = vmax.f32 %v7058_v28, 0.0  ;;  %9295 = vmatmul.mubr.msk.bf16.gmra.mrb[168].mxu1 %vm5259_vm3, %v12680_v46  ;;  %6453 = vmatprep.mubr.bf16.mxu0 %v13640_v41 }
 0x5a5   : > { %v7441_v31 = vpack.c.bf16 %v7313_v11, %v7281_v44  ;;  %v7316_v3 = vmax.f32 %v7060_v14, 0.0  ;;  %6526 = vmatprep.mubr.bf16.mxu1 %v13640_v41 }
 0x5a6   : > { %v7443_v55 = vpack.c.bf16 %v7315_v0, %v7283_v15  ;;  %v7442_v43 = vpack.c.bf16 %v7314_v12, %v7282_v63  ;;  %v5549_v33 = vpop.f32.mrb[80].mxu0 }
 0x5a7   : > { %v7444_v18 = vpack.c.bf16 %v7316_v3, %v7284_v1  ;;  %v6837_v24 = vadd.f32 %v12980_v30, %v5549_v33  ;;  %v5622_v20 = vpop.f32.mrb[80].mxu1  ;;  %v5551_v6 = vpop.f32.mrb[81].mxu0 }
 0x5a8   : > { %v6839_v19 = vadd.f32 %v12980_v30, %v5622_v20  ;;  %v6838_v28 = vadd.f32 %v12980_v30, %v5551_v6  ;;  %v5624_v46 = vpop.f32.mrb[81].mxu1  ;;  %v5553_v10 = vpop.f32.mrb[82].mxu0  ;;  %7490 = vmatprep.subr.bf16.mxu0 %v7442_v43 }
 0x5a9   : > { %v6840_v32 = vadd.f32 %v12980_v30, %v5624_v46  ;;  %v6869_v44 = vadd.f32 %v12977_v56, %v5553_v10  ;;  %v5626_v11 = vpop.f32.mrb[82].mxu1  ;;  %7531 = vmatprep.subr.bf16.mxu1 %v7444_v18  ;;  %v5555_v14 = vpop.f32.mrb[83].mxu0  ;;  %7491 = vmatpush1.bf16.msra.mxu0 %v7441_v31  ;;  %v7093_v12 = vmax.f32 %v6837_v24, 0.0 }
 0x5aa   : > { %v6871_v15 = vadd.f32 %v12977_v56, %v5626_v11  ;;  %v6870_v63 = vadd.f32 %v12977_v56, %v5555_v14  ;;  %v5628_v0 = vpop.f32.mrb[83].mxu1  ;;  %7532 = vmatpush1.bf16.msra.mxu1 %v7443_v55  ;;  %v7095_v43 = vmax.f32 %v6839_v19, 0.0  ;;  %v7094_v33 = vmax.f32 %v6838_v28, 0.0 }
 0x5ab   : > { %v7125_v1 = vmax.f32 %v6869_v44, 0.0  ;;  %v6872_v3 = vadd.f32 %v12977_v56, %v5628_v0  ;;  %9291 = vmatmul.mubr.msk.bf16.gmra.mrb[172].mxu0 %vm5259_vm3, %v12688_v17  ;;  %v7096_v31 = vmax.f32 %v6840_v32, 0.0  ;;  %v13087_v32 = vld [vmem:[#allocation10] sm:$0x1] }
 0x5ac   : > { %v7127_v20 = vmax.f32 %v6871_v15, 0.0  ;;  %v7126_v6 = vmax.f32 %v6870_v63, 0.0  ;;  %9296 = vmatmul.mubr.msk.bf16.gmra.mrb[172].mxu1 %vm5259_vm3, %v12688_v17  ;;  %7516 = vmatprep.mubr.bf16.mxu0 %v13640_v41 }
 0x5ad   : > { %v7349_v18 = vpack.c.bf16 %v7125_v1, %v7093_v12  ;;  %v7128_v46 = vmax.f32 %v6872_v3, 0.0  ;;  %7557 = vmatprep.mubr.bf16.mxu1 %v13640_v41 }
 0x5ae   : > { %v7351_v55 = vpack.c.bf16 %v7127_v20, %v7095_v43  ;;  %v7350_v24 = vpack.c.bf16 %v7126_v6, %v7094_v33  ;;  %v5559_v10 = vpop.f32.mrb[84].mxu0 }
 0x5af   : > { %v7352_v44 = vpack.c.bf16 %v7128_v46, %v7096_v31  ;;  %v6901_v11 = vadd.f32 %v13013_v50, %v5559_v10  ;;  %v5632_v19 = vpop.f32.mrb[84].mxu1  ;;  %v5561_v28 = vpop.f32.mrb[85].mxu0 }
 0x5b0   : > { %v6903_v14 = vadd.f32 %v13013_v50, %v5632_v19  ;;  %v6902_v15 = vadd.f32 %v13013_v50, %v5561_v28  ;;  %v5634_v17 = vpop.f32.mrb[85].mxu1  ;;  %v5563_v63 = vpop.f32.mrb[86].mxu0  ;;  %7566 = vmatprep.subr.bf16.mxu0 %v7350_v24 }
 0x5b1   : > { %v6904_v0 = vadd.f32 %v13013_v50, %v5634_v17  ;;  %v6933_v12 = vadd.f32 %v13007_v38, %v5563_v63  ;;  %v5636_v1 = vpop.f32.mrb[86].mxu1  ;;  %7607 = vmatprep.subr.bf16.mxu1 %v7352_v44  ;;  %v5565_v3 = vpop.f32.mrb[87].mxu0  ;;  %v7157_v6 = vmax.f32 %v6901_v11, 0.0 }
 0x5b2   : > { %v6935_v43 = vadd.f32 %v13007_v38, %v5636_v1  ;;  %v6934_v33 = vadd.f32 %v13007_v38, %v5565_v3  ;;  %v5638_v20 = vpop.f32.mrb[87].mxu1  ;;  %v7159_v24 = vmax.f32 %v6903_v14, 0.0  ;;  %v7158_v10 = vmax.f32 %v6902_v15, 0.0 }
 0x5b3   : > { %v7189_v31 = vmax.f32 %v6933_v12, 0.0  ;;  %v6936_v46 = vadd.f32 %v13007_v38, %v5638_v20  ;;  %9297 = vmatmul.mubr.msk.bf16.vlgmr.msra.gmra.mrb[240].mxu0 %vm7480_vm4, %v13087_v32  ;;  %v7160_v44 = vmax.f32 %v6904_v0, 0.0 }
 0x5b4   : > { %v7191_v19 = vmax.f32 %v6935_v43, 0.0  ;;  %v7190_v28 = vmax.f32 %v6934_v33, 0.0  ;;  %9298 = vmatmul.mubr.msk.bf16.vlgmr.msra.gmra.mrb[240].mxu1 %vm7480_vm4, %v13087_v32  ;;  %7567 = vmatpush1.bf16.msra.mxu0 %v7349_v18 }
 0x5b5   : > { %v7381_v17 = vpack.c.bf16 %v7189_v31, %v7157_v6  ;;  %v7192_v63 = vmax.f32 %v6936_v46, 0.0  ;;  %7608 = vmatpush1.bf16.msra.mxu1 %v7351_v55  ;;  %7598 = vmatprep.mubr.bf16.mxu0 %v13640_v41 }
 0x5b6   : > { %v7383_v11 = vpack.c.bf16 %v7191_v19, %v7159_v24  ;;  %v7382_v12 = vpack.c.bf16 %v7190_v28, %v7158_v10  ;;  %v5569_v1 = vpop.f32.mrb[88].mxu0  ;;  %7639 = vmatprep.mubr.bf16.mxu1 %v13640_v41 }
 0x5b7   : > { %v7384_v3 = vpack.c.bf16 %v7192_v63, %v7160_v44  ;;  %v6965_v14 = vadd.f32 %v13035_v60, %v5569_v1  ;;  %v5642_v15 = vpop.f32.mrb[88].mxu1  ;;  %v5571_v43 = vpop.f32.mrb[89].mxu0 }
 0x5b8   : > { %v6967_v33 = vadd.f32 %v13035_v60, %v5642_v15  ;;  %v6966_v18 = vadd.f32 %v13035_v60, %v5571_v43  ;;  %v5644_v0 = vpop.f32.mrb[89].mxu1  ;;  %v5573_v20 = vpop.f32.mrb[90].mxu0  ;;  %7568 = vmatprep.subr.bf16.mxu0 %v7382_v12 }
 0x5b9   : > { %v6968_v55 = vadd.f32 %v13035_v60, %v5644_v0  ;;  %v6997_v6 = vadd.f32 %v13032_v53, %v5573_v20  ;;  %v5646_v31 = vpop.f32.mrb[90].mxu1  ;;  %7609 = vmatprep.subr.bf16.mxu1 %v7384_v3  ;;  %v5575_v46 = vpop.f32.mrb[91].mxu0  ;;  %7569 = vmatpush1.bf16.msra.mxu0 %v7381_v17  ;;  %v7221_v28 = vmax.f32 %v6965_v14, 0.0 }
 0x5ba   : > { %v6999_v24 = vadd.f32 %v13032_v53, %v5646_v31  ;;  %v6998_v10 = vadd.f32 %v13032_v53, %v5575_v46  ;;  %v5648_v19 = vpop.f32.mrb[91].mxu1  ;;  %7610 = vmatpush1.bf16.msra.mxu1 %v7383_v11  ;;  %v7223_v1 = vmax.f32 %v6967_v33, 0.0  ;;  %v7222_v12 = vmax.f32 %v6966_v18, 0.0 }
 0x5bb   : > { %v7253_v44 = vmax.f32 %v6997_v6, 0.0  ;;  %v7000_v63 = vadd.f32 %v13032_v53, %v5648_v19  ;;  %v7224_v0 = vmax.f32 %v6968_v55, 0.0 }
 0x5bc   : > { %v7255_v15 = vmax.f32 %v6999_v24, 0.0  ;;  %v7254_v43 = vmax.f32 %v6998_v10, 0.0 }
 0x5bd   : > { %v7413_v20 = vpack.c.bf16 %v7253_v44, %v7221_v28  ;;  %v7256_v7 = vmax.f32 %v7000_v63, 0.0 }
 0x5be   : > { %v7415_v3 = vpack.c.bf16 %v7255_v15, %v7223_v1  ;;  %v7414_v49 = vpack.c.bf16 %v7254_v43, %v7222_v12  ;;  %v5579_v17 = vpop.f32.mrb[92].mxu0 }
 0x5bf   : > { %v7416_v45 = vpack.c.bf16 %v7256_v7, %v7224_v0  ;;  %v7029_v31 = vadd.f32 %v13054_v37, %v5579_v17  ;;  %v5652_v46 = vpop.f32.mrb[92].mxu1  ;;  %v5581_v8 = vpop.f32.mrb[93].mxu0 }
 0x5c0   : > { %v7031_v11 = vadd.f32 %v13054_v37, %v5652_v46  ;;  %v7030_v14 = vadd.f32 %v13054_v37, %v5581_v8  ;;  %v5654_v6 = vpop.f32.mrb[93].mxu1  ;;  %v5583_v33 = vpop.f32.mrb[94].mxu0  ;;  %7570 = vmatprep.subr.bf16.mxu0 %v7414_v49 }
 0x5c1   : > { %v7032_v18 = vadd.f32 %v13054_v37, %v5654_v6  ;;  %v7061_v55 = vadd.f32 %v13051_v36, %v5583_v33  ;;  %v5656_v24 = vpop.f32.mrb[94].mxu1  ;;  %7611 = vmatprep.subr.bf16.mxu1 %v7416_v45  ;;  %v5585_v10 = vpop.f32.mrb[95].mxu0  ;;  %7571 = vmatpush1.bf16.msra.mxu0 %v7413_v20  ;;  %v7285_v44 = vmax.f32 %v7029_v31, 0.0 }
 0x5c2   : > { %v7063_v7 = vadd.f32 %v13051_v36, %v5656_v24  ;;  %v7062_v19 = vadd.f32 %v13051_v36, %v5585_v10  ;;  %v5658_v28 = vpop.f32.mrb[95].mxu1  ;;  %7612 = vmatpush1.bf16.msra.mxu1 %v7415_v3  ;;  %v7287_v1 = vmax.f32 %v7031_v11, 0.0  ;;  %v7286_v49 = vmax.f32 %v7030_v14, 0.0 }
 0x5c3   : > { %v7317_v63 = vmax.f32 %v7061_v55, 0.0  ;;  %v7064_v8 = vadd.f32 %v13051_v36, %v5658_v28  ;;  %v7288_v43 = vmax.f32 %v7032_v18, 0.0 }
 0x5c4   : > { %v7319_v12 = vmax.f32 %v7063_v7, 0.0  ;;  %v7318_v15 = vmax.f32 %v7062_v19, 0.0 }
 0x5c5   : > { %v7445_v0 = vpack.c.bf16 %v7317_v63, %v7285_v44  ;;  %v7320_v17 = vmax.f32 %v7064_v8, 0.0 }
 0x5c6   : > { %v7447_v45 = vpack.c.bf16 %v7319_v12, %v7287_v1  ;;  %v7446_v46 = vpack.c.bf16 %v7318_v15, %v7286_v49  ;;  %v5695_v20 = vpop.f32.mrb[128].mxu0 }
 0x5c7   : > { %v7448_v6 = vpack.c.bf16 %v7320_v17, %v7288_v43  ;;  %v6841_v33 = vadd.f32 %v12980_v30, %v5695_v20  ;;  %v5768_v24 = vpop.f32.mrb[128].mxu1  ;;  %v5697_v10 = vpop.f32.mrb[129].mxu0 }
 0x5c8   : > { %v6843_v3 = vadd.f32 %v12980_v30, %v5768_v24  ;;  %v6842_v31 = vadd.f32 %v12980_v30, %v5697_v10  ;;  %v5770_v55 = vpop.f32.mrb[129].mxu1  ;;  %v5699_v11 = vpop.f32.mrb[130].mxu0  ;;  %7572 = vmatprep.subr.bf16.mxu0 %v7446_v46 }
 0x5c9   : > { %v6844_v14 = vadd.f32 %v12980_v30, %v5770_v55  ;;  %v6873_v18 = vadd.f32 %v12977_v56, %v5699_v11  ;;  %v5772_v7 = vpop.f32.mrb[130].mxu1  ;;  %7613 = vmatprep.subr.bf16.mxu1 %v7448_v6  ;;  %v5701_v19 = vpop.f32.mrb[131].mxu0  ;;  %7573 = vmatpush1.bf16.msra.mxu0 %v7445_v0  ;;  %v7097_v8 = vmax.f32 %v6841_v33, 0.0 }
 0x5ca   : > { %v6875_v28 = vadd.f32 %v12977_v56, %v5772_v7  ;;  %v6874_v44 = vadd.f32 %v12977_v56, %v5701_v19  ;;  %v5774_v63 = vpop.f32.mrb[131].mxu1  ;;  %7614 = vmatpush1.bf16.msra.mxu1 %v7447_v45  ;;  %v7099_v12 = vmax.f32 %v6843_v3, 0.0  ;;  %v7098_v15 = vmax.f32 %v6842_v31, 0.0 }
 0x5cb   : > { %v7129_v1 = vmax.f32 %v6873_v18, 0.0  ;;  %v6876_v49 = vadd.f32 %v12977_v56, %v5774_v63  ;;  %v7100_v46 = vmax.f32 %v6844_v14, 0.0 }
 0x5cc   : > { %v7131_v43 = vmax.f32 %v6875_v28, 0.0  ;;  %v7130_v17 = vmax.f32 %v6874_v44, 0.0  ;;  %9299 = vmatmul.mubr.msk.bf16.vlgmr.msra.gmra.mrb[244].mxu0 %vm7480_vm4, %v13087_v32 }
 0x5cd   : > { %v7353_v20 = vpack.c.bf16 %v7129_v1, %v7097_v8  ;;  %v7132_v0 = vmax.f32 %v6876_v49, 0.0  ;;  %9300 = vmatmul.mubr.msk.bf16.vlgmr.msra.gmra.mrb[244].mxu1 %vm7480_vm4, %v13087_v32  ;;  %7680 = vmatprep.mubr.bf16.mxu0 %v13640_v41 }
 0x5ce   : > { %v7355_v45 = vpack.c.bf16 %v7131_v43, %v7099_v12  ;;  %v7354_v6 = vpack.c.bf16 %v7130_v17, %v7098_v15  ;;  %v5705_v33 = vpop.f32.mrb[132].mxu0  ;;  %7721 = vmatprep.mubr.bf16.mxu1 %v13640_v41 }
 0x5cf   : > { %v7356_v24 = vpack.c.bf16 %v7132_v0, %v7100_v46  ;;  %v6905_v10 = vadd.f32 %v13013_v50, %v5705_v33  ;;  %v5778_v3 = vpop.f32.mrb[132].mxu1  ;;  %v5707_v31 = vpop.f32.mrb[133].mxu0 }
 0x5d0   : > { %v6907_v55 = vadd.f32 %v13013_v50, %v5778_v3  ;;  %v6906_v11 = vadd.f32 %v13013_v50, %v5707_v31  ;;  %v5780_v14 = vpop.f32.mrb[133].mxu1  ;;  %v5709_v18 = vpop.f32.mrb[134].mxu0  ;;  %7648 = vmatprep.subr.bf16.mxu0 %v7354_v6 }
 0x5d1   : > { %v6908_v7 = vadd.f32 %v13013_v50, %v5780_v14  ;;  %v6937_v19 = vadd.f32 %v13007_v38, %v5709_v18  ;;  %v5782_v28 = vpop.f32.mrb[134].mxu1  ;;  %7689 = vmatprep.subr.bf16.mxu1 %v7356_v24  ;;  %v5711_v44 = vpop.f32.mrb[135].mxu0  ;;  %7649 = vmatpush1.bf16.msra.mxu0 %v7353_v20  ;;  %v7161_v49 = vmax.f32 %v6905_v10, 0.0 }
 0x5d2   : > { %v6939_v63 = vadd.f32 %v13007_v38, %v5782_v28  ;;  %v6938_v8 = vadd.f32 %v13007_v38, %v5711_v44  ;;  %v5784_v1 = vpop.f32.mrb[135].mxu1  ;;  %7690 = vmatpush1.bf16.msra.mxu1 %v7355_v45  ;;  %v7163_v43 = vmax.f32 %v6907_v55, 0.0  ;;  %v7162_v17 = vmax.f32 %v6906_v11, 0.0 }
 0x5d3   : > { %v7193_v12 = vmax.f32 %v6937_v19, 0.0  ;;  %v6940_v15 = vadd.f32 %v13007_v38, %v5784_v1  ;;  %v7164_v6 = vmax.f32 %v6908_v7, 0.0 }
 0x5d4   : > { %v7195_v46 = vmax.f32 %v6939_v63, 0.0  ;;  %v7194_v0 = vmax.f32 %v6938_v8, 0.0 }
 0x5d5   : > { %v7385_v33 = vpack.c.bf16 %v7193_v12, %v7161_v49  ;;  %v7196_v3 = vmax.f32 %v6940_v15, 0.0 }
 0x5d6   : > { %v7387_v24 = vpack.c.bf16 %v7195_v46, %v7163_v43  ;;  %v7386_v31 = vpack.c.bf16 %v7194_v0, %v7162_v17  ;;  %v5715_v20 = vpop.f32.mrb[136].mxu0 }
 0x5d7   : > { %v7388_v14 = vpack.c.bf16 %v7196_v3, %v7164_v6  ;;  %v6969_v18 = vadd.f32 %v13035_v60, %v5715_v20  ;;  %v5788_v28 = vpop.f32.mrb[136].mxu1  ;;  %v5717_v44 = vpop.f32.mrb[137].mxu0 }
 0x5d8   : > { %v6971_v45 = vadd.f32 %v13035_v60, %v5788_v28  ;;  %v6970_v10 = vadd.f32 %v13035_v60, %v5717_v44  ;;  %v5790_v19 = vpop.f32.mrb[137].mxu1  ;;  %v5719_v55 = vpop.f32.mrb[138].mxu0  ;;  %7650 = vmatprep.subr.bf16.mxu0 %v7386_v31 }
 0x5d9   : > { %v6972_v11 = vadd.f32 %v13035_v60, %v5790_v19  ;;  %v7001_v7 = vadd.f32 %v13032_v53, %v5719_v55  ;;  %v5792_v63 = vpop.f32.mrb[138].mxu1  ;;  %7691 = vmatprep.subr.bf16.mxu1 %v7388_v14  ;;  %v5721_v8 = vpop.f32.mrb[139].mxu0  ;;  %7651 = vmatpush1.bf16.msra.mxu0 %v7385_v33  ;;  %v7225_v15 = vmax.f32 %v6969_v18, 0.0 }
 0x5da   : > { %v7003_v1 = vadd.f32 %v13032_v53, %v5792_v63  ;;  %v7002_v49 = vadd.f32 %v13032_v53, %v5721_v8  ;;  %v5794_v12 = vpop.f32.mrb[139].mxu1  ;;  %7692 = vmatpush1.bf16.msra.mxu1 %v7387_v24  ;;  %v7227_v46 = vmax.f32 %v6971_v45, 0.0  ;;  %v7226_v0 = vmax.f32 %v6970_v10, 0.0 }
 0x5db   : > { %v7257_v43 = vmax.f32 %v7001_v7, 0.0  ;;  %v7004_v17 = vadd.f32 %v13032_v53, %v5794_v12  ;;  %v7228_v31 = vmax.f32 %v6972_v11, 0.0 }
 0x5dc   : > { %v7259_v6 = vmax.f32 %v7003_v1, 0.0  ;;  %v7258_v3 = vmax.f32 %v7002_v49, 0.0 }
 0x5dd   : > { %v7417_v20 = vpack.c.bf16 %v7257_v43, %v7225_v15  ;;  %v7260_v28 = vmax.f32 %v7004_v17, 0.0 }
 0x5de   : > { %v7419_v14 = vpack.c.bf16 %v7259_v6, %v7227_v46  ;;  %v7418_v44 = vpack.c.bf16 %v7258_v3, %v7226_v0  ;;  %v5725_v33 = vpop.f32.mrb[140].mxu0 }
 0x5df   : > { %v7420_v19 = vpack.c.bf16 %v7260_v28, %v7228_v31  ;;  %v7033_v55 = vadd.f32 %v13054_v37, %v5725_v33  ;;  %v5798_v63 = vpop.f32.mrb[140].mxu1  ;;  %v5727_v8 = vpop.f32.mrb[141].mxu0 }
 0x5e0   : > { %v7035_v24 = vadd.f32 %v13054_v37, %v5798_v63  ;;  %v7034_v18 = vadd.f32 %v13054_v37, %v5727_v8  ;;  %v5800_v7 = vpop.f32.mrb[141].mxu1  ;;  %v5729_v45 = vpop.f32.mrb[142].mxu0  ;;  %7652 = vmatprep.subr.bf16.mxu0 %v7418_v44 }
 0x5e1   : > { %v7036_v10 = vadd.f32 %v13054_v37, %v5800_v7  ;;  %v7065_v11 = vadd.f32 %v13051_v36, %v5729_v45  ;;  %v5802_v1 = vpop.f32.mrb[142].mxu1  ;;  %7693 = vmatprep.subr.bf16.mxu1 %v7420_v19  ;;  %v5731_v49 = vpop.f32.mrb[143].mxu0  ;;  %7653 = vmatpush1.bf16.msra.mxu0 %v7417_v20  ;;  %v7289_v17 = vmax.f32 %v7033_v55, 0.0 }
 0x5e2   : > { %v7067_v12 = vadd.f32 %v13051_v36, %v5802_v1  ;;  %v7066_v15 = vadd.f32 %v13051_v36, %v5731_v49  ;;  %v5804_v43 = vpop.f32.mrb[143].mxu1  ;;  %7694 = vmatpush1.bf16.msra.mxu1 %v7419_v14  ;;  %v7291_v6 = vmax.f32 %v7035_v24, 0.0  ;;  %v7290_v3 = vmax.f32 %v7034_v18, 0.0 }
 0x5e3   : > { %v7321_v46 = vmax.f32 %v7065_v11, 0.0  ;;  %v7068_v0 = vadd.f32 %v13051_v36, %v5804_v43  ;;  %v7292_v44 = vmax.f32 %v7036_v10, 0.0 }
 0x5e4   : > { %v7323_v31 = vmax.f32 %v7067_v12, 0.0  ;;  %v7322_v28 = vmax.f32 %v7066_v15, 0.0 }
 0x5e5   : > { %v7449_v33 = vpack.c.bf16 %v7321_v46, %v7289_v17  ;;  %v7324_v63 = vmax.f32 %v7068_v0, 0.0 }
 0x5e6   : > { %v7451_v19 = vpack.c.bf16 %v7323_v31, %v7291_v6  ;;  %v7450_v8 = vpack.c.bf16 %v7322_v28, %v7290_v3  ;;  %v5841_v20 = vpop.f32.mrb[176].mxu0 }
 0x5e7   : > { %v7452_v7 = vpack.c.bf16 %v7324_v63, %v7292_v44  ;;  %v6845_v45 = vadd.f32 %v12980_v30, %v5841_v20  ;;  %v5914_v1 = vpop.f32.mrb[176].mxu1  ;;  %v5843_v49 = vpop.f32.mrb[177].mxu0 }
 0x5e8   : > { %v6847_v14 = vadd.f32 %v12980_v30, %v5914_v1  ;;  %v6846_v55 = vadd.f32 %v12980_v30, %v5843_v49  ;;  %v5916_v11 = vpop.f32.mrb[177].mxu1  ;;  %v5845_v24 = vpop.f32.mrb[178].mxu0  ;;  %7654 = vmatprep.subr.bf16.mxu0 %v7450_v8 }
 0x5e9   : > { %v6848_v18 = vadd.f32 %v12980_v30, %v5916_v11  ;;  %v6877_v10 = vadd.f32 %v12977_v56, %v5845_v24  ;;  %v5918_v12 = vpop.f32.mrb[178].mxu1  ;;  %7695 = vmatprep.subr.bf16.mxu1 %v7452_v7  ;;  %v5847_v15 = vpop.f32.mrb[179].mxu0  ;;  %7655 = vmatpush1.bf16.msra.mxu0 %v7449_v33  ;;  %v7101_v0 = vmax.f32 %v6845_v45, 0.0 }
 0x5ea   : > { %v6879_v43 = vadd.f32 %v12977_v56, %v5918_v12  ;;  %v6878_v17 = vadd.f32 %v12977_v56, %v5847_v15  ;;  %v5920_v46 = vpop.f32.mrb[179].mxu1  ;;  %7696 = vmatpush1.bf16.msra.mxu1 %v7451_v19  ;;  %v7103_v31 = vmax.f32 %v6847_v14, 0.0  ;;  %v7102_v28 = vmax.f32 %v6846_v55, 0.0 }
 0x5eb   : > { %v7133_v6 = vmax.f32 %v6877_v10, 0.0  ;;  %v6880_v3 = vadd.f32 %v12977_v56, %v5920_v46  ;;  %v7104_v8 = vmax.f32 %v6848_v18, 0.0 }
 0x5ec   : > { %v7135_v44 = vmax.f32 %v6879_v43, 0.0  ;;  %v7134_v63 = vmax.f32 %v6878_v17, 0.0  ;;  %9301 = vmatmul.mubr.msk.bf16.vlgmr.msra.gmra.mrb[248].mxu0 %vm7480_vm4, %v13087_v32 }
 0x5ed   : > { %v7357_v20 = vpack.c.bf16 %v7133_v6, %v7101_v0  ;;  %v7136_v33 = vmax.f32 %v6880_v3, 0.0  ;;  %9302 = vmatmul.mubr.msk.bf16.vlgmr.msra.gmra.mrb[248].mxu1 %vm7480_vm4, %v13087_v32  ;;  %7762 = vmatprep.mubr.bf16.mxu0 %v13640_v41 }
 0x5ee   : > { %v7359_v19 = vpack.c.bf16 %v7135_v44, %v7103_v31  ;;  %v7358_v7 = vpack.c.bf16 %v7134_v63, %v7102_v28  ;;  %v5851_v45 = vpop.f32.mrb[180].mxu0  ;;  %7803 = vmatprep.mubr.bf16.mxu1 %v13640_v41 }
 0x5ef   : > { %v7360_v1 = vpack.c.bf16 %v7136_v33, %v7104_v8  ;;  %v6909_v49 = vadd.f32 %v13013_v50, %v5851_v45  ;;  %v5924_v14 = vpop.f32.mrb[180].mxu1  ;;  %v5853_v55 = vpop.f32.mrb[181].mxu0 }
 0x5f0   : > { %v6911_v11 = vadd.f32 %v13013_v50, %v5924_v14  ;;  %v6910_v24 = vadd.f32 %v13013_v50, %v5853_v55  ;;  %v5926_v18 = vpop.f32.mrb[181].mxu1  ;;  %v5855_v10 = vpop.f32.mrb[182].mxu0  ;;  %7730 = vmatprep.subr.bf16.mxu0 %v7358_v7 }
 0x5f1   : > { %v6912_v12 = vadd.f32 %v13013_v50, %v5926_v18  ;;  %v6941_v15 = vadd.f32 %v13007_v38, %v5855_v10  ;;  %v5928_v43 = vpop.f32.mrb[182].mxu1  ;;  %7771 = vmatprep.subr.bf16.mxu1 %v7360_v1  ;;  %v5857_v17 = vpop.f32.mrb[183].mxu0  ;;  %7731 = vmatpush1.bf16.msra.mxu0 %v7357_v20  ;;  %v7165_v3 = vmax.f32 %v6909_v49, 0.0 }
 0x5f2   : > { %v6943_v46 = vadd.f32 %v13007_v38, %v5928_v43  ;;  %v6942_v0 = vadd.f32 %v13007_v38, %v5857_v17  ;;  %v5930_v6 = vpop.f32.mrb[183].mxu1  ;;  %7772 = vmatpush1.bf16.msra.mxu1 %v7359_v19  ;;  %v7167_v44 = vmax.f32 %v6911_v11, 0.0  ;;  %v7166_v63 = vmax.f32 %v6910_v24, 0.0 }
 0x5f3   : > { %v7197_v31 = vmax.f32 %v6941_v15, 0.0  ;;  %v6944_v28 = vadd.f32 %v13007_v38, %v5930_v6  ;;  %v7168_v7 = vmax.f32 %v6912_v12, 0.0 }
 0x5f4   : > { %v7199_v8 = vmax.f32 %v6943_v46, 0.0  ;;  %v7198_v33 = vmax.f32 %v6942_v0, 0.0 }
 0x5f5   : > { %v7389_v45 = vpack.c.bf16 %v7197_v31, %v7165_v3  ;;  %v7200_v14 = vmax.f32 %v6944_v28, 0.0 }
 0x5f6   : > { %v7391_v1 = vpack.c.bf16 %v7199_v8, %v7167_v44  ;;  %v7390_v55 = vpack.c.bf16 %v7198_v33, %v7166_v63  ;;  %v5861_v20 = vpop.f32.mrb[184].mxu0 }
 0x5f7   : > { %v7392_v18 = vpack.c.bf16 %v7200_v14, %v7168_v7  ;;  %v6973_v10 = vadd.f32 %v13035_v60, %v5861_v20  ;;  %v5934_v43 = vpop.f32.mrb[184].mxu1  ;;  %v5863_v17 = vpop.f32.mrb[185].mxu0 }
 0x5f8   : > { %v6975_v19 = vadd.f32 %v13035_v60, %v5934_v43  ;;  %v6974_v49 = vadd.f32 %v13035_v60, %v5863_v17  ;;  %v5936_v15 = vpop.f32.mrb[185].mxu1  ;;  %v5865_v11 = vpop.f32.mrb[186].mxu0  ;;  %7732 = vmatprep.subr.bf16.mxu0 %v7390_v55 }
 0x5f9   : > { %v6976_v24 = vadd.f32 %v13035_v60, %v5936_v15  ;;  %v7005_v12 = vadd.f32 %v13032_v53, %v5865_v11  ;;  %v5938_v46 = vpop.f32.mrb[186].mxu1  ;;  %7773 = vmatprep.subr.bf16.mxu1 %v7392_v18  ;;  %v5867_v0 = vpop.f32.mrb[187].mxu0  ;;  %7733 = vmatpush1.bf16.msra.mxu0 %v7389_v45  ;;  %v7229_v28 = vmax.f32 %v6973_v10, 0.0 }
 0x5fa   : > { %v7007_v6 = vadd.f32 %v13032_v53, %v5938_v46  ;;  %v7006_v3 = vadd.f32 %v13032_v53, %v5867_v0  ;;  %v5940_v31 = vpop.f32.mrb[187].mxu1  ;;  %7774 = vmatpush1.bf16.msra.mxu1 %v7391_v1  ;;  %v7231_v8 = vmax.f32 %v6975_v19, 0.0  ;;  %v7230_v33 = vmax.f32 %v6974_v49, 0.0 }
 0x5fb   : > { %v7261_v44 = vmax.f32 %v7005_v12, 0.0  ;;  %v7008_v63 = vadd.f32 %v13032_v53, %v5940_v31  ;;  %v7232_v55 = vmax.f32 %v6976_v24, 0.0 }
 0x5fc   : > { %v7263_v7 = vmax.f32 %v7007_v6, 0.0  ;;  %v7262_v14 = vmax.f32 %v7006_v3, 0.0 }
 0x5fd   : > { %v7421_v20 = vpack.c.bf16 %v7261_v44, %v7229_v28  ;;  %v7264_v43 = vmax.f32 %v7008_v63, 0.0 }
 0x5fe   : > { %v7423_v18 = vpack.c.bf16 %v7263_v7, %v7231_v8  ;;  %v7422_v17 = vpack.c.bf16 %v7262_v14, %v7230_v33  ;;  %v5871_v45 = vpop.f32.mrb[188].mxu0 }
 0x5ff   : > { %v7424_v15 = vpack.c.bf16 %v7264_v43, %v7232_v55  ;;  %v7037_v11 = vadd.f32 %v13054_v37, %v5871_v45  ;;  %v5944_v46 = vpop.f32.mrb[188].mxu1  ;;  %v5873_v0 = vpop.f32.mrb[189].mxu0 }
 0x600   : > { %v7039_v1 = vadd.f32 %v13054_v37, %v5944_v46  ;;  %v7038_v10 = vadd.f32 %v13054_v37, %v5873_v0  ;;  %v5946_v12 = vpop.f32.mrb[189].mxu1  ;;  %v5875_v19 = vpop.f32.mrb[190].mxu0  ;;  %7734 = vmatprep.subr.bf16.mxu0 %v7422_v17 }
 0x601   : > { %v7040_v49 = vadd.f32 %v13054_v37, %v5946_v12  ;;  %v7069_v24 = vadd.f32 %v13051_v36, %v5875_v19  ;;  %v5948_v6 = vpop.f32.mrb[190].mxu1  ;;  %7775 = vmatprep.subr.bf16.mxu1 %v7424_v15  ;;  %v5877_v3 = vpop.f32.mrb[191].mxu0  ;;  %7735 = vmatpush1.bf16.msra.mxu0 %v7421_v20  ;;  %v7293_v63 = vmax.f32 %v7037_v11, 0.0 }
 0x602   : > { %v7071_v31 = vadd.f32 %v13051_v36, %v5948_v6  ;;  %v7070_v28 = vadd.f32 %v13051_v36, %v5877_v3  ;;  %v5950_v44 = vpop.f32.mrb[191].mxu1  ;;  %7776 = vmatpush1.bf16.msra.mxu1 %v7423_v18  ;;  %v7295_v7 = vmax.f32 %v7039_v1, 0.0  ;;  %v7294_v14 = vmax.f32 %v7038_v10, 0.0 }
 0x603   : > { %v7325_v8 = vmax.f32 %v7069_v24, 0.0  ;;  %v7072_v33 = vadd.f32 %v13051_v36, %v5950_v44  ;;  %v7296_v17 = vmax.f32 %v7040_v49, 0.0 }
 0x604   : > { %v7327_v55 = vmax.f32 %v7071_v31, 0.0  ;;  %v7326_v43 = vmax.f32 %v7070_v28, 0.0 }
 0x605   : > { %v7453_v45 = vpack.c.bf16 %v7325_v8, %v7293_v63  ;;  %v7328_v46 = vmax.f32 %v7072_v33, 0.0 }
 0x606   : > { %v7455_v15 = vpack.c.bf16 %v7327_v55, %v7295_v7  ;;  %v7454_v0 = vpack.c.bf16 %v7326_v43, %v7294_v14  ;;  %v5987_v20 = vpop.f32.mrb[224].mxu0 }
 0x607   : > { %v7456_v12 = vpack.c.bf16 %v7328_v46, %v7296_v17  ;;  %v6849_v19 = vadd.f32 %v12980_v30, %v5987_v20  ;;  %v6060_v6 = vpop.f32.mrb[224].mxu1  ;;  %v5989_v3 = vpop.f32.mrb[225].mxu0 }
 0x608   : > { %v6851_v18 = vadd.f32 %v12980_v30, %v6060_v6  ;;  %v6850_v11 = vadd.f32 %v12980_v30, %v5989_v3  ;;  %v6062_v24 = vpop.f32.mrb[225].mxu1  ;;  %v5991_v1 = vpop.f32.mrb[226].mxu0  ;;  %7736 = vmatprep.subr.bf16.mxu0 %v7454_v0 }
 0x609   : > { %v6852_v10 = vadd.f32 %v12980_v30, %v6062_v24  ;;  %v6881_v49 = vadd.f32 %v12977_v56, %v5991_v1  ;;  %v6064_v31 = vpop.f32.mrb[226].mxu1  ;;  %7777 = vmatprep.subr.bf16.mxu1 %v7456_v12  ;;  %v5993_v28 = vpop.f32.mrb[227].mxu0  ;;  %7737 = vmatpush1.bf16.msra.mxu0 %v7453_v45  ;;  %v7105_v33 = vmax.f32 %v6849_v19, 0.0 }
 0x60a   : > { %v6883_v44 = vadd.f32 %v12977_v56, %v6064_v31  ;;  %v6882_v63 = vadd.f32 %v12977_v56, %v5993_v28  ;;  %v6066_v8 = vpop.f32.mrb[227].mxu1  ;;  %7778 = vmatpush1.bf16.msra.mxu1 %v7455_v15  ;;  %v7107_v55 = vmax.f32 %v6851_v18, 0.0  ;;  %v7106_v43 = vmax.f32 %v6850_v11, 0.0 }
 0x60b   : > { %v7137_v7 = vmax.f32 %v6881_v49, 0.0  ;;  %v6884_v14 = vadd.f32 %v12977_v56, %v6066_v8  ;;  %v7108_v0 = vmax.f32 %v6852_v10, 0.0 }
 0x60c   : > { %v7139_v17 = vmax.f32 %v6883_v44, 0.0  ;;  %v7138_v46 = vmax.f32 %v6882_v63, 0.0  ;;  %9303 = vmatmul.mubr.msk.bf16.vlgmr.msra.gmra.mrb[252].mxu0 %vm7480_vm4, %v13087_v32 }
 0x60d   : > { %v7361_v20 = vpack.c.bf16 %v7137_v7, %v7105_v33  ;;  %v7140_v45 = vmax.f32 %v6884_v14, 0.0  ;;  %9304 = vmatmul.mubr.msk.bf16.vlgmr.msra.gmra.mrb[252].mxu1 %vm7480_vm4, %v13087_v32  ;;  %7844 = vmatprep.mubr.bf16.mxu0 %v13640_v41 }
 0x60e   : > { %v7363_v15 = vpack.c.bf16 %v7139_v17, %v7107_v55  ;;  %v7362_v12 = vpack.c.bf16 %v7138_v46, %v7106_v43  ;;  %v5997_v19 = vpop.f32.mrb[228].mxu0  ;;  %7885 = vmatprep.mubr.bf16.mxu1 %v13640_v41 }
 0x60f   : > { %v7364_v6 = vpack.c.bf16 %v7140_v45, %v7108_v0  ;;  %v6913_v3 = vadd.f32 %v13013_v50, %v5997_v19  ;;  %v6070_v18 = vpop.f32.mrb[228].mxu1  ;;  %v5999_v11 = vpop.f32.mrb[229].mxu0 }
 0x610   : > { %v6915_v24 = vadd.f32 %v13013_v50, %v6070_v18  ;;  %v6914_v1 = vadd.f32 %v13013_v50, %v5999_v11  ;;  %v6072_v10 = vpop.f32.mrb[229].mxu1  ;;  %v6001_v49 = vpop.f32.mrb[230].mxu0  ;;  %7812 = vmatprep.subr.bf16.mxu0 %v7362_v12 }
 0x611   : > { %v6916_v32 = vadd.f32 %v13013_v50, %v6072_v10  ;;  %v6945_v31 = vadd.f32 %v13007_v38, %v6001_v49  ;;  %v6074_v28 = vpop.f32.mrb[230].mxu1  ;;  %7853 = vmatprep.subr.bf16.mxu1 %v7364_v6  ;;  %v6003_v44 = vpop.f32.mrb[231].mxu0  ;;  %7813 = vmatpush1.bf16.msra.mxu0 %v7361_v20  ;;  %v7169_v7 = vmax.f32 %v6913_v3, 0.0 }
 0x612   : > { %v6947_v63 = vadd.f32 %v13007_v38, %v6074_v28  ;;  %v6946_v8 = vadd.f32 %v13007_v38, %v6003_v44  ;;  %v6076_v33 = vpop.f32.mrb[231].mxu1  ;;  %7854 = vmatpush1.bf16.msra.mxu1 %v7363_v15  ;;  %v7171_v43 = vmax.f32 %v6915_v24, 0.0  ;;  %v7170_v17 = vmax.f32 %v6914_v1, 0.0 }
 0x613   : > { %v7201_v14 = vmax.f32 %v6945_v31, 0.0  ;;  %v6948_v55 = vadd.f32 %v13007_v38, %v6076_v33  ;;  %v7172_v45 = vmax.f32 %v6916_v32, 0.0 }
 0x614   : > { %v7203_v46 = vmax.f32 %v6947_v63, 0.0  ;;  %v7202_v0 = vmax.f32 %v6946_v8, 0.0 }
 0x615   : > { %v7393_v12 = vpack.c.bf16 %v7201_v14, %v7169_v7  ;;  %v7204_v19 = vmax.f32 %v6948_v55, 0.0 }
 0x616   : > { %v7395_v6 = vpack.c.bf16 %v7203_v46, %v7171_v43  ;;  %v7394_v18 = vpack.c.bf16 %v7202_v0, %v7170_v17  ;;  %v6007_v20 = vpop.f32.mrb[232].mxu0 }
 0x617   : > { %v7396_v11 = vpack.c.bf16 %v7204_v19, %v7172_v45  ;;  %v6977_v10 = vadd.f32 %v13035_v60, %v6007_v20  ;;  %v6080_v49 = vpop.f32.mrb[232].mxu1  ;;  %v6009_v28 = vpop.f32.mrb[233].mxu0 }
 0x618   : > { %v6979_v15 = vadd.f32 %v13035_v60, %v6080_v49  ;;  %v6978_v3 = vadd.f32 %v13035_v60, %v6009_v28  ;;  %v6082_v31 = vpop.f32.mrb[233].mxu1  ;;  %v6011_v24 = vpop.f32.mrb[234].mxu0  ;;  %7814 = vmatprep.subr.bf16.mxu0 %v7394_v18 }
 0x619   : > { %v6980_v1 = vadd.f32 %v13035_v60, %v6082_v31  ;;  %v7009_v32 = vadd.f32 %v13032_v53, %v6011_v24  ;;  %v6084_v44 = vpop.f32.mrb[234].mxu1  ;;  %7855 = vmatprep.subr.bf16.mxu1 %v7396_v11  ;;  %v6013_v63 = vpop.f32.mrb[235].mxu0  ;;  %7815 = vmatpush1.bf16.msra.mxu0 %v7393_v12  ;;  %v7233_v14 = vmax.f32 %v6977_v10, 0.0 }
 0x61a   : > { %v7011_v8 = vadd.f32 %v13032_v53, %v6084_v44  ;;  %v7010_v33 = vadd.f32 %v13032_v53, %v6013_v63  ;;  %v6086_v7 = vpop.f32.mrb[235].mxu1  ;;  %7856 = vmatpush1.bf16.msra.mxu1 %v7395_v6  ;;  %v7235_v17 = vmax.f32 %v6979_v15, 0.0  ;;  %v7234_v46 = vmax.f32 %v6978_v3, 0.0 }
 0x61b   : > { %v7265_v55 = vmax.f32 %v7009_v32, 0.0  ;;  %v7012_v43 = vadd.f32 %v13032_v53, %v6086_v7  ;;  %v7236_v19 = vmax.f32 %v6980_v1, 0.0 }
 0x61c   : > { %v7267_v0 = vmax.f32 %v7011_v8, 0.0  ;;  %v7266_v45 = vmax.f32 %v7010_v33, 0.0 }
 0x61d   : > { %v7425_v18 = vpack.c.bf16 %v7265_v55, %v7233_v14  ;;  %v7268_v20 = vmax.f32 %v7012_v43, 0.0 }
 0x61e   : > { %v7427_v11 = vpack.c.bf16 %v7267_v0, %v7235_v17  ;;  %v7426_v49 = vpack.c.bf16 %v7266_v45, %v7234_v46  ;;  %v6017_v12 = vpop.f32.mrb[236].mxu0 }
 0x61f   : > { %v7428_v28 = vpack.c.bf16 %v7268_v20, %v7236_v19  ;;  %v7041_v31 = vadd.f32 %v13054_v37, %v6017_v12  ;;  %v6090_v24 = vpop.f32.mrb[236].mxu1  ;;  %v6019_v44 = vpop.f32.mrb[237].mxu0 }
 0x620   : > { %v7043_v6 = vadd.f32 %v13054_v37, %v6090_v24  ;;  %v7042_v10 = vadd.f32 %v13054_v37, %v6019_v44  ;;  %v6092_v32 = vpop.f32.mrb[237].mxu1  ;;  %v6021_v15 = vpop.f32.mrb[238].mxu0  ;;  %7816 = vmatprep.subr.bf16.mxu0 %v7426_v49 }
 0x621   : > { %v7044_v3 = vadd.f32 %v13054_v37, %v6092_v32  ;;  %v7073_v1 = vadd.f32 %v13051_v36, %v6021_v15  ;;  %v6094_v63 = vpop.f32.mrb[238].mxu1  ;;  %7857 = vmatprep.subr.bf16.mxu1 %v7428_v28  ;;  %v6023_v8 = vpop.f32.mrb[239].mxu0  ;;  %7817 = vmatpush1.bf16.msra.mxu0 %v7425_v18  ;;  %v7297_v55 = vmax.f32 %v7041_v31, 0.0 }
 0x622   : > { %v7075_v33 = vadd.f32 %v13051_v36, %v6094_v63  ;;  %v7074_v7 = vadd.f32 %v13051_v36, %v6023_v8  ;;  %v6096_v14 = vpop.f32.mrb[239].mxu1  ;;  %7858 = vmatpush1.bf16.msra.mxu1 %v7427_v11  ;;  %v7299_v46 = vmax.f32 %v7043_v6, 0.0  ;;  %v7298_v0 = vmax.f32 %v7042_v10, 0.0 }
 0x623   : > { %v7329_v43 = vmax.f32 %v7073_v1, 0.0  ;;  %v7076_v17 = vadd.f32 %v13051_v36, %v6096_v14  ;;  %v7300_v20 = vmax.f32 %v7044_v3, 0.0 }
 0x624   : > { %v7331_v45 = vmax.f32 %v7075_v33, 0.0  ;;  %v7330_v19 = vmax.f32 %v7074_v7, 0.0 }
 0x625   : > { %v7457_v49 = vpack.c.bf16 %v7329_v43, %v7297_v55  ;;  %v7332_v12 = vmax.f32 %v7076_v17, 0.0 }
 0x626   : > { %v7459_v28 = vpack.c.bf16 %v7331_v45, %v7299_v46  ;;  %v7458_v24 = vpack.c.bf16 %v7330_v19, %v7298_v0  ;;  %v6133_v18 = vpop.f32.mrb[16].mxu0 }
 0x627   : > { %v7460_v44 = vpack.c.bf16 %v7332_v12, %v7300_v20  ;;  %v6853_v32 = vadd.f32 %v12980_v30, %v6133_v18  ;;  %v6206_v15 = vpop.f32.mrb[16].mxu1  ;;  %v6135_v63 = vpop.f32.mrb[17].mxu0  ;;  %v13238_v12 = vld [vmem:[#allocation10] sm:$0x1] }
 0x628   : > { %v6855_v11 = vadd.f32 %v12980_v30, %v6206_v15  ;;  %v6854_v31 = vadd.f32 %v12980_v30, %v6135_v63  ;;  %v6208_v1 = vpop.f32.mrb[17].mxu1  ;;  %v6137_v6 = vpop.f32.mrb[18].mxu0  ;;  %7818 = vmatprep.subr.bf16.mxu0 %v7458_v24 }
 0x629   : > { %v6856_v10 = vadd.f32 %v12980_v30, %v6208_v1  ;;  %v6885_v3 = vadd.f32 %v12977_v56, %v6137_v6  ;;  %v6210_v8 = vpop.f32.mrb[18].mxu1  ;;  %7859 = vmatprep.subr.bf16.mxu1 %v7460_v44  ;;  %v6139_v33 = vpop.f32.mrb[19].mxu0  ;;  %7819 = vmatpush1.bf16.msra.mxu0 %v7457_v49  ;;  %v7109_v43 = vmax.f32 %v6853_v32, 0.0 }
 0x62a   : > { %v6887_v7 = vadd.f32 %v12977_v56, %v6210_v8  ;;  %v6886_v14 = vadd.f32 %v12977_v56, %v6139_v33  ;;  %v6212_v55 = vpop.f32.mrb[19].mxu1  ;;  %7860 = vmatpush1.bf16.msra.mxu1 %v7459_v28  ;;  %v7111_v0 = vmax.f32 %v6855_v11, 0.0  ;;  %v7110_v45 = vmax.f32 %v6854_v31, 0.0 }
 0x62b   : > { %v7141_v17 = vmax.f32 %v6885_v3, 0.0  ;;  %v6888_v46 = vadd.f32 %v12977_v56, %v6212_v55  ;;  %v7112_v49 = vmax.f32 %v6856_v10, 0.0 }
 0x62c   : > { %v7143_v19 = vmax.f32 %v6887_v7, 0.0  ;;  %v7142_v20 = vmax.f32 %v6886_v14, 0.0  ;;  %9305 = vmatmul.mubr.msk.bf16.vlgmr.msra.gmra.mrb[0].mxu0 %vm7480_vm4, %v13238_v12 }
 0x62d   : > { %v7365_v24 = vpack.c.bf16 %v7141_v17, %v7109_v43  ;;  %v7144_v18 = vmax.f32 %v6888_v46, 0.0  ;;  %9306 = vmatmul.mubr.msk.bf16.vlgmr.msra.gmra.mrb[0].mxu1 %vm7480_vm4, %v13238_v12  ;;  %7926 = vmatprep.mubr.bf16.mxu0 %v13640_v41 }
 0x62e   : > { %v7367_v28 = vpack.c.bf16 %v7143_v19, %v7111_v0  ;;  %v7366_v44 = vpack.c.bf16 %v7142_v20, %v7110_v45  ;;  %v6143_v32 = vpop.f32.mrb[20].mxu0  ;;  %7967 = vmatprep.mubr.bf16.mxu1 %v13640_v41 }
 0x62f   : > { %v7368_v15 = vpack.c.bf16 %v7144_v18, %v7112_v49  ;;  %v6917_v63 = vadd.f32 %v13013_v50, %v6143_v32  ;;  %v6216_v11 = vpop.f32.mrb[20].mxu1  ;;  %v6145_v31 = vpop.f32.mrb[21].mxu0 }
 0x630   : > { %v6919_v1 = vadd.f32 %v13013_v50, %v6216_v11  ;;  %v6918_v6 = vadd.f32 %v13013_v50, %v6145_v31  ;;  %v6218_v10 = vpop.f32.mrb[21].mxu1  ;;  %v6147_v3 = vpop.f32.mrb[22].mxu0  ;;  %7894 = vmatprep.subr.bf16.mxu0 %v7366_v44 }
 0x631   : > { %v6920_v8 = vadd.f32 %v13013_v50, %v6218_v10  ;;  %v6949_v33 = vadd.f32 %v13007_v38, %v6147_v3  ;;  %v6220_v7 = vpop.f32.mrb[22].mxu1  ;;  %7935 = vmatprep.subr.bf16.mxu1 %v7368_v15  ;;  %v6149_v14 = vpop.f32.mrb[23].mxu0  ;;  %7895 = vmatpush1.bf16.msra.mxu0 %v7365_v24  ;;  %v7173_v46 = vmax.f32 %v6917_v63, 0.0 }
 0x632   : > { %v6951_v55 = vadd.f32 %v13007_v38, %v6220_v7  ;;  %v6950_v43 = vadd.f32 %v13007_v38, %v6149_v14  ;;  %v6222_v17 = vpop.f32.mrb[23].mxu1  ;;  %7936 = vmatpush1.bf16.msra.mxu1 %v7367_v28  ;;  %v7175_v19 = vmax.f32 %v6919_v1, 0.0  ;;  %v7174_v20 = vmax.f32 %v6918_v6, 0.0 }
 0x633   : > { %v7205_v0 = vmax.f32 %v6949_v33, 0.0  ;;  %v6952_v45 = vadd.f32 %v13007_v38, %v6222_v17  ;;  %v7176_v44 = vmax.f32 %v6920_v8, 0.0 }
 0x634   : > { %v7207_v49 = vmax.f32 %v6951_v55, 0.0  ;;  %v7206_v18 = vmax.f32 %v6950_v43, 0.0 }
 0x635   : > { %v7397_v32 = vpack.c.bf16 %v7205_v0, %v7173_v46  ;;  %v7208_v11 = vmax.f32 %v6952_v45, 0.0 }
 0x636   : > { %v7399_v15 = vpack.c.bf16 %v7207_v49, %v7175_v19  ;;  %v7398_v31 = vpack.c.bf16 %v7206_v18, %v7174_v20  ;;  %v6153_v24 = vpop.f32.mrb[24].mxu0 }
 0x637   : > { %v7400_v10 = vpack.c.bf16 %v7208_v11, %v7176_v44  ;;  %v6981_v3 = vadd.f32 %v13035_v60, %v6153_v24  ;;  %v6226_v7 = vpop.f32.mrb[24].mxu1  ;;  %v6155_v14 = vpop.f32.mrb[25].mxu0 }
 0x638   : > { %v6983_v28 = vadd.f32 %v13035_v60, %v6226_v7  ;;  %v6982_v63 = vadd.f32 %v13035_v60, %v6155_v14  ;;  %v6228_v33 = vpop.f32.mrb[25].mxu1  ;;  %v6157_v1 = vpop.f32.mrb[26].mxu0  ;;  %7896 = vmatprep.subr.bf16.mxu0 %v7398_v31 }
 0x639   : > { %v6984_v6 = vadd.f32 %v13035_v60, %v6228_v33  ;;  %v7013_v8 = vadd.f32 %v13032_v53, %v6157_v1  ;;  %v6230_v55 = vpop.f32.mrb[26].mxu1  ;;  %7937 = vmatprep.subr.bf16.mxu1 %v7400_v10  ;;  %v6159_v43 = vpop.f32.mrb[27].mxu0  ;;  %7897 = vmatpush1.bf16.msra.mxu0 %v7397_v32  ;;  %v7237_v45 = vmax.f32 %v6981_v3, 0.0 }
 0x63a   : > { %v7015_v17 = vadd.f32 %v13032_v53, %v6230_v55  ;;  %v7014_v46 = vadd.f32 %v13032_v53, %v6159_v43  ;;  %v6232_v0 = vpop.f32.mrb[27].mxu1  ;;  %7938 = vmatpush1.bf16.msra.mxu1 %v7399_v15  ;;  %v7239_v49 = vmax.f32 %v6983_v28, 0.0  ;;  %v7238_v18 = vmax.f32 %v6982_v63, 0.0 }
 0x63b   : > { %v7269_v19 = vmax.f32 %v7013_v8, 0.0  ;;  %v7016_v20 = vadd.f32 %v13032_v53, %v6232_v0  ;;  %v7240_v31 = vmax.f32 %v6984_v6, 0.0 }
 0x63c   : > { %v7271_v44 = vmax.f32 %v7015_v17, 0.0  ;;  %v7270_v11 = vmax.f32 %v7014_v46, 0.0 }
 0x63d   : > { %v7429_v24 = vpack.c.bf16 %v7269_v19, %v7237_v45  ;;  %v7272_v7 = vmax.f32 %v7016_v20, 0.0 }
 0x63e   : > { %v7431_v10 = vpack.c.bf16 %v7271_v44, %v7239_v49  ;;  %v7430_v14 = vpack.c.bf16 %v7270_v11, %v7238_v18  ;;  %v6163_v32 = vpop.f32.mrb[28].mxu0 }
 0x63f   : > { %v7432_v33 = vpack.c.bf16 %v7272_v7, %v7240_v31  ;;  %v7045_v1 = vadd.f32 %v13054_v37, %v6163_v32  ;;  %v6236_v55 = vpop.f32.mrb[28].mxu1  ;;  %v6165_v43 = vpop.f32.mrb[29].mxu0 }
 0x640   : > { %v7047_v15 = vadd.f32 %v13054_v37, %v6236_v55  ;;  %v7046_v3 = vadd.f32 %v13054_v37, %v6165_v43  ;;  %v6238_v8 = vpop.f32.mrb[29].mxu1  ;;  %v6167_v28 = vpop.f32.mrb[30].mxu0  ;;  %7898 = vmatprep.subr.bf16.mxu0 %v7430_v14 }
 0x641   : > { %v7048_v63 = vadd.f32 %v13054_v37, %v6238_v8  ;;  %v7077_v6 = vadd.f32 %v13051_v36, %v6167_v28  ;;  %v6240_v17 = vpop.f32.mrb[30].mxu1  ;;  %7939 = vmatprep.subr.bf16.mxu1 %v7432_v33  ;;  %v6169_v46 = vpop.f32.mrb[31].mxu0  ;;  %7899 = vmatpush1.bf16.msra.mxu0 %v7429_v24  ;;  %v7301_v20 = vmax.f32 %v7045_v1, 0.0 }
 0x642   : > { %v7079_v0 = vadd.f32 %v13051_v36, %v6240_v17  ;;  %v7078_v45 = vadd.f32 %v13051_v36, %v6169_v46  ;;  %v6242_v19 = vpop.f32.mrb[31].mxu1  ;;  %7940 = vmatpush1.bf16.msra.mxu1 %v7431_v10  ;;  %v7303_v44 = vmax.f32 %v7047_v15, 0.0  ;;  %v7302_v11 = vmax.f32 %v7046_v3, 0.0 }
 0x643   : > { %v7333_v49 = vmax.f32 %v7077_v6, 0.0  ;;  %v7080_v18 = vadd.f32 %v13051_v36, %v6242_v19  ;;  %v7304_v14 = vmax.f32 %v7048_v63, 0.0 }
 0x644   : > { %v7335_v31 = vmax.f32 %v7079_v0, 0.0  ;;  %v7334_v7 = vmax.f32 %v7078_v45, 0.0 }
 0x645   : > { %v7461_v32 = vpack.c.bf16 %v7333_v49, %v7301_v20  ;;  %v7336_v55 = vmax.f32 %v7080_v18, 0.0 }
 0x646   : > { %v7463_v33 = vpack.c.bf16 %v7335_v31, %v7303_v44  ;;  %v7462_v43 = vpack.c.bf16 %v7334_v7, %v7302_v11  ;;  %v6279_v24 = vpop.f32.mrb[96].mxu0 }
 0x647   : > { %v7464_v8 = vpack.c.bf16 %v7336_v55, %v7304_v14  ;;  %v6857_v28 = vadd.f32 %v12980_v30, %v6279_v24  ;;  %v6352_v17 = vpop.f32.mrb[96].mxu1  ;;  %v6281_v46 = vpop.f32.mrb[97].mxu0 }
 0x648   : > { %v6859_v10 = vadd.f32 %v12980_v30, %v6352_v17  ;;  %v6858_v1 = vadd.f32 %v12980_v30, %v6281_v46  ;;  %v6354_v6 = vpop.f32.mrb[97].mxu1  ;;  %v6283_v15 = vpop.f32.mrb[98].mxu0  ;;  %7900 = vmatprep.subr.bf16.mxu0 %v7462_v43 }
 0x649   : > { %v6860_v3 = vadd.f32 %v12980_v30, %v6354_v6  ;;  %v6889_v63 = vadd.f32 %v12977_v56, %v6283_v15  ;;  %v6356_v0 = vpop.f32.mrb[98].mxu1  ;;  %7941 = vmatprep.subr.bf16.mxu1 %v7464_v8  ;;  %v6285_v45 = vpop.f32.mrb[99].mxu0  ;;  %7901 = vmatpush1.bf16.msra.mxu0 %v7461_v32  ;;  %v7113_v18 = vmax.f32 %v6857_v28, 0.0 }
 0x64a   : > { %v6891_v19 = vadd.f32 %v12977_v56, %v6356_v0  ;;  %v6890_v20 = vadd.f32 %v12977_v56, %v6285_v45  ;;  %v6358_v49 = vpop.f32.mrb[99].mxu1  ;;  %7942 = vmatpush1.bf16.msra.mxu1 %v7463_v33  ;;  %v7115_v31 = vmax.f32 %v6859_v10, 0.0  ;;  %v7114_v7 = vmax.f32 %v6858_v1, 0.0 }
 0x64b   : > { %v7145_v44 = vmax.f32 %v6889_v63, 0.0  ;;  %v6892_v11 = vadd.f32 %v12977_v56, %v6358_v49  ;;  %v7116_v43 = vmax.f32 %v6860_v3, 0.0 }
 0x64c   : > { %v7147_v14 = vmax.f32 %v6891_v19, 0.0  ;;  %v7146_v55 = vmax.f32 %v6890_v20, 0.0  ;;  %9307 = vmatmul.mubr.msk.bf16.vlgmr.msra.gmra.mrb[4].mxu0 %vm7480_vm4, %v13238_v12 }
 0x64d   : > { %v7369_v24 = vpack.c.bf16 %v7145_v44, %v7113_v18  ;;  %v7148_v32 = vmax.f32 %v6892_v11, 0.0  ;;  %9308 = vmatmul.mubr.msk.bf16.vlgmr.msra.gmra.mrb[4].mxu1 %vm7480_vm4, %v13238_v12  ;;  %8008 = vmatprep.mubr.bf16.mxu0 %v13640_v41 }
 0x64e   : > { %v7371_v33 = vpack.c.bf16 %v7147_v14, %v7115_v31  ;;  %v7370_v8 = vpack.c.bf16 %v7146_v55, %v7114_v7  ;;  %v6289_v28 = vpop.f32.mrb[100].mxu0  ;;  %8049 = vmatprep.mubr.bf16.mxu1 %v13640_v41 }
 0x64f   : > { %v7372_v17 = vpack.c.bf16 %v7148_v32, %v7116_v43  ;;  %v6921_v46 = vadd.f32 %v13013_v50, %v6289_v28  ;;  %v6362_v10 = vpop.f32.mrb[100].mxu1  ;;  %v6291_v1 = vpop.f32.mrb[101].mxu0 }
 0x650   : > { %v6923_v6 = vadd.f32 %v13013_v50, %v6362_v10  ;;  %v6922_v15 = vadd.f32 %v13013_v50, %v6291_v1  ;;  %v6364_v3 = vpop.f32.mrb[101].mxu1  ;;  %v6293_v63 = vpop.f32.mrb[102].mxu0  ;;  %7976 = vmatprep.subr.bf16.mxu0 %v7370_v8 }
 0x651   : > { %v6924_v0 = vadd.f32 %v13013_v50, %v6364_v3  ;;  %v6953_v45 = vadd.f32 %v13007_v38, %v6293_v63  ;;  %v6366_v19 = vpop.f32.mrb[102].mxu1  ;;  %8017 = vmatprep.subr.bf16.mxu1 %v7372_v17  ;;  %v6295_v20 = vpop.f32.mrb[103].mxu0  ;;  %7977 = vmatpush1.bf16.msra.mxu0 %v7369_v24  ;;  %v7177_v11 = vmax.f32 %v6921_v46, 0.0 }
 0x652   : > { %v6955_v49 = vadd.f32 %v13007_v38, %v6366_v19  ;;  %v6954_v18 = vadd.f32 %v13007_v38, %v6295_v20  ;;  %v6368_v44 = vpop.f32.mrb[103].mxu1  ;;  %8018 = vmatpush1.bf16.msra.mxu1 %v7371_v33  ;;  %v7179_v14 = vmax.f32 %v6923_v6, 0.0  ;;  %v7178_v55 = vmax.f32 %v6922_v15, 0.0 }
 0x653   : > { %v7209_v31 = vmax.f32 %v6953_v45, 0.0  ;;  %v6956_v7 = vadd.f32 %v13007_v38, %v6368_v44  ;;  %v7180_v8 = vmax.f32 %v6924_v0, 0.0 }
 0x654   : > { %v7211_v43 = vmax.f32 %v6955_v49, 0.0  ;;  %v7210_v32 = vmax.f32 %v6954_v18, 0.0 }
 0x655   : > { %v7401_v28 = vpack.c.bf16 %v7209_v31, %v7177_v11  ;;  %v7212_v10 = vmax.f32 %v6956_v7, 0.0 }
 0x656   : > { %v7403_v17 = vpack.c.bf16 %v7211_v43, %v7179_v14  ;;  %v7402_v1 = vpack.c.bf16 %v7210_v32, %v7178_v55  ;;  %v6299_v24 = vpop.f32.mrb[104].mxu0 }
 0x657   : > { %v7404_v3 = vpack.c.bf16 %v7212_v10, %v7180_v8  ;;  %v6985_v63 = vadd.f32 %v13035_v60, %v6299_v24  ;;  %v6372_v19 = vpop.f32.mrb[104].mxu1  ;;  %v6301_v20 = vpop.f32.mrb[105].mxu0 }
 0x658   : > { %v6987_v33 = vadd.f32 %v13035_v60, %v6372_v19  ;;  %v6986_v46 = vadd.f32 %v13035_v60, %v6301_v20  ;;  %v6374_v45 = vpop.f32.mrb[105].mxu1  ;;  %v6303_v6 = vpop.f32.mrb[106].mxu0  ;;  %7978 = vmatprep.subr.bf16.mxu0 %v7402_v1 }
 0x659   : > { %v6988_v15 = vadd.f32 %v13035_v60, %v6374_v45  ;;  %v7017_v0 = vadd.f32 %v13032_v53, %v6303_v6  ;;  %v6376_v49 = vpop.f32.mrb[106].mxu1  ;;  %8019 = vmatprep.subr.bf16.mxu1 %v7404_v3  ;;  %v6305_v18 = vpop.f32.mrb[107].mxu0  ;;  %7979 = vmatpush1.bf16.msra.mxu0 %v7401_v28  ;;  %v7241_v7 = vmax.f32 %v6985_v63, 0.0 }
 0x65a   : > { %v7019_v44 = vadd.f32 %v13032_v53, %v6376_v49  ;;  %v7018_v11 = vadd.f32 %v13032_v53, %v6305_v18  ;;  %v6378_v31 = vpop.f32.mrb[107].mxu1  ;;  %8020 = vmatpush1.bf16.msra.mxu1 %v7403_v17  ;;  %v7243_v43 = vmax.f32 %v6987_v33, 0.0  ;;  %v7242_v32 = vmax.f32 %v6986_v46, 0.0 }
 0x65b   : > { %v7273_v14 = vmax.f32 %v7017_v0, 0.0  ;;  %v7020_v55 = vadd.f32 %v13032_v53, %v6378_v31  ;;  %v7244_v1 = vmax.f32 %v6988_v15, 0.0 }
 0x65c   : > { %v7275_v8 = vmax.f32 %v7019_v44, 0.0  ;;  %v7274_v10 = vmax.f32 %v7018_v11, 0.0 }
 0x65d   : > { %v7433_v24 = vpack.c.bf16 %v7273_v14, %v7241_v7  ;;  %v7276_v19 = vmax.f32 %v7020_v55, 0.0 }
 0x65e   : > { %v7435_v3 = vpack.c.bf16 %v7275_v8, %v7243_v43  ;;  %v7434_v20 = vpack.c.bf16 %v7274_v10, %v7242_v32  ;;  %v6309_v28 = vpop.f32.mrb[108].mxu0 }
 0x65f   : > { %v7436_v45 = vpack.c.bf16 %v7276_v19, %v7244_v1  ;;  %v7049_v6 = vadd.f32 %v13054_v37, %v6309_v28  ;;  %v6382_v49 = vpop.f32.mrb[108].mxu1  ;;  %v6311_v18 = vpop.f32.mrb[109].mxu0 }
 0x660   : > { %v7051_v17 = vadd.f32 %v13054_v37, %v6382_v49  ;;  %v7050_v63 = vadd.f32 %v13054_v37, %v6311_v18  ;;  %v6384_v0 = vpop.f32.mrb[109].mxu1  ;;  %v6313_v33 = vpop.f32.mrb[110].mxu0  ;;  %7980 = vmatprep.subr.bf16.mxu0 %v7434_v20 }
 0x661   : > { %v7052_v46 = vadd.f32 %v13054_v37, %v6384_v0  ;;  %v7081_v15 = vadd.f32 %v13051_v36, %v6313_v33  ;;  %v6386_v44 = vpop.f32.mrb[110].mxu1  ;;  %8021 = vmatprep.subr.bf16.mxu1 %v7436_v45  ;;  %v6315_v11 = vpop.f32.mrb[111].mxu0  ;;  %7981 = vmatpush1.bf16.msra.mxu0 %v7433_v24  ;;  %v7305_v55 = vmax.f32 %v7049_v6, 0.0 }
 0x662   : > { %v7083_v31 = vadd.f32 %v13051_v36, %v6386_v44  ;;  %v7082_v7 = vadd.f32 %v13051_v36, %v6315_v11  ;;  %v6388_v14 = vpop.f32.mrb[111].mxu1  ;;  %8022 = vmatpush1.bf16.msra.mxu1 %v7435_v3  ;;  %v7307_v8 = vmax.f32 %v7051_v17, 0.0  ;;  %v7306_v10 = vmax.f32 %v7050_v63, 0.0 }
 0x663   : > { %v7337_v43 = vmax.f32 %v7081_v15, 0.0  ;;  %v7084_v32 = vadd.f32 %v13051_v36, %v6388_v14  ;;  %v7308_v20 = vmax.f32 %v7052_v46, 0.0 }
 0x664   : > { %v7339_v1 = vmax.f32 %v7083_v31, 0.0  ;;  %v7338_v19 = vmax.f32 %v7082_v7, 0.0 }
 0x665   : > { %v7465_v28 = vpack.c.bf16 %v7337_v43, %v7305_v55  ;;  %v7340_v49 = vmax.f32 %v7084_v32, 0.0 }
 0x666   : > { %v7467_v45 = vpack.c.bf16 %v7339_v1, %v7307_v8  ;;  %v7466_v18 = vpack.c.bf16 %v7338_v19, %v7306_v10  ;;  %v6425_v24 = vpop.f32.mrb[160].mxu0 }
 0x667   : > { %v7468_v0 = vpack.c.bf16 %v7340_v49, %v7308_v20  ;;  %v6861_v33 = vadd.f32 %v12980_v30, %v6425_v24  ;;  %v6498_v44 = vpop.f32.mrb[160].mxu1  ;;  %v6427_v11 = vpop.f32.mrb[161].mxu0 }
 0x668   : > { %v6863_v3 = vadd.f32 %v12980_v30, %v6498_v44  ;;  %v6862_v6 = vadd.f32 %v12980_v30, %v6427_v11  ;;  %v6500_v15 = vpop.f32.mrb[161].mxu1  ;;  %v6429_v17 = vpop.f32.mrb[162].mxu0  ;;  %7982 = vmatprep.subr.bf16.mxu0 %v7466_v18 }
 0x669   : > { %v6864_v63 = vadd.f32 %v12980_v30, %v6500_v15  ;;  %v6893_v46 = vadd.f32 %v12977_v56, %v6429_v17  ;;  %v6502_v31 = vpop.f32.mrb[162].mxu1  ;;  %8023 = vmatprep.subr.bf16.mxu1 %v7468_v0  ;;  %v6431_v7 = vpop.f32.mrb[163].mxu0  ;;  %7983 = vmatpush1.bf16.msra.mxu0 %v7465_v28  ;;  %v7117_v32 = vmax.f32 %v6861_v33, 0.0 }
 0x66a   : > { %v6895_v14 = vadd.f32 %v12977_v56, %v6502_v31  ;;  %v6894_v55 = vadd.f32 %v12977_v56, %v6431_v7  ;;  %v6504_v43 = vpop.f32.mrb[163].mxu1  ;;  %8024 = vmatpush1.bf16.msra.mxu1 %v7467_v45  ;;  %v7119_v1 = vmax.f32 %v6863_v3, 0.0  ;;  %v7118_v19 = vmax.f32 %v6862_v6, 0.0 }
 0x66b   : > { %v7149_v8 = vmax.f32 %v6893_v46, 0.0  ;;  %v6896_v10 = vadd.f32 %v12977_v56, %v6504_v43  ;;  %v7120_v49 = vmax.f32 %v6864_v63, 0.0 }
 0x66c   : > { %v7151_v20 = vmax.f32 %v6895_v14, 0.0  ;;  %v7150_v30 = vmax.f32 %v6894_v55, 0.0  ;;  %9309 = vmatmul.mubr.msk.bf16.vlgmr.msra.gmra.mrb[8].mxu0 %vm7480_vm4, %v13238_v12 }
 0x66d   : > { %v7373_v18 = vpack.c.bf16 %v7149_v8, %v7117_v32  ;;  %v7152_v28 = vmax.f32 %v6896_v10, 0.0  ;;  %9310 = vmatmul.mubr.msk.bf16.vlgmr.msra.gmra.mrb[8].mxu1 %vm7480_vm4, %v13238_v12  ;;  %8090 = vmatprep.mubr.bf16.mxu0 %v13640_v41 }
 0x66e   : > { %v7375_v45 = vpack.c.bf16 %v7151_v20, %v7119_v1  ;;  %v7374_v24 = vpack.c.bf16 %v7150_v30, %v7118_v19  ;;  %v6435_v0 = vpop.f32.mrb[164].mxu0  ;;  %8131 = vmatprep.mubr.bf16.mxu1 %v13640_v41 }
 0x66f   : > { %v7376_v56 = vpack.c.bf16 %v7152_v28, %v7120_v49  ;;  %v6925_v33 = vadd.f32 %v13013_v50, %v6435_v0  ;;  %v6508_v44 = vpop.f32.mrb[164].mxu1  ;;  %v6437_v11 = vpop.f32.mrb[165].mxu0 }
 0x670   : > { %v6927_v3 = vadd.f32 %v13013_v50, %v6508_v44  ;;  %v6926_v6 = vadd.f32 %v13013_v50, %v6437_v11  ;;  %v6510_v15 = vpop.f32.mrb[165].mxu1  ;;  %v6439_v17 = vpop.f32.mrb[166].mxu0  ;;  %8058 = vmatprep.subr.bf16.mxu0 %v7374_v24 }
 0x671   : > { %v6928_v63 = vadd.f32 %v13013_v50, %v6510_v15  ;;  %v6957_v46 = vadd.f32 %v13007_v38, %v6439_v17  ;;  %v6512_v31 = vpop.f32.mrb[166].mxu1  ;;  %8099 = vmatprep.subr.bf16.mxu1 %v7376_v56  ;;  %v6441_v7 = vpop.f32.mrb[167].mxu0  ;;  %8059 = vmatpush1.bf16.msra.mxu0 %v7373_v18  ;;  %v7181_v43 = vmax.f32 %v6925_v33, 0.0 }
 0x672   : > { %v6959_v41 = vadd.f32 %v13007_v38, %v6512_v31  ;;  %v6958_v14 = vadd.f32 %v13007_v38, %v6441_v7  ;;  %v6514_v55 = vpop.f32.mrb[167].mxu1  ;;  %8100 = vmatpush1.bf16.msra.mxu1 %v7375_v45  ;;  %v7183_v10 = vmax.f32 %v6927_v3, 0.0  ;;  %v7182_v1 = vmax.f32 %v6926_v6, 0.0 }
 0x673   : > { %v7213_v32 = vmax.f32 %v6957_v46, 0.0  ;;  %v6960_v8 = vadd.f32 %v13007_v38, %v6514_v55  ;;  %v7184_v20 = vmax.f32 %v6928_v63, 0.0 }
 0x674   : > { %v7215_v19 = vmax.f32 %v6959_v41, 0.0  ;;  %v7214_v50 = vmax.f32 %v6958_v14, 0.0 }
 0x675   : > { %v7405_v30 = vpack.c.bf16 %v7213_v32, %v7181_v43  ;;  %v7216_v49 = vmax.f32 %v6960_v8, 0.0 }
 0x676   : > { %v7407_v28 = vpack.c.bf16 %v7215_v19, %v7183_v10  ;;  %v7406_v24 = vpack.c.bf16 %v7214_v50, %v7182_v1  ;;  %v6445_v18 = vpop.f32.mrb[168].mxu0 }
 0x677   : > { %v7408_v0 = vpack.c.bf16 %v7216_v49, %v7184_v20  ;;  %v6989_v56 = vadd.f32 %v13035_v60, %v6445_v18  ;;  %v6518_v44 = vpop.f32.mrb[168].mxu1  ;;  %v6447_v11 = vpop.f32.mrb[169].mxu0 }
 0x678   : > { %v6991_v45 = vadd.f32 %v13035_v60, %v6518_v44  ;;  %v6990_v33 = vadd.f32 %v13035_v60, %v6447_v11  ;;  %v6520_v38 = vpop.f32.mrb[169].mxu1  ;;  %v6449_v3 = vpop.f32.mrb[170].mxu0  ;;  %8060 = vmatprep.subr.bf16.mxu0 %v7406_v24 }
 0x679   : > { %v6992_v6 = vadd.f32 %v13035_v60, %v6520_v38  ;;  %v7021_v15 = vadd.f32 %v13032_v53, %v6449_v3  ;;  %v6522_v17 = vpop.f32.mrb[170].mxu1  ;;  %8101 = vmatprep.subr.bf16.mxu1 %v7408_v0  ;;  %v6451_v63 = vpop.f32.mrb[171].mxu0  ;;  %8061 = vmatpush1.bf16.msra.mxu0 %v7405_v30  ;;  %v7245_v41 = vmax.f32 %v6989_v56, 0.0 }
 0x67a   : > { %v7023_v46 = vadd.f32 %v13032_v53, %v6522_v17  ;;  %v7022_v31 = vadd.f32 %v13032_v53, %v6451_v63  ;;  %v6524_v7 = vpop.f32.mrb[171].mxu1  ;;  %8102 = vmatpush1.bf16.msra.mxu1 %v7407_v28  ;;  %v7247_v43 = vmax.f32 %v6991_v45, 0.0  ;;  %v7246_v32 = vmax.f32 %v6990_v33, 0.0 }
 0x67b   : > { %v7277_v14 = vmax.f32 %v7021_v15, 0.0  ;;  %v7024_v55 = vadd.f32 %v13032_v53, %v6524_v7  ;;  %v7248_v10 = vmax.f32 %v6992_v6, 0.0 }
 0x67c   : > { %v7279_v8 = vmax.f32 %v7023_v46, 0.0  ;;  %v7278_v60 = vmax.f32 %v7022_v31, 0.0 }
 0x67d   : > { %v7437_v1 = vpack.c.bf16 %v7277_v14, %v7245_v41  ;;  %v7280_v19 = vmax.f32 %v7024_v55, 0.0 }
 0x67e   : > { %v7439_v50 = vpack.c.bf16 %v7279_v8, %v7247_v43  ;;  %v7438_v20 = vpack.c.bf16 %v7278_v60, %v7246_v32  ;;  %v6455_v30 = vpop.f32.mrb[172].mxu0  ;;  %v13346_v32 = vpop.permute.xlu1 %7477 }
 0x67f   : > { %v7440_v49 = vpack.c.bf16 %v7280_v19, %v7248_v10  ;;  %v7053_v24 = vadd.f32 %v13054_v37, %v6455_v30  ;;  %v6528_v18 = vpop.f32.mrb[172].mxu1  ;;  %v6457_v0 = vpop.f32.mrb[173].mxu0 }
 0x680   : > { %v7055_v28 = vadd.f32 %v13054_v37, %v6528_v18  ;;  %v7054_v56 = vadd.f32 %v13054_v37, %v6457_v0  ;;  %v6530_v53 = vpop.f32.mrb[173].mxu1  ;;  %v6459_v44 = vpop.f32.mrb[174].mxu0  ;;  %8062 = vmatprep.subr.bf16.mxu0 %v7438_v20 }
 0x681   : > { %v7056_v11 = vadd.f32 %v13054_v37, %v6530_v53  ;;  %v7085_v45 = vadd.f32 %v13051_v36, %v6459_v44  ;;  %v6532_v33 = vpop.f32.mrb[174].mxu1  ;;  %8103 = vmatprep.subr.bf16.mxu1 %v7440_v49  ;;  %v6461_v38 = vpop.f32.mrb[175].mxu0  ;;  %8063 = vmatpush1.bf16.msra.mxu0 %v7437_v1  ;;  %v7309_v17 = vmax.f32 %v7053_v24, 0.0 }
 0x682   : > { %v7087_v3 = vadd.f32 %v13051_v36, %v6532_v33  ;;  %v7086_v6 = vadd.f32 %v13051_v36, %v6461_v38  ;;  %v6534_v15 = vpop.f32.mrb[175].mxu1  ;;  %8104 = vmatpush1.bf16.msra.mxu1 %v7439_v50  ;;  %v7311_v31 = vmax.f32 %v7055_v28, 0.0  ;;  %v7310_v7 = vmax.f32 %v7054_v56, 0.0 }
 0x683   : > { %v7341_v63 = vmax.f32 %v7085_v45, 0.0  ;;  %v7088_v46 = vadd.f32 %v13051_v36, %v6534_v15  ;;  %v7312_v14 = vmax.f32 %v7056_v11, 0.0 }
 0x684   : > { %v7343_v41 = vmax.f32 %v7087_v3, 0.0  ;;  %v7342_v37 = vmax.f32 %v7086_v6, 0.0 }
 0x685   : > { %v7469_v55 = vpack.c.bf16 %v7341_v63, %v7309_v17  ;;  %v7344_v43 = vmax.f32 %v7088_v46, 0.0 }
 0x686   : > { %v7471_v8 = vpack.c.bf16 %v7343_v41, %v7311_v31  ;;  %v7470_v60 = vpack.c.bf16 %v7342_v37, %v7310_v7  ;;  %v7518_v10 = vpop.f32.mrb[240].mxu0 }
 0x687   : > { %v7472_v1 = vpack.c.bf16 %v7344_v43, %v7312_v14  ;;  %v7519_v19 = vadd.f32 %v7518_v10, %v13346_v32  ;;  %v7559_v50 = vpop.f32.mrb[240].mxu1  ;;  %v7520_v20 = vpop.f32.mrb[241].mxu0  ;;  %v8332_v14 = vrot.slane %v12636_v4, 1  ;;  %v8333_v43 = vrot.slane %v12646_v51, 1 }
 0x688   : > { %v7560_v30 = vadd.f32 %v7559_v50, %v13346_v32  ;;  %v7521_v36 = vadd.f32 %v7520_v20, %v13346_v32  ;;  %v7561_v49 = vpop.f32.mrb[241].mxu1  ;;  %8064 = vmatprep.subr.bf16.mxu0 %v7470_v60  ;;  %v7522_v24 = vpop.f32.mrb[242].mxu0 }
 0x689   : > { %v8140_v18 = vsub.f32 0.0, %v7519_v19  ;;  %v7562_v0 = vadd.f32 %v7561_v49, %v13346_v32  ;;  %8105 = vmatprep.subr.bf16.mxu1 %v7472_v1  ;;  %8065 = vmatpush1.bf16.msra.mxu0 %v7469_v55  ;;  %v7563_v28 = vpop.f32.mrb[242].mxu1  ;;  %v7523_v56 = vpop.f32.mrb[243].mxu0  ;;  %v8335_v1 = vrot.slane %v12650_v9, 1 }
 0x68a   : > { %v8142_v53 = vsub.f32 0.0, %v7560_v30  ;;  %v8141_v44 = vsub.f32 0.0, %v7521_v36  ;;  %8106 = vmatpush1.bf16.msra.mxu1 %v7471_v8  ;;  %v7564_v11 = vpop.f32.mrb[243].mxu1  ;;  %v10231_v36 = vmov 1966171168   ;;  %v8396_v56 = vsub.f32 %v12636_v4, %v8332_v14 }
 0x68b   : > { %v8172_v45 = vmul.f32 1.442695, %v8140_v18  ;;  %v8143_v33 = vsub.f32 0.0, %v7562_v0  ;;  %v8625_v49 = vunpack.c.l.s4 %v10231_v36 }
 0x68c   : > { %v8176_v38 = vmul.f32 1.442695, %v8142_v53  ;;  %v8174_v3 = vmul.f32 1.442695, %v8141_v44  ;;  %9311 = vmatmul.mubr.msk.bf16.vlgmr.msra.gmra.mrb[12].mxu0 %vm7480_vm4, %v13238_v12  ;;  %v8627_v53 = vlaneseq }
 0x68d   : > { %9793 = vpow2.f32 %v8172_v45  ;;  %v8178_v6 = vmul.f32 1.442695, %v8143_v33  ;;  %9312 = vmatmul.mubr.msk.bf16.vlgmr.msra.gmra.mrb[12].mxu1 %vm7480_vm4, %v13238_v12  ;;  %v8334_v12 = vrot.slane %v12640_v25, 1  ;;  %v8626_v14 = vunpack.c.0.s8 %v8625_v49 }
 0x68e   : > { %9795 = vpow2.f32 %v8176_v38 }
 0x68f   : > { %9797 = vpow2.f32 %v8174_v3  ;;  %v8398_v38 = vsub.f32 %v12640_v25, %v8334_v12  ;;  %v8397_v3 = vsub.f32 %v12646_v51, %v8333_v43 }
 0x690   : > { %9799 = vpow2.f32 %v8178_v6 }
 0x697   : > { %v9794_v15 = vpop.eup %9793 }
 0x698   : > { %v9796_v17 = vpop.eup %9795  ;;  %v8236_v63 = vadd.f32 1.0, %v9794_v15 }
 0x699   : > { %v9798_v46 = vpop.eup %9797  ;;  %v8238_v31 = vadd.f32 1.0, %v9796_v17 }
 0x69a   : > { %v9800_v7 = vpop.eup %9799  ;;  %9801 = vrcp.f32 %v8236_v63  ;;  %v8237_v41 = vadd.f32 1.0, %v9798_v46  ;;  %v8399_v46 = vsub.f32 %v12650_v9, %v8335_v1 }
 0x69b   : > { %9803 = vrcp.f32 %v8238_v31  ;;  %v8239_v37 = vadd.f32 1.0, %v9800_v7 }
 0x69c   : > { %9805 = vrcp.f32 %v8237_v41 }
 0x69d   : > { %9807 = vrcp.f32 %v8239_v37 }
 0x69f   : > { %v7600_v55 = vpop.f32.mrb[244].mxu0 }
 0x6a0   : > { %v7601_v8 = vadd.f32 %v7600_v55, %v13346_v32  ;;  %v7641_v60 = vpop.f32.mrb[244].mxu1  ;;  %v7602_v10 = vpop.f32.mrb[245].mxu0 }
 0x6a1   : > { %v7642_v19 = vadd.f32 %v7641_v60, %v13346_v32  ;;  %v7603_v50 = vadd.f32 %v7602_v10, %v13346_v32  ;;  %v7643_v20 = vpop.f32.mrb[245].mxu1  ;;  %v7604_v30 = vpop.f32.mrb[246].mxu0 }
 0x6a2   : > { %v8144_v24 = vsub.f32 0.0, %v7601_v8  ;;  %v7644_v18 = vadd.f32 %v7643_v20, %v13346_v32  ;;  %v7645_v0 = vpop.f32.mrb[246].mxu1  ;;  %v7605_v28 = vpop.f32.mrb[247].mxu0 }
 0x6a3   : > { %v8146_v44 = vsub.f32 0.0, %v7642_v19  ;;  %v8145_v11 = vsub.f32 0.0, %v7603_v50  ;;  %v7646_v45 = vpop.f32.mrb[247].mxu1  ;;  %v8628_v19 = vshrl.u32 %v8627_v53, 7 }
 0x6a4   : > { %v9802_v33 = vpop.eup %9801  ;;  %v8180_v6 = vmul.f32 1.442695, %v8144_v24  ;;  %v8147_v15 = vsub.f32 0.0, %v7644_v18 }
 0x6a5   : > { %v9804_v17 = vpop.eup %9803  ;;  %v8428_v63 = vmul.f32 %v9802_v33, %v8396_v56  ;;  %v8184_v31 = vmul.f32 1.442695, %v8146_v44  ;;  %v8182_v7 = vmul.f32 1.442695, %v8145_v11  ;;  %v13371_v49 = vsub.s32 %v8626_v14, %v8628_v19 }
 0x6a6   : > { %v9806_v41 = vpop.eup %9805  ;;  %v8430_v37 = vmul.f32 %v9804_v17, %v8398_v38  ;;  %9809 = vpow2.f32 %v8180_v6  ;;  %v8186_v55 = vmul.f32 1.442695, %v8147_v15  ;;  %v8336_v38 = vrot.slane %v12690_v23, 1 }
 0x6a7   : > { %v9808_v8 = vpop.eup %9807  ;;  %v8492_v60 = vrot.slane %v8428_v63, 7  ;;  %v8429_v10 = vmul.f32 %v9806_v41, %v8397_v3  ;;  %9811 = vpow2.f32 %v8184_v31  ;;  %v8338_v3 = vrot.slane %v12692_v26, 1 }
 0x6a8   : > { %v8494_v12 = vrot.slane %v8430_v37, 7  ;;  %v8431_v43 = vmul.f32 %v9808_v8, %v8399_v46  ;;  %9813 = vpow2.f32 %v8182_v7  ;;  %v8337_v6 = vrot.slane %v12698_v29, 1 }
 0x6a9   : > { %v8556_v50 = vadd.f32 %v12636_v4, %v8492_v60  ;;  %v8493_v20 = vrot.slane %v8429_v10, 7  ;;  %9815 = vpow2.f32 %v8186_v55  ;;  %v8339_v15 = vrot.slane %v12705_v16, 1 }
 0x6aa   : > { %v8558_v1 = vadd.f32 %v12640_v25, %v8494_v12  ;;  %v8495_v30 = vrot.slane %v8431_v43, 7  ;;  %v8400_v17 = vsub.f32 %v12690_v23, %v8336_v38  ;;  %v8402_v46 = vsub.f32 %v12692_v26, %v8338_v3 }
 0x6ab   : > { %v8557_v36 = vadd.f32 %v12646_v51, %v8493_v20  ;;  %v8401_v41 = vsub.f32 %v12698_v29, %v8337_v6  ;;  %v8403_v55 = vsub.f32 %v12705_v16, %v8339_v15 }
 0x6ac   : > { %v8559_v24 = vadd.f32 %v12650_v9, %v8495_v30 }
 0x6ad   : > { %v8620_v18 = vcombine.low %v8556_v50, %v8557_v36 }
 0x6ae   : > { %v8621_v0 = vcombine.low %v8558_v1, %v8559_v24 }
 0x6af   : > { %v13375_v28 = vrot.slane %v8620_v18, %v13371_v49 }
 0x6b0   : > { %v9810_v56 = vpop.eup %9809  ;;  %v13378_v53 = vrot.slane %v8621_v0, %v13371_v49 }
 0x6b1   : > { %v9812_v4 = vpop.eup %9811  ;;  %v8240_v44 = vadd.f32 1.0, %v9810_v56 }
 0x6b2   : > { %v9814_v11 = vpop.eup %9813  ;;  %v8242_v25 = vadd.f32 1.0, %v9812_v4  ;;  %v8652_v51 = vcombine.high %v13375_v28, %v13378_v53 }
 0x6b3   : > { %v9816_v45 = vpop.eup %9815  ;;  %9817 = vrcp.f32 %v8240_v44  ;;  %v8241_v33 = vadd.f32 1.0, %v9814_v11 }
 0x6b4   : > { %9819 = vrcp.f32 %v8242_v25  ;;  %v8243_v9 = vadd.f32 1.0, %v9816_v45 }
 0x6b5   : > { %9821 = vrcp.f32 %v8241_v33 }
 0x6b6   : > { %9823 = vrcp.f32 %v8243_v9 }
 0x6bd   : > { %v9818_v63 = vpop.eup %9817 }
 0x6be   : > { %v9820_v31 = vpop.eup %9819  ;;  %v8432_v7 = vmul.f32 %v9818_v63, %v8400_v17 }
 0x6bf   : > { %v9822_v37 = vpop.eup %9821  ;;  %v8434_v14 = vmul.f32 %v9820_v31, %v8402_v46  ;;  %v7682_v8 = vpop.f32.mrb[248].mxu0 }
 0x6c0   : > { %v9824_v60 = vpop.eup %9823  ;;  %v8496_v10 = vrot.slane %v8432_v7, 7  ;;  %v8433_v19 = vmul.f32 %v9822_v37, %v8401_v41  ;;  %v7683_v12 = vadd.f32 %v7682_v8, %v13346_v32  ;;  %v7723_v43 = vpop.f32.mrb[248].mxu1 }
 0x6c1   : > { %v7684_v50 = vpop.f32.mrb[249].mxu0  ;;  %v8498_v20 = vrot.slane %v8434_v14, 7  ;;  %v8435_v1 = vmul.f32 %v9824_v60, %v8403_v55  ;;  %v7724_v30 = vadd.f32 %v7723_v43, %v13346_v32  ;;  %v7725_v24 = vpop.f32.mrb[249].mxu1 }
 0x6c2   : > { %v7685_v36 = vadd.f32 %v7684_v50, %v13346_v32  ;;  %v7686_v18 = vpop.f32.mrb[250].mxu0  ;;  %v8560_v0 = vadd.f32 %v12690_v23, %v8496_v10  ;;  %v8497_v28 = vrot.slane %v8433_v19, 7  ;;  %v8148_v56 = vsub.f32 0.0, %v7683_v12  ;;  %v7727_v4 = vpop.f32.mrb[250].mxu1 }
 0x6c3   : > { %v7726_v53 = vadd.f32 %v7725_v24, %v13346_v32  ;;  %v7687_v44 = vpop.f32.mrb[251].mxu0  ;;  %v8562_v11 = vadd.f32 %v12692_v26, %v8498_v20  ;;  %v8499_v25 = vrot.slane %v8435_v1, 7  ;;  %v8150_v45 = vsub.f32 0.0, %v7724_v30  ;;  %v7728_v9 = vpop.f32.mrb[251].mxu1 }
 0x6c4   : > { %v8149_v33 = vsub.f32 0.0, %v7685_v36  ;;  %v8561_v38 = vadd.f32 %v12698_v29, %v8497_v28  ;;  %v8188_v3 = vmul.f32 1.442695, %v8148_v56  ;;  %v8660_v29 = vrot.slane %v8652_v51, %v13371_v49 }
 0x6c5   : > { %v8151_v6 = vsub.f32 0.0, %v7726_v53  ;;  %v8563_v15 = vadd.f32 %v12705_v16, %v8499_v25  ;;  %v8192_v23 = vmul.f32 1.442695, %v8150_v45  ;;  %v8340_v51 = vrot.slane %v12738_v61, 1 }
 0x6c6   : > { %v8190_v17 = vmul.f32 1.442695, %v8149_v33  ;;  %v8622_v63 = vcombine.low %v8560_v0, %v8561_v38  ;;  %9825 = vpow2.f32 %v8188_v3  ;;  %v8342_v50 = vrot.slane %v12740_v58, 1 }
 0x6c7   : > { %v8194_v46 = vmul.f32 1.442695, %v8151_v6  ;;  %v8623_v31 = vcombine.low %v8562_v11, %v8563_v15  ;;  %9827 = vpow2.f32 %v8192_v23  ;;  %v8341_v20 = vrot.slane %v12746_v40, 1 }
 0x6c8   : > { %v8644_v26 = vrot.slane %v8622_v63, %v13371_v49  ;;  %9829 = vpow2.f32 %v8190_v17  ;;  %v8343_v1 = vrot.slane %v12753_v57, 1  ;;  %v8404_v30 = vsub.f32 %v12738_v61, %v8340_v51 }
 0x6c9   : > { %v8651_v7 = vrot.slane %v8623_v31, %v13371_v49  ;;  %9831 = vpow2.f32 %v8194_v46  ;;  %v8406_v24 = vsub.f32 %v12740_v58, %v8342_v50  ;;  %v8405_v28 = vsub.f32 %v12746_v40, %v8341_v20 }
 0x6ca   : > { %v8407_v4 = vsub.f32 %v12753_v57, %v8343_v1 }
 0x6cb   : > { %v8653_v41 = vcombine.high %v8644_v26, %v8651_v7 }
 0x6cd   : > { %v8667_v37 = vrot.slane %v8653_v41, %v13371_v49 }
 0x6cf   : > { %v8668_v16 = vcombine.low %v8660_v29, %v8667_v37 }
 0x6d0   : > { %v9826_v14 = vpop.eup %9825 }
 0x6d1   : > { %v9828_v55 = vpop.eup %9827  ;;  %v8244_v8 = vadd.f32 1.0, %v9826_v14  ;;  %8820 = vst [vmem:[%s13403_s29] sm:$0xff] %v8668_v16 }
 0x6d2   : > { %v9830_v60 = vpop.eup %9829  ;;  %v8246_v10 = vadd.f32 1.0, %v9828_v55 }
 0x6d3   : > { %v9832_v19 = vpop.eup %9831  ;;  %9833 = vrcp.f32 %v8244_v8  ;;  %v8245_v12 = vadd.f32 1.0, %v9830_v60 }
 0x6d4   : > { %9835 = vrcp.f32 %v8246_v10  ;;  %v8247_v43 = vadd.f32 1.0, %v9832_v19 }
 0x6d5   : > { %9837 = vrcp.f32 %v8245_v12 }
 0x6d6   : > { %9839 = vrcp.f32 %v8247_v43 }
 0x6dd   : > { %v9834_v36 = vpop.eup %9833 }
 0x6de   : > { %v9836_v18 = vpop.eup %9835  ;;  %v8436_v0 = vmul.f32 %v9834_v36, %v8404_v30 }
 0x6df   : > { %v9838_v56 = vpop.eup %9837  ;;  %v8438_v53 = vmul.f32 %v9836_v18, %v8406_v24  ;;  %v7764_v44 = vpop.f32.mrb[252].mxu0 }
 0x6e0   : > { %v9840_v11 = vpop.eup %9839  ;;  %v8500_v25 = vrot.slane %v8436_v0, 7  ;;  %v8437_v45 = vmul.f32 %v9838_v56, %v8405_v28  ;;  %v7765_v33 = vadd.f32 %v7764_v44, %v13346_v32  ;;  %v7805_v9 = vpop.f32.mrb[252].mxu1  ;;  %v8345_v44 = vrot.slane %v12794_v42, 1 }
 0x6e1   : > { %v7766_v38 = vpop.f32.mrb[253].mxu0  ;;  %v8502_v3 = vrot.slane %v8438_v53, 7  ;;  %v8439_v6 = vmul.f32 %v9840_v11, %v8407_v4  ;;  %v7806_v15 = vadd.f32 %v7805_v9, %v13346_v32  ;;  %v7807_v17 = vpop.f32.mrb[253].mxu1  ;;  %v8344_v53 = vrot.slane %v12786_v22, 1 }
 0x6e2   : > { %v7767_v23 = vadd.f32 %v7766_v38, %v13346_v32  ;;  %v7768_v63 = vpop.f32.mrb[254].mxu0  ;;  %v8564_v46 = vadd.f32 %v12738_v61, %v8500_v25  ;;  %v8501_v31 = vrot.slane %v8437_v45, 7  ;;  %v8152_v26 = vsub.f32 0.0, %v7765_v33  ;;  %v7809_v41 = vpop.f32.mrb[254].mxu1 }
 0x6e3   : > { %v7808_v7 = vadd.f32 %v7807_v17, %v13346_v32  ;;  %v7769_v29 = vpop.f32.mrb[255].mxu0  ;;  %v8566_v37 = vadd.f32 %v12740_v58, %v8502_v3  ;;  %v8503_v16 = vrot.slane %v8439_v6, 7  ;;  %v8154_v14 = vsub.f32 0.0, %v7806_v15  ;;  %v7810_v8 = vpop.f32.mrb[255].mxu1 }
 0x6e4   : > { %v8153_v55 = vsub.f32 0.0, %v7767_v23  ;;  %v8565_v60 = vadd.f32 %v12746_v40, %v8501_v31  ;;  %v8196_v10 = vmul.f32 1.442695, %v8152_v26  ;;  %v8346_v4 = vrot.slane %v12788_v5, 1 }
 0x6e5   : > { %v8155_v19 = vsub.f32 0.0, %v7808_v7  ;;  %v8567_v12 = vadd.f32 %v12753_v57, %v8503_v16  ;;  %v8200_v43 = vmul.f32 1.442695, %v8154_v14  ;;  %v8347_v11 = vrot.slane %v12801_v52, 1 }
 0x6e6   : > { %v8198_v61 = vmul.f32 1.442695, %v8153_v55  ;;  %v8669_v51 = vcombine.low %v8564_v46, %v8565_v60  ;;  %9841 = vpow2.f32 %v8196_v10  ;;  %v8408_v25 = vsub.f32 %v12786_v22, %v8344_v53 }
 0x6e7   : > { %v8202_v50 = vmul.f32 1.442695, %v8155_v19  ;;  %v8670_v20 = vcombine.low %v8566_v37, %v8567_v12  ;;  %9843 = vpow2.f32 %v8200_v43  ;;  %v8410_v33 = vsub.f32 %v12788_v5, %v8346_v4 }
 0x6e8   : > { %v13423_v1 = vrot.slane %v8669_v51, %v13371_v49  ;;  %9845 = vpow2.f32 %v8198_v61  ;;  %v8409_v3 = vsub.f32 %v12794_v42, %v8345_v44  ;;  %v8411_v23 = vsub.f32 %v12801_v52, %v8347_v11 }
 0x6e9   : > { %v13426_v58 = vrot.slane %v8670_v20, %v13371_v49  ;;  %9847 = vpow2.f32 %v8202_v50 }
 0x6eb   : > { %v8701_v40 = vcombine.high %v13423_v1, %v13426_v58  ;;  %v8350_v1 = vrot.slane %v12836_v48, 1  ;;  %v8349_v58 = vrot.slane %v12842_v21, 1 }
 0x6f0   : > { %v9842_v30 = vpop.eup %9841 }
 0x6f1   : > { %v9844_v57 = vpop.eup %9843  ;;  %v8248_v36 = vadd.f32 1.0, %v9842_v30 }
 0x6f2   : > { %v9846_v24 = vpop.eup %9845  ;;  %v8250_v18 = vadd.f32 1.0, %v9844_v57 }
 0x6f3   : > { %v9848_v0 = vpop.eup %9847  ;;  %9849 = vrcp.f32 %v8248_v36  ;;  %v8249_v28 = vadd.f32 1.0, %v9846_v24 }
 0x6f4   : > { %9851 = vrcp.f32 %v8250_v18  ;;  %v8251_v56 = vadd.f32 1.0, %v9848_v0 }
 0x6f5   : > { %9853 = vrcp.f32 %v8249_v28 }
 0x6f6   : > { %9855 = vrcp.f32 %v8251_v56 }
 0x6fd   : > { %v9850_v45 = vpop.eup %9849 }
 0x6fe   : > { %v9852_v9 = vpop.eup %9851  ;;  %v8440_v38 = vmul.f32 %v9850_v45, %v8408_v25 }
 0x6ff   : > { %v9854_v6 = vpop.eup %9853  ;;  %v8442_v15 = vmul.f32 %v9852_v9, %v8410_v33  ;;  %v7846_v17 = vpop.f32.mrb[0].mxu0 }
 0x700   : > { %v9856_v63 = vpop.eup %9855  ;;  %v8504_v46 = vrot.slane %v8440_v38, 7  ;;  %v8441_v31 = vmul.f32 %v9854_v6, %v8409_v3  ;;  %v7847_v26 = vadd.f32 %v7846_v17, %v13346_v32  ;;  %v7887_v7 = vpop.f32.mrb[0].mxu1  ;;  %v8348_v17 = vrot.slane %v12834_v39, 1 }
 0x701   : > { %v7848_v41 = vpop.f32.mrb[1].mxu0  ;;  %v8506_v29 = vrot.slane %v8442_v15, 7  ;;  %v8443_v37 = vmul.f32 %v9856_v63, %v8411_v23  ;;  %v7888_v16 = vadd.f32 %v7887_v7, %v13346_v32  ;;  %v7889_v55 = vpop.f32.mrb[1].mxu1 }
 0x702   : > { %v7849_v14 = vadd.f32 %v7848_v41, %v13346_v32  ;;  %v7850_v8 = vpop.f32.mrb[2].mxu0  ;;  %v8568_v60 = vadd.f32 %v12786_v22, %v8504_v46  ;;  %v8505_v10 = vrot.slane %v8441_v31, 7  ;;  %v8156_v19 = vsub.f32 0.0, %v7847_v26  ;;  %v7891_v43 = vpop.f32.mrb[2].mxu1 }
 0x703   : > { %v7890_v12 = vadd.f32 %v7889_v55, %v13346_v32  ;;  %v7851_v61 = vpop.f32.mrb[3].mxu0  ;;  %v8570_v51 = vadd.f32 %v12788_v5, %v8506_v29  ;;  %v8507_v50 = vrot.slane %v8443_v37, 7  ;;  %v8158_v20 = vsub.f32 0.0, %v7888_v16  ;;  %v7892_v57 = vpop.f32.mrb[3].mxu1 }
 0x704   : > { %v8157_v30 = vsub.f32 0.0, %v7849_v14  ;;  %v8569_v36 = vadd.f32 %v12794_v42, %v8505_v10  ;;  %v8204_v24 = vmul.f32 1.442695, %v8156_v19  ;;  %v8709_v42 = vrot.slane %v8701_v40, %v13371_v49 }
 0x705   : > { %v8159_v18 = vsub.f32 0.0, %v7890_v12  ;;  %v8571_v0 = vadd.f32 %v12801_v52, %v8507_v50  ;;  %v8208_v28 = vmul.f32 1.442695, %v8158_v20  ;;  %v8351_v40 = vrot.slane %v12849_v62, 1 }
 0x706   : > { %v8206_v22 = vmul.f32 1.442695, %v8157_v30  ;;  %v8671_v56 = vcombine.low %v8568_v60, %v8569_v36  ;;  %9857 = vpow2.f32 %v8204_v24  ;;  %v8412_v63 = vsub.f32 %v12834_v39, %v8348_v17 }
 0x707   : > { %v8210_v53 = vmul.f32 1.442695, %v8159_v18  ;;  %v8672_v4 = vcombine.low %v8570_v51, %v8571_v0  ;;  %9859 = vpow2.f32 %v8208_v28  ;;  %v8414_v31 = vsub.f32 %v12836_v48, %v8350_v1 }
 0x708   : > { %v8693_v5 = vrot.slane %v8671_v56, %v13371_v49  ;;  %9861 = vpow2.f32 %v8206_v22  ;;  %v8413_v41 = vsub.f32 %v12842_v21, %v8349_v58  ;;  %v8415_v16 = vsub.f32 %v12849_v62, %v8351_v40 }
 0x709   : > { %v8700_v44 = vrot.slane %v8672_v4, %v13371_v49  ;;  %9863 = vpow2.f32 %v8210_v53  ;;  %v8352_v40 = vrot.slane %v12882_v59, 1 }
 0x70b   : > { %v8702_v11 = vcombine.high %v8693_v5, %v8700_v44 }
 0x70d   : > { %v8716_v52 = vrot.slane %v8702_v11, %v13371_v49 }
 0x70f   : > { %v8717_v25 = vcombine.low %v8709_v42, %v8716_v52 }
 0x710   : > { %v9858_v45 = vpop.eup %9857 }
 0x711   : > { %v9860_v33 = vpop.eup %9859  ;;  %v8252_v9 = vadd.f32 1.0, %v9858_v45  ;;  %8821 = vst [vmem:[%s13403_s29 + $0x8] sm:$0xff] %v8717_v25 }
 0x712   : > { %v9862_v38 = vpop.eup %9861  ;;  %v8254_v3 = vadd.f32 1.0, %v9860_v33 }
 0x713   : > { %v9864_v6 = vpop.eup %9863  ;;  %9865 = vrcp.f32 %v8252_v9  ;;  %v8253_v15 = vadd.f32 1.0, %v9862_v38 }
 0x714   : > { %9867 = vrcp.f32 %v8254_v3  ;;  %v8255_v23 = vadd.f32 1.0, %v9864_v6 }
 0x715   : > { %9869 = vrcp.f32 %v8253_v15 }
 0x716   : > { %9871 = vrcp.f32 %v8255_v23 }
 0x71d   : > { %v9866_v46 = vpop.eup %9865 }
 0x71e   : > { %v9868_v26 = vpop.eup %9867  ;;  %v8444_v7 = vmul.f32 %v9866_v46, %v8412_v63  ;;  %v8354_v63 = vrot.slane %v12884_v2, 1  ;;  %v8353_v46 = vrot.slane %v12890_v27, 1 }
 0x71f   : > { %v9870_v29 = vpop.eup %9869  ;;  %v8446_v37 = vmul.f32 %v9868_v26, %v8414_v31  ;;  %v7928_v14 = vpop.f32.mrb[4].mxu0  ;;  %v8355_v31 = vrot.slane %v12897_v47, 1  ;;  %v8416_v26 = vsub.f32 %v12882_v59, %v8352_v40 }
 0x720   : > { %v9872_v55 = vpop.eup %9871  ;;  %v8508_v8 = vrot.slane %v8444_v7, 7  ;;  %v8445_v60 = vmul.f32 %v9870_v29, %v8413_v41  ;;  %v7929_v10 = vadd.f32 %v7928_v14, %v13346_v32  ;;  %v7969_v19 = vpop.f32.mrb[4].mxu1  ;;  %v8418_v41 = vsub.f32 %v12884_v2, %v8354_v63 }
 0x721   : > { %v7930_v12 = vpop.f32.mrb[5].mxu0  ;;  %v8510_v43 = vrot.slane %v8446_v37, 7  ;;  %v8447_v61 = vmul.f32 %v9872_v55, %v8415_v16  ;;  %v7970_v51 = vadd.f32 %v7969_v19, %v13346_v32  ;;  %v7971_v20 = vpop.f32.mrb[5].mxu1  ;;  %v8417_v16 = vsub.f32 %v12890_v27, %v8353_v46 }
 0x722   : > { %v7931_v50 = vadd.f32 %v7930_v12, %v13346_v32  ;;  %v7932_v30 = vpop.f32.mrb[6].mxu0  ;;  %v8572_v57 = vadd.f32 %v12834_v39, %v8508_v8  ;;  %v8509_v36 = vrot.slane %v8445_v60, 7  ;;  %v8160_v24 = vsub.f32 0.0, %v7929_v10  ;;  %v7973_v0 = vpop.f32.mrb[6].mxu1 }
 0x723   : > { %v7972_v18 = vadd.f32 %v7971_v20, %v13346_v32  ;;  %v7933_v28 = vpop.f32.mrb[7].mxu0  ;;  %v8574_v22 = vadd.f32 %v12836_v48, %v8510_v43  ;;  %v8511_v56 = vrot.slane %v8447_v61, 7  ;;  %v8162_v53 = vsub.f32 0.0, %v7970_v51  ;;  %v7974_v5 = vpop.f32.mrb[7].mxu1 }
 0x724   : > { %v8161_v4 = vsub.f32 0.0, %v7931_v50  ;;  %v8573_v44 = vadd.f32 %v12842_v21, %v8509_v36  ;;  %v8212_v11 = vmul.f32 1.442695, %v8160_v24  ;;  %v8419_v8 = vsub.f32 %v12897_v47, %v8355_v31 }
 0x725   : > { %v8163_v42 = vsub.f32 0.0, %v7972_v18  ;;  %v8575_v52 = vadd.f32 %v12849_v62, %v8511_v56  ;;  %v8216_v25 = vmul.f32 1.442695, %v8162_v53 }
 0x726   : > { %v8214_v39 = vmul.f32 1.442695, %v8161_v4  ;;  %v8718_v45 = vcombine.low %v8572_v57, %v8573_v44  ;;  %9873 = vpow2.f32 %v8212_v11 }
 0x727   : > { %v8218_v33 = vmul.f32 1.442695, %v8163_v42  ;;  %v8719_v9 = vcombine.low %v8574_v22, %v8575_v52  ;;  %9875 = vpow2.f32 %v8216_v25 }
 0x728   : > { %v13471_v38 = vrot.slane %v8718_v45, %v13371_v49  ;;  %9877 = vpow2.f32 %v8214_v39 }
 0x729   : > { %v13474_v48 = vrot.slane %v8719_v9, %v13371_v49  ;;  %9879 = vpow2.f32 %v8218_v33 }
 0x72b   : > { %v8750_v21 = vcombine.high %v13471_v38, %v13474_v48  ;;  %v8358_v38 = vrot.slane %v12932_v34, 1  ;;  %v8357_v48 = vrot.slane %v12938_v13, 1 }
 0x730   : > { %v9874_v3 = vpop.eup %9873 }
 0x731   : > { %v9876_v62 = vpop.eup %9875  ;;  %v8256_v6 = vadd.f32 1.0, %v9874_v3 }
 0x732   : > { %v9878_v15 = vpop.eup %9877  ;;  %v8258_v23 = vadd.f32 1.0, %v9876_v62 }
 0x733   : > { %v9880_v17 = vpop.eup %9879  ;;  %9881 = vrcp.f32 %v8256_v6  ;;  %v8257_v1 = vadd.f32 1.0, %v9878_v15 }
 0x734   : > { %9883 = vrcp.f32 %v8258_v23  ;;  %v8259_v58 = vadd.f32 1.0, %v9880_v17 }
 0x735   : > { %9885 = vrcp.f32 %v8257_v1 }
 0x736   : > { %9887 = vrcp.f32 %v8259_v58 }
 0x73d   : > { %v9882_v7 = vpop.eup %9881 }
 0x73e   : > { %v9884_v29 = vpop.eup %9883  ;;  %v8448_v37 = vmul.f32 %v9882_v7, %v8416_v26  ;;  %v8356_v7 = vrot.slane %v12930_v54, 1 }
 0x73f   : > { %v9886_v14 = vpop.eup %9885  ;;  %v8450_v55 = vmul.f32 %v9884_v29, %v8418_v41  ;;  %v8010_v60 = vpop.f32.mrb[8].mxu0 }
 0x740   : > { %v9888_v10 = vpop.eup %9887  ;;  %v8512_v19 = vrot.slane %v8448_v37, 7  ;;  %v8449_v12 = vmul.f32 %v9886_v14, %v8417_v16  ;;  %v8011_v43 = vadd.f32 %v8010_v60, %v13346_v32  ;;  %v8051_v61 = vpop.f32.mrb[8].mxu1  ;;  %v8420_v41 = vsub.f32 %v12930_v54, %v8356_v7  ;;  %v13994_v7 = vld [vmem:[#allocation64_spill] sm:$0xff] }
 0x741   : > { %v8012_v51 = vpop.f32.mrb[9].mxu0  ;;  %v8514_v50 = vrot.slane %v8450_v55, 7  ;;  %v8451_v20 = vmul.f32 %v9888_v10, %v8419_v8  ;;  %v8052_v30 = vadd.f32 %v8051_v61, %v13346_v32  ;;  %v8053_v36 = vpop.f32.mrb[9].mxu1  ;;  %v8422_v37 = vsub.f32 %v12932_v34, %v8358_v38 }
 0x742   : > { %v8013_v57 = vadd.f32 %v8012_v51, %v13346_v32  ;;  %v8014_v24 = vpop.f32.mrb[10].mxu0  ;;  %v8576_v18 = vadd.f32 %v12882_v59, %v8512_v19  ;;  %v8513_v0 = vrot.slane %v8449_v12, 7  ;;  %v8164_v28 = vsub.f32 0.0, %v8011_v43  ;;  %v8055_v56 = vpop.f32.mrb[10].mxu1 }
 0x743   : > { %v8054_v22 = vadd.f32 %v8053_v36, %v13346_v32  ;;  %v8015_v53 = vpop.f32.mrb[11].mxu0  ;;  %v8578_v4 = vadd.f32 %v12884_v2, %v8514_v50  ;;  %v8515_v5 = vrot.slane %v8451_v20, 7  ;;  %v8166_v44 = vsub.f32 0.0, %v8052_v30  ;;  %v8056_v42 = vpop.f32.mrb[11].mxu1 }
 0x744   : > { %v8165_v11 = vsub.f32 0.0, %v8013_v57  ;;  %v8577_v52 = vadd.f32 %v12890_v27, %v8513_v0  ;;  %v8220_v25 = vmul.f32 1.442695, %v8164_v28  ;;  %v8758_v27 = vrot.slane %v8750_v21, %v13371_v49 }
 0x745   : > { %v8167_v39 = vsub.f32 0.0, %v8054_v22  ;;  %v8579_v45 = vadd.f32 %v12897_v47, %v8515_v5  ;;  %v8224_v33 = vmul.f32 1.442695, %v8166_v44  ;;  %v8359_v21 = vrot.slane %v12945_v35, 1 }
 0x746   : > { %v8222_v59 = vmul.f32 1.442695, %v8165_v11  ;;  %v8720_v9 = vcombine.low %v8576_v18, %v8577_v52  ;;  %9889 = vpow2.f32 %v8220_v25  ;;  %v8421_v55 = vsub.f32 %v12938_v13, %v8357_v48 }
 0x747   : > { %v8226_v3 = vmul.f32 1.442695, %v8167_v39  ;;  %v8721_v62 = vcombine.low %v8578_v4, %v8579_v45  ;;  %9891 = vpow2.f32 %v8224_v33  ;;  %v8423_v10 = vsub.f32 %v12945_v35, %v8359_v21 }
 0x748   : > { %v8742_v2 = vrot.slane %v8720_v9, %v13371_v49  ;;  %9893 = vpow2.f32 %v8222_v59  ;;  %v8363_v38 = vrot.slane %v13994_v7, 1 }
 0x749   : > { %v8749_v6 = vrot.slane %v8721_v62, %v13371_v49  ;;  %9895 = vpow2.f32 %v8226_v3 }
 0x74b   : > { %v8751_v15 = vcombine.high %v8742_v2, %v8749_v6 }
 0x74d   : > { %v8765_v47 = vrot.slane %v8751_v15, %v13371_v49 }
 0x74f   : > { %v8766_v23 = vcombine.low %v8758_v27, %v8765_v47 }
 0x750   : > { %v9890_v17 = vpop.eup %9889 }
 0x751   : > { %v9892_v1 = vpop.eup %9891  ;;  %v8260_v58 = vadd.f32 1.0, %v9890_v17  ;;  %8822 = vst [vmem:[%s13403_s29 + $0x10] sm:$0xff] %v8766_v23 }
 0x752   : > { %v9894_v40 = vpop.eup %9893  ;;  %v8262_v63 = vadd.f32 1.0, %v9892_v1 }
 0x753   : > { %v9896_v46 = vpop.eup %9895  ;;  %9897 = vrcp.f32 %v8260_v58  ;;  %v8261_v31 = vadd.f32 1.0, %v9894_v40  ;;  %v13991_v58 = vld [vmem:[#allocation65_spill] sm:$0xff] }
 0x754   : > { %9899 = vrcp.f32 %v8262_v63  ;;  %v8263_v26 = vadd.f32 1.0, %v9896_v46  ;;  %v8360_v40 = vrot.slane %v13991_v58, 1  ;;  %v13992_v63 = vld [vmem:[#allocation66_spill] sm:$0xff] }
 0x755   : > { %9901 = vrcp.f32 %v8261_v31  ;;  %v8362_v46 = vrot.slane %v13992_v63, 1  ;;  %v13993_v31 = vld [vmem:[#allocation63_spill] sm:$0xff] }
 0x756   : > { %9903 = vrcp.f32 %v8263_v26  ;;  %v8361_v26 = vrot.slane %v13993_v31, 1  ;;  %v8424_v48 = vsub.f32 %v13991_v58, %v8360_v40 }
 0x75d   : > { %v9898_v29 = vpop.eup %9897 }
 0x75e   : > { %v9900_v16 = vpop.eup %9899  ;;  %v8452_v14 = vmul.f32 %v9898_v29, %v8420_v41  ;;  %v8426_v41 = vsub.f32 %v13992_v63, %v8362_v46 }
 0x75f   : > { %v9902_v8 = vpop.eup %9901  ;;  %v8454_v60 = vmul.f32 %v9900_v16, %v8422_v37  ;;  %v8092_v19 = vpop.f32.mrb[12].mxu0  ;;  %v8425_v16 = vsub.f32 %v13993_v31, %v8361_v26 }
 0x760   : > { %v9904_v12 = vpop.eup %9903  ;;  %v8516_v43 = vrot.slane %v8452_v14, 7  ;;  %v8453_v61 = vmul.f32 %v9902_v8, %v8421_v55  ;;  %v8093_v51 = vadd.f32 %v8092_v19, %v13346_v32  ;;  %v8133_v50 = vpop.f32.mrb[12].mxu1  ;;  %v8427_v8 = vsub.f32 %v13994_v7, %v8363_v38 }
 0x761   : > { %v8094_v20 = vpop.f32.mrb[13].mxu0  ;;  %v8518_v30 = vrot.slane %v8454_v60, 7  ;;  %v8455_v57 = vmul.f32 %v9904_v12, %v8423_v10  ;;  %v8134_v36 = vadd.f32 %v8133_v50, %v13346_v32  ;;  %v8135_v18 = vpop.f32.mrb[13].mxu1 }
 0x762   : > { %v8095_v24 = vadd.f32 %v8094_v20, %v13346_v32  ;;  %v8096_v0 = vpop.f32.mrb[14].mxu0  ;;  %v8580_v28 = vadd.f32 %v12930_v54, %v8516_v43  ;;  %v8517_v22 = vrot.slane %v8453_v61, 7  ;;  %v8168_v56 = vsub.f32 0.0, %v8093_v51  ;;  %v8137_v4 = vpop.f32.mrb[14].mxu1 }
 0x763   : > { %v8136_v53 = vadd.f32 %v8135_v18, %v13346_v32  ;;  %v8097_v5 = vpop.f32.mrb[15].mxu0  ;;  %v8582_v44 = vadd.f32 %v12932_v34, %v8518_v30  ;;  %v8519_v11 = vrot.slane %v8455_v57, 7  ;;  %v8170_v42 = vsub.f32 0.0, %v8134_v36  ;;  %v8138_v25 = vpop.f32.mrb[15].mxu1 }
 0x764   : > { %v8169_v52 = vsub.f32 0.0, %v8095_v24  ;;  %v8581_v39 = vadd.f32 %v12938_v13, %v8517_v22  ;;  %v8228_v45 = vmul.f32 1.442695, %v8168_v56 }
 0x765   : > { %v8171_v33 = vsub.f32 0.0, %v8136_v53  ;;  %v8583_v59 = vadd.f32 %v12945_v35, %v8519_v11  ;;  %v8232_v9 = vmul.f32 1.442695, %v8170_v42 }
 0x766   : > { %v8230_v54 = vmul.f32 1.442695, %v8169_v52  ;;  %v8767_v3 = vcombine.low %v8580_v28, %v8581_v39  ;;  %9905 = vpow2.f32 %v8228_v45 }
 0x767   : > { %v8234_v62 = vmul.f32 1.442695, %v8171_v33  ;;  %v8768_v32 = vcombine.low %v8582_v44, %v8583_v59  ;;  %9907 = vpow2.f32 %v8232_v9 }
 0x768   : > { %v8777_v2 = vrot.slane %v8767_v3, %v13371_v49  ;;  %9909 = vpow2.f32 %v8230_v54 }
 0x769   : > { %v8784_v34 = vrot.slane %v8768_v32, %v13371_v49  ;;  %9911 = vpow2.f32 %v8234_v62 }
 0x76b   : > { %v8799_v6 = vcombine.high %v8777_v2, %v8784_v34 }
 0x76d   : > { %v8807_v22 = vrot.slane %v8799_v6, %v13371_v49 }
 0x770   : > { %v9906_v15 = vpop.eup %9905 }
 0x771   : > { %v9908_v13 = vpop.eup %9907  ;;  %v8264_v27 = vadd.f32 1.0, %v9906_v15 }
 0x772   : > { %v9910_v47 = vpop.eup %9909  ;;  %v8266_v23 = vadd.f32 1.0, %v9908_v13 }
 0x773   : > { %v9912_v35 = vpop.eup %9911  ;;  %9913 = vrcp.f32 %v8264_v27  ;;  %v8265_v17 = vadd.f32 1.0, %v9910_v47 }
 0x774   : > { %9915 = vrcp.f32 %v8266_v23  ;;  %v8267_v1 = vadd.f32 1.0, %v9912_v35 }
 0x775   : > { %9917 = vrcp.f32 %v8265_v17 }
 0x776   : > { %9919 = vrcp.f32 %v8267_v1 }
 0x77d   : > { %v9914_v21 = vpop.eup %9913 }
 0x77e   : > { %v9916_v29 = vpop.eup %9915  ;;  %v8456_v37 = vmul.f32 %v9914_v21, %v8424_v48 }
 0x77f   : > { %v9918_v14 = vpop.eup %9917  ;;  %v8458_v55 = vmul.f32 %v9916_v29, %v8426_v41 }
 0x780   : > { %v9920_v60 = vpop.eup %9919  ;;  %v8520_v10 = vrot.slane %v8456_v37, 7  ;;  %v8457_v19 = vmul.f32 %v9918_v14, %v8425_v16 }
 0x781   : > { %v8522_v12 = vrot.slane %v8458_v55, 7  ;;  %v8459_v43 = vmul.f32 %v9920_v60, %v8427_v8 }
 0x782   : > { %v8584_v61 = vadd.f32 %v13991_v58, %v8520_v10  ;;  %v8521_v51 = vrot.slane %v8457_v19, 7 }
 0x783   : > { %v8586_v50 = vadd.f32 %v13992_v63, %v8522_v12  ;;  %v8523_v20 = vrot.slane %v8459_v43, 7 }
 0x784   : > { %v8585_v30 = vadd.f32 %v13993_v31, %v8521_v51 }
 0x785   : > { %v8587_v57 = vadd.f32 %v13994_v7, %v8523_v20 }
 0x786   : > { %v8769_v36 = vcombine.low %v8584_v61, %v8585_v30 }
 0x787   : > { %v8770_v24 = vcombine.low %v8586_v50, %v8587_v57 }
 0x788   : > { %v8791_v18 = vrot.slane %v8769_v36, %v13371_v49 }
 0x789   : > { %v8798_v0 = vrot.slane %v8770_v24, %v13371_v49 }
 0x78b   : > { %v8800_v28 = vcombine.high %v8791_v18, %v8798_v0 }
 0x78d   : > { %v8814_v56 = vrot.slane %v8800_v28, %v13371_v49 }
 0x78f   : > { %v8815_v53 = vcombine.low %v8807_v22, %v8814_v56 }
 0x791   : > { %8823 = vst [vmem:[%s13403_s29 + $0x18] sm:$0xff] %v8815_v53 }
 0x792   : > { %10137 = shalt.err (!%p10134_p8)
}
 0x793   : > { %s10138_s1 = scalar_lea.hbm %s13541_s17, 512  ;;  %s10142_s12 = scalar_lea.hbm %s13597_s6, 1024 }
 0x794   : > { %p10139_p3 = scmp.ne.s32.totalorder %s13541_s17, %s10138_s1  ;;  %p10143_p0 = scmp.lt.u32.totalorder %s13541_s17, %s13597_s6 }
 0x795   : > { %p10144_p11 = scmp.lt.u32.totalorder %s10142_s12, %s10138_s1  ;;  %p10146_p6 = scmp.lt.u32.totalorder %s10138_s1, %s13541_s17 }
 0x796   : > { %p10140_p12 = pnand %p10139_p3, %p13995_p5 }
 0x797   : > { %p10145_p7 = por %p10144_p11, %p10143_p0 }
 0x798   : > { %p10141_p13 = pneg %p10140_p12 }
 0x799   : > { %p10147_p10 = por %p10146_p6, %p10145_p7 }
 0x79b   : > { %p10148_p1 = pnand %p10147_p10, %p10141_p13 }
 0x79d   : > { %10151 = shalt.err (!%p10148_p1)
}
 0x79e   : > { %9598 = dma.vmem_to_hbm [thread:$0]  (%p13995_p5), %s13543_s9, 512, %s13541_s17, %s8825_s7  }
 0x79f PF: > { %s8853_s15 = sand.u32 1, %s10198_s21   ;;  %p13996_p2 = scmp.ne.s32.totalorder %s13624_s30, 0 }
 0x7a0   : > { %p13997_p4 = scmp.ge.s32.totalorder %s10218_s26, 2  ;;  %s8854_s16 = scalar_lea.sflag [#allocation4], %s8853_s15 }
 0x7a2   : > { %p9621_p9 = pnand %p13997_p4, %p13996_p2 }
 0x7a4   : > { %10193 = dma.done.wait (!%p9621_p9), %s8854_s16, 512  }
 0x7a5   : > { %10195 = vsyncadd (!%p9621_p9), %s8854_s16, 4294966784  ;;  %s25_s26 = sadd.s32 1, %s10218_s26   ;;  %s13998_s21 = smov %s10202_s22 }
 0x7a6   : > { %p22_p8 = scmp.ge.s32.totalorder %s25_s26, 4   ;;  %s13999_s22 = smov %s10206_s23 }
 0x7a7   : > { %s14000_s23 = smov %s10463_s20  ;;  %s14001_s24 = smov %s10214_s25 }
 0x7a8   : > { %s14002_s25 = smov %s14004_s27  ;;  %24 = sbr.rel (!%p22_p8) target bundleno = 11 (0xb), region = 109 }
 0x7af   :  { %8859 = vsyncpa [#allocation3], 1 }
 0x7b0   :  { %8861 = vsyncpa [#allocation3 + $0x1], 1 }
 0x7b1   :  { %8862 = vsyncpa [#allocation6], 1 }
 0x7b2   :  { %8863 = vsyncpa [#allocation9], 1 }
 0x7b3   :  { %8864 = vsyncpa [#allocation12], 1 }
 0x7b4   :  { %8865 = vsyncpa [#allocation4], 1 }
 0x7b5   :  { %8867 = vsyncpa [#allocation4 + $0x1], 1 }

</bundles_post_ra>
